<compile_context>
chip_gen: v7x
topology: tpu7x:2x2x1
jax: 0.10.0
libtpu: 0.0.40
codegen_flags: <defaults>
</compile_context>

<pallas_src>
import numpy as np

import jax
import jax.numpy as jnp
from jax.experimental import pallas as pl
from jax.experimental.pallas import tpu as pltpu


# Stored-row geometry (shared "block grid" width 11 for every conv layer).
_W = 11       # stored row width (11x11 blocks of 8x8 input pixels)
_R0 = 144     # padded input rows   (121 valid)
_L1 = 128     # conv1 stored rows   (110 valid = 10*11)
_L2 = 112     # conv2 stored rows   ( 99 valid =  9*11)
_L3 = 80      # conv3 stored rows   ( 77 valid =  7*11)
_FC_K = 3200  # 49*64 = 3136 fc features zero-padded to 25*128
_H = 512
_H_TILE = 256
_OUT_PAD = 128
_VMEM_LIMIT = 32 * 1024 * 1024


# ----------------------------------------------------------------------------
# Kernel 1: fused conv1 + conv2 + conv3 for one image (weights VMEM-resident).
# ----------------------------------------------------------------------------
def _conv_stack_kernel(x_ref, w1_ref, b1_ref, w2_ref, b2_ref, w3_ref, b3_ref,
                       o_ref, h1_ref, h2_ref, h3_ref):
    # conv1: 8x8/stride-4 conv expressed as a 2x2 stride-1 conv over 8x8 pixel
    # blocks; its 128 output channels are the 2x2 phases of conv1's output
    # (i.e. the output lands directly in conv2's space-to-depth layout).
    acc = None
    for q in range(4):
        qi, qj = divmod(q, 2)
        s = qi * _W + qj
        part = jnp.dot(x_ref[0, s:s + _L1, :], w1_ref[q],
                       preferred_element_type=jnp.float32)
        acc = part if acc is None else acc + part
    h1_ref[...] = jnp.maximum(acc + b1_ref[...], 0.0).astype(jnp.bfloat16)

    # conv2: 4x4/stride-2 conv == 2x2 stride-1 conv on the phase-packed h1.
    acc = None
    for q in range(4):
        qi, qj = divmod(q, 2)
        s = qi * _W + qj
        part = jnp.dot(h1_ref[s:s + _L2, :], w2_ref[q],
                       preferred_element_type=jnp.float32)
        acc = part if acc is None else acc + part
    h2_ref[...] = jnp.maximum(acc + b2_ref[...], 0.0).astype(jnp.bfloat16)

    # conv3: 3x3 stride-1 conv.
    acc = None
    for q in range(9):
        qi, qj = divmod(q, 3)
        s = qi * _W + qj
        part = jnp.dot(h2_ref[s:s + _L3, :], w3_ref[q],
                       preferred_element_type=jnp.float32)
        acc = part if acc is None else acc + part
    h3_ref[...] = jnp.maximum(acc + b3_ref[...], 0.0).astype(jnp.bfloat16)

    # Compact the valid 7x7 spatial grid into rows (h*7 + w); row 49 is the
    # zero row that pads the fc contraction dim to 3200.
    for h in range(7):
        o_ref[0, h * 7:h * 7 + 7, :] = h3_ref[h * _W:h * _W + 7, :]
    o_ref[0, 49:50, :] = jnp.zeros((1, 64), jnp.bfloat16)


def conv_features(x_nchw, params):
    """x: (N, Cin, 84, 84) -> (N, 3200) bf16 flattened conv features."""
    n, c, hh, ww = x_nchw.shape
    assert (hh, ww) == (84, 84), "DDQN fc layer expects 84x84 inputs (64*7*7)"

    # One-time layout plumbing in XLA: NHWC, pad 84->88, space-to-depth(8),
    # flatten blocks row-major, pad rows 121 -> 144 with zeros.
    x = jnp.transpose(x_nchw, (0, 2, 3, 1)).astype(jnp.bfloat16)
    x = jnp.pad(x, ((0, 0), (0, 4), (0, 4), (0, 0)))
    x = x.reshape(n, 11, 8, 11, 8, c).transpose(0, 1, 3, 2, 4, 5)
    x = x.reshape(n, 121, 64 * c)
    x = jnp.pad(x, ((0, 0), (0, _R0 - 121), (0, 0)))

    cin_b = 64 * c
    out = pl.pallas_call(
        _conv_stack_kernel,
        grid=(n,),
        in_specs=[
            pl.BlockSpec((1, _R0, cin_b), lambda i: (i, 0, 0)),   # image blocks
            pl.BlockSpec((4, cin_b, 128), lambda i: (0, 0, 0)),   # w1 (resident)
            pl.BlockSpec((1, 128), lambda i: (0, 0)),
            pl.BlockSpec((4, 128, 64), lambda i: (0, 0, 0)),      # w2 (resident)
            pl.BlockSpec((1, 64), lambda i: (0, 0)),
            pl.BlockSpec((9, 64, 64), lambda i: (0, 0, 0)),       # w3 (resident)
            pl.BlockSpec((1, 64), lambda i: (0, 0)),
        ],
        out_specs=pl.BlockSpec((1, 50, 64), lambda i: (i, 0, 0)),
        out_shape=jax.ShapeDtypeStruct((n, 50, 64), jnp.bfloat16),
        scratch_shapes=[
            pltpu.VMEM((_L1, 128), jnp.bfloat16),
            pltpu.VMEM((_L2, 64), jnp.bfloat16),
            pltpu.VMEM((_L3, 64), jnp.bfloat16),
        ],
        compiler_params=pltpu.CompilerParams(
            dimension_semantics=("parallel",),       # one image per TC on v7x
            vmem_limit_bytes=_VMEM_LIMIT),
    )(x, params["w1b"], params["b1b"], params["w2b"], params["b2b"],
      params["w3b"], params["b3b"])
    return out.reshape(n, _FC_K)


# ----------------------------------------------------------------------------
# Kernel 2: fc(3200->512)+ReLU and out(512->2, padded to 128 lanes), hidden
# split into 2 blocks (parallel grid) producing per-block partial Q-values.
# ----------------------------------------------------------------------------
def _fc_out_kernel(x_ref, wfc_ref, bfc_ref, wout_ref, o_ref):
    h = jnp.dot(x_ref[...], wfc_ref[...], preferred_element_type=jnp.float32)
    h = jnp.maximum(h + bfc_ref[...], 0.0).astype(jnp.bfloat16)
    o_ref[0, :, :] = jnp.dot(h, wout_ref[...],
                             preferred_element_type=jnp.float32)


def q_head(feats, params):
    n = feats.shape[0]
    n_tiles = _H // _H_TILE
    partials = pl.pallas_call(
        _fc_out_kernel,
        grid=(n_tiles,),
        in_specs=[
            pl.BlockSpec((n, _FC_K), lambda i: (0, 0)),          # activations
            pl.BlockSpec((_FC_K, _H_TILE), lambda i: (0, i)),    # wfc half
            pl.BlockSpec((1, _H_TILE), lambda i: (0, i)),
            pl.BlockSpec((_H_TILE, _OUT_PAD), lambda i: (i, 0)),
        ],
        out_specs=pl.BlockSpec((1, n, _OUT_PAD), lambda i: (i, 0, 0)),
        out_shape=jax.ShapeDtypeStruct((n_tiles, n, _OUT_PAD), jnp.float32),
        compiler_params=pltpu.CompilerParams(
            dimension_semantics=("parallel",),
            vmem_limit_bytes=_VMEM_LIMIT),
    )(feats, params["wfc"], params["bfc"], params["wout"])
    q = jnp.sum(partials, axis=0)
    return q[:, :2] + params["bout"]


def ddqn_forward(x_nchw, params):
    return q_head(conv_features(x_nchw, params), params)


# ----------------------------------------------------------------------------
# One-time parameter preparation (layout, scale folding, padding, bf16 cast).
# ----------------------------------------------------------------------------
def prepare_params(p):
    cin = p["w1"].shape[1]

    # conv1 -> 2x2 block conv over 8x8 pixel blocks, output channels = the 2x2
    # output phases.  Folds x/255 into the weights.
    w1 = np.transpose(np.asarray(p["w1"], np.float32), (2, 3, 1, 0)) / 255.0
    w1b = np.zeros((2, 2, 8, 8, cin, 2, 2, 32), np.float32)  # [qi,qj,ri,rj,c,pi,pj,f]
    for qi in range(2):
        for pi in range(2):
            for ri in range(8):
                ki = 8 * qi + ri - 4 * pi
                if not 0 <= ki < 8:
                    continue
                for qj in range(2):
                    for pj in range(2):
                        for rj in range(8):
                            kj = 8 * qj + rj - 4 * pj
                            if not 0 <= kj < 8:
                                continue
                            w1b[qi, qj, ri, rj, :, pi, pj, :] = w1[ki, kj]
    w1b = w1b.reshape(4, 64 * cin, 128)

    # conv2 -> 2x2 block conv on the phase-packed (pi,pj,c)=128-channel input.
    w2 = np.transpose(np.asarray(p["w2"], np.float32), (2, 3, 1, 0))  # (4,4,32,64)
    w2b = np.zeros((2, 2, 2, 2, 32, 64), np.float32)  # [qi,qj,pi,pj,c,f]
    for qi in range(2):
        for qj in range(2):
            for pi in range(2):
                for pj in range(2):
                    w2b[qi, qj, pi, pj] = w2[2 * qi + pi, 2 * qj + pj]
    w2b = w2b.reshape(4, 128, 64)

    # conv3 is already stride 1.
    w3 = np.transpose(np.asarray(p["w3"], np.float32), (2, 3, 1, 0))  # (3,3,64,64)
    w3b = w3.reshape(9, 64, 64)

    # fc rows: PyTorch NCHW-flatten order (c*49+h*7+w) -> kernel NHWC-flatten
    # order ((h*7+w)*64+c); zero-pad K 3136 -> 3200.
    hh, ww, cc = np.meshgrid(np.arange(7), np.arange(7), np.arange(64),
                             indexing="ij")
    perm = (cc * 49 + hh * 7 + ww).reshape(-1)
    wfc = np.asarray(p["wfc"], np.float32)[perm]
    wfc = np.concatenate([wfc, np.zeros((_FC_K - 3136, 512), np.float32)], 0)

    # out head padded to 128 lanes for lane-dense stores.
    wout = np.zeros((512, _OUT_PAD), np.float32)
    wout[:, :2] = np.asarray(p["wout"], np.float32)

    return {
        "w1b": jnp.asarray(w1b, jnp.bfloat16),
        "b1b": jnp.asarray(np.tile(np.asarray(p["b1"], np.float32), 4)
                           .reshape(1, 128)),
        "w2b": jnp.asarray(w2b, jnp.bfloat16),
        "b2b": jnp.asarray(np.asarray(p["b2"], np.float32).reshape(1, 64)),
        "w3b": jnp.asarray(w3b, jnp.bfloat16),
        "b3b": jnp.asarray(np.asarray(p["b3"], np.float32).reshape(1, 64)),
        "wfc": jnp.asarray(wfc, jnp.bfloat16),
        "bfc": jnp.asarray(np.asarray(p["bfc"], np.float32).reshape(1, _H)),
        "wout": jnp.asarray(wout, jnp.bfloat16),
        "bout": jnp.asarray(np.asarray(p["bout"], np.float32)),
    }


# ----------------------------------------------------------------------------
# Deterministic synthetic init (shapes match the nn.Module) + f32 reference.
# ----------------------------------------------------------------------------
def init_params(key, n_channels_in):
    ks = jax.random.split(key, 10)

    def u(k, shape, fan_in):
        bound = 1.0 / jnp.sqrt(jnp.float32(fan_in))
        return jax.random.uniform(k, shape, jnp.float32, -bound, bound)

    p = {}
    p["w1"] = u(ks[0], (32, n_channels_in, 8, 8), n_channels_in * 64)
    p["b1"] = u(ks[1], (32,), n_channels_in * 64)
    p["w2"] = u(ks[2], (64, 32, 4, 4), 32 * 16)
    p["b2"] = u(ks[3], (64,), 32 * 16)
    p["w3"] = u(ks[4], (64, 64, 3, 3), 64 * 9)
    p["b3"] = u(ks[5], (64,), 64 * 9)
    p["wfc"] = u(ks[6], (64 * 7 * 7, 512), 64 * 7 * 7)   # stored (K, N)
    p["bfc"] = u(ks[7], (512,), 64 * 7 * 7)
    p["wout"] = u(ks[8], (512, 2), 512)                  # stored (K, N)
    p["bout"] = u(ks[9], (2,), 512)
    return p


def reference_forward(x_nchw, p):
    """Pure-JAX f32 reference matching the PyTorch module."""
    x = jnp.transpose(x_nchw.astype(jnp.float32) / 255.0, (0, 2, 3, 1))

    def conv(v, w_oihw, b, s):
        w = jnp.transpose(w_oihw, (2, 3, 1, 0))
        v = jax.lax.conv_general_dilated(
            v, w, (s, s), "VALID", dimension_numbers=("NHWC", "HWIO", "NHWC"))
        return jax.nn.relu(v + b)

    v = conv(x, p["w1"], p["b1"], 4)
    v = conv(v, p["w2"], p["b2"], 2)
    v = conv(v, p["w3"], p["b3"], 1)
    feats_nhwc = v.reshape(v.shape[0], -1)
    flat_nchw = jnp.transpose(v, (0, 3, 1, 2)).reshape(v.shape[0], -1)
    h = jax.nn.relu(flat_nchw @ p["wfc"] + p["bfc"])
    return h @ p["wout"] + p["bout"], feats_nhwc


if __name__ == "__main__":
    key = jax.random.PRNGKey(0)
    k_x, k_p = jax.random.split(key)

    batch, n_channels_in = 2, 4
    # Spatial size must be 84 so the fc layer sees 64*7*7 features.
    x = jax.random.uniform(k_x, (batch, n_channels_in, 84, 84),
                           jnp.float32, 0.0, 255.0)
    raw = init_params(k_p, n_channels_in)
    params = prepare_params(raw)

    y = jax.block_until_ready(jax.jit(ddqn_forward)(x, params))
    assert y.shape == (batch, 2), y.shape
    assert bool(jnp.all(jnp.isfinite(y)))

    # Correctness vs the f32 reference (bf16 weights/activations => loose tol).
    feats = jax.jit(conv_features)(x, params)[:, :3136].astype(jnp.float32)
    y_ref, feats_ref = jax.jit(reference_forward)(x, raw)
    np.testing.assert_allclose(np.asarray(feats), np.asarray(feats_ref),
                               rtol=0.05, atol=0.03)
    np.testing.assert_allclose(np.asarray(y), np.asarray(y_ref),
                               rtol=0.05, atol=0.03)
    print("KERNEL_OK")
</pallas_src>

<mosaic_0001>
module attributes {stable_mosaic.version = 11 : i64} {
  func.func @_conv_stack_kernel(%arg0: i32, %arg1: memref<1x144x256xbf16, #tpu.memory_space<vmem>>, %arg2: memref<4x256x128xbf16, #tpu.memory_space<vmem>>, %arg3: memref<1x128xf32, #tpu.memory_space<vmem>>, %arg4: memref<4x128x64xbf16, #tpu.memory_space<vmem>>, %arg5: memref<1x64xf32, #tpu.memory_space<vmem>>, %arg6: memref<9x64x64xbf16, #tpu.memory_space<vmem>>, %arg7: memref<1x64xf32, #tpu.memory_space<vmem>>, %arg8: memref<1x50x64xbf16, #tpu.memory_space<vmem>>, %arg9: memref<128x128xbf16, #tpu.memory_space<vmem>>, %arg10: memref<112x64xbf16, #tpu.memory_space<vmem>>, %arg11: memref<80x64xbf16, #tpu.memory_space<vmem>>) attributes {dimension_semantics = [#tpu.dimension_semantics<parallel>], iteration_bounds = array<i64: 2>, scalar_prefetch = 0 : i64, scratch_operands = 3 : i64, tpu.core_type = #tpu.core_type<tc>, window_params = [{transform_indices = @transform_0, window_bounds = array<i64: 1, 144, 256>}, {pipeline_mode = #tpu.pipeline_mode<synchronous>, transform_indices = @transform_1, window_bounds = array<i64: 4, 256, 128>}, {pipeline_mode = #tpu.pipeline_mode<synchronous>, transform_indices = @transform_2, window_bounds = array<i64: 1, 128>}, {pipeline_mode = #tpu.pipeline_mode<synchronous>, transform_indices = @transform_3, window_bounds = array<i64: 4, 128, 64>}, {pipeline_mode = #tpu.pipeline_mode<synchronous>, transform_indices = @transform_4, window_bounds = array<i64: 1, 64>}, {pipeline_mode = #tpu.pipeline_mode<synchronous>, transform_indices = @transform_5, window_bounds = array<i64: 9, 64, 64>}, {pipeline_mode = #tpu.pipeline_mode<synchronous>, transform_indices = @transform_6, window_bounds = array<i64: 1, 64>}, {transform_indices = @transform_7, window_bounds = array<i64: 1, 50, 64>}]} {
    %c0 = arith.constant 0 : index
    %c0_0 = arith.constant 0 : index
    %c0_1 = arith.constant 0 : index
    %0 = vector.load %arg1[%c0, %c0_0, %c0_1] : memref<1x144x256xbf16, #tpu.memory_space<vmem>>, vector<1x128x256xbf16>
    %1 = vector.shape_cast %0 : vector<1x128x256xbf16> to vector<128x256xbf16>
    %c0_2 = arith.constant 0 : index
    %c0_3 = arith.constant 0 : index
    %c0_4 = arith.constant 0 : index
    %2 = vector.load %arg2[%c0_2, %c0_3, %c0_4] : memref<4x256x128xbf16, #tpu.memory_space<vmem>>, vector<1x256x128xbf16>
    %3 = vector.shape_cast %2 : vector<1x256x128xbf16> to vector<256x128xbf16>
    %cst = arith.constant dense<0.000000e+00> : vector<128x128xf32>
    %4 = tpu.matmul %1, %3, %cst {dimension_numbers = #tpu.dot_dimension_numbers<[1], [0], [0], [1], [0, 0, 1, 1], [], []>} : vector<128x256xbf16>, vector<256x128xbf16>, vector<128x128xf32> -> vector<128x128xf32>
    %c0_5 = arith.constant 0 : index
    %c1 = arith.constant 1 : index
    %c0_6 = arith.constant 0 : index
    %5 = vector.load %arg1[%c0_5, %c1, %c0_6] : memref<1x144x256xbf16, #tpu.memory_space<vmem>>, vector<1x128x256xbf16>
    %6 = vector.shape_cast %5 : vector<1x128x256xbf16> to vector<128x256xbf16>
    %c1_7 = arith.constant 1 : index
    %c0_8 = arith.constant 0 : index
    %c0_9 = arith.constant 0 : index
    %7 = vector.load %arg2[%c1_7, %c0_8, %c0_9] : memref<4x256x128xbf16, #tpu.memory_space<vmem>>, vector<1x256x128xbf16>
    %8 = vector.shape_cast %7 : vector<1x256x128xbf16> to vector<256x128xbf16>
    %cst_10 = arith.constant dense<0.000000e+00> : vector<128x128xf32>
    %9 = tpu.matmul %6, %8, %cst_10 {dimension_numbers = #tpu.dot_dimension_numbers<[1], [0], [0], [1], [0, 0, 1, 1], [], []>} : vector<128x256xbf16>, vector<256x128xbf16>, vector<128x128xf32> -> vector<128x128xf32>
    %10 = arith.addf %4, %9 : vector<128x128xf32>
    %c0_11 = arith.constant 0 : index
    %c11 = arith.constant 11 : index
    %c0_12 = arith.constant 0 : index
    %11 = vector.load %arg1[%c0_11, %c11, %c0_12] : memref<1x144x256xbf16, #tpu.memory_space<vmem>>, vector<1x128x256xbf16>
    %12 = vector.shape_cast %11 : vector<1x128x256xbf16> to vector<128x256xbf16>
    %c2 = arith.constant 2 : index
    %c0_13 = arith.constant 0 : index
    %c0_14 = arith.constant 0 : index
    %13 = vector.load %arg2[%c2, %c0_13, %c0_14] : memref<4x256x128xbf16, #tpu.memory_space<vmem>>, vector<1x256x128xbf16>
    %14 = vector.shape_cast %13 : vector<1x256x128xbf16> to vector<256x128xbf16>
    %cst_15 = arith.constant dense<0.000000e+00> : vector<128x128xf32>
    %15 = tpu.matmul %12, %14, %cst_15 {dimension_numbers = #tpu.dot_dimension_numbers<[1], [0], [0], [1], [0, 0, 1, 1], [], []>} : vector<128x256xbf16>, vector<256x128xbf16>, vector<128x128xf32> -> vector<128x128xf32>
    %16 = arith.addf %10, %15 : vector<128x128xf32>
    %c0_16 = arith.constant 0 : index
    %c12 = arith.constant 12 : index
    %c0_17 = arith.constant 0 : index
    %17 = vector.load %arg1[%c0_16, %c12, %c0_17] : memref<1x144x256xbf16, #tpu.memory_space<vmem>>, vector<1x128x256xbf16>
    %18 = vector.shape_cast %17 : vector<1x128x256xbf16> to vector<128x256xbf16>
    %c3 = arith.constant 3 : index
    %c0_18 = arith.constant 0 : index
    %c0_19 = arith.constant 0 : index
    %19 = vector.load %arg2[%c3, %c0_18, %c0_19] : memref<4x256x128xbf16, #tpu.memory_space<vmem>>, vector<1x256x128xbf16>
    %20 = vector.shape_cast %19 : vector<1x256x128xbf16> to vector<256x128xbf16>
    %cst_20 = arith.constant dense<0.000000e+00> : vector<128x128xf32>
    %21 = tpu.matmul %18, %20, %cst_20 {dimension_numbers = #tpu.dot_dimension_numbers<[1], [0], [0], [1], [0, 0, 1, 1], [], []>} : vector<128x256xbf16>, vector<256x128xbf16>, vector<128x128xf32> -> vector<128x128xf32>
    %22 = arith.addf %16, %21 : vector<128x128xf32>
    %c0_21 = arith.constant 0 : index
    %c0_22 = arith.constant 0 : index
    %23 = vector.load %arg3[%c0_21, %c0_22] : memref<1x128xf32, #tpu.memory_space<vmem>>, vector<1x128xf32>
    %24 = vector.broadcast %23 : vector<1x128xf32> to vector<128x128xf32>
    %25 = arith.addf %22, %24 : vector<128x128xf32>
    %cst_23 = arith.constant 0.000000e+00 : f32
    %26 = vector.broadcast %cst_23 : f32 to vector<128x128xf32>
    %27 = arith.maximumf %25, %26 : vector<128x128xf32>
    %28 = arith.truncf %27 : vector<128x128xf32> to vector<128x128xbf16>
    %c0_24 = arith.constant 0 : index
    %c0_25 = arith.constant 0 : index
    %29 = vector.load %arg9[%c0_24, %c0_25] : memref<128x128xbf16, #tpu.memory_space<vmem>>, vector<128x128xbf16>
    tpu.vector_store %arg9[%c0_24, %c0_25], %28 {strides = array<i32>} : memref<128x128xbf16, #tpu.memory_space<vmem>>, vector<128x128xbf16>,
    %c0_26 = arith.constant 0 : index
    %c0_27 = arith.constant 0 : index
    %30 = vector.load %arg9[%c0_26, %c0_27] : memref<128x128xbf16, #tpu.memory_space<vmem>>, vector<112x128xbf16>
    %c0_28 = arith.constant 0 : index
    %c0_29 = arith.constant 0 : index
    %c0_30 = arith.constant 0 : index
    %31 = vector.load %arg4[%c0_28, %c0_29, %c0_30] : memref<4x128x64xbf16, #tpu.memory_space<vmem>>, vector<1x128x64xbf16>
    %32 = vector.shape_cast %31 : vector<1x128x64xbf16> to vector<128x64xbf16>
    %cst_31 = arith.constant dense<0.000000e+00> : vector<112x64xf32>
    %33 = tpu.matmul %30, %32, %cst_31 {dimension_numbers = #tpu.dot_dimension_numbers<[1], [0], [0], [1], [0, 0, 1, 1], [], []>} : vector<112x128xbf16>, vector<128x64xbf16>, vector<112x64xf32> -> vector<112x64xf32>
    %c1_32 = arith.constant 1 : index
    %c0_33 = arith.constant 0 : index
    %34 = vector.load %arg9[%c1_32, %c0_33] : memref<128x128xbf16, #tpu.memory_space<vmem>>, vector<112x128xbf16>
    %c1_34 = arith.constant 1 : index
    %c0_35 = arith.constant 0 : index
    %c0_36 = arith.constant 0 : index
    %35 = vector.load %arg4[%c1_34, %c0_35, %c0_36] : memref<4x128x64xbf16, #tpu.memory_space<vmem>>, vector<1x128x64xbf16>
    %36 = vector.shape_cast %35 : vector<1x128x64xbf16> to vector<128x64xbf16>
    %cst_37 = arith.constant dense<0.000000e+00> : vector<112x64xf32>
    %37 = tpu.matmul %34, %36, %cst_37 {dimension_numbers = #tpu.dot_dimension_numbers<[1], [0], [0], [1], [0, 0, 1, 1], [], []>} : vector<112x128xbf16>, vector<128x64xbf16>, vector<112x64xf32> -> vector<112x64xf32>
    %38 = arith.addf %33, %37 : vector<112x64xf32>
    %c11_38 = arith.constant 11 : index
    %c0_39 = arith.constant 0 : index
    %39 = vector.load %arg9[%c11_38, %c0_39] : memref<128x128xbf16, #tpu.memory_space<vmem>>, vector<112x128xbf16>
    %c2_40 = arith.constant 2 : index
    %c0_41 = arith.constant 0 : index
    %c0_42 = arith.constant 0 : index
    %40 = vector.load %arg4[%c2_40, %c0_41, %c0_42] : memref<4x128x64xbf16, #tpu.memory_space<vmem>>, vector<1x128x64xbf16>
    %41 = vector.shape_cast %40 : vector<1x128x64xbf16> to vector<128x64xbf16>
    %cst_43 = arith.constant dense<0.000000e+00> : vector<112x64xf32>
    %42 = tpu.matmul %39, %41, %cst_43 {dimension_numbers = #tpu.dot_dimension_numbers<[1], [0], [0], [1], [0, 0, 1, 1], [], []>} : vector<112x128xbf16>, vector<128x64xbf16>, vector<112x64xf32> -> vector<112x64xf32>
    %43 = arith.addf %38, %42 : vector<112x64xf32>
    %c12_44 = arith.constant 12 : index
    %c0_45 = arith.constant 0 : index
    %44 = vector.load %arg9[%c12_44, %c0_45] : memref<128x128xbf16, #tpu.memory_space<vmem>>, vector<112x128xbf16>
    %c3_46 = arith.constant 3 : index
    %c0_47 = arith.constant 0 : index
    %c0_48 = arith.constant 0 : index
    %45 = vector.load %arg4[%c3_46, %c0_47, %c0_48] : memref<4x128x64xbf16, #tpu.memory_space<vmem>>, vector<1x128x64xbf16>
    %46 = vector.shape_cast %45 : vector<1x128x64xbf16> to vector<128x64xbf16>
    %cst_49 = arith.constant dense<0.000000e+00> : vector<112x64xf32>
    %47 = tpu.matmul %44, %46, %cst_49 {dimension_numbers = #tpu.dot_dimension_numbers<[1], [0], [0], [1], [0, 0, 1, 1], [], []>} : vector<112x128xbf16>, vector<128x64xbf16>, vector<112x64xf32> -> vector<112x64xf32>
    %48 = arith.addf %43, %47 : vector<112x64xf32>
    %c0_50 = arith.constant 0 : index
    %c0_51 = arith.constant 0 : index
    %49 = vector.load %arg5[%c0_50, %c0_51] : memref<1x64xf32, #tpu.memory_space<vmem>>, vector<1x64xf32>
    %50 = vector.broadcast %49 : vector<1x64xf32> to vector<112x64xf32>
    %51 = arith.addf %48, %50 : vector<112x64xf32>
    %cst_52 = arith.constant 0.000000e+00 : f32
    %52 = vector.broadcast %cst_52 : f32 to vector<112x64xf32>
    %53 = arith.maximumf %51, %52 : vector<112x64xf32>
    %54 = arith.truncf %53 : vector<112x64xf32> to vector<112x64xbf16>
    %c0_53 = arith.constant 0 : index
    %c0_54 = arith.constant 0 : index
    %55 = vector.load %arg10[%c0_53, %c0_54] : memref<112x64xbf16, #tpu.memory_space<vmem>>, vector<112x64xbf16>
    tpu.vector_store %arg10[%c0_53, %c0_54], %54 {strides = array<i32>} : memref<112x64xbf16, #tpu.memory_space<vmem>>, vector<112x64xbf16>,
    %c0_55 = arith.constant 0 : index
    %c0_56 = arith.constant 0 : index
    %56 = vector.load %arg10[%c0_55, %c0_56] : memref<112x64xbf16, #tpu.memory_space<vmem>>, vector<80x64xbf16>
    %c0_57 = arith.constant 0 : index
    %c0_58 = arith.constant 0 : index
    %c0_59 = arith.constant 0 : index
    %57 = vector.load %arg6[%c0_57, %c0_58, %c0_59] : memref<9x64x64xbf16, #tpu.memory_space<vmem>>, vector<1x64x64xbf16>
    %58 = vector.shape_cast %57 : vector<1x64x64xbf16> to vector<64x64xbf16>
    %cst_60 = arith.constant dense<0.000000e+00> : vector<80x64xf32>
    %59 = tpu.matmul %56, %58, %cst_60 {dimension_numbers = #tpu.dot_dimension_numbers<[1], [0], [0], [1], [0, 0, 1, 1], [], []>} : vector<80x64xbf16>, vector<64x64xbf16>, vector<80x64xf32> -> vector<80x64xf32>
    %c1_61 = arith.constant 1 : index
    %c0_62 = arith.constant 0 : index
    %60 = vector.load %arg10[%c1_61, %c0_62] : memref<112x64xbf16, #tpu.memory_space<vmem>>, vector<80x64xbf16>
    %c1_63 = arith.constant 1 : index
    %c0_64 = arith.constant 0 : index
    %c0_65 = arith.constant 0 : index
    %61 = vector.load %arg6[%c1_63, %c0_64, %c0_65] : memref<9x64x64xbf16, #tpu.memory_space<vmem>>, vector<1x64x64xbf16>
    %62 = vector.shape_cast %61 : vector<1x64x64xbf16> to vector<64x64xbf16>
    %cst_66 = arith.constant dense<0.000000e+00> : vector<80x64xf32>
    %63 = tpu.matmul %60, %62, %cst_66 {dimension_numbers = #tpu.dot_dimension_numbers<[1], [0], [0], [1], [0, 0, 1, 1], [], []>} : vector<80x64xbf16>, vector<64x64xbf16>, vector<80x64xf32> -> vector<80x64xf32>
    %64 = arith.addf %59, %63 : vector<80x64xf32>
    %c2_67 = arith.constant 2 : index
    %c0_68 = arith.constant 0 : index
    %65 = vector.load %arg10[%c2_67, %c0_68] : memref<112x64xbf16, #tpu.memory_space<vmem>>, vector<80x64xbf16>
    %c2_69 = arith.constant 2 : index
    %c0_70 = arith.constant 0 : index
    %c0_71 = arith.constant 0 : index
    %66 = vector.load %arg6[%c2_69, %c0_70, %c0_71] : memref<9x64x64xbf16, #tpu.memory_space<vmem>>, vector<1x64x64xbf16>
    %67 = vector.shape_cast %66 : vector<1x64x64xbf16> to vector<64x64xbf16>
    %cst_72 = arith.constant dense<0.000000e+00> : vector<80x64xf32>
    %68 = tpu.matmul %65, %67, %cst_72 {dimension_numbers = #tpu.dot_dimension_numbers<[1], [0], [0], [1], [0, 0, 1, 1], [], []>} : vector<80x64xbf16>, vector<64x64xbf16>, vector<80x64xf32> -> vector<80x64xf32>
    %69 = arith.addf %64, %68 : vector<80x64xf32>
    %c11_73 = arith.constant 11 : index
    %c0_74 = arith.constant 0 : index
    %70 = vector.load %arg10[%c11_73, %c0_74] : memref<112x64xbf16, #tpu.memory_space<vmem>>, vector<80x64xbf16>
    %c3_75 = arith.constant 3 : index
    %c0_76 = arith.constant 0 : index
    %c0_77 = arith.constant 0 : index
    %71 = vector.load %arg6[%c3_75, %c0_76, %c0_77] : memref<9x64x64xbf16, #tpu.memory_space<vmem>>, vector<1x64x64xbf16>
    %72 = vector.shape_cast %71 : vector<1x64x64xbf16> to vector<64x64xbf16>
    %cst_78 = arith.constant dense<0.000000e+00> : vector<80x64xf32>
    %73 = tpu.matmul %70, %72, %cst_78 {dimension_numbers = #tpu.dot_dimension_numbers<[1], [0], [0], [1], [0, 0, 1, 1], [], []>} : vector<80x64xbf16>, vector<64x64xbf16>, vector<80x64xf32> -> vector<80x64xf32>
    %74 = arith.addf %69, %73 : vector<80x64xf32>
    %c12_79 = arith.constant 12 : index
    %c0_80 = arith.constant 0 : index
    %75 = vector.load %arg10[%c12_79, %c0_80] : memref<112x64xbf16, #tpu.memory_space<vmem>>, vector<80x64xbf16>
    %c4 = arith.constant 4 : index
    %c0_81 = arith.constant 0 : index
    %c0_82 = arith.constant 0 : index
    %76 = vector.load %arg6[%c4, %c0_81, %c0_82] : memref<9x64x64xbf16, #tpu.memory_space<vmem>>, vector<1x64x64xbf16>
    %77 = vector.shape_cast %76 : vector<1x64x64xbf16> to vector<64x64xbf16>
    %cst_83 = arith.constant dense<0.000000e+00> : vector<80x64xf32>
    %78 = tpu.matmul %75, %77, %cst_83 {dimension_numbers = #tpu.dot_dimension_numbers<[1], [0], [0], [1], [0, 0, 1, 1], [], []>} : vector<80x64xbf16>, vector<64x64xbf16>, vector<80x64xf32> -> vector<80x64xf32>
    %79 = arith.addf %74, %78 : vector<80x64xf32>
    %c13 = arith.constant 13 : index
    %c0_84 = arith.constant 0 : index
    %80 = vector.load %arg10[%c13, %c0_84] : memref<112x64xbf16, #tpu.memory_space<vmem>>, vector<80x64xbf16>
    %c5 = arith.constant 5 : index
    %c0_85 = arith.constant 0 : index
    %c0_86 = arith.constant 0 : index
    %81 = vector.load %arg6[%c5, %c0_85, %c0_86] : memref<9x64x64xbf16, #tpu.memory_space<vmem>>, vector<1x64x64xbf16>
    %82 = vector.shape_cast %81 : vector<1x64x64xbf16> to vector<64x64xbf16>
    %cst_87 = arith.constant dense<0.000000e+00> : vector<80x64xf32>
    %83 = tpu.matmul %80, %82, %cst_87 {dimension_numbers = #tpu.dot_dimension_numbers<[1], [0], [0], [1], [0, 0, 1, 1], [], []>} : vector<80x64xbf16>, vector<64x64xbf16>, vector<80x64xf32> -> vector<80x64xf32>
    %84 = arith.addf %79, %83 : vector<80x64xf32>
    %c22 = arith.constant 22 : index
    %c0_88 = arith.constant 0 : index
    %85 = vector.load %arg10[%c22, %c0_88] : memref<112x64xbf16, #tpu.memory_space<vmem>>, vector<80x64xbf16>
    %c6 = arith.constant 6 : index
    %c0_89 = arith.constant 0 : index
    %c0_90 = arith.constant 0 : index
    %86 = vector.load %arg6[%c6, %c0_89, %c0_90] : memref<9x64x64xbf16, #tpu.memory_space<vmem>>, vector<1x64x64xbf16>
    %87 = vector.shape_cast %86 : vector<1x64x64xbf16> to vector<64x64xbf16>
    %cst_91 = arith.constant dense<0.000000e+00> : vector<80x64xf32>
    %88 = tpu.matmul %85, %87, %cst_91 {dimension_numbers = #tpu.dot_dimension_numbers<[1], [0], [0], [1], [0, 0, 1, 1], [], []>} : vector<80x64xbf16>, vector<64x64xbf16>, vector<80x64xf32> -> vector<80x64xf32>
    %89 = arith.addf %84, %88 : vector<80x64xf32>
    %c23 = arith.constant 23 : index
    %c0_92 = arith.constant 0 : index
    %90 = vector.load %arg10[%c23, %c0_92] : memref<112x64xbf16, #tpu.memory_space<vmem>>, vector<80x64xbf16>
    %c7 = arith.constant 7 : index
    %c0_93 = arith.constant 0 : index
    %c0_94 = arith.constant 0 : index
    %91 = vector.load %arg6[%c7, %c0_93, %c0_94] : memref<9x64x64xbf16, #tpu.memory_space<vmem>>, vector<1x64x64xbf16>
    %92 = vector.shape_cast %91 : vector<1x64x64xbf16> to vector<64x64xbf16>
    %cst_95 = arith.constant dense<0.000000e+00> : vector<80x64xf32>
    %93 = tpu.matmul %90, %92, %cst_95 {dimension_numbers = #tpu.dot_dimension_numbers<[1], [0], [0], [1], [0, 0, 1, 1], [], []>} : vector<80x64xbf16>, vector<64x64xbf16>, vector<80x64xf32> -> vector<80x64xf32>
    %94 = arith.addf %89, %93 : vector<80x64xf32>
    %c24 = arith.constant 24 : index
    %c0_96 = arith.constant 0 : index
    %95 = vector.load %arg10[%c24, %c0_96] : memref<112x64xbf16, #tpu.memory_space<vmem>>, vector<80x64xbf16>
    %c8 = arith.constant 8 : index
    %c0_97 = arith.constant 0 : index
    %c0_98 = arith.constant 0 : index
    %96 = vector.load %arg6[%c8, %c0_97, %c0_98] : memref<9x64x64xbf16, #tpu.memory_space<vmem>>, vector<1x64x64xbf16>
    %97 = vector.shape_cast %96 : vector<1x64x64xbf16> to vector<64x64xbf16>
    %cst_99 = arith.constant dense<0.000000e+00> : vector<80x64xf32>
    %98 = tpu.matmul %95, %97, %cst_99 {dimension_numbers = #tpu.dot_dimension_numbers<[1], [0], [0], [1], [0, 0, 1, 1], [], []>} : vector<80x64xbf16>, vector<64x64xbf16>, vector<80x64xf32> -> vector<80x64xf32>
    %99 = arith.addf %94, %98 : vector<80x64xf32>
    %c0_100 = arith.constant 0 : index
    %c0_101 = arith.constant 0 : index
    %100 = vector.load %arg7[%c0_100, %c0_101] : memref<1x64xf32, #tpu.memory_space<vmem>>, vector<1x64xf32>
    %101 = vector.broadcast %100 : vector<1x64xf32> to vector<80x64xf32>
    %102 = arith.addf %99, %101 : vector<80x64xf32>
    %cst_102 = arith.constant 0.000000e+00 : f32
    %103 = vector.broadcast %cst_102 : f32 to vector<80x64xf32>
    %104 = arith.maximumf %102, %103 : vector<80x64xf32>
    %105 = arith.truncf %104 : vector<80x64xf32> to vector<80x64xbf16>
    %c0_103 = arith.constant 0 : index
    %c0_104 = arith.constant 0 : index
    %106 = vector.load %arg11[%c0_103, %c0_104] : memref<80x64xbf16, #tpu.memory_space<vmem>>, vector<80x64xbf16>
    tpu.vector_store %arg11[%c0_103, %c0_104], %105 {strides = array<i32>} : memref<80x64xbf16, #tpu.memory_space<vmem>>, vector<80x64xbf16>,
    %c0_105 = arith.constant 0 : index
    %c0_106 = arith.constant 0 : index
    %107 = vector.load %arg11[%c0_105, %c0_106] : memref<80x64xbf16, #tpu.memory_space<vmem>>, vector<7x64xbf16>
    %c0_107 = arith.constant 0 : index
    %c0_108 = arith.constant 0 : index
    %c0_109 = arith.constant 0 : index
    %108 = vector.load %arg8[%c0_107, %c0_108, %c0_109] : memref<1x50x64xbf16, #tpu.memory_space<vmem>>, vector<1x7x64xbf16>
    %109 = vector.shape_cast %108 : vector<1x7x64xbf16> to vector<7x64xbf16>
    %110 = vector.shape_cast %107 : vector<7x64xbf16> to vector<1x7x64xbf16>
    tpu.vector_store %arg8[%c0_107, %c0_108, %c0_109], %110 {strides = array<i32>} : memref<1x50x64xbf16, #tpu.memory_space<vmem>>, vector<1x7x64xbf16>,
    %c11_110 = arith.constant 11 : index
    %c0_111 = arith.constant 0 : index
    %111 = vector.load %arg11[%c11_110, %c0_111] : memref<80x64xbf16, #tpu.memory_space<vmem>>, vector<7x64xbf16>
    %c0_112 = arith.constant 0 : index
    %c7_113 = arith.constant 7 : index
    %c0_114 = arith.constant 0 : index
    %112 = vector.load %arg8[%c0_112, %c7_113, %c0_114] : memref<1x50x64xbf16, #tpu.memory_space<vmem>>, vector<1x7x64xbf16>
    %113 = vector.shape_cast %112 : vector<1x7x64xbf16> to vector<7x64xbf16>
    %114 = vector.shape_cast %111 : vector<7x64xbf16> to vector<1x7x64xbf16>
    tpu.vector_store %arg8[%c0_112, %c7_113, %c0_114], %114 {strides = array<i32>} : memref<1x50x64xbf16, #tpu.memory_space<vmem>>, vector<1x7x64xbf16>,
    %c22_115 = arith.constant 22 : index
    %c0_116 = arith.constant 0 : index
    %115 = vector.load %arg11[%c22_115, %c0_116] : memref<80x64xbf16, #tpu.memory_space<vmem>>, vector<7x64xbf16>
    %c0_117 = arith.constant 0 : index
    %c14 = arith.constant 14 : index
    %c0_118 = arith.constant 0 : index
    %116 = vector.load %arg8[%c0_117, %c14, %c0_118] : memref<1x50x64xbf16, #tpu.memory_space<vmem>>, vector<1x7x64xbf16>
    %117 = vector.shape_cast %116 : vector<1x7x64xbf16> to vector<7x64xbf16>
    %118 = vector.shape_cast %115 : vector<7x64xbf16> to vector<1x7x64xbf16>
    tpu.vector_store %arg8[%c0_117, %c14, %c0_118], %118 {strides = array<i32>} : memref<1x50x64xbf16, #tpu.memory_space<vmem>>, vector<1x7x64xbf16>,
    %c33 = arith.constant 33 : index
    %c0_119 = arith.constant 0 : index
    %119 = vector.load %arg11[%c33, %c0_119] : memref<80x64xbf16, #tpu.memory_space<vmem>>, vector<7x64xbf16>
    %c0_120 = arith.constant 0 : index
    %c21 = arith.constant 21 : index
    %c0_121 = arith.constant 0 : index
    %120 = vector.load %arg8[%c0_120, %c21, %c0_121] : memref<1x50x64xbf16, #tpu.memory_space<vmem>>, vector<1x7x64xbf16>
    %121 = vector.shape_cast %120 : vector<1x7x64xbf16> to vector<7x64xbf16>
    %122 = vector.shape_cast %119 : vector<7x64xbf16> to vector<1x7x64xbf16>
    tpu.vector_store %arg8[%c0_120, %c21, %c0_121], %122 {strides = array<i32>} : memref<1x50x64xbf16, #tpu.memory_space<vmem>>, vector<1x7x64xbf16>,
    %c44 = arith.constant 44 : index
    %c0_122 = arith.constant 0 : index
    %123 = vector.load %arg11[%c44, %c0_122] : memref<80x64xbf16, #tpu.memory_space<vmem>>, vector<7x64xbf16>
    %c0_123 = arith.constant 0 : index
    %c28 = arith.constant 28 : index
    %c0_124 = arith.constant 0 : index
    %124 = vector.load %arg8[%c0_123, %c28, %c0_124] : memref<1x50x64xbf16, #tpu.memory_space<vmem>>, vector<1x7x64xbf16>
    %125 = vector.shape_cast %124 : vector<1x7x64xbf16> to vector<7x64xbf16>
    %126 = vector.shape_cast %123 : vector<7x64xbf16> to vector<1x7x64xbf16>
    tpu.vector_store %arg8[%c0_123, %c28, %c0_124], %126 {strides = array<i32>} : memref<1x50x64xbf16, #tpu.memory_space<vmem>>, vector<1x7x64xbf16>,
    %c55 = arith.constant 55 : index
    %c0_125 = arith.constant 0 : index
    %127 = vector.load %arg11[%c55, %c0_125] : memref<80x64xbf16, #tpu.memory_space<vmem>>, vector<7x64xbf16>
    %c0_126 = arith.constant 0 : index
    %c35 = arith.constant 35 : index
    %c0_127 = arith.constant 0 : index
    %128 = vector.load %arg8[%c0_126, %c35, %c0_127] : memref<1x50x64xbf16, #tpu.memory_space<vmem>>, vector<1x7x64xbf16>
    %129 = vector.shape_cast %128 : vector<1x7x64xbf16> to vector<7x64xbf16>
    %130 = vector.shape_cast %127 : vector<7x64xbf16> to vector<1x7x64xbf16>
    tpu.vector_store %arg8[%c0_126, %c35, %c0_127], %130 {strides = array<i32>} : memref<1x50x64xbf16, #tpu.memory_space<vmem>>, vector<1x7x64xbf16>,
    %c66 = arith.constant 66 : index
    %c0_128 = arith.constant 0 : index
    %131 = vector.load %arg11[%c66, %c0_128] : memref<80x64xbf16, #tpu.memory_space<vmem>>, vector<7x64xbf16>
    %c0_129 = arith.constant 0 : index
    %c42 = arith.constant 42 : index
    %c0_130 = arith.constant 0 : index
    %132 = vector.load %arg8[%c0_129, %c42, %c0_130] : memref<1x50x64xbf16, #tpu.memory_space<vmem>>, vector<1x7x64xbf16>
    %133 = vector.shape_cast %132 : vector<1x7x64xbf16> to vector<7x64xbf16>
    %134 = vector.shape_cast %131 : vector<7x64xbf16> to vector<1x7x64xbf16>
    tpu.vector_store %arg8[%c0_129, %c42, %c0_130], %134 {strides = array<i32>} : memref<1x50x64xbf16, #tpu.memory_space<vmem>>, vector<1x7x64xbf16>,
    %cst_131 = arith.constant 0.000000e+00 : bf16
    %135 = vector.broadcast %cst_131 : bf16 to vector<1x64xbf16>
    %c0_132 = arith.constant 0 : index
    %c49 = arith.constant 49 : index
    %c0_133 = arith.constant 0 : index
    %136 = vector.load %arg8[%c0_132, %c49, %c0_133] : memref<1x50x64xbf16, #tpu.memory_space<vmem>>, vector<1x1x64xbf16>
    %137 = vector.shape_cast %136 : vector<1x1x64xbf16> to vector<1x64xbf16>
    %138 = vector.shape_cast %135 : vector<1x64xbf16> to vector<1x1x64xbf16>
    tpu.vector_store %arg8[%c0_132, %c49, %c0_133], %138 {strides = array<i32>} : memref<1x50x64xbf16, #tpu.memory_space<vmem>>, vector<1x1x64xbf16>,
    return
  }
  func.func @transform_0(%arg0: i32) -> (i32, i32, i32) {
    %c0_i32 = arith.constant 0 : i32
    %c0_i32_0 = arith.constant 0 : i32
    %c0_i32_1 = arith.constant 0 : i32
    return %arg0, %c0_i32, %c0_i32_0 : i32, i32, i32
  }
  func.func @transform_1(%arg0: i32) -> (i32, i32, i32) {
    %c0_i32 = arith.constant 0 : i32
    %c0_i32_0 = arith.constant 0 : i32
    %c0_i32_1 = arith.constant 0 : i32
    %c0_i32_2 = arith.constant 0 : i32
    return %c0_i32, %c0_i32_0, %c0_i32_1 : i32, i32, i32
  }
  func.func @transform_2(%arg0: i32) -> (i32, i32) {
    %c0_i32 = arith.constant 0 : i32
    %c0_i32_0 = arith.constant 0 : i32
    %c0_i32_1 = arith.constant 0 : i32
    return %c0_i32, %c0_i32_0 : i32, i32
  }
  func.func @transform_3(%arg0: i32) -> (i32, i32, i32) {
    %c0_i32 = arith.constant 0 : i32
    %c0_i32_0 = arith.constant 0 : i32
    %c0_i32_1 = arith.constant 0 : i32
    %c0_i32_2 = arith.constant 0 : i32
    return %c0_i32, %c0_i32_0, %c0_i32_1 : i32, i32, i32
  }
  func.func @transform_4(%arg0: i32) -> (i32, i32) {
    %c0_i32 = arith.constant 0 : i32
    %c0_i32_0 = arith.constant 0 : i32
    %c0_i32_1 = arith.constant 0 : i32
    return %c0_i32, %c0_i32_0 : i32, i32
  }
  func.func @transform_5(%arg0: i32) -> (i32, i32, i32) {
    %c0_i32 = arith.constant 0 : i32
    %c0_i32_0 = arith.constant 0 : i32
    %c0_i32_1 = arith.constant 0 : i32
    %c0_i32_2 = arith.constant 0 : i32
    return %c0_i32, %c0_i32_0, %c0_i32_1 : i32, i32, i32
  }
  func.func @transform_6(%arg0: i32) -> (i32, i32) {
    %c0_i32 = arith.constant 0 : i32
    %c0_i32_0 = arith.constant 0 : i32
    %c0_i32_1 = arith.constant 0 : i32
    return %c0_i32, %c0_i32_0 : i32, i32
  }
  func.func @transform_7(%arg0: i32) -> (i32, i32, i32) {
    %c0_i32 = arith.constant 0 : i32
    %c0_i32_0 = arith.constant 0 : i32
    %c0_i32_1 = arith.constant 0 : i32
    return %arg0, %c0_i32, %c0_i32_0 : i32, i32, i32
  }
}

module attributes {stable_mosaic.version = 11 : i64} {
  func.func @_fc_out_kernel(%arg0: i32, %arg1: memref<2x3200xbf16, #tpu.memory_space<vmem>>, %arg2: memref<3200x256xbf16, #tpu.memory_space<vmem>>, %arg3: memref<1x256xf32, #tpu.memory_space<vmem>>, %arg4: memref<256x128xbf16, #tpu.memory_space<vmem>>, %arg5: memref<1x2x128xf32, #tpu.memory_space<vmem>>) attributes {dimension_semantics = [#tpu.dimension_semantics<parallel>], iteration_bounds = array<i64: 2>, scalar_prefetch = 0 : i64, scratch_operands = 0 : i64, tpu.core_type = #tpu.core_type<tc>, window_params = [{pipeline_mode = #tpu.pipeline_mode<synchronous>, transform_indices = @transform_0, window_bounds = array<i64: 2, 3200>}, {transform_indices = @transform_1, window_bounds = array<i64: 3200, 256>}, {transform_indices = @transform_2, window_bounds = array<i64: 1, 256>}, {transform_indices = @transform_3, window_bounds = array<i64: 256, 128>}, {transform_indices = @transform_4, window_bounds = array<i64: 1, 2, 128>}]} {
    %c0 = arith.constant 0 : index
    %c0_0 = arith.constant 0 : index
    %0 = vector.load %arg1[%c0, %c0_0] : memref<2x3200xbf16, #tpu.memory_space<vmem>>, vector<2x3200xbf16>
    %c0_1 = arith.constant 0 : index
    %c0_2 = arith.constant 0 : index
    %1 = vector.load %arg2[%c0_1, %c0_2] : memref<3200x256xbf16, #tpu.memory_space<vmem>>, vector<3200x256xbf16>
    %cst = arith.constant dense<0.000000e+00> : vector<2x256xf32>
    %2 = tpu.matmul %0, %1, %cst {dimension_numbers = #tpu.dot_dimension_numbers<[1], [0], [0], [1], [0, 0, 1, 1], [], []>} : vector<2x3200xbf16>, vector<3200x256xbf16>, vector<2x256xf32> -> vector<2x256xf32>
    %c0_3 = arith.constant 0 : index
    %c0_4 = arith.constant 0 : index
    %3 = vector.load %arg3[%c0_3, %c0_4] : memref<1x256xf32, #tpu.memory_space<vmem>>, vector<1x256xf32>
    %4 = vector.broadcast %3 : vector<1x256xf32> to vector<2x256xf32>
    %5 = arith.addf %2, %4 : vector<2x256xf32>
    %cst_5 = arith.constant 0.000000e+00 : f32
    %6 = vector.broadcast %cst_5 : f32 to vector<2x256xf32>
    %7 = arith.maximumf %5, %6 : vector<2x256xf32>
    %8 = arith.truncf %7 : vector<2x256xf32> to vector<2x256xbf16>
    %c0_6 = arith.constant 0 : index
    %c0_7 = arith.constant 0 : index
    %9 = vector.load %arg4[%c0_6, %c0_7] : memref<256x128xbf16, #tpu.memory_space<vmem>>, vector<256x128xbf16>
    %cst_8 = arith.constant dense<0.000000e+00> : vector<2x128xf32>
    %10 = tpu.matmul %8, %9, %cst_8 {dimension_numbers = #tpu.dot_dimension_numbers<[1], [0], [0], [1], [0, 0, 1, 1], [], []>} : vector<2x256xbf16>, vector<256x128xbf16>, vector<2x128xf32> -> vector<2x128xf32>
    %c0_9 = arith.constant 0 : index
    %c0_10 = arith.constant 0 : index
    %c0_11 = arith.constant 0 : index
    %11 = vector.load %arg5[%c0_9, %c0_10, %c0_11] : memref<1x2x128xf32, #tpu.memory_space<vmem>>, vector<1x2x128xf32>
    %12 = vector.shape_cast %11 : vector<1x2x128xf32> to vector<2x128xf32>
    %13 = vector.shape_cast %10 : vector<2x128xf32> to vector<1x2x128xf32>
    tpu.vector_store %arg5[%c0_9, %c0_10, %c0_11], %13 {strides = array<i32>} : memref<1x2x128xf32, #tpu.memory_space<vmem>>, vector<1x2x128xf32>,
    return
  }
  func.func @transform_0(%arg0: i32) -> (i32, i32) {
    %c0_i32 = arith.constant 0 : i32
    %c0_i32_0 = arith.constant 0 : i32
    %c0_i32_1 = arith.constant 0 : i32
    return %c0_i32, %c0_i32_0 : i32, i32
  }
  func.func @transform_1(%arg0: i32) -> (i32, i32) {
    %c0_i32 = arith.constant 0 : i32
    %c0_i32_0 = arith.constant 0 : i32
    return %c0_i32, %arg0 : i32, i32
  }
  func.func @transform_2(%arg0: i32) -> (i32, i32) {
    %c0_i32 = arith.constant 0 : i32
    %c0_i32_0 = arith.constant 0 : i32
    return %c0_i32, %arg0 : i32, i32
  }
  func.func @transform_3(%arg0: i32) -> (i32, i32) {
    %c0_i32 = arith.constant 0 : i32
    %c0_i32_0 = arith.constant 0 : i32
    return %arg0, %c0_i32 : i32, i32
  }
  func.func @transform_4(%arg0: i32) -> (i32, i32, i32) {
    %c0_i32 = arith.constant 0 : i32
    %c0_i32_0 = arith.constant 0 : i32
    %c0_i32_1 = arith.constant 0 : i32
    return %arg0, %c0_i32, %c0_i32_0 : i32, i32, i32
  }
}

</mosaic_0001>

<bundles_post_ra>
// kernel: ddqn_forward.2
= control target key start
LH: loop header
LB: loop body
LE: loop exit
PB: predicated region body
PF: predicated region fallthrough
CT: control target
= control target key end

     0   :  { %s5840_s24 = smov 0   ;;  %s7454_s0 = inlined_call_operand.vmem [shape: bf16[2,144,256], index: 0, kind: input, shape index: {}]   ;;  %s7455_s1 = inlined_call_operand.vmem [shape: bf16[4,256,128], index: 1, kind: input, shape index: {}]   ;;  %s7456_s2 = inlined_call_operand.vmem [shape: f32[1,128], index: 2, kind: input, shape index: {}]   ;;  %s7457_s3 = inlined_call_operand.vmem [shape: bf16[4,128,64], index: 3, kind: input, shape index: {}]   ;;  %s7458_s4 = inlined_call_operand.vmem [shape: f32[1,64], index: 4, kind: input, shape index: {}]   ;;  %s7459_s5 = inlined_call_operand.vmem [shape: bf16[9,64,64], index: 5, kind: input, shape index: {}]   ;;  %s7460_s6 = inlined_call_operand.vmem [shape: f32[1,64], index: 6, kind: input, shape index: {}]   ;;  %s7461_s7 = inlined_call_operand.vmem [shape: bf16[2,50,64], index: 7, kind: output, shape index: {}]  }
   0x1 LB: > { %s4316_s25 = sadd.s32 4294967295, %s5796_s24   ;;  %p4320_p0 = scmp.ge.s32.totalorder %s5796_s24, 1  ;;  %s5796_s24 = sphi %s5840_s24, %s17_s24  }
   0x2   : > { %p237_p1 = scmp.lt.s32.totalorder %s5796_s24, 3 }
   0x4   : > { %p238_p2 = pnand %p4320_p0, %p237_p1 }
   0x5   : > { %v5608_v0 = vld [vmem:[%s7455_s1 + $0xc0] sm:$0xff] (!%p238_p2)   ;;  %v5612_v4 = vld [vmem:[%s7455_s1 + $0xc8] sm:$0xff] (!%p238_p2)   ;;  %v5616_v8 = vld [vmem:[%s7455_s1 + $0xd0] sm:$0xff] (!%p238_p2)   ;;  %p269_p3 = scmp.lt.s32.totalorder (!%p238_p2), %s4316_s25, 1  ;;  %vm431_vm0 = vsmask.f32 (!%p238_p2), 7424 }
   0x6   : > { %241 = sbr.rel (%p238_p2) target bundleno = 1092 (0x444), region = 48  ;;  %v5609_v1 = vld [vmem:[%s7455_s1 + $0x40] sm:$0xff] (!%p238_p2)   ;;  %4763 = vmatprep.subr.bf16.mxu0 (!%p238_p2), %v5608_v0  ;;  %v5613_v5 = vld [vmem:[%s7455_s1 + $0x48] sm:$0xff] (!%p238_p2)   ;;  %v5617_v9 = vld [vmem:[%s7455_s1 + $0x50] sm:$0xff] (!%p238_p2)   ;;  %vm1530_vm1 = vcmask (!%p238_p2), 1045504   ;;  %vm5799_vm3 = vmmov (!%p238_p2), 0  }
   0x7   : > { %v5610_v2 = vld [vmem:[%s7455_s1 + $0x80] sm:$0xff] (!%p238_p2)   ;;  %4827 = vmatprep.subr.bf16.mxu1 (!%p238_p2), %v5609_v1  ;;  %v5614_v6 = vld [vmem:[%s7455_s1 + $0x88] sm:$0xff] (!%p238_p2)   ;;  %v5618_v10 = vld [vmem:[%s7455_s1 + $0x90] sm:$0xff] (!%p238_p2)   ;;  %vm1105_vm2 = vsmask.f32 (!%p238_p2), 6400  ;;  %vm2479_vm4 = vcmask (!%p238_p2), 1041408  }
   0x8   : > { %v5611_v3 = vld [vmem:[%s7455_s1] sm:$0xff] (!%p238_p2)   ;;  %4764 = vmatpush3.bf16.msra.mxu0 (!%p238_p2), %v5610_v2  ;;  %v5615_v7 = vld [vmem:[%s7455_s1 + $0x8] sm:$0xff] (!%p238_p2)   ;;  %v5619_v11 = vld [vmem:[%s7455_s1 + $0x10] sm:$0xff] (!%p238_p2)   ;;  %vm2253_vm5 = vsmask.f32 (!%p238_p2), 2304  ;;  %vm2695_vm6 = vcmask (!%p238_p2), 523264  }
   0x9   : > { %4828 = vmatpush3.bf16.msra.mxu1 (!%p238_p2), %v5611_v3  ;;  %4765 = vmatprep.subr.bf16.mxu0 (!%p238_p2), %v5612_v4  ;;  %v5620_v12 = vld [vmem:[%s7455_s1 + $0xd8] sm:$0xff] (!%p238_p2)   ;;  %v5624_v16 = vld [vmem:[%s7455_s1 + $0xe0] sm:$0xff] (!%p238_p2)   ;;  %v5628_v20 = vld [vmem:[%s7455_s1 + $0xe8] sm:$0xff] (!%p238_p2)   ;;  %vm3005_vm7 = vcmask (!%p238_p2), 1046528   ;;  %vm3460_vm8 = vsmask.f32 (!%p238_p2), 1280 }
   0xa   : > { %4829 = vmatprep.subr.bf16.mxu1 (!%p238_p2), %v5613_v5  ;;  %v5621_v13 = vld [vmem:[%s7455_s1 + $0x58] sm:$0xff] (!%p238_p2)   ;;  %v5625_v17 = vld [vmem:[%s7455_s1 + $0x60] sm:$0xff] (!%p238_p2)   ;;  %v5629_v21 = vld [vmem:[%s7455_s1 + $0x68] sm:$0xff] (!%p238_p2)   ;;  %vm3637_vm9 = vcmask (!%p238_p2), 1044480   ;;  %vm3969_vm10 = vcmask (!%p238_p2), 1043456   ;;  %vm4141_vm12 = vcmask (!%p238_p2), 519168  }
   0xb   : > { %v5622_v14 = vld [vmem:[%s7455_s1 + $0x98] sm:$0xff] (!%p238_p2)   ;;  %v5626_v18 = vld [vmem:[%s7455_s1 + $0xa0] sm:$0xff] (!%p238_p2)   ;;  %v5630_v22 = vld [vmem:[%s7455_s1 + $0xa8] sm:$0xff] (!%p238_p2)   ;;  %vm3781_vm11 = vsmask.f32 (!%p238_p2), 4352  ;;  %vm4163_vm15 = vcmask (!%p238_p2), 519171  }
   0xc   : > { %4766 = vmatpush3.bf16.msra.mxu0 (!%p238_p2), %v5614_v6  ;;  %v5623_v15 = vld [vmem:[%s7455_s1 + $0x18] sm:$0xff] (!%p238_p2)   ;;  %v5627_v19 = vld [vmem:[%s7455_s1 + $0x20] sm:$0xff] (!%p238_p2)   ;;  %v5631_v23 = vld [vmem:[%s7455_s1 + $0x28] sm:$0xff] (!%p238_p2)   ;;  %vm4142_vm13 = vsmask.f32 (!%p238_p2), 3328 }
   0xd   : > { %4830 = vmatpush3.bf16.msra.mxu1 %v5615_v7  ;;  %4767 = vmatprep.subr.bf16.mxu0 %v5616_v8  ;;  %s7465_s25 = smov (!%p269_p3, %s4316_s25), 1  ;;  %v5632_v24 = vld [vmem:[%s7455_s1 + $0xf0] sm:$0xff]   ;;  %v5636_v28 = vld [vmem:[%s7455_s1 + $0xf8] sm:$0xff]   ;;  %v5645_v38 = vld [vmem:[%s7455_s1 + $0x140] sm:$0xff]  }
   0xe   : > { %4831 = vmatprep.subr.bf16.mxu1 %v5617_v9  ;;  %v5633_v25 = vld [vmem:[%s7455_s1 + $0x70] sm:$0xff]   ;;  %s5596_s13 = smul.u32 144, %s7465_s25  ;;  %v5637_v29 = vld [vmem:[%s7455_s1 + $0x78] sm:$0xff]   ;;  %v5647_v45 = vld [vmem:[%s7455_s1 + $0x1c0] sm:$0xff]  }
   0xf   : > { %v5634_v26 = vld [vmem:[%s7455_s1 + $0xb0] sm:$0xff]   ;;  %v5638_v30 = vld [vmem:[%s7455_s1 + $0xb8] sm:$0xff]   ;;  %v5648_v52 = vld [vmem:[%s7455_s1 + $0x180] sm:$0xff]   ;;  %s5597_s30 = smul.u32 28, %s7465_s25 }
  0x10   : > { %4768 = vmatpush3.bf16.msra.mxu0 %v5618_v10  ;;  %v5635_v27 = vld [vmem:[%s7455_s1 + $0x30] sm:$0xff]   ;;  %s5948_s26 = scalar_lea.vmem %s7454_s0, %s5596_s13  ;;  %v5639_v31 = vld [vmem:[%s7455_s1 + $0x38] sm:$0xff]   ;;  %v5646_v56 = vld [vmem:[%s7455_s1 + $0x100] sm:$0xff]  }
  0x11   : > { %4832 = vmatpush3.bf16.msra.mxu1 %v5619_v11  ;;  %4769 = vmatprep.subr.bf16.mxu0 %v5620_v12  ;;  %v5957_v32 = vld [vmem:[%s5948_s26 + $0x10] sm:$0xff]  ;;  %v5960_v33 = vld [vmem:[%s5948_s26 + $0x18] sm:$0xff]  ;;  %v5640_v34 = vld [vmem:[%s5948_s26 + $0x4] ss:$8 sps:$4 sm:$0xff]   ;;  %s7385_s10 = scalar_lea.vmem %s7461_s7, %s5597_s30 }
  0x12   : > { %4833 = vmatprep.subr.bf16.mxu1 %v5621_v13  ;;  %v5643_v35 = vld [vmem:[%s5948_s26] ss:$8 sps:$4 sm:$0xff]   ;;  %v4358_v36 = vcombine.high %v5957_v32, %v5960_v33  ;;  %v4357_v37 = vcombine.low %v5957_v32, %v5960_v33  ;;  %v445_v39 = vshrl.u32 %v5640_v34, 16  ;;  %v447_v40 = vshll.u32 %v5640_v34, 16  ;;  %921 = vmatprep.mubr.bf16.mxu1 %v5640_v34  ;;  %v6005_v9 = vld [vmem:[%s5948_s26 + $0x30] sm:$0xff]  ;;  %v6008_v10 = vld [vmem:[%s5948_s26 + $0x38] sm:$0xff] }
  0x13   : > { %v433_v41 = vshrl.u32 %v5643_v35, 16  ;;  %v435_v42 = vshll.u32 %v5643_v35, 16  ;;  %v5978_v53 = vld [vmem:[%s5948_s26 + $0x20] sm:$0xff]  ;;  %v5981_v54 = vld [vmem:[%s5948_s26 + $0x28] sm:$0xff]  ;;  %v4362_v11 = vcombine.high %v6005_v9, %v6008_v10  ;;  %v6014_v12 = vcombine.low %v6005_v9, %v6008_v10  ;;  %v5657_v13 = vld [vmem:[%s7455_s1 + $0x150] sm:$0xff]  }
  0x14   : > { %4770 = vmatpush3.bf16.msra.mxu0 %v5622_v14  ;;  %v452_v43 = vshll.u32 %v4358_v36, 16  ;;  %v440_v44 = vshll.u32 %v4357_v37, 16  ;;  %v449_v46 = vrot.slane %v447_v40, 1  ;;  %v464_v55 = vshrl.u32 %v4358_v36, 16  ;;  %v5651_v62 = vld [vmem:[%s7455_s1 + $0x148] sm:$0xff]   ;;  %v5666_v40 = vld [vmem:[%s7455_s1 + $0x198] sm:$0xff]   ;;  %vm4143_vm14 = vmand %vm4141_vm12, %vm4142_vm13 }
  0x15   : > { %4834 = vmatpush3.bf16.msra.mxu1 %v5623_v15  ;;  %4771 = vmatprep.subr.bf16.mxu0 %v5624_v16  ;;  %v437_v47 = vrot.slane %v435_v42, 1  ;;  %v4360_v57 = vcombine.high %v5978_v53, %v5981_v54  ;;  %v4359_v58 = vcombine.low %v5978_v53, %v5981_v54  ;;  %v456_v59 = vshrl.u32 %v4357_v37, 16  ;;  %v5652_v2 = vld [vmem:[%s7455_s1 + $0x108] sm:$0xff]   ;;  %v6060_v42 = vld [vmem:[%s5948_s26 + $0x58] sm:$0xff] }
  0x16   : > { %4835 = vmatprep.subr.bf16.mxu1 %v5625_v17  ;;  %v454_v48 = vrot.slane %v452_v43, 1  ;;  %v442_v49 = vrot.slane %v440_v44, 1  ;;  %v450_v50 = vor.u32 %v449_v46, %v445_v39  ;;  %v5653_v3 = vld [vmem:[%s7455_s1 + $0x1c8] sm:$0xff]   ;;  %v484_v16 = vshll.u32 %v4362_v11, 16 }
  0x17   : > { %v438_v51 = vor.u32 %v437_v47, %v433_v41  ;;  %v468_v0 = vshll.u32 %v4360_v57, 16  ;;  %v460_v1 = vshll.u32 %v4359_v58, 16  ;;  %v480_v4 = vshrl.u32 %v4360_v57, 16  ;;  %v5654_v8 = vld [vmem:[%s7455_s1 + $0x188] sm:$0xff]   ;;  %v6057_v41 = vld [vmem:[%s5948_s26 + $0x50] sm:$0xff] }
  0x18   : > { %4772 = vmatpush3.bf16.msra.mxu0 %v5626_v18  ;;  %v455_v60 = vsel %vm431_vm0, %v450_v50, %v454_v48  ;;  %v466_v63 = vor.u32 %v464_v55, %v454_v48  ;;  %v458_v6 = vor.u32 %v456_v59, %v442_v49  ;;  %v476_v17 = vshll.u32 %v6014_v12, 16  ;;  %v5658_v18 = vld [vmem:[%s7455_s1 + $0x110] sm:$0xff]   ;;  %v5671_v55 = vld [vmem:[%s7455_s1 + $0x1e0] sm:$0xff]   ;;  %v6092_v59 = vld [vmem:[%s5948_s26 + $0x68] sm:$0xff] }
  0x19   : > { %4836 = vmatpush3.bf16.msra.mxu1 %v5627_v19  ;;  %4773 = vmatprep.subr.bf16.mxu0 %v5628_v20  ;;  %v443_v61 = vsel %vm431_vm0, %v438_v51, %v442_v49  ;;  %v470_v5 = vrot.slane %v468_v0, 1  ;;  %v462_v7 = vrot.slane %v460_v1, 1  ;;  %v472_v20 = vshrl.u32 %v4359_v58, 16 }
  0x1a   : > { %4837 = vmatprep.subr.bf16.mxu1 %v5629_v21  ;;  %712 = vmatprep.mubr.bf16.mxu0 %v455_v60  ;;  %v5659_v21 = vld [vmem:[%s7455_s1 + $0x1d0] sm:$0xff]   ;;  %v488_v43 = vshrl.u32 %v6014_v12, 16  ;;  %v4366_v44 = vcombine.high %v6057_v41, %v6060_v42  ;;  %v6070_v46 = vcombine.high %v5960_v33, %v5978_v53  ;;  %vm4232_vm13 = vcmask 519169  }
  0x1b   : > { %v471_v14 = vsel %vm431_vm0, %v466_v63, %v470_v5  ;;  %v482_v15 = vor.u32 %v480_v4, %v470_v5  ;;  %v463_v19 = vsel %vm431_vm0, %v458_v6, %v462_v7  ;;  %v5675_v63 = vld [vmem:[%s7455_s1 + $0x168] sm:$0xff]  }
  0x1c   : > { %4774 = vmatpush3.bf16.msra.mxu0 %v5630_v22  ;;  %v486_v22 = vrot.slane %v484_v16, 1  ;;  %v516_v51 = vshll.u32 %v4366_v44, 16  ;;  %v1132_v60 = vshrl.u32 %v6070_v46, 16  ;;  %v1135_v4 = vshll.u32 %v6070_v46, 16  ;;  %v5677_v6 = vld [vmem:[%s7455_s1 + $0x1e8] sm:$0xff]  }
  0x1d   : > { %4838 = vmatpush3.bf16.msra.mxu1 %v5631_v23  ;;  %4775 = vmatprep.subr.bf16.mxu0 %v5632_v24  ;;  %v5660_v23 = vld [vmem:[%s7455_s1 + $0x190] sm:$0xff]   ;;  %v6032_v24 = vld [vmem:[%s5948_s26 + $0x40] sm:$0xff] }
  0x1e   : > { %4839 = vmatprep.subr.bf16.mxu1 %v5633_v25  ;;  %v6035_v25 = vld [vmem:[%s5948_s26 + $0x48] sm:$0xff]  ;;  %v518_v1 = vrot.slane %v516_v51, 1 }
  0x20   : > { %4776 = vmatpush3.bf16.msra.mxu0 %v5634_v26  ;;  %v496_v26 = vshrl.u32 %v4362_v11, 16 }
  0x21   : > { %4840 = vmatpush3.bf16.msra.mxu1 %v5635_v27  ;;  %4777 = vmatprep.subr.bf16.mxu0 %v5636_v28  ;;  %v4364_v27 = vcombine.high %v6032_v24, %v6035_v25  ;;  %v5663_v28 = vld [vmem:[%s7455_s1 + $0x158] sm:$0xff]  }
  0x22   : > { %4841 = vmatprep.subr.bf16.mxu1 %v5637_v29  ;;  %v487_v29 = vsel %vm431_vm0, %v482_v15, %v486_v22  ;;  %v1134_v15 = vrot.slane %v1132_v60, 1  ;;  %v6197_v60 = vcombine.high %v6035_v25, %v6057_v41 }
  0x23   : > { %v500_v34 = vshll.u32 %v4364_v27, 16  ;;  %v512_v49 = vshrl.u32 %v4364_v27, 16 }
  0x24   : > { %4778 = vmatpush3.bf16.msra.mxu0 %v5638_v30  ;;  %v478_v30 = vrot.slane %v476_v17, 1 }
  0x25   : > { %4842 = vmatpush3.bf16.msra.mxu1 %v5639_v31  ;;  %4891 = vmatprep.subr.bf16.mxu0 %v5645_v38  ;;  %v474_v31 = vor.u32 %v472_v20, %v462_v7  ;;  %v5665_v38 = vld [vmem:[%s7455_s1 + $0x1d8] sm:$0xff]   ;;  %v502_v39 = vrot.slane %v500_v34, 1 }
  0x26   : > { %4955 = vmatprep.subr.bf16.mxu1 %v5647_v45  ;;  %v5669_v45 = vld [vmem:[%s7455_s1 + $0x160] sm:$0xff]  }
  0x27   : > { %713 = vmatmul.mubr.bf16.vlgmr.msra.gmra.mrb[0].mxu0 %v443_v61  ;;  %v479_v47 = vsel %vm431_vm0, %v474_v31, %v478_v30  ;;  %v490_v61 = vor.u32 %v488_v43, %v478_v30  ;;  %v514_v0 = vor.u32 %v512_v49, %v502_v39  ;;  %v5684_v31 = vld [vmem:[%s7455_s1 + $0x1b0] sm:$0xff]   ;;  %v328_v43 = vld [vmem:[%s5948_s26 + $0x80] sm:$0x11] }
  0x28   : > { %922 = vmatmul.mubr.bf16.vlgmr.msra.gmra.mrb[0].mxu1 %v5643_v35  ;;  %4892 = vmatpush3.bf16.msra.mxu0 %v5646_v56  ;;  %v6045_v35 = vcombine.low %v6032_v24, %v6035_v25  ;;  %v6083_v56 = vcombine.low %v6057_v41, %v6060_v42 }
  0x29   : > { %929 = vmatprep.mubr.bf16.mxu1 %v4358_v36  ;;  %4956 = vmatpush3.bf16.msra.mxu1 %v5648_v52  ;;  %v5664_v36 = vld [vmem:[%s7455_s1 + $0x118] sm:$0xff]   ;;  %v5670_v52 = vld [vmem:[%s7455_s1 + $0x120] sm:$0xff]   ;;  %v519_v16 = vsel %vm431_vm0, %v514_v0, %v518_v1 }
  0x2a   : > { %4893 = vmatprep.subr.bf16.mxu0 %v5651_v62  ;;  %4957 = vmatprep.subr.bf16.mxu1 %v5653_v3  ;;  %v492_v48 = vshll.u32 %v6045_v35, 16  ;;  %v5676_v3 = vld [vmem:[%s7455_s1 + $0x128] sm:$0xff]   ;;  %v508_v5 = vshll.u32 %v6083_v56, 16 }
  0x2b   : > { %720 = vmatprep.mubr.bf16.mxu0 %v471_v14  ;;  %v6120_v14 = vld [vmem:[%s5948_s26 + $0x78] sm:$0xff] }
  0x2c   : > { %4894 = vmatpush3.bf16.msra.mxu0 %v5652_v2  ;;  %v494_v62 = vrot.slane %v492_v48, 1 }
  0x2d   : > { %4958 = vmatpush3.bf16.msra.mxu1 %v5654_v8  ;;  %4895 = vmatprep.subr.bf16.mxu0 %v5657_v13  ;;  %v504_v8 = vshrl.u32 %v6045_v35, 16  ;;  %v6117_v13 = vld [vmem:[%s5948_s26 + $0x70] sm:$0xff] }
  0x2e   : > { %4959 = vmatprep.subr.bf16.mxu1 %v5659_v21  ;;  %v495_v7 = vsel %vm431_vm0, %v490_v61, %v494_v62  ;;  %v5682_v21 = vld [vmem:[%s7455_s1 + $0x130] sm:$0xff]   ;;  %v6146_v30 = vcombine.high %v6117_v13, %v6120_v14  ;;  %v6201_v61 = vcombine.low %v6035_v25, %v6057_v41 }
  0x2f   : > { %721 = vmatmul.mubr.bf16.gmra.mrb[4].mxu0 %v463_v19  ;;  %v6129_v19 = vcombine.low %v5960_v33, %v5978_v53  ;;  %v520_v33 = vshrl.u32 %v6083_v56, 16  ;;  %v5683_v53 = vld [vmem:[%s7455_s1 + $0x1f0] sm:$0xff]  }
  0x30   : > { %930 = vmatmul.mubr.bf16.gmra.mrb[4].mxu1 %v4357_v37  ;;  %728 = vmatprep.mubr.bf16.mxu0 %v487_v29  ;;  %v498_v37 = vor.u32 %v496_v26, %v486_v22  ;;  %v1137_v22 = vrot.slane %v1135_v4, 2  ;;  %v1535_v26 = vrot.slane %v6070_v46, 2  ;;  %v548_v49 = vshll.u32 %v6146_v30, 16 }
  0x31   : > { %937 = vmatprep.mubr.bf16.mxu1 %v4360_v57  ;;  %4960 = vmatpush3.bf16.msra.mxu1 %v5660_v23  ;;  %v5672_v57 = vld [vmem:[%s7455_s1 + $0x1a0] sm:$0xff]   ;;  %v510_v23 = vrot.slane %v508_v5, 1  ;;  %v1115_v34 = vshrl.u32 %v6129_v19, 16 }
  0x32   : > { %4896 = vmatpush3.bf16.msra.mxu0 %v5658_v18  ;;  %4961 = vmatprep.subr.bf16.mxu1 %v5665_v38  ;;  %v503_v50 = vsel %vm431_vm0, %v498_v37, %v502_v39  ;;  %v5681_v18 = vld [vmem:[%s7455_s1 + $0x170] sm:$0xff]   ;;  %v5687_v37 = vld [vmem:[%s7455_s1 + $0x178] sm:$0xff]   ;;  %v6183_v51 = vor.u32 %v1137_v22, %v1134_v15  ;;  %v550_v5 = vrot.slane %v548_v49, 1 }
  0x33   : > { %4897 = vmatprep.subr.bf16.mxu0 %v5663_v28  ;;  %v5688_v39 = vld [vmem:[%s7455_s1 + $0x138] sm:$0xff]   ;;  %v522_v0 = vor.u32 %v520_v33, %v510_v23  ;;  %v1117_v4 = vrot.slane %v1115_v34, 1 }
  0x35   : > { %4962 = vmatpush3.bf16.msra.mxu1 %v5666_v40 }
  0x36   : > { %4898 = vmatpush3.bf16.msra.mxu0 %v5664_v36  ;;  %4963 = vmatprep.subr.bf16.mxu1 %v5671_v55  ;;  %v6155_v36 = vcombine.low %v6117_v13, %v6120_v14  ;;  %v986_v55 = vld [vmem:[%s5948_s26 + $0x8] sm:$0xee] }
  0x37   : > { %4899 = vmatprep.subr.bf16.mxu0 %v5669_v45  ;;  %729 = vmatmul.mubr.bf16.gmra.mrb[8].mxu0 %v479_v47  ;;  %v6172_v45 = vcombine.low %v5981_v54, %v6005_v9  ;;  %v6176_v47 = vcombine.high %v6008_v10, %v6032_v24 }
  0x38   : > { %938 = vmatmul.mubr.bf16.gmra.mrb[8].mxu1 %v4359_v58  ;;  %v6089_v58 = vld [vmem:[%s5948_s26 + $0x60] sm:$0xff]  ;;  %736 = vmatprep.mubr.bf16.mxu0 %v503_v50  ;;  %v5689_v50 = vld [vmem:[%s7455_s1 + $0x1f8] sm:$0xff]  }
  0x39   : > { %945 = vmatprep.mubr.bf16.mxu1 %v4362_v11  ;;  %v6101_v2 = vcombine.high %v6089_v58, %v6092_v59  ;;  %4964 = vmatpush3.bf16.msra.mxu1 %v5672_v57  ;;  %v528_v11 = vshrl.u32 %v4366_v44, 16  ;;  %v6133_v20 = vcombine.low %v6089_v58, %v6092_v59  ;;  %v1118_v57 = vshll.u32 %v6129_v19, 16 }
  0x3a   : > { %4900 = vmatpush3.bf16.msra.mxu0 %v5670_v52  ;;  %4965 = vmatprep.subr.bf16.mxu1 %v5677_v6  ;;  %v6187_v52 = vcombine.low %v6008_v10, %v6032_v24  ;;  %v4372_v24 = vcombine.high %v328_v43, %v328_v43  ;;  %v6212_v25 = vcombine.low %v6060_v42, %v6089_v58  ;;  %v560_v6 = vshrl.u32 %v6146_v30, 16 }
  0x3b   : > { %4901 = vmatprep.subr.bf16.mxu0 %v5675_v63  ;;  %v532_v17 = vshll.u32 %v6101_v2, 16  ;;  %v530_v28 = vor.u32 %v528_v11, %v518_v1  ;;  %v544_v38 = vshrl.u32 %v6101_v2, 16  ;;  %v6205_v63 = vcombine.high %v6060_v42, %v6089_v58 }
  0x3c   : > { %v536_v1 = vshrl.u32 %v6133_v20, 16  ;;  %v4437_v11 = vcombine.low %v986_v55, %v5957_v32  ;;  %v564_v15 = vshll.u32 %v4372_v24, 16  ;;  %v1168_v24 = vshrl.u32 %v6176_v47, 16 }
  0x3d   : > { %v534_v29 = vrot.slane %v532_v17, 1  ;;  %v1532_v17 = vrot.slane %v6129_v19, 2 }
  0x3e   : > { %4902 = vmatpush3.bf16.msra.mxu0 %v5676_v3  ;;  %v1491_v3 = vld [vmem:[%s5948_s26 + $0x8] sm:$0xcc]  ;;  %v566_v34 = vrot.slane %v564_v15, 1 }
  0x3f   : > { %737 = vmatmul.mubr.bf16.gmra.mrb[12].mxu0 %v495_v7  ;;  %4903 = vmatprep.subr.bf16.mxu0 %v5681_v18  ;;  %v535_v48 = vsel %vm431_vm0, %v530_v28, %v534_v29  ;;  %v546_v41 = vor.u32 %v544_v38, %v534_v29  ;;  %v4438_v7 = vcombine.high %v986_v55, %v5957_v32  ;;  %v1107_v28 = vshrl.u32 %v4437_v11, 16 }
  0x40   : > { %946 = vmatmul.mubr.bf16.gmra.mrb[12].mxu1 %v6014_v12  ;;  %v5678_v12 = vld [vmem:[%s7455_s1 + $0x1a8] sm:$0xff]   ;;  %744 = vmatprep.mubr.bf16.mxu0 %v519_v16  ;;  %v4503_v42 = vcombine.low %v1491_v3, %v5957_v32  ;;  %v1110_v29 = vshll.u32 %v4437_v11, 16 }
  0x41   : > { %953 = vmatprep.mubr.bf16.mxu1 %v4364_v27  ;;  %4966 = vmatpush3.bf16.msra.mxu1 %v5678_v12  ;;  %v506_v27 = vor.u32 %v504_v8, %v494_v62  ;;  %v4371_v62 = vcombine.low %v328_v43, %v328_v43  ;;  %v1120_v12 = vrot.slane %v1118_v57, 2  ;;  %v551_v22 = vsel %vm431_vm0, %v546_v41, %v550_v5 }
  0x42   : > { %4904 = vmatpush3.bf16.msra.mxu0 %v5682_v21  ;;  %4967 = vmatprep.subr.bf16.mxu1 %v5683_v53  ;;  %v6226_v21 = vcombine.high %v6092_v59, %v6117_v13  ;;  %v1127_v33 = vshll.u32 %v4438_v7, 16  ;;  %v4504_v53 = vcombine.high %v1491_v3, %v5957_v32 }
  0x43   : > { %v511_v40 = vsel %vm431_vm0, %v506_v27, %v510_v23  ;;  %4905 = vmatprep.subr.bf16.mxu0 %v5687_v37  ;;  %v556_v16 = vshll.u32 %v4371_v62, 16  ;;  %v1124_v27 = vshrl.u32 %v4438_v7, 16  ;;  %v1531_v37 = vrot.slane %v4503_v42, 2 }
  0x44   : > { %v1129_v49 = vrot.slane %v1127_v33, 2  ;;  %v6245_v57 = vor.u32 %v1120_v12, %v1117_v4  ;;  %v1171_v62 = vshll.u32 %v6176_v47, 16 }
  0x45   : > { %4968 = vmatpush3.bf16.msra.mxu1 %v5684_v31  ;;  %v6232_v31 = vcombine.low %v6092_v59, %v6117_v13  ;;  %v1126_v32 = vrot.slane %v1124_v27, 1  ;;  %v1159_v59 = vshrl.u32 %v6187_v52, 16  ;;  %v1162_v13 = vshll.u32 %v6187_v52, 16 }
  0x46   : > { %4906 = vmatpush3.bf16.msra.mxu0 %v5688_v39  ;;  %4969 = vmatprep.subr.bf16.mxu1 %v5689_v50  ;;  %v562_v39 = vor.u32 %v560_v6, %v550_v5  ;;  %v1534_v50 = vrot.slane %v4504_v53, 2  ;;  %v1177_v5 = vshrl.u32 %v6201_v61, 16  ;;  %v1180_v6 = vshll.u32 %v6201_v61, 16 }
  0x47   : > { %745 = vmatmul.mubr.bf16.gmra.mrb[16].mxu0 %v511_v40  ;;  %v1533_v7 = vsel %vm1530_vm1, %v1531_v37, %v1532_v17  ;;  %v1130_v42 = vor.u32 %v1129_v49, %v1126_v32  ;;  %v1198_v27 = vshll.u32 %v6212_v25, 16  ;;  %v6281_v33 = vrot.slane %v1171_v62, 2 }
  0x48   : > { %954 = vmatmul.mubr.bf16.gmra.mrb[16].mxu1 %v6045_v35  ;;  %v524_v35 = vshll.u32 %v6133_v20, 16  ;;  %752 = vmatprep.mubr.bf16.mxu0 %v535_v48  ;;  %v567_v3 = vsel %vm431_vm0, %v562_v39, %v566_v34  ;;  %v1536_v4 = vsel %vm1530_vm1, %v1534_v50, %v1535_v26  ;;  %v1179_v15 = vrot.slane %v1177_v5, 1 }
  0x49   : > { %961 = vmatprep.mubr.bf16.mxu1 %v4366_v44  ;;  %v6168_v44 = vcombine.high %v5981_v54, %v6005_v9  ;;  %v540_v54 = vshll.u32 %v6155_v36, 16  ;;  %v5690_v9 = vld [vmem:[%s7455_s1 + $0x1b8] sm:$0xff]   ;;  %v1543_v53 = vrot.slane %v6176_v47, 2  ;;  %v1200_v37 = vrot.slane %v1198_v27, 2 }
  0x4a   : > { %v526_v10 = vrot.slane %v524_v35, 1  ;;  %4970 = vmatpush3.bf16.msra.mxu1 %v5690_v9  ;;  %v558_v35 = vrot.slane %v556_v16, 1  ;;  %v6241_v9 = vrot.slane %v1110_v29, 2  ;;  %v1182_v16 = vrot.slane %v1180_v6, 2 }
  0x4b   : > { %v542_v8 = vrot.slane %v540_v54, 1  ;;  %v1150_v58 = vshrl.u32 %v6168_v44, 16  ;;  %v1153_v18 = vshll.u32 %v6168_v44, 16  ;;  %v1539_v48 = vrot.slane %v6168_v44, 2 }
  0x4c   : > { %v538_v23 = vor.u32 %v536_v1, %v526_v10  ;;  %v6239_v54 = vrot.slane %v1107_v28, 1  ;;  %v1164_v1 = vrot.slane %v1162_v13, 2  ;;  %v1549_v28 = vrot.slane %v6212_v25, 2 }
  0x4d   : > { %v1152_v38 = vrot.slane %v1150_v58, 1  ;;  %v1155_v43 = vrot.slane %v1153_v18, 2  ;;  %v1186_v58 = vshrl.u32 %v6197_v60, 16  ;;  %v1547_v32 = vrot.slane %v6197_v60, 2 }
  0x4e   : > { %v543_v55 = vsel %vm431_vm0, %v538_v23, %v542_v8  ;;  %v1195_v23 = vshrl.u32 %v6212_v25, 16  ;;  %v1139_v25 = vsel %vm1105_vm2, %v1130_v42, %v6183_v51  ;;  %v1216_v13 = vshll.u32 %v6232_v31, 16 }
  0x4f   : > { %v6285_v29 = vor.u32 %v1155_v43, %v1152_v38  ;;  %v6291_v39 = vrot.slane %v1186_v58, 1  ;;  %v1213_v43 = vshrl.u32 %v6232_v31, 16  ;;  %v1113_v50 = vor.u32 %v6241_v9, %v6239_v54  ;;  %v6326_v9 = vld [vmem:[%s5948_s26 + $0x88] sm:$0x33] }
  0x50   : > { %962 = vmatmul.mubr.bf16.gmra.mrb[20].mxu1 %v6083_v56  ;;  %v552_v56 = vshrl.u32 %v6155_v36, 16  ;;  %v1222_v54 = vshrl.u32 %v6226_v21, 16  ;;  %v1555_v27 = vrot.slane %v6226_v21, 2  ;;  %v1544_v19 = vsel %vm1530_vm1, %v1539_v48, %v1543_v53 }
  0x51   : > { %969 = vmatprep.mubr.bf16.mxu1 %v6101_v2  ;;  %v527_v2 = vsel %vm431_vm0, %v522_v0, %v526_v10  ;;  %v1537_v10 = vrot.slane %v6172_v45, 2  ;;  %v1161_v0 = vrot.slane %v1159_v59, 1  ;;  %v1001_v59 = vld [vmem:[%s5948_s26 + $0x80] sm:$0xff]  ;;  %v1215_v62 = vrot.slane %v1213_v43, 1 }
  0x52   : > { %753 = vmatmul.mubr.bf16.gmra.mrb[20].mxu0 %v527_v2  ;;  %v554_v40 = vor.u32 %v552_v56, %v542_v8  ;;  %v1541_v8 = vrot.slane %v6187_v52, 2  ;;  %v1545_v56 = vrot.slane %v6201_v61, 2  ;;  %v1189_v2 = vshll.u32 %v6197_v60, 16 }
  0x53   : > { %760 = vmatprep.mubr.bf16.mxu0 %v551_v22  ;;  %v6275_v61 = vor.u32 %v1164_v1, %v1161_v0  ;;  %v1183_v22 = vor.u32 %v1182_v16, %v1179_v15  ;;  %v1218_v0 = vrot.slane %v1216_v13, 2  ;;  %v4451_v1 = vcombine.low %v6120_v14, %v1001_v59 }
  0x54   : > { %v559_v41 = vsel %vm431_vm0, %v554_v40, %v558_v35  ;;  %v6273_v18 = vsel %vm1530_vm1, %v1541_v8, %v1545_v56  ;;  %v1197_v35 = vrot.slane %v1195_v23, 1  ;;  %v6293_v40 = vrot.slane %v1189_v2, 2 }
  0x55   : > { %v6289_v34 = vsel %vm1105_vm2, %v6275_v61, %v1183_v22  ;;  %v6297_v49 = vsel %vm1530_vm1, %v1545_v56, %v1549_v28  ;;  %v1157_v46 = vsel %vm1105_vm2, %v6183_v51, %v6285_v29  ;;  %v1231_v5 = vshrl.u32 %v4451_v1, 16 }
  0x56   : > { %v1201_v38 = vor.u32 %v1200_v37, %v1197_v35  ;;  %v1234_v6 = vshll.u32 %v4451_v1, 16  ;;  %v6331_v51 = vcombine.high %v6120_v14, %v1001_v59  ;;  %v1557_v56 = vrot.slane %v4451_v1, 2 }
  0x57   : > { %v1122_v15 = vsel %vm1105_vm2, %v1113_v50, %v6245_v57  ;;  %v1233_v42 = vrot.slane %v1231_v5, 1  ;;  %v1538_v2 = vsel %vm1530_vm1, %v1532_v17, %v1537_v10  ;;  %v4453_v35 = vcombine.low %v6326_v9, %v6326_v9  ;;  %v5714_v5 = vld [vmem:[%s7457_s3 + $0x8] sm:$0xff]  }
  0x58   : > { %970 = vmatmul.mubr.bf16.gmra.mrb[24].mxu1 %v6133_v20  ;;  %v1141_v20 = vshrl.u32 %v6172_v45, 16  ;;  %v1236_v58 = vrot.slane %v1234_v6, 2  ;;  %v1240_v17 = vshrl.u32 %v6331_v51, 16  ;;  %v1243_v37 = vshll.u32 %v6331_v51, 16  ;;  %v5715_v6 = vld [vmem:[%s7457_s3 + $0x50] sm:$0xff]  }
  0x59   : > { %977 = vmatprep.mubr.bf16.mxu1 %v6146_v30  ;;  %v1144_v30 = vshll.u32 %v6172_v45, 16  ;;  %v1559_v43 = vrot.slane %v6331_v51, 2  ;;  %v1561_v44 = vrot.slane %v4453_v35, 2  ;;  %v5717_v51 = vld [vmem:[%s7457_s3 + $0x58] sm:$0xff]  }
  0x5a   : > { %761 = vmatmul.mubr.bf16.gmra.mrb[24].mxu0 %v543_v55  ;;  %v6263_v11 = vrot.slane %v1141_v20, 1  ;;  %v1540_v20 = vsel %vm1530_vm1, %v1535_v26, %v1539_v48  ;;  %v1204_v55 = vshrl.u32 %v6205_v63, 16  ;;  %v1207_v26 = vshll.u32 %v6205_v63, 16 }
  0x5b   : > { %v6265_v12 = vrot.slane %v1144_v30, 2  ;;  %768 = vmatprep.mubr.bf16.mxu0 %v567_v3  ;;  %v1553_v30 = vrot.slane %v6232_v31, 2  ;;  %v1225_v3 = vshll.u32 %v6226_v21, 16  ;;  %v1252_v21 = vshll.u32 %v4453_v35, 16 }
  0x5d   : > { %v6323_v31 = vsel %vm1530_vm1, %v1549_v28, %v1553_v30  ;;  %v6344_v14 = vsel %vm1530_vm1, %v1553_v30, %v1557_v56  ;;  %v1227_v23 = vrot.slane %v1225_v3, 2  ;;  %v1237_v28 = vor.u32 %v1236_v58, %v1233_v42  ;;  %v5712_v3 = vld [vmem:[%s7457_s3] sm:$0xff]   ;;  %v5724_v42 = vld [vmem:[%s7457_s3 + $0x38] sm:$0xff]  }
  0x5e   : > { %v1254_v50 = vrot.slane %v1252_v21, 2  ;;  %v5719_v58 = vld [vmem:[%s7457_s3 + $0x60] sm:$0xff]  }
  0x60   : > { %978 = vmatmul.mubr.bf16.gmra.mrb[28].mxu1 %v6155_v36  ;;  %v6279_v36 = vrot.slane %v1168_v24, 1  ;;  %v6314_v24 = vsel %vm1105_vm2, %v1183_v22, %v1201_v38  ;;  %v1209_v22 = vrot.slane %v1207_v26, 2 }
  0x61   : > { %1709 = vmatprep.mubr.bf16.mxu1 %v1536_v4  ;;  %v1206_v4 = vrot.slane %v1204_v55, 1 }
  0x62   : > { %769 = vmatmul.mubr.bf16.gmra.mrb[28].mxu0 %v559_v41  ;;  %v1219_v41 = vor.u32 %v1218_v0, %v1215_v62  ;;  %v1174_v48 = vor.u32 %v6281_v33, %v6279_v36  ;;  %v1548_v36 = vsel %vm1530_vm1, %v1543_v53, %v1547_v32  ;;  %v1242_v53 = vrot.slane %v1240_v17, 1 }
  0x63   : > { %1410 = vmatprep.mubr.bf16.mxu0 %v1139_v25  ;;  %v1249_v25 = vshrl.u32 %v4453_v35, 16  ;;  %v1210_v47 = vor.u32 %v1209_v22, %v1206_v4  ;;  %v5716_v4 = vld [vmem:[%s7457_s3 + $0x10] sm:$0xff]  }
  0x64   : > { %v6336_v16 = vsel %vm1105_vm2, %v1201_v38, %v1219_v41  ;;  %v6357_v59 = vsel %vm1105_vm2, %v1219_v41, %v1237_v28  ;;  %v1147_v38 = vor.u32 %v6265_v12, %v6263_v11  ;;  %v1175_v62 = vsel %vm1105_vm2, %v6285_v29, %v1174_v48  ;;  %v5713_v41 = vld [vmem:[%s7457_s3 + $0x48] sm:$0xff]   ;;  %v5725_v22 = vld [vmem:[%s7457_s3 + $0x70] sm:$0xff]  }
  0x65   : > { %v1251_v13 = vrot.slane %v1249_v25, 1  ;;  %v1542_v11 = vsel %vm1530_vm1, %v1537_v10, %v1541_v8  ;;  %v1245_v29 = vrot.slane %v1243_v37, 2 }
  0x66   : > { %v1148_v30 = vsel %vm1105_vm2, %v6245_v57, %v1147_v38  ;;  %v1192_v57 = vor.u32 %v6293_v40, %v6291_v39  ;;  %v1166_v45 = vsel %vm1105_vm2, %v1147_v38, %v6275_v61  ;;  %v1560_v39 = vsel %vm1530_vm1, %v1555_v27, %v1559_v43 }
  0x67   : > { %v1255_v55 = vor.u32 %v1254_v50, %v1251_v13 }
  0x68   : > { %1710 = vmatmul.mubr.bf16.vlgmr.msra.gmra.mrb[32].mxu1 %v1533_v7  ;;  %v1551_v7 = vrot.slane %v6205_v63, 2  ;;  %v1224_v63 = vrot.slane %v1222_v54, 1  ;;  %v1193_v52 = vsel %vm1105_vm2, %v1174_v48, %v1192_v57  ;;  %v1211_v8 = vsel %vm1105_vm2, %v1192_v57, %v1210_v47 }
  0x69   : > { %1717 = vmatprep.mubr.bf16.mxu1 %v1540_v20  ;;  %v1562_v20 = vsel %vm1530_vm1, %v1557_v56, %v1561_v44  ;;  %v1256_v12 = vsel %vm1105_vm2, %v1237_v28, %v1255_v55  ;;  %v5720_v56 = vld [vmem:[%s7457_s3 + $0x20] sm:$0xff]  }
  0x6a   : > { %1411 = vmatmul.mubr.bf16.vlgmr.msra.gmra.mrb[32].mxu0 %v1122_v15  ;;  %v1552_v10 = vsel %vm1530_vm1, %v1547_v32, %v1551_v7  ;;  %v1556_v33 = vsel %vm1530_vm1, %v1551_v7, %v1555_v27  ;;  %v1228_v61 = vor.u32 %v1227_v23, %v1224_v63  ;;  %v5718_v7 = vld [vmem:[%s7457_s3 + $0x18] sm:$0xff]   ;;  %v5721_v15 = vld [vmem:[%s7457_s3 + $0x28] sm:$0xff]  }
  0x6b   : > { %1418 = vmatprep.mubr.bf16.mxu0 %v1157_v46  ;;  %v5726_v63 = vld [vmem:[%s7457_s3 + $0x78] sm:$0xff]  }
  0x6c   : > { %v1229_v60 = vsel %vm1105_vm2, %v1210_v47, %v1228_v61 }
  0x70   : > { %1718 = vmatmul.mubr.bf16.gmra.mrb[36].mxu1 %v1538_v2  ;;  %v5722_v2 = vld [vmem:[%s7457_s3 + $0x68] sm:$0xff]  }
  0x71   : > { %1725 = vmatprep.mubr.bf16.mxu1 %v1544_v19 }
  0x72   : > { %1419 = vmatmul.mubr.bf16.gmra.mrb[36].mxu0 %v1148_v30 }
  0x73   : > { %1426 = vmatprep.mubr.bf16.mxu0 %v1175_v62 }
  0x78   : > { %1726 = vmatmul.mubr.bf16.gmra.mrb[40].mxu1 %v1542_v11 }
  0x79   : > { %1733 = vmatprep.mubr.bf16.mxu1 %v1548_v36 }
  0x7a   : > { %1427 = vmatmul.mubr.bf16.gmra.mrb[40].mxu0 %v1166_v45 }
  0x7b   : > { %1434 = vmatprep.mubr.bf16.mxu0 %v1193_v52 }
  0x80   : > { %1734 = vmatmul.mubr.bf16.gmra.mrb[44].mxu1 %v6273_v18  ;;  %v4454_v18 = vcombine.high %v6326_v9, %v6326_v9  ;;  %v5798_v9 = vmov 0.0  }
  0x81   : > { %1741 = vmatprep.mubr.bf16.mxu1 %v1552_v10  ;;  %5160 = vmatprep.subr.bf16.mxu0 %v5798_v9 }
  0x82   : > { %1435 = vmatmul.mubr.bf16.gmra.mrb[44].mxu0 %v6289_v34  ;;  %v1246_v34 = vor.u32 %v1245_v29, %v1242_v53  ;;  %v1258_v40 = vshrl.u32 %v4454_v18, 16  ;;  %v1261_v32 = vshll.u32 %v4454_v18, 16  ;;  %5204 = vmatprep.subr.bf16.mxu1 %v5798_v9 }
  0x83   : > { %1442 = vmatprep.mubr.bf16.mxu0 %v1211_v8  ;;  %5205 = vmatpush3.bf16.msra.mxu1 %v5712_v3 }
  0x84   : > { %v1247_v0 = vsel %vm1105_vm2, %v1228_v61, %v1246_v34  ;;  %v1260_v1 = vrot.slane %v1258_v40, 1  ;;  %v1263_v46 = vrot.slane %v1261_v32, 2  ;;  %5206 = vmatprep.subr.bf16.mxu1 %v5798_v9 }
  0x87   : > { %5207 = vmatpush3.bf16.msra.mxu1 %v5714_v5 }
  0x88   : > { %1742 = vmatmul.mubr.bf16.gmra.mrb[48].mxu1 %v6297_v49  ;;  %v1563_v49 = vrot.slane %v4454_v18, 2  ;;  %5208 = vmatprep.subr.bf16.mxu1 %v5798_v9 }
  0x89   : > { %1749 = vmatprep.mubr.bf16.mxu1 %v1556_v33 }
  0x8a   : > { %1443 = vmatmul.mubr.bf16.gmra.mrb[48].mxu0 %v6314_v24  ;;  %v1564_v26 = vsel %vm1530_vm1, %v1559_v43, %v1563_v49  ;;  %v1264_v24 = vor.u32 %v1263_v46, %v1260_v1  ;;  %vm4155_vm1 = vcmask 1045508  }
  0x8b   : > { %1450 = vmatprep.mubr.bf16.mxu0 %v1229_v60  ;;  %5209 = vmatpush3.bf16.msra.mxu1 %v5716_v4 }
  0x8c   : > { %v1265_v54 = vsel %vm1105_vm2, %v1246_v34, %v1264_v24  ;;  %5210 = vmatprep.subr.bf16.mxu1 %v5798_v9  ;;  %vm4169_vm2 = vcmask 518144  }
  0x8f   : > { %5211 = vmatpush3.bf16.msra.mxu1 %v5718_v7 }
  0x90   : > { %1750 = vmatmul.mubr.bf16.gmra.mrb[52].mxu1 %v6323_v31  ;;  %v5711_v31 = vld [vmem:[%s7457_s3 + $0x40] sm:$0xff]   ;;  %5212 = vmatprep.subr.bf16.mxu1 %v5798_v9 }
  0x91   : > { %1757 = vmatprep.mubr.bf16.mxu1 %v1560_v39  ;;  %5161 = vmatpush3.bf16.msra.mxu0 %v5711_v31 }
  0x92   : > { %1451 = vmatmul.mubr.bf16.gmra.mrb[52].mxu0 %v6336_v16  ;;  %5162 = vmatprep.subr.bf16.mxu0 %v5798_v9  ;;  %v5723_v16 = vld [vmem:[%s7457_s3 + $0x30] sm:$0xff]  }
  0x93   : > { %1458 = vmatprep.mubr.bf16.mxu0 %v1247_v0  ;;  %5213 = vmatpush3.bf16.msra.mxu1 %v5720_v56 }
  0x94   : > { %5214 = vmatprep.subr.bf16.mxu1 %v5798_v9 }
  0x95   : > { %5163 = vmatpush3.bf16.msra.mxu0 %v5713_v41 }
  0x96   : > { %5164 = vmatprep.subr.bf16.mxu0 %v5798_v9 }
  0x97   : > { %5215 = vmatpush3.bf16.msra.mxu1 %v5721_v15 }
  0x98   : > { %1758 = vmatmul.mubr.bf16.gmra.mrb[56].mxu1 %v6344_v14  ;;  %5216 = vmatprep.subr.bf16.mxu1 %v5798_v9 }
  0x99   : > { %1765 = vmatprep.mubr.bf16.mxu1 %v1564_v26  ;;  %5165 = vmatpush3.bf16.msra.mxu0 %v5715_v6 }
  0x9a   : > { %1459 = vmatmul.mubr.bf16.gmra.mrb[56].mxu0 %v6357_v59  ;;  %5166 = vmatprep.subr.bf16.mxu0 %v5798_v9 }
  0x9b   : > { %1466 = vmatprep.mubr.bf16.mxu0 %v1265_v54  ;;  %5217 = vmatpush3.bf16.msra.mxu1 %v5723_v16 }
  0x9c   : > { %5218 = vmatprep.subr.bf16.mxu1 %v5798_v9 }
  0x9d   : > { %5167 = vmatpush3.bf16.msra.mxu0 %v5717_v51 }
  0x9e   : > { %5168 = vmatprep.subr.bf16.mxu0 %v5798_v9 }
  0x9f   : > { %5219 = vmatpush3.bf16.msra.mxu1 %v5724_v42 }
  0xa0   : > { %1766 = vmatmul.mubr.bf16.gmra.mrb[60].mxu1 %v1562_v20  ;;  %5292 = vmatprep.subr.bf16.mxu1 %v5798_v9 }
  0xa1   : > { %5169 = vmatpush3.bf16.msra.mxu0 %v5719_v58  ;;  %5220 = vmatprep.mubr.msk.bf16.mxu1 %vm5799_vm3, %v5798_v9 }
  0xa2   : > { %1467 = vmatmul.mubr.bf16.gmra.mrb[60].mxu0 %v1256_v12  ;;  %5170 = vmatprep.subr.bf16.mxu0 %v5798_v9 }
  0xa3   : > { %5176 = vmatprep.mubr.msk.bf16.mxu0 %vm5799_vm3, %v5798_v9 }
  0xa5   : > { %5171 = vmatpush3.bf16.msra.mxu0 %v5722_v2 }
  0xa6   : > { %5172 = vmatprep.subr.bf16.mxu0 %v5798_v9 }
  0xa9   : > { %5173 = vmatpush3.bf16.msra.mxu0 %v5725_v22 }
  0xaa   : > { %5174 = vmatprep.subr.bf16.mxu0 %v5798_v9 }
  0xad   : > { %5175 = vmatpush3.bf16.msra.mxu0 %v5726_v63 }
  0xae   : > { %5248 = vmatprep.subr.bf16.mxu0 %v5798_v9 }
  0xfa   : > { %v4779_v17 = vpop.f32.mrb[0].mxu0 }
  0xfb   : > { %v4843_v14 = vpop.f32.mrb[0].mxu1  ;;  %v4780_v37 = vpop.f32.mrb[1].mxu0 }
  0xfc   : > { %v4844_v23 = vpop.f32.mrb[1].mxu1  ;;  %v4781_v25 = vadd.f32 %v4780_v37, %v4779_v17  ;;  %v4782_v21 = vpop.f32.mrb[2].mxu0 }
  0xfd   : > { %v4845_v27 = vadd.f32 %v4844_v23, %v4843_v14  ;;  %v4846_v28 = vpop.f32.mrb[2].mxu1  ;;  %v4783_v43 = vpop.f32.mrb[3].mxu0 }
  0xfe   : > { %v4847_v35 = vpop.f32.mrb[3].mxu1  ;;  %v4784_v50 = vadd.f32 %v4783_v43, %v4782_v21 }
  0xff   : > { %v4848_v19 = vadd.f32 %v4847_v35, %v4846_v28  ;;  %v6475_v13 = vadd.f32 %v4845_v27, %v4781_v25 }
 0x101   : > { %v6477_v30 = vadd.f32 %v4848_v19, %v4784_v50 }
 0x102   : > { %v4785_v62 = vpop.f32.mrb[4].mxu0 }
 0x103   : > { %v4849_v59 = vpop.f32.mrb[4].mxu1  ;;  %v4786_v11 = vpop.f32.mrb[5].mxu0 }
 0x104   : > { %v4850_v38 = vpop.f32.mrb[5].mxu1  ;;  %v4787_v36 = vadd.f32 %v4786_v11, %v4785_v62  ;;  %v4788_v57 = vpop.f32.mrb[6].mxu0 }
 0x105   : > { %v4851_v44 = vadd.f32 %v4850_v38, %v4849_v59  ;;  %v4852_v48 = vpop.f32.mrb[6].mxu1  ;;  %v4789_v52 = vpop.f32.mrb[7].mxu0 }
 0x106   : > { %v4853_v20 = vpop.f32.mrb[7].mxu1  ;;  %v4790_v33 = vadd.f32 %v4789_v52, %v4788_v57 }
 0x107   : > { %v4854_v55 = vadd.f32 %v4853_v20, %v4852_v48  ;;  %v6479_v8 = vadd.f32 %v4851_v44, %v4787_v36 }
 0x109   : > { %v6481_v53 = vadd.f32 %v4854_v55, %v4790_v33 }
 0x10a   : > { %v4791_v29 = vpop.f32.mrb[8].mxu0 }
 0x10b   : > { %v4855_v12 = vpop.f32.mrb[8].mxu1  ;;  %v4792_v18 = vpop.f32.mrb[9].mxu0 }
 0x10c   : > { %v4856_v45 = vpop.f32.mrb[9].mxu1  ;;  %v4793_v34 = vadd.f32 %v4792_v18, %v4791_v29  ;;  %v4794_v40 = vpop.f32.mrb[10].mxu0 }
 0x10d   : > { %v4857_v10 = vadd.f32 %v4856_v45, %v4855_v12  ;;  %v4858_v47 = vpop.f32.mrb[10].mxu1  ;;  %v4795_v49 = vpop.f32.mrb[11].mxu0 }
 0x10e   : > { %v4859_v61 = vpop.f32.mrb[11].mxu1  ;;  %v4796_v26 = vadd.f32 %v4795_v49, %v4794_v40 }
 0x10f   : > { %v4860_v60 = vadd.f32 %v4859_v61, %v4858_v47  ;;  %v6483_v46 = vadd.f32 %v4857_v10, %v4793_v34 }
 0x111   : > { %v6485_v31 = vadd.f32 %v4860_v60, %v4796_v26 }
 0x112   : > { %v4797_v3 = vpop.f32.mrb[12].mxu0 }
 0x113   : > { %v4861_v39 = vpop.f32.mrb[12].mxu1  ;;  %v4798_v41 = vpop.f32.mrb[13].mxu0 }
 0x114   : > { %v4862_v32 = vpop.f32.mrb[13].mxu1  ;;  %v4799_v6 = vadd.f32 %v4798_v41, %v4797_v3  ;;  %v4800_v4 = vpop.f32.mrb[14].mxu0 }
 0x115   : > { %v4863_v0 = vadd.f32 %v4862_v32, %v4861_v39  ;;  %v4864_v1 = vpop.f32.mrb[14].mxu1  ;;  %v4801_v51 = vpop.f32.mrb[15].mxu0 }
 0x116   : > { %v4865_v24 = vpop.f32.mrb[15].mxu1  ;;  %v4802_v42 = vadd.f32 %v4801_v51, %v4800_v4 }
 0x117   : > { %v4866_v54 = vadd.f32 %v4865_v24, %v4864_v1  ;;  %v6487_v16 = vadd.f32 %v4863_v0, %v4799_v6 }
 0x119   : > { %v6489_v22 = vadd.f32 %v4866_v54, %v4802_v42 }
 0x11a   : > { %v4803_v63 = vpop.f32.mrb[16].mxu0 }
 0x11b   : > { %v4867_v5 = vpop.f32.mrb[16].mxu1  ;;  %v4804_v14 = vpop.f32.mrb[17].mxu0 }
 0x11c   : > { %v4868_v7 = vpop.f32.mrb[17].mxu1  ;;  %v4805_v27 = vadd.f32 %v4804_v14, %v4803_v63  ;;  %v4806_v28 = vpop.f32.mrb[18].mxu0 }
 0x11d   : > { %v4869_v56 = vadd.f32 %v4868_v7, %v4867_v5  ;;  %v4870_v15 = vpop.f32.mrb[18].mxu1  ;;  %v4807_v19 = vpop.f32.mrb[19].mxu0 }
 0x11e   : > { %v4871_v58 = vpop.f32.mrb[19].mxu1  ;;  %v4808_v25 = vadd.f32 %v4807_v19, %v4806_v28 }
 0x11f   : > { %v4872_v2 = vadd.f32 %v4871_v58, %v4870_v15  ;;  %v6491_v59 = vadd.f32 %v4869_v56, %v4805_v27 }
 0x121   : > { %v6493_v43 = vadd.f32 %v4872_v2, %v4808_v25 }
 0x123   : > { %v4873_v23 = vpop.f32.mrb[20].mxu1 }
 0x124   : > { %v4874_v35 = vpop.f32.mrb[21].mxu1 }
 0x125   : > { %v4875_v17 = vadd.f32 %v4874_v35, %v4873_v23  ;;  %v4876_v37 = vpop.f32.mrb[22].mxu1  ;;  %v4809_v44 = vpop.f32.mrb[20].mxu0 }
 0x126   : > { %v4877_v21 = vpop.f32.mrb[23].mxu1  ;;  %v4810_v48 = vpop.f32.mrb[21].mxu0 }
 0x127   : > { %v4878_v38 = vadd.f32 %v4877_v21, %v4876_v37  ;;  %v4811_v20 = vadd.f32 %v4810_v48, %v4809_v44  ;;  %v4812_v55 = vpop.f32.mrb[22].mxu0  ;;  %v6511_v48 = vld [vmem:[%s7456_s2] ss:$0 sm:$0xff] }
 0x128   : > { %v4813_v11 = vpop.f32.mrb[23].mxu0 }
 0x129   : > { %v6495_v57 = vadd.f32 %v4875_v17, %v4811_v20  ;;  %v4814_v45 = vadd.f32 %v4813_v11, %v4812_v55 }
 0x12b   : > { %v4879_v50 = vpop.f32.mrb[24].mxu1  ;;  %v6497_v47 = vadd.f32 %v4878_v38, %v4814_v45 }
 0x12c   : > { %v4880_v62 = vpop.f32.mrb[25].mxu1 }
 0x12d   : > { %v4881_v12 = vadd.f32 %v4880_v62, %v4879_v50  ;;  %v4882_v36 = vpop.f32.mrb[26].mxu1  ;;  %v4815_v33 = vpop.f32.mrb[24].mxu0 }
 0x12e   : > { %v4883_v52 = vpop.f32.mrb[27].mxu1  ;;  %v4816_v61 = vpop.f32.mrb[25].mxu0 }
 0x12f   : > { %v4884_v10 = vadd.f32 %v4883_v52, %v4882_v36  ;;  %v4817_v29 = vadd.f32 %v4816_v61, %v4815_v33  ;;  %v4818_v18 = vpop.f32.mrb[26].mxu0 }
 0x130   : > { %v4819_v34 = vpop.f32.mrb[27].mxu0 }
 0x131   : > { %v6499_v49 = vadd.f32 %v4881_v12, %v4817_v29  ;;  %v4820_v0 = vadd.f32 %v4819_v34, %v4818_v18 }
 0x133   : > { %v4885_v60 = vpop.f32.mrb[28].mxu1  ;;  %v6501_v24 = vadd.f32 %v4884_v10, %v4820_v0  ;;  %v5728_v0 = vld [vmem:[%s7457_s3 + $0xc0] sm:$0xff]  }
 0x134   : > { %v4886_v39 = vpop.f32.mrb[29].mxu1 }
 0x135   : > { %v4887_v40 = vadd.f32 %v4886_v39, %v4885_v60  ;;  %v4888_v32 = vpop.f32.mrb[30].mxu1  ;;  %v4821_v54 = vpop.f32.mrb[28].mxu0 }
 0x136   : > { %v4889_v1 = vpop.f32.mrb[31].mxu1  ;;  %v4822_v3 = vpop.f32.mrb[29].mxu0 }
 0x137   : > { %v4890_v26 = vadd.f32 %v4889_v1, %v4888_v32  ;;  %v4823_v5 = vadd.f32 %v4822_v3, %v4821_v54  ;;  %v4824_v6 = vpop.f32.mrb[30].mxu0 }
 0x138   : > { %v4825_v7 = vpop.f32.mrb[31].mxu0 }
 0x139   : > { %v6503_v15 = vadd.f32 %v4887_v40, %v4823_v5  ;;  %v4826_v42 = vadd.f32 %v4825_v7, %v4824_v6 }
 0x13b   : > { %v4971_v41 = vpop.f32.mrb[32].mxu1  ;;  %v6505_v63 = vadd.f32 %v4890_v26, %v4826_v42 }
 0x13c   : > { %v4972_v4 = vpop.f32.mrb[33].mxu1 }
 0x13d   : > { %v4973_v51 = vadd.f32 %v4972_v4, %v4971_v41  ;;  %v4974_v56 = vpop.f32.mrb[34].mxu1  ;;  %v4907_v14 = vpop.f32.mrb[32].mxu0 }
 0x13e   : > { %v4975_v58 = vpop.f32.mrb[35].mxu1  ;;  %v4908_v23 = vpop.f32.mrb[33].mxu0 }
 0x13f   : > { %v4976_v2 = vadd.f32 %v4975_v58, %v4974_v56  ;;  %v4909_v28 = vadd.f32 %v4908_v23, %v4907_v14  ;;  %v4910_v35 = vpop.f32.mrb[34].mxu0 }
 0x140   : > { %v4911_v17 = vpop.f32.mrb[35].mxu0 }
 0x141   : > { %v1475_v21 = vadd.f32 %v4909_v28, %v6475_v13  ;;  %v4912_v38 = vadd.f32 %v4911_v17, %v4910_v35 }
 0x143   : > { %v4977_v27 = vpop.f32.mrb[36].mxu1  ;;  %v1774_v20 = vadd.f32 %v4973_v51, %v1475_v21  ;;  %v1476_v55 = vadd.f32 %v4912_v38, %v6477_v30 }
 0x144   : > { %v4978_v19 = vpop.f32.mrb[37].mxu1 }
 0x145   : > { %v4979_v37 = vadd.f32 %v4978_v19, %v4977_v27  ;;  %v4980_v25 = vpop.f32.mrb[38].mxu1  ;;  %v1797_v62 = vadd.f32 %v6511_v48, %v1774_v20  ;;  %v1775_v11 = vadd.f32 %v4976_v2, %v1476_v55  ;;  %v4913_v12 = vpop.f32.mrb[36].mxu0 }
 0x146   : > { %v4981_v44 = vpop.f32.mrb[39].mxu1  ;;  %v4914_v36 = vpop.f32.mrb[37].mxu0 }
 0x147   : > { %v4982_v50 = vadd.f32 %v4981_v44, %v4980_v25  ;;  %v1798_v52 = vadd.f32 %v6511_v48, %v1775_v11  ;;  %v4915_v13 = vadd.f32 %v4914_v36, %v4913_v12  ;;  %v4916_v10 = vpop.f32.mrb[38].mxu0  ;;  %v1813_v18 = vmax.f32 %v1797_v62, 0.0 }
 0x148   : > { %v4917_v61 = vpop.f32.mrb[39].mxu0 }
 0x149   : > { %v1814_v39 = vmax.f32 %v1798_v52, 0.0  ;;  %v1477_v34 = vadd.f32 %v4915_v13, %v6479_v8  ;;  %v4918_v40 = vadd.f32 %v4917_v61, %v4916_v10  ;;  %v5730_v8 = vld [vmem:[%s7457_s3 + $0xc8] sm:$0xff]   ;;  %v5727_v61 = vld [vmem:[%s7457_s3 + $0x80] sm:$0xff]  }
 0x14b   : > { %v4983_v45 = vpop.f32.mrb[40].mxu1  ;;  %v1829_v1 = vpack.c.bf16 %v1814_v39, %v1813_v18  ;;  %v1776_v26 = vadd.f32 %v4979_v37, %v1477_v34  ;;  %v1478_v54 = vadd.f32 %v4918_v40, %v6481_v53  ;;  %v5732_v37 = vld [vmem:[%s7457_s3 + $0xd0] sm:$0xff]  }
 0x14c   : > { %v4984_v33 = vpop.f32.mrb[41].mxu1 }
 0x14d   : > { %v4985_v60 = vadd.f32 %v4984_v33, %v4983_v45  ;;  %v4986_v29 = vpop.f32.mrb[42].mxu1  ;;  %1837 = vst [vmem:[#allocation2] sm:$0xff] %v1829_v1  ;;  %v1799_v3 = vadd.f32 %v6511_v48, %v1776_v26  ;;  %v1777_v41 = vadd.f32 %v4982_v50, %v1478_v54  ;;  %v4919_v5 = vpop.f32.mrb[40].mxu0  ;;  %5221 = vmatmul.mubr.bf16.vlgmr.msra.gmra.mrb[64].mxu1 %v1829_v1  ;;  %v1896_v42 = vshll.u32 %v1829_v1, 16  ;;  %v5735_v54 = vld [vmem:[%s7457_s3 + $0xe0] sm:$0xff]  }
 0x14e   : > { %v4987_v30 = vpop.f32.mrb[43].mxu1  ;;  %v4920_v6 = vpop.f32.mrb[41].mxu0  ;;  %5224 = vmatprep.mubr.msk.bf16.mxu1 %vm5799_vm3, %v5798_v9  ;;  %5293 = vmatpush3.bf16.msra.mxu1 %v5728_v0  ;;  %v1894_v55 = vshrl.u32 %v1829_v1, 16 }
 0x14f   : > { %v4988_v32 = vadd.f32 %v4987_v30, %v4986_v29  ;;  %v1800_v7 = vadd.f32 %v6511_v48, %v1777_v41  ;;  %v4921_v51 = vadd.f32 %v4920_v6, %v4919_v5  ;;  %v4922_v53 = vpop.f32.mrb[42].mxu0  ;;  %5294 = vmatprep.subr.bf16.mxu1 %v5798_v9  ;;  %v1815_v23 = vmax.f32 %v1799_v3, 0.0 }
 0x150   : > { %v4923_v58 = vpop.f32.mrb[43].mxu0  ;;  %v1898_v44 = vrot.slane %v1896_v42, 1 }
 0x151   : > { %v1816_v27 = vmax.f32 %v1800_v7, 0.0  ;;  %v1479_v28 = vadd.f32 %v4921_v51, %v6483_v46  ;;  %v4924_v35 = vadd.f32 %v4923_v58, %v4922_v53 }
 0x152   : > { %5295 = vmatpush3.bf16.msra.mxu1 %v5730_v8  ;;  %v1899_v10 = vor.u32 %v1898_v44, %v1894_v55 }
 0x153   : > { %v4989_v4 = vpop.f32.mrb[44].mxu1  ;;  %v6533_v25 = vpack.c.bf16 %v1816_v27, %v1815_v23  ;;  %v1778_v21 = vadd.f32 %v4985_v60, %v1479_v28  ;;  %v1480_v38 = vadd.f32 %v4924_v35, %v6485_v31  ;;  %5296 = vmatprep.subr.bf16.mxu1 %v5798_v9  ;;  %v5734_v31 = vld [vmem:[%s7457_s3 + $0xd8] sm:$0xff]  }
 0x154   : > { %v4990_v56 = vpop.f32.mrb[45].mxu1 }
 0x155   : > { %v4991_v2 = vadd.f32 %v4990_v56, %v4989_v4  ;;  %v4992_v14 = vpop.f32.mrb[46].mxu1  ;;  %v1801_v50 = vadd.f32 %v6511_v48, %v1778_v21  ;;  %v1779_v20 = vadd.f32 %v4988_v32, %v1480_v38  ;;  %v4925_v46 = vpop.f32.mrb[44].mxu0  ;;  %5225 = vmatmul.mubr.bf16.gmra.mrb[68].mxu1 %v6533_v25  ;;  %v1901_v62 = vshll.u32 %v6533_v25, 16  ;;  %v5731_v21 = vld [vmem:[%s7457_s3 + $0x90] sm:$0xff]  }
 0x156   : > { %v4993_v19 = vpop.f32.mrb[47].mxu1  ;;  %v4926_v11 = vpop.f32.mrb[45].mxu0  ;;  %5228 = vmatprep.mubr.msk.bf16.mxu1 %vm5799_vm3, %v5798_v9  ;;  %5297 = vmatpush3.bf16.msra.mxu1 %v5732_v37  ;;  %v1905_v26 = vshrl.u32 %v6533_v25, 16  ;;  %v2481_v6 = vrot.slane %v6533_v25, 6 }
 0x157   : > { %v4994_v17 = vadd.f32 %v4993_v19, %v4992_v14  ;;  %v1802_v36 = vadd.f32 %v6511_v48, %v1779_v20  ;;  %v4927_v45 = vadd.f32 %v4926_v11, %v4925_v46  ;;  %v4928_v52 = vpop.f32.mrb[46].mxu0  ;;  %v1903_v33 = vrot.slane %v1901_v62, 1  ;;  %5298 = vmatprep.subr.bf16.mxu1 %v5798_v9 }
 0x158   : > { %v1817_v60 = vmax.f32 %v1801_v50, 0.0  ;;  %v4929_v29 = vpop.f32.mrb[47].mxu0  ;;  %v2262_v58 = vrot.slane %v1905_v26, 5  ;;  %v2263_v23 = vrot.slane %v1901_v62, 6 }
 0x159   : > { %v1818_v34 = vmax.f32 %v1802_v36, 0.0  ;;  %v1481_v40 = vadd.f32 %v4927_v45, %v6487_v16  ;;  %v4930_v30 = vadd.f32 %v4929_v29, %v4928_v52  ;;  %v1904_v0 = vsel %vm431_vm0, %v1899_v10, %v1903_v33  ;;  %v5729_v16 = vld [vmem:[%s7457_s3 + $0x88] sm:$0xff]   ;;  %v5739_v52 = vld [vmem:[%s7457_s3 + $0xf0] sm:$0xff]  }
 0x15a   : > { %5177 = vmatmul.mubr.bf16.vlgmr.msra.gmra.mrb[64].mxu0 %v1904_v0  ;;  %5299 = vmatpush3.bf16.msra.mxu1 %v5734_v31  ;;  %v1907_v42 = vor.u32 %v1905_v26, %v1903_v33  ;;  %v5740_v26 = vld [vmem:[%s7457_s3 + $0xf8] sm:$0xff]  }
 0x15b   : > { %v4995_v12 = vpop.f32.mrb[48].mxu1  ;;  %v6560_v3 = vpack.c.bf16 %v1818_v34, %v1817_v60  ;;  %v1780_v41 = vadd.f32 %v4991_v2, %v1481_v40  ;;  %v1482_v5 = vadd.f32 %v4930_v30, %v6489_v22  ;;  %5249 = vmatpush3.bf16.msra.mxu0 %v5727_v61  ;;  %5180 = vmatprep.mubr.msk.bf16.mxu0 %vm5799_vm3, %v5798_v9  ;;  %v5737_v2 = vld [vmem:[%s7457_s3 + $0xe8] sm:$0xff]   ;;  %v5733_v60 = vld [vmem:[%s7457_s3 + $0x98] sm:$0xff]  }
 0x15c   : > { %v4996_v13 = vpop.f32.mrb[49].mxu1  ;;  %5250 = vmatprep.subr.bf16.mxu0 %v5798_v9  ;;  %5300 = vmatprep.subr.bf16.mxu1 %v5798_v9 }
 0x15d   : > { %v6550_v18 = vadd.f32 %v4996_v13, %v4995_v12  ;;  %v4998_v39 = vpop.f32.mrb[50].mxu1  ;;  %v1803_v4 = vadd.f32 %v6511_v48, %v1780_v41  ;;  %v1781_v8 = vadd.f32 %v4994_v17, %v1482_v5  ;;  %v4931_v7 = vpop.f32.mrb[48].mxu0  ;;  %5229 = vmatmul.mubr.bf16.gmra.mrb[72].mxu1 %v6560_v3  ;;  %v1909_v22 = vshll.u32 %v6560_v3, 16 }
 0x15e   : > { %v4999_v32 = vpop.f32.mrb[51].mxu1  ;;  %v1913_v51 = vshrl.u32 %v6560_v3, 16  ;;  %v4932_v53 = vpop.f32.mrb[49].mxu0  ;;  %5232 = vmatprep.mubr.msk.bf16.mxu1 %vm5799_vm3, %v5798_v9  ;;  %5301 = vmatpush3.bf16.msra.mxu1 %v5735_v54  ;;  %v2483_v14 = vrot.slane %v6560_v3, 6  ;;  %v6603_v13 = vor.u32 %v2263_v23, %v2262_v58 }
 0x15f   : > { %v6554_v1 = vadd.f32 %v4999_v32, %v4998_v39  ;;  %v1819_v27 = vmax.f32 %v1803_v4, 0.0  ;;  %v1804_v28 = vadd.f32 %v6511_v48, %v1781_v8  ;;  %v4933_v35 = vadd.f32 %v4932_v53, %v4931_v7  ;;  %v4934_v19 = vpop.f32.mrb[50].mxu0  ;;  %5251 = vmatpush3.bf16.msra.mxu0 %v5729_v16  ;;  %5302 = vmatprep.subr.bf16.mxu1 %v5798_v9  ;;  %v5736_v7 = vld [vmem:[%s7457_s3 + $0xa0] sm:$0xff]  }
 0x160   : > { %v1911_v37 = vrot.slane %v1909_v22, 1  ;;  %v4935_v38 = vpop.f32.mrb[51].mxu0  ;;  %5252 = vmatprep.subr.bf16.mxu0 %v5798_v9  ;;  %v6594_v20 = vsel %vm2479_vm4, %v2481_v6, %v2483_v14  ;;  %v2266_v46 = vrot.slane %v1913_v51, 5  ;;  %v2267_v55 = vrot.slane %v1909_v22, 6 }
 0x161   : > { %v1820_v62 = vmax.f32 %v1804_v28, 0.0  ;;  %v1483_v11 = vadd.f32 %v4933_v35, %v6491_v59  ;;  %v4936_v12 = vadd.f32 %v4935_v38, %v4934_v19 }
 0x162   : > { %v1912_v36 = vsel %vm431_vm0, %v1907_v42, %v1911_v37  ;;  %5303 = vmatpush3.bf16.msra.mxu1 %v5737_v2  ;;  %v2268_v10 = vor.u32 %v2267_v55, %v2266_v46  ;;  %v1915_v0 = vor.u32 %v1913_v51, %v1911_v37 }
 0x163   : > { %v5001_v56 = vpop.f32.mrb[52].mxu1  ;;  %5181 = vmatmul.mubr.bf16.gmra.mrb[68].mxu0 %v1912_v36  ;;  %v6605_v33 = vpack.c.bf16 %v1820_v62, %v1819_v27  ;;  %v1782_v61 = vadd.f32 %v6550_v18, %v1483_v11  ;;  %v1484_v59 = vadd.f32 %v4936_v12, %v6493_v43  ;;  %5304 = vmatprep.subr.bf16.mxu1 %v5798_v9 }
 0x164   : > { %v5002_v17 = vpop.f32.mrb[53].mxu1  ;;  %5184 = vmatprep.mubr.msk.bf16.mxu0 %vm5799_vm3, %v5798_v9  ;;  %5253 = vmatpush3.bf16.msra.mxu0 %v5731_v21  ;;  %v6618_v29 = vsel %vm2253_vm5, %v6603_v13, %v2268_v10 }
 0x165   : > { %v6586_v44 = vadd.f32 %v5002_v17, %v5001_v56  ;;  %v5004_v50 = vpop.f32.mrb[54].mxu1  ;;  %5254 = vmatprep.subr.bf16.mxu0 %v5798_v9  ;;  %v1805_v18 = vadd.f32 %v6511_v48, %v1782_v61  ;;  %v1783_v43 = vadd.f32 %v6554_v1, %v1484_v59  ;;  %v4937_v39 = vpop.f32.mrb[52].mxu0  ;;  %5233 = vmatmul.mubr.bf16.gmra.mrb[76].mxu1 %v6605_v33  ;;  %v1917_v34 = vshll.u32 %v6605_v33, 16  ;;  %v5741_v61 = vld [vmem:[%s7457_s3 + $0xb0] sm:$0xff]  }
 0x166   : > { %v5005_v31 = vpop.f32.mrb[55].mxu1  ;;  %v1921_v40 = vshrl.u32 %v6605_v33, 16  ;;  %v4938_v30 = vpop.f32.mrb[53].mxu0  ;;  %5236 = vmatprep.mubr.msk.bf16.mxu1 %vm5799_vm3, %v5798_v9  ;;  %5305 = vmatpush3.bf16.msra.mxu1 %v5739_v52  ;;  %v2485_v1 = vrot.slane %v6605_v33, 6 }
 0x167   : > { %v6598_v45 = vadd.f32 %v5005_v31, %v5004_v50  ;;  %v1821_v54 = vmax.f32 %v1805_v18, 0.0  ;;  %v1806_v41 = vadd.f32 %v6511_v48, %v1783_v43  ;;  %v4939_v5 = vadd.f32 %v4938_v30, %v4937_v39  ;;  %v4940_v16 = vpop.f32.mrb[54].mxu0  ;;  %5306 = vmatprep.subr.bf16.mxu1 %v5798_v9 }
 0x168   : > { %v1919_v8 = vrot.slane %v1917_v34, 1  ;;  %5255 = vmatpush3.bf16.msra.mxu0 %v5733_v60  ;;  %v4941_v22 = vpop.f32.mrb[55].mxu0  ;;  %v6640_v56 = vsel %vm2479_vm4, %v2483_v14, %v2485_v1  ;;  %v2270_v42 = vrot.slane %v1921_v40, 5  ;;  %v2271_v58 = vrot.slane %v1917_v34, 6 }
 0x169   : > { %5256 = vmatprep.subr.bf16.mxu0 %v5798_v9  ;;  %v1822_v2 = vmax.f32 %v1806_v41, 0.0  ;;  %v1485_v23 = vadd.f32 %v4939_v5, %v6495_v57  ;;  %v4942_v27 = vadd.f32 %v4941_v22, %v4940_v16  ;;  %v5738_v57 = vld [vmem:[%s7457_s3 + $0xa8] sm:$0xff]  }
 0x16a   : > { %v1920_v35 = vsel %vm431_vm0, %v1915_v0, %v1919_v8  ;;  %5307 = vmatpush3.bf16.msra.mxu1 %v5740_v26  ;;  %v2272_v17 = vor.u32 %v2271_v58, %v2270_v42  ;;  %v1923_v11 = vor.u32 %v1921_v40, %v1919_v8 }
 0x16b   : > { %v5007_v32 = vpop.f32.mrb[56].mxu1  ;;  %5185 = vmatmul.mubr.bf16.gmra.mrb[72].mxu0 %v1920_v35  ;;  %v6644_v37 = vpack.c.bf16 %v1822_v2, %v1821_v54  ;;  %v1784_v3 = vadd.f32 %v6586_v44, %v1485_v23  ;;  %v1486_v14 = vadd.f32 %v4942_v27, %v6497_v47  ;;  %5588 = vmatprep.subr.bf16.mxu1 %v5798_v9 }
 0x16c   : > { %v5008_v4 = vpop.f32.mrb[57].mxu1  ;;  %5188 = vmatprep.mubr.msk.bf16.mxu0 %vm5799_vm3, %v5798_v9  ;;  %5257 = vmatpush3.bf16.msra.mxu0 %v5736_v7  ;;  %v6655_v21 = vsel %vm2253_vm5, %v2268_v10, %v2272_v17 }
 0x16d   : > { %v5009_v51 = vadd.f32 %v5008_v4, %v5007_v32  ;;  %v5010_v53 = vpop.f32.mrb[58].mxu1  ;;  %5258 = vmatprep.subr.bf16.mxu0 %v5798_v9  ;;  %v1807_v38 = vadd.f32 %v6511_v48, %v1784_v3  ;;  %v1785_v44 = vadd.f32 %v6598_v45, %v1486_v14  ;;  %v4943_v47 = vpop.f32.mrb[56].mxu0  ;;  %5237 = vmatmul.mubr.bf16.gmra.mrb[80].mxu1 %v6644_v37  ;;  %v1925_v50 = vshll.u32 %v6644_v37, 16 }
 0x16e   : > { %v5011_v28 = vpop.f32.mrb[59].mxu1  ;;  %v1929_v46 = vshrl.u32 %v6644_v37, 16  ;;  %v4944_v55 = vpop.f32.mrb[57].mxu0  ;;  %5240 = vmatprep.mubr.msk.bf16.mxu1 %vm5799_vm3, %v5798_v9  ;;  %v2487_v12 = vrot.slane %v6644_v37, 6 }
 0x16f   : > { %v5012_v19 = vadd.f32 %v5011_v28, %v5010_v53  ;;  %v1823_v31 = vmax.f32 %v1807_v38, 0.0  ;;  %v1808_v36 = vadd.f32 %v6511_v48, %v1785_v44  ;;  %v4945_v52 = vadd.f32 %v4944_v55, %v4943_v47  ;;  %v4946_v45 = vpop.f32.mrb[58].mxu0 }
 0x170   : > { %v1927_v33 = vrot.slane %v1925_v50, 1  ;;  %5259 = vmatpush3.bf16.msra.mxu0 %v5738_v57  ;;  %v4947_v59 = vpop.f32.mrb[59].mxu0  ;;  %v6672_v43 = vsel %vm2479_vm4, %v2485_v1, %v2487_v12  ;;  %v2274_v39 = vrot.slane %v1929_v46, 5  ;;  %v2275_v34 = vrot.slane %v1925_v50, 6  ;;  %v5742_v1 = vld [vmem:[%s7457_s3 + $0xb8] sm:$0xff]  }
 0x171   : > { %5260 = vmatprep.subr.bf16.mxu0 %v5798_v9  ;;  %v1824_v40 = vmax.f32 %v1808_v36, 0.0  ;;  %v1487_v30 = vadd.f32 %v4945_v52, %v6499_v49  ;;  %v4948_v32 = vadd.f32 %v4947_v59, %v4946_v45 }
 0x172   : > { %v1928_v26 = vsel %vm431_vm0, %v1923_v11, %v1927_v33  ;;  %v2276_v41 = vor.u32 %v2275_v34, %v2274_v39  ;;  %v1931_v27 = vor.u32 %v1929_v46, %v1927_v33 }
 0x173   : > { %v5013_v62 = vpop.f32.mrb[60].mxu1  ;;  %5189 = vmatmul.mubr.bf16.gmra.mrb[76].mxu0 %v1928_v26  ;;  %v1834_v5 = vpack.c.bf16 %v1824_v40, %v1823_v31  ;;  %v1786_v16 = vadd.f32 %v5009_v51, %v1487_v30  ;;  %v1488_v4 = vadd.f32 %v4948_v32, %v6501_v24  ;;  %v2453_v31 = vld [vmem:[#allocation2] sm:$0xc0] }
 0x174   : > { %v5014_v10 = vpop.f32.mrb[61].mxu1  ;;  %5192 = vmatprep.mubr.msk.bf16.mxu0 %vm5799_vm3, %v5798_v9  ;;  %5261 = vmatpush3.bf16.msra.mxu0 %v5741_v61  ;;  %v6684_v49 = vsel %vm2253_vm5, %v2272_v17, %v2276_v41  ;;  %v2480_v61 = vrot.slane %v2453_v31, 6 }
 0x175   : > { %v5015_v60 = vadd.f32 %v5014_v10, %v5013_v62  ;;  %v5016_v18 = vpop.f32.mrb[62].mxu1  ;;  %5262 = vmatprep.subr.bf16.mxu0 %v5798_v9  ;;  %v1809_v8 = vadd.f32 %v6511_v48, %v1786_v16  ;;  %v1787_v7 = vadd.f32 %v5012_v19, %v1488_v4  ;;  %v4949_v22 = vpop.f32.mrb[60].mxu0  ;;  %5241 = vmatmul.mubr.bf16.gmra.mrb[84].mxu1 %v1834_v5  ;;  %v1933_v51 = vshll.u32 %v1834_v5, 16 }
 0x176   : > { %v5017_v0 = vpop.f32.mrb[63].mxu1  ;;  %v1937_v24 = vshrl.u32 %v1834_v5, 16  ;;  %v4950_v53 = vpop.f32.mrb[61].mxu0  ;;  %5244 = vmatprep.mubr.msk.bf16.mxu1 %vm5799_vm3, %v5798_v9  ;;  %v2489_v42 = vrot.slane %v1834_v5, 6 }
 0x177   : > { %v5018_v54 = vadd.f32 %v5017_v0, %v5016_v18  ;;  %v1810_v58 = vadd.f32 %v6511_v48, %v1787_v7  ;;  %v4951_v2 = vadd.f32 %v4950_v53, %v4949_v22  ;;  %v4952_v23 = vpop.f32.mrb[62].mxu0  ;;  %v1935_v28 = vrot.slane %v1933_v51, 1  ;;  %v2234_v0 = vld [vmem:[#allocation2] sm:$0xe0]  ;;  %v5744_v53 = vld [vmem:[%s7459_s5 + $0x28] sm:$0xff]  }
 0x178   : > { %5263 = vmatpush3.bf16.msra.mxu0 %v5742_v1  ;;  %v1825_v35 = vmax.f32 %v1809_v8, 0.0  ;;  %v4953_v17 = vpop.f32.mrb[63].mxu0  ;;  %v6691_v19 = vsel %vm2479_vm4, %v2487_v12, %v2489_v42  ;;  %v2278_v37 = vrot.slane %v1937_v24, 5  ;;  %v2279_v3 = vrot.slane %v1933_v51, 6 }
 0x179   : > { %5336 = vmatprep.subr.bf16.mxu0 %v5798_v9  ;;  %v1826_v14 = vmax.f32 %v1810_v58, 0.0  ;;  %v1489_v57 = vadd.f32 %v4951_v2, %v6503_v15  ;;  %v4954_v38 = vadd.f32 %v4953_v17, %v4952_v23  ;;  %v1936_v44 = vsel %vm431_vm0, %v1931_v27, %v1935_v28  ;;  %v5746_v58 = vld [vmem:[%s7459_s5 + $0x38] sm:$0xff]  }
 0x17a   : > { %v2280_v47 = vor.u32 %v2279_v3, %v2278_v37  ;;  %v1939_v45 = vor.u32 %v1937_v24, %v1935_v28  ;;  %v2258_v5 = vshll.u32 %v2234_v0, 16  ;;  %v5743_v24 = vld [vmem:[%s7459_s5 + $0x20] sm:$0xff]  }
 0x17b   : > { %5193 = vmatmul.mubr.bf16.gmra.mrb[80].mxu0 %v1936_v44  ;;  %v6696_v50 = vpack.c.bf16 %v1826_v14, %v1825_v35  ;;  %v1788_v46 = vadd.f32 %v5015_v60, %v1489_v57  ;;  %v1490_v55 = vadd.f32 %v4954_v38, %v6505_v63 }
 0x17c   : > { %5196 = vmatprep.mubr.msk.bf16.mxu0 %vm5799_vm3, %v5798_v9  ;;  %v6702_v62 = vsel %vm2253_vm5, %v2276_v41, %v2280_v47  ;;  %v2255_v41 = vshrl.u32 %v2234_v0, 16  ;;  %v2260_v1 = vrot.slane %v2258_v5, 6 }
 0x17d   : > { %v1811_v11 = vadd.f32 %v6511_v48, %v1788_v46  ;;  %v1789_v12 = vadd.f32 %v5018_v54, %v1490_v55  ;;  %5245 = vmatmul.mubr.bf16.gmra.mrb[88].mxu1 %v6696_v50  ;;  %v1941_v15 = vshll.u32 %v6696_v50, 16  ;;  %v1945_v36 = vshrl.u32 %v6696_v50, 16 }
 0x17e   : > { %5308 = vmatprep.mubr.msk.bf16.mxu1 %vm5799_vm3, %v5798_v9  ;;  %v2491_v63 = vrot.slane %v6696_v50, 6  ;;  %v2257_v4 = vrot.slane %v2255_v41, 5 }
 0x17f   : > { %v1812_v52 = vadd.f32 %v6511_v48, %v1789_v12  ;;  %v1943_v10 = vrot.slane %v1941_v15, 1  ;;  %v2282_v33 = vrot.slane %v1945_v36, 5  ;;  %v2283_v60 = vrot.slane %v1941_v15, 6 }
 0x180   : > { %v2492_v59 = vsel %vm2479_vm4, %v2489_v42, %v2491_v63  ;;  %v1827_v18 = vmax.f32 %v1811_v11, 0.0  ;;  %v2482_v48 = vsel %vm2479_vm4, %v2480_v61, %v2481_v6  ;;  %v2261_v8 = vor.u32 %v2260_v1, %v2257_v4  ;;  %v5745_v42 = vld [vmem:[%s7459_s5 + $0x30] sm:$0xff]  }
 0x181   : > { %v1828_v39 = vmax.f32 %v1812_v52, 0.0  ;;  %v1944_v34 = vsel %vm431_vm0, %v1939_v45, %v1943_v10  ;;  %v2284_v40 = vor.u32 %v2283_v60, %v2282_v33  ;;  %v1947_v25 = vor.u32 %v1945_v36, %v1943_v10 }
 0x183   : > { %5197 = vmatmul.mubr.bf16.gmra.mrb[84].mxu0 %v1944_v34  ;;  %v1836_v30 = vpack.c.bf16 %v1828_v39, %v1827_v18  ;;  %v2285_v32 = vsel %vm2253_vm5, %v2280_v47, %v2284_v40 }
 0x184   : > { %5200 = vmatprep.mubr.msk.bf16.mxu0 %vm5799_vm3, %v5798_v9 }
 0x185   : > { %1844 = vst [vmem:[#allocation2 + $0x38] sm:$0xff] %v1836_v30  ;;  %5309 = vmatmul.mubr.bf16.vlgmr.msra.gmra.mrb[92].mxu1 %v2482_v48 }
 0x186   : > { %5312 = vmatprep.mubr.msk.bf16.mxu1 %vm5799_vm3, %v5798_v9  ;;  %5592 = vmatpush3.bf16.msra.mxu1 %v5743_v24 }
 0x187   : > { %5589 = vmatprep.subr.bf16.mxu1 %v5798_v9 }
 0x18a   : > { %5593 = vmatpush3.bf16.msra.mxu1 %v5744_v53 }
 0x18b   : > { %5590 = vmatprep.subr.bf16.mxu1 %v5798_v9 }
 0x18c   : > { %v1875_v26 = vld [vmem:[#allocation2 + $0x38] sm:$0x1] }
 0x18d   : > { %v1949_v54 = vshll.u32 %v1875_v26, 16  ;;  %5313 = vmatmul.mubr.bf16.gmra.mrb[96].mxu1 %v6594_v20  ;;  %v2265_v20 = vsel %vm2253_vm5, %v2261_v8, %v6603_v13  ;;  %v2235_v13 = vld [vmem:[#allocation2 + $0x38] sm:$0x3f] }
 0x18e   : > { %5316 = vmatprep.mubr.msk.bf16.mxu1 %vm5799_vm3, %v5798_v9  ;;  %5594 = vmatpush3.bf16.msra.mxu1 %v5745_v42 }
 0x18f   : > { %v1951_v16 = vrot.slane %v1949_v54, 1  ;;  %5591 = vmatprep.subr.bf16.mxu1 %v5798_v9 }
 0x191   : > { %v1952_v6 = vsel %vm431_vm0, %v1947_v25, %v1951_v16 }
 0x192   : > { %5201 = vmatmul.mubr.bf16.gmra.mrb[88].mxu0 %v1952_v6  ;;  %5595 = vmatpush3.bf16.msra.mxu1 %v5746_v58 }
 0x193   : > { %5264 = vmatprep.mubr.msk.bf16.mxu0 %vm5799_vm3, %v5798_v9  ;;  %5364 = vmatprep.subr.bf16.mxu1 %v5798_v9 }
 0x195   : > { %5317 = vmatmul.mubr.bf16.gmra.mrb[100].mxu1 %v6640_v56  ;;  %v2493_v56 = vrot.slane %v2235_v13, 6 }
 0x196   : > { %5320 = vmatprep.mubr.msk.bf16.mxu1 %vm5799_vm3, %v5798_v9 }
 0x19a   : > { %5265 = vmatmul.mubr.bf16.vlgmr.msra.gmra.mrb[92].mxu0 %v2265_v20 }
 0x19b   : > { %5268 = vmatprep.mubr.msk.bf16.mxu0 %vm5799_vm3, %v5798_v9  ;;  %5337 = vmatpush3.bf16.msra.mxu0 %v5743_v24 }
 0x19c   : > { %5338 = vmatprep.subr.bf16.mxu0 %v5798_v9 }
 0x19d   : > { %5321 = vmatmul.mubr.bf16.gmra.mrb[104].mxu1 %v6672_v43  ;;  %v2290_v43 = vshll.u32 %v2235_v13, 16 }
 0x19e   : > { %5324 = vmatprep.mubr.msk.bf16.mxu1 %vm5799_vm3, %v5798_v9 }
 0x19f   : > { %v2292_v22 = vrot.slane %v2290_v43, 6  ;;  %5339 = vmatpush3.bf16.msra.mxu0 %v5744_v53 }
 0x1a0   : > { %5340 = vmatprep.subr.bf16.mxu0 %v5798_v9 }
 0x1a2   : > { %5269 = vmatmul.mubr.bf16.gmra.mrb[96].mxu0 %v6618_v29  ;;  %v2494_v29 = vsel %vm2479_vm4, %v2491_v63, %v2493_v56 }
 0x1a3   : > { %5272 = vmatprep.mubr.msk.bf16.mxu0 %vm5799_vm3, %v5798_v9  ;;  %5341 = vmatpush3.bf16.msra.mxu0 %v5745_v42 }
 0x1a4   : > { %5342 = vmatprep.subr.bf16.mxu0 %v5798_v9 }
 0x1a5   : > { %5325 = vmatmul.mubr.bf16.gmra.mrb[108].mxu1 %v6691_v19 }
 0x1a6   : > { %5328 = vmatprep.mubr.msk.bf16.mxu1 %vm5799_vm3, %v5798_v9 }
 0x1a7   : > { %5343 = vmatpush3.bf16.msra.mxu0 %v5746_v58 }
 0x1a8   : > { %5392 = vmatprep.subr.bf16.mxu0 %v5798_v9 }
 0x1aa   : > { %5273 = vmatmul.mubr.bf16.gmra.mrb[100].mxu0 %v6655_v21  ;;  %v2287_v21 = vshrl.u32 %v2235_v13, 16 }
 0x1ab   : > { %5276 = vmatprep.mubr.msk.bf16.mxu0 %vm5799_vm3, %v5798_v9 }
 0x1ac   : > { %v2289_v7 = vrot.slane %v2287_v21, 5 }
 0x1ad   : > { %5329 = vmatmul.mubr.bf16.gmra.mrb[112].mxu1 %v2492_v59 }
 0x1ae   : > { %5332 = vmatprep.mubr.msk.bf16.mxu1 %vm5799_vm3, %v5798_v9 }
 0x1b2   : > { %5277 = vmatmul.mubr.bf16.gmra.mrb[104].mxu0 %v6684_v49  ;;  %v2293_v49 = vor.u32 %v2292_v22, %v2289_v7 }
 0x1b3   : > { %5280 = vmatprep.mubr.msk.bf16.mxu0 %vm5799_vm3, %v5798_v9 }
 0x1b4   : > { %v2294_v51 = vsel %vm2253_vm5, %v2284_v40, %v2293_v49 }
 0x1b5   : > { %5333 = vmatmul.mubr.bf16.gmra.mrb[116].mxu1 %v2494_v29 }
 0x1b6   : > { %5352 = vmatprep.mubr.msk.bf16.mxu1 %vm5799_vm3, %v5798_v9 }
 0x1ba   : > { %5281 = vmatmul.mubr.bf16.gmra.mrb[108].mxu0 %v6702_v62 }
 0x1bb   : > { %5284 = vmatprep.mubr.msk.bf16.mxu0 %vm5799_vm3, %v5798_v9 }
 0x1c2   : > { %5285 = vmatmul.mubr.bf16.gmra.mrb[112].mxu0 %v2285_v32 }
 0x1c3   : > { %5288 = vmatprep.mubr.msk.bf16.mxu0 %vm5799_vm3, %v5798_v9 }
 0x1ca   : > { %5289 = vmatmul.mubr.bf16.gmra.mrb[116].mxu0 %v2294_v51 }
 0x1cb   : > { %5344 = vmatprep.mubr.msk.bf16.mxu0 %vm5799_vm3, %v5798_v9 }
 0x220   : > { %v2179_v2 = vpop.f32.mrb[64].mxu1 }
 0x221   : > { %v5222_v23 = vpop.f32.mrb[65].mxu1 }
 0x222   : > { %v2182_v27 = vpop.f32.mrb[66].mxu1 }
 0x223   : > { %v5223_v28 = vpop.f32.mrb[67].mxu1 }
 0x228   : > { %v2187_v35 = vpop.f32.mrb[68].mxu1 }
 0x229   : > { %v5226_v17 = vpop.f32.mrb[69].mxu1 }
 0x22a   : > { %v2190_v19 = vpop.f32.mrb[70].mxu1 }
 0x22b   : > { %v5227_v37 = vpop.f32.mrb[71].mxu1 }
 0x22d   : > { %v2042_v3 = vpop.f32.mrb[64].mxu0 }
 0x22e   : > { %v6783_v14 = vadd.f32 %v2179_v2, %v2042_v3  ;;  %v5178_v57 = vpop.f32.mrb[65].mxu0 }
 0x22f   : > { %v2045_v38 = vpop.f32.mrb[66].mxu0 }
 0x230   : > { %v6785_v44 = vadd.f32 %v2182_v27, %v2045_v38  ;;  %v5179_v47 = vpop.f32.mrb[67].mxu0  ;;  %v2195_v50 = vpop.f32.mrb[72].mxu1 }
 0x231   : > { %v5230_v46 = vpop.f32.mrb[73].mxu1 }
 0x232   : > { %v2198_v55 = vpop.f32.mrb[74].mxu1 }
 0x233   : > { %v5231_v62 = vpop.f32.mrb[75].mxu1 }
 0x236   : > { %v2050_v11 = vpop.f32.mrb[68].mxu0 }
 0x237   : > { %v6787_v12 = vadd.f32 %v2187_v35, %v2050_v11  ;;  %v5182_v15 = vpop.f32.mrb[69].mxu0 }
 0x238   : > { %v2053_v31 = vpop.f32.mrb[70].mxu0  ;;  %v2203_v52 = vpop.f32.mrb[76].mxu1 }
 0x239   : > { %v6789_v36 = vadd.f32 %v2190_v19, %v2053_v31  ;;  %v5183_v63 = vpop.f32.mrb[71].mxu0  ;;  %v5234_v45 = vpop.f32.mrb[77].mxu1 }
 0x23a   : > { %v2206_v10 = vpop.f32.mrb[78].mxu1 }
 0x23b   : > { %v5235_v33 = vpop.f32.mrb[79].mxu1 }
 0x23e   : > { %v2058_v61 = vpop.f32.mrb[72].mxu0 }
 0x23f   : > { %v6791_v59 = vadd.f32 %v2195_v50, %v2058_v61  ;;  %v5186_v60 = vpop.f32.mrb[73].mxu0 }
 0x240   : > { %v2061_v18 = vpop.f32.mrb[74].mxu0  ;;  %v2211_v40 = vpop.f32.mrb[80].mxu1 }
 0x241   : > { %v6793_v39 = vadd.f32 %v2198_v55, %v2061_v18  ;;  %v5187_v34 = vpop.f32.mrb[75].mxu0  ;;  %v5238_v30 = vpop.f32.mrb[81].mxu1 }
 0x242   : > { %v2214_v48 = vpop.f32.mrb[82].mxu1 }
 0x243   : > { %v5239_v32 = vpop.f32.mrb[83].mxu1 }
 0x246   : > { %v2066_v0 = vpop.f32.mrb[76].mxu0 }
 0x247   : > { %v6795_v26 = vadd.f32 %v2203_v52, %v2066_v0  ;;  %v5190_v54 = vpop.f32.mrb[77].mxu0 }
 0x248   : > { %v2069_v41 = vpop.f32.mrb[78].mxu0  ;;  %v2219_v16 = vpop.f32.mrb[84].mxu1 }
 0x249   : > { %v6797_v5 = vadd.f32 %v2206_v10, %v2069_v41  ;;  %v5191_v25 = vpop.f32.mrb[79].mxu0  ;;  %v5242_v6 = vpop.f32.mrb[85].mxu1  ;;  %v6815_v10 = vld [vmem:[%s7458_s4] ss:$0 sm:$0xff] }
 0x24a   : > { %v2222_v4 = vpop.f32.mrb[86].mxu1 }
 0x24b   : > { %v5243_v1 = vpop.f32.mrb[87].mxu1 }
 0x24e   : > { %v2074_v8 = vpop.f32.mrb[80].mxu0 }
 0x24f   : > { %v6799_v20 = vadd.f32 %v2211_v40, %v2074_v8  ;;  %v5194_v13 = vpop.f32.mrb[81].mxu0 }
 0x250   : > { %v2077_v56 = vpop.f32.mrb[82].mxu0  ;;  %v2227_v43 = vpop.f32.mrb[88].mxu1 }
 0x251   : > { %v6801_v29 = vadd.f32 %v2214_v48, %v2077_v56  ;;  %v5195_v21 = vpop.f32.mrb[83].mxu0  ;;  %v5246_v7 = vpop.f32.mrb[89].mxu1 }
 0x252   : > { %v2230_v22 = vpop.f32.mrb[90].mxu1 }
 0x253   : > { %v5247_v49 = vpop.f32.mrb[91].mxu1 }
 0x256   : > { %v2082_v51 = vpop.f32.mrb[84].mxu0 }
 0x257   : > { %v6803_v24 = vadd.f32 %v2219_v16, %v2082_v51  ;;  %v5198_v53 = vpop.f32.mrb[85].mxu0 }
 0x258   : > { %v2085_v42 = vpop.f32.mrb[86].mxu0  ;;  %v2584_v23 = vpop.f32.mrb[92].mxu1 }
 0x259   : > { %v6805_v58 = vadd.f32 %v2222_v4, %v2085_v42  ;;  %v5199_v2 = vpop.f32.mrb[87].mxu0  ;;  %v5310_v27 = vpop.f32.mrb[93].mxu1 }
 0x25a   : > { %v2587_v28 = vpop.f32.mrb[94].mxu1 }
 0x25b   : > { %v5311_v35 = vpop.f32.mrb[95].mxu1 }
 0x260   : > { %v2592_v17 = vpop.f32.mrb[96].mxu1 }
 0x261   : > { %v5314_v19 = vpop.f32.mrb[97].mxu1 }
 0x262   : > { %v2595_v37 = vpop.f32.mrb[98].mxu1 }
 0x263   : > { %v5315_v3 = vpop.f32.mrb[99].mxu1 }
 0x265   : > { %v2090_v57 = vpop.f32.mrb[88].mxu0 }
 0x266   : > { %v6807_v38 = vadd.f32 %v2227_v43, %v2090_v57  ;;  %v5202_v47 = vpop.f32.mrb[89].mxu0 }
 0x267   : > { %v2093_v50 = vpop.f32.mrb[90].mxu0 }
 0x268   : > { %v6809_v46 = vadd.f32 %v2230_v22, %v2093_v50  ;;  %v5203_v55 = vpop.f32.mrb[91].mxu0  ;;  %v2600_v62 = vpop.f32.mrb[100].mxu1 }
 0x269   : > { %v5318_v11 = vpop.f32.mrb[101].mxu1 }
 0x26a   : > { %v2603_v15 = vpop.f32.mrb[102].mxu1 }
 0x26b   : > { %v5319_v31 = vpop.f32.mrb[103].mxu1 }
 0x26d   : > { %v2384_v63 = vpop.f32.mrb[92].mxu0 }
 0x26e   : > { %v2439_v52 = vadd.f32 %v2384_v63, %v6783_v14  ;;  %v5266_v45 = vpop.f32.mrb[93].mxu0 }
 0x26f   : > { %v2387_v33 = vpop.f32.mrb[94].mxu0 }
 0x270   : > { %v2639_v61 = vadd.f32 %v2584_v23, %v2439_v52  ;;  %v2440_v60 = vadd.f32 %v2387_v33, %v6785_v44  ;;  %v5267_v18 = vpop.f32.mrb[95].mxu0  ;;  %v2608_v34 = vpop.f32.mrb[104].mxu1 }
 0x271   : > { %v5322_v40 = vpop.f32.mrb[105].mxu1 }
 0x272   : > { %v2660_v30 = vadd.f32 %v6815_v10, %v2639_v61  ;;  %v2640_v48 = vadd.f32 %v2587_v28, %v2440_v60  ;;  %v2611_v32 = vpop.f32.mrb[106].mxu1 }
 0x273   : > { %v5323_v0 = vpop.f32.mrb[107].mxu1 }
 0x274   : > { %v2661_v14 = vadd.f32 %v6815_v10, %v2640_v48  ;;  %v2674_v41 = vmax.f32 %v2660_v30, 0.0 }
 0x275   : > { %v2392_v54 = vpop.f32.mrb[96].mxu0 }
 0x276   : > { %v2675_v25 = vmax.f32 %v2661_v14, 0.0  ;;  %v2441_v16 = vadd.f32 %v2392_v54, %v6787_v12  ;;  %v5270_v6 = vpop.f32.mrb[97].mxu0 }
 0x277   : > { %v2395_v4 = vpop.f32.mrb[98].mxu0 }
 0x278   : > { %v2688_v1 = vpack.c.bf16 %v2675_v25, %v2674_v41  ;;  %v2641_v44 = vadd.f32 %v2592_v17, %v2441_v16  ;;  %v2442_v8 = vadd.f32 %v2395_v4, %v6789_v36  ;;  %v5271_v13 = vpop.f32.mrb[99].mxu0  ;;  %v6822_v56 = vpop.f32.mrb[108].mxu1  ;;  %v5747_v4 = vld [vmem:[%s7459_s5 + $0x40] sm:$0xff]  }
 0x279   : > { %v5326_v21 = vpop.f32.mrb[109].mxu1 }
 0x27a   : > { %2696 = vst.msk [vmem:[#allocation3] sm:$0xff] %vm2695_vm6, %v2688_v1  ;;  %v2662_v43 = vadd.f32 %v6815_v10, %v2641_v44  ;;  %v2642_v7 = vadd.f32 %v2595_v37, %v2442_v8  ;;  %v6826_v22 = vpop.f32.mrb[110].mxu1 }
 0x27b   : > { %v5327_v49 = vpop.f32.mrb[111].mxu1 }
 0x27c   : > { %v2663_v12 = vadd.f32 %v6815_v10, %v2642_v7  ;;  %v2676_v53 = vmax.f32 %v2662_v43, 0.0 }
 0x27d   : > { %v2400_v51 = vpop.f32.mrb[100].mxu0 }
 0x27e   : > { %v2677_v42 = vmax.f32 %v2663_v12, 0.0  ;;  %v2443_v2 = vadd.f32 %v2400_v51, %v6791_v59  ;;  %v5274_v36 = vpop.f32.mrb[101].mxu0 }
 0x27f   : > { %v2403_v23 = vpop.f32.mrb[102].mxu0 }
 0x280   : > { %v2689_v27 = vpack.c.bf16 %v2677_v42, %v2676_v53  ;;  %v2643_v28 = vadd.f32 %v2600_v62, %v2443_v2  ;;  %v2444_v35 = vadd.f32 %v2403_v23, %v6793_v39  ;;  %v5275_v17 = vpop.f32.mrb[103].mxu0  ;;  %v6831_v19 = vpop.f32.mrb[112].mxu1 }
 0x281   : > { %v5330_v37 = vpop.f32.mrb[113].mxu1  ;;  %v6833_v3 = vld [vmem:[#allocation3] sm:$0xff] }
 0x282   : > { %2697 = vst.msk [vmem:[#allocation3 + $0x8] sm:$0xff] %vm2695_vm6, %v2689_v27  ;;  %v2664_v57 = vadd.f32 %v6815_v10, %v2643_v28  ;;  %v2644_v47 = vadd.f32 %v2603_v15, %v2444_v35  ;;  %v6837_v50 = vpop.f32.mrb[114].mxu1  ;;  %v2729_v62 = vshll.u32 %v6833_v3, 16  ;;  %v2727_v48 = vshrl.u32 %v6833_v3, 16 }
 0x283   : > { %v5331_v59 = vpop.f32.mrb[115].mxu1 }
 0x284   : > { %v2665_v55 = vadd.f32 %v6815_v10, %v2644_v47  ;;  %v2678_v39 = vmax.f32 %v2664_v57, 0.0  ;;  %v2731_v15 = vrot.slane %v2729_v62, 1  ;;  %v5749_v59 = vld [vmem:[%s7459_s5 + $0x50] sm:$0xff]  }
 0x285   : > { %v2408_v11 = vpop.f32.mrb[104].mxu0 }
 0x286   : > { %v2679_v31 = vmax.f32 %v2665_v55, 0.0  ;;  %v2445_v63 = vadd.f32 %v2408_v11, %v6795_v26  ;;  %v5278_v52 = vpop.f32.mrb[105].mxu0  ;;  %v2732_v16 = vor.u32 %v2731_v15, %v2727_v48 }
 0x287   : > { %v2411_v45 = vpop.f32.mrb[106].mxu0 }
 0x288   : > { %v2690_v33 = vpack.c.bf16 %v2679_v31, %v2678_v39  ;;  %v2645_v61 = vadd.f32 %v2608_v34, %v2445_v63  ;;  %v2446_v60 = vadd.f32 %v2411_v45, %v6797_v5  ;;  %v5279_v18 = vpop.f32.mrb[107].mxu0  ;;  %v6843_v40 = vpop.f32.mrb[116].mxu1 }
 0x289   : > { %v6845_v30 = vld [vmem:[#allocation3 + $0x8] sm:$0xff]  ;;  %v5334_v0 = vpop.f32.mrb[117].mxu1 }
 0x28a   : > { %2698 = vst.msk [vmem:[#allocation3 + $0x10] sm:$0xff] %vm2695_vm6, %v2690_v33  ;;  %v2666_v14 = vadd.f32 %v6815_v10, %v2645_v61  ;;  %v2646_v26 = vadd.f32 %v2611_v32, %v2446_v60  ;;  %v2734_v54 = vshll.u32 %v6845_v30, 16  ;;  %v6851_v41 = vpop.f32.mrb[118].mxu1  ;;  %v2738_v5 = vshrl.u32 %v6845_v30, 16 }
 0x28b   : > { %v5335_v34 = vpop.f32.mrb[119].mxu1 }
 0x28c   : > { %v2667_v25 = vadd.f32 %v6815_v10, %v2646_v26  ;;  %v2736_v6 = vrot.slane %v2734_v54, 1  ;;  %v3158_v1 = vrot.slane %v2738_v5, 5  ;;  %v3159_v8 = vrot.slane %v2734_v54, 6 }
 0x28d   : > { %v2416_v44 = vpop.f32.mrb[108].mxu0  ;;  %v3469_v13 = vrot.slane %v2738_v5, 6  ;;  %v2680_v32 = vmax.f32 %v2666_v14, 0.0  ;;  %v3470_v53 = vrot.slane %v2734_v54, 7  ;;  %v2989_v14 = vld [vmem:[#allocation3] sm:$0xfe] }
 0x28e   : > { %v2681_v21 = vmax.f32 %v2667_v25, 0.0  ;;  %v2447_v43 = vadd.f32 %v2416_v44, %v6799_v20  ;;  %v5282_v7 = vpop.f32.mrb[109].mxu0  ;;  %v2737_v49 = vsel %vm431_vm0, %v2732_v16, %v2736_v6  ;;  %v6861_v51 = vor.u32 %v3159_v8, %v3158_v1  ;;  %v5748_v20 = vld [vmem:[%s7459_s5 + $0x48] sm:$0xff]  }
 0x28f   : > { %v2419_v12 = vpop.f32.mrb[110].mxu0  ;;  %5345 = vmatmul.mubr.msk.bf16.vlgmr.msra.gmra.mrb[120].mxu0 %vm2695_vm6, %v2737_v49  ;;  %v6873_v28 = vor.u32 %v3470_v53, %v3469_v13  ;;  %v2740_v57 = vor.u32 %v2738_v5, %v2736_v6  ;;  %v3007_v54 = vrot.slane %v6845_v30, 1  ;;  %v3006_v6 = vrot.slane %v2989_v14, 1  ;;  %v5753_v14 = vld [vmem:[%s7459_s5 + $0x10] sm:$0xff]  }
 0x290   : > { %v2691_v42 = vpack.c.bf16 %v2681_v21, %v2680_v32  ;;  %v2647_v2 = vadd.f32 %v6822_v56, %v2447_v43  ;;  %v2448_v36 = vadd.f32 %v2419_v12, %v6801_v29  ;;  %v5283_v23 = vpop.f32.mrb[111].mxu0  ;;  %5393 = vmatpush3.bf16.msra.mxu0 %v5747_v4  ;;  %5348 = vmatprep.mubr.msk.bf16.mxu0 %vm5799_vm3, %v5798_v9  ;;  %v5751_v32 = vld [vmem:[%s7459_s5] sm:$0xff]  }
 0x291   : > { %5394 = vmatprep.subr.bf16.mxu0 %v5798_v9  ;;  %v6871_v27 = vld [vmem:[#allocation3 + $0x10] sm:$0xff]  ;;  %v3008_v7 = vsel %vm3005_vm7, %v3006_v6, %v3007_v54 }
 0x292   : > { %2699 = vst.msk [vmem:[#allocation3 + $0x18] sm:$0xff] %vm2695_vm6, %v2691_v42  ;;  %v2668_v56 = vadd.f32 %v6815_v10, %v2647_v2  ;;  %v2648_v29 = vadd.f32 %v6826_v22, %v2448_v36  ;;  %v6879_v35 = vshll.u32 %v6871_v27, 16  ;;  %v6882_v17 = vshrl.u32 %v6871_v27, 16 }
 0x293   : > { %v3639_v4 = vrot.slane %v6871_v27, 3  ;;  %v3971_v53 = vrot.slane %v6871_v27, 4 }
 0x294   : > { %v2669_v37 = vadd.f32 %v6815_v10, %v2648_v29  ;;  %5395 = vmatpush3.bf16.msra.mxu0 %v5748_v20  ;;  %v2744_v47 = vrot.slane %v6879_v35, 1  ;;  %v3162_v55 = vrot.slane %v6882_v17, 5  ;;  %v3163_v22 = vrot.slane %v6879_v35, 6 }
 0x295   : > { %v2424_v62 = vpop.f32.mrb[112].mxu0  ;;  %5396 = vmatprep.subr.bf16.mxu0 %v5798_v9  ;;  %v2682_v11 = vmax.f32 %v2668_v56, 0.0  ;;  %v3473_v61 = vrot.slane %v6882_v17, 6  ;;  %v3474_v60 = vrot.slane %v6879_v35, 7  ;;  %v5756_v56 = vld [vmem:[%s7459_s5 + $0x80] sm:$0xff]  }
 0x296   : > { %v2683_v39 = vmax.f32 %v2669_v37, 0.0  ;;  %v2449_v31 = vadd.f32 %v2424_v62, %v6803_v24  ;;  %v5286_v63 = vpop.f32.mrb[113].mxu0  ;;  %v2745_v52 = vsel %vm431_vm0, %v2740_v57, %v2744_v47  ;;  %v6895_v33 = vor.u32 %v3163_v22, %v3162_v55  ;;  %v5750_v24 = vld [vmem:[%s7459_s5 + $0x58] sm:$0xff]  }
 0x297   : > { %v2427_v45 = vpop.f32.mrb[114].mxu0  ;;  %5349 = vmatmul.mubr.msk.bf16.gmra.mrb[124].mxu0 %vm2695_vm6, %v2745_v52  ;;  %v2748_v13 = vor.u32 %v6882_v17, %v2744_v47 }
 0x298   : > { %v2692_v18 = vpack.c.bf16 %v2683_v39, %v2682_v11  ;;  %v2649_v15 = vadd.f32 %v6831_v19, %v2449_v31  ;;  %v2450_v48 = vadd.f32 %v2427_v45, %v6805_v58  ;;  %v5287_v0 = vpop.f32.mrb[115].mxu0  ;;  %5397 = vmatpush3.bf16.msra.mxu0 %v5749_v59  ;;  %5400 = vmatprep.mubr.msk.bf16.mxu0 %vm5799_vm3, %v5798_v9  ;;  %v5752_v11 = vld [vmem:[%s7459_s5 + $0x8] sm:$0xff]  }
 0x299   : > { %5398 = vmatprep.subr.bf16.mxu0 %v5798_v9  ;;  %v6907_v26 = vld [vmem:[#allocation3 + $0x18] sm:$0xff]  ;;  %v6913_v58 = vsel %vm2253_vm5, %v6861_v51, %v6895_v33  ;;  %v3475_v19 = vor.u32 %v3474_v60, %v3473_v61 }
 0x29a   : > { %2700 = vst.msk [vmem:[#allocation3 + $0x20] sm:$0xff] %vm2695_vm6, %v2692_v18  ;;  %v2670_v5 = vadd.f32 %v6815_v10, %v2649_v15  ;;  %v2650_v34 = vadd.f32 %v6837_v50, %v2450_v48  ;;  %v6919_v25 = vshll.u32 %v6907_v26, 16  ;;  %v6922_v16 = vshrl.u32 %v6907_v26, 16 }
 0x29b   : > { %v3641_v1 = vrot.slane %v6907_v26, 3  ;;  %v6928_v44 = vsel %vm3460_vm8, %v6873_v28, %v3475_v19  ;;  %v3973_v59 = vrot.slane %v6907_v26, 4 }
 0x29c   : > { %v2671_v8 = vadd.f32 %v6815_v10, %v2650_v34  ;;  %5399 = vmatpush3.bf16.msra.mxu0 %v5750_v24  ;;  %v2752_v50 = vrot.slane %v6919_v25, 1  ;;  %v3166_v21 = vrot.slane %v6922_v16, 5  ;;  %v3167_v49 = vrot.slane %v6919_v25, 6 }
 0x29d   : > { %v2432_v43 = vpop.f32.mrb[116].mxu0  ;;  %5448 = vmatprep.subr.bf16.mxu0 %v5798_v9  ;;  %v6947_v12 = vsel %vm3637_vm9, %v3639_v4, %v3641_v1  ;;  %v2684_v42 = vmax.f32 %v2670_v5, 0.0  ;;  %v3477_v57 = vrot.slane %v6922_v16, 6  ;;  %v3478_v47 = vrot.slane %v6919_v25, 7 }
 0x29e   : > { %v2685_v2 = vmax.f32 %v2671_v8, 0.0  ;;  %v2451_v36 = vadd.f32 %v2432_v43, %v6807_v38  ;;  %v5290_v23 = vpop.f32.mrb[117].mxu0  ;;  %v2753_v20 = vsel %vm431_vm0, %v2748_v13, %v2752_v50  ;;  %v3168_v37 = vor.u32 %v3167_v49, %v3166_v21  ;;  %v5754_v43 = vld [vmem:[%s7459_s5 + $0x18] sm:$0xff]  }
 0x29f   : > { %v2435_v29 = vpop.f32.mrb[118].mxu0  ;;  %5353 = vmatmul.mubr.msk.bf16.vlgmr.msra.gmra.mrb[120].mxu1 %vm2695_vm6, %v2753_v20  ;;  %5401 = vmatmul.mubr.msk.bf16.vlgmr.msra.gmra.mrb[128].mxu0 %vm2695_vm6, %v3008_v7  ;;  %v3479_v31 = vor.u32 %v3478_v47, %v3477_v57  ;;  %v6980_v63 = vsel %vm3969_vm10, %v3971_v53, %v3973_v59  ;;  %v2756_v18 = vor.u32 %v6922_v16, %v2752_v50  ;;  %v3796_v34 = vrot.slane %v6879_v35, 4 }
 0x2a0   : > { %v2693_v38 = vpack.c.bf16 %v2685_v2, %v2684_v42  ;;  %v2651_v55 = vadd.f32 %v6843_v40, %v2451_v36  ;;  %v2452_v62 = vadd.f32 %v2435_v29, %v6809_v46  ;;  %v5291_v22 = vpop.f32.mrb[119].mxu0  ;;  %5365 = vmatpush3.bf16.msra.mxu1 %v5751_v32  ;;  %5356 = vmatprep.mubr.msk.bf16.mxu1 %vm5799_vm3, %v5798_v9  ;;  %v3009_v40 = vrot.slane %v6871_v27, 1 }
 0x2a1   : > { %5366 = vmatprep.subr.bf16.mxu1 %v5798_v9  ;;  %5404 = vmatprep.mubr.msk.bf16.mxu0 %vm5799_vm3, %v5798_v9  ;;  %v6970_v39 = vld [vmem:[#allocation3 + $0x20] sm:$0xff]  ;;  %v6975_v46 = vsel %vm2253_vm5, %v6895_v33, %v3168_v37  ;;  %v5757_v33 = vld [vmem:[%s7459_s5 + $0x88] sm:$0xff]   ;;  %v6998_v48 = vsel %vm3460_vm8, %v3475_v19, %v3479_v31  ;;  %v3011_v20 = vrot.slane %v6907_v26, 1  ;;  %v3805_v29 = vrot.slane %v6919_v25, 4  ;;  %v5760_v25 = vld [vmem:[%s7459_s5 + $0x98] sm:$0xff]  }
 0x2a2   : > { %2701 = vst.msk [vmem:[#allocation3 + $0x28] sm:$0xff] %vm2695_vm6, %v2693_v38  ;;  %v2672_v52 = vadd.f32 %v6815_v10, %v2651_v55  ;;  %v2652_v45 = vadd.f32 %v6851_v41, %v2452_v62  ;;  %v6986_v61 = vshll.u32 %v6970_v39, 16  ;;  %v6989_v60 = vshrl.u32 %v6970_v39, 16  ;;  %5449 = vmatpush3.bf16.msra.mxu0 %v5756_v56 }
 0x2a3   : > { %5450 = vmatprep.subr.bf16.mxu0 %v5798_v9  ;;  %v3643_v15 = vrot.slane %v6970_v39, 3  ;;  %v3793_v41 = vrot.slane %v6882_v17, 3  ;;  %v3010_v19 = vsel %vm3005_vm7, %v3007_v54, %v3009_v40  ;;  %v5758_v54 = vld [vmem:[%s7459_s5 + $0x90] sm:$0xff]   ;;  %v3975_v32 = vrot.slane %v6970_v39, 4 }
 0x2a4   : > { %v2673_v0 = vadd.f32 %v6815_v10, %v2652_v45  ;;  %5367 = vmatpush3.bf16.msra.mxu1 %v5752_v11  ;;  %v2760_v24 = vrot.slane %v6986_v61, 1  ;;  %v3170_v5 = vrot.slane %v6989_v60, 5  ;;  %v3171_v10 = vrot.slane %v6986_v61, 6 }
 0x2a5   : > { %5368 = vmatprep.subr.bf16.mxu1 %v5798_v9  ;;  %v7020_v17 = vsel %vm3637_vm9, %v3641_v1, %v3643_v15  ;;  %v2686_v6 = vmax.f32 %v2672_v52, 0.0  ;;  %v3481_v13 = vrot.slane %v6989_v60, 6  ;;  %v3482_v1 = vrot.slane %v6986_v61, 7  ;;  %v5755_v52 = vld [vmem:[%s7459_s5 + $0x60] sm:$0xff]  }
 0x2a6   : > { %v2687_v8 = vmax.f32 %v2673_v0, 0.0  ;;  %v2761_v35 = vsel %vm431_vm0, %v2756_v18, %v2760_v24  ;;  %5451 = vmatpush3.bf16.msra.mxu0 %v5757_v33  ;;  %v7029_v50 = vor.u32 %v3171_v10, %v3170_v5  ;;  %v7038_v7 = vor.u32 %v3796_v34, %v3793_v41  ;;  %v7120_v18 = vld [vmem:[#allocation3] sm:$0xc0]  ;;  %v5762_v41 = vld [vmem:[%s7459_s5 + $0x78] sm:$0xff]  }
 0x2a7   : > { %5357 = vmatmul.mubr.msk.bf16.gmra.mrb[124].mxu1 %vm2695_vm6, %v2761_v35  ;;  %5405 = vmatmul.mubr.msk.bf16.gmra.mrb[132].mxu0 %vm2695_vm6, %v3010_v19  ;;  %v7047_v2 = vor.u32 %v3482_v1, %v3481_v13  ;;  %v7052_v36 = vsel %vm3969_vm10, %v3973_v59, %v3975_v32  ;;  %v3802_v56 = vrot.slane %v6922_v16, 3  ;;  %v3811_v57 = vrot.slane %v6989_v60, 3  ;;  %v5766_v19 = vld [vmem:[%s7459_s5 + $0xd0] sm:$0xff]  }
 0x2a8   : > { %v2694_v21 = vpack.c.bf16 %v2687_v8, %v2686_v6  ;;  %5369 = vmatpush3.bf16.msra.mxu1 %v5753_v14  ;;  %5360 = vmatprep.mubr.msk.bf16.mxu1 %vm5799_vm3, %v5798_v9  ;;  %v7045_v42 = vsel %vm2253_vm5, %v3168_v37, %v7029_v50  ;;  %v3814_v47 = vrot.slane %v6986_v61, 4  ;;  %v2764_v59 = vor.u32 %v6989_v60, %v2760_v24  ;;  %v5759_v61 = vld [vmem:[%s7459_s5 + $0x68] sm:$0xff]   ;;  %v5764_v14 = vld [vmem:[%s7459_s5 + $0xc0] sm:$0xff]   ;;  %v5768_v8 = vld [vmem:[%s7459_s5 + $0xd8] sm:$0xff]  }
 0x2a9   : > { %5408 = vmatprep.mubr.msk.bf16.mxu0 %vm5799_vm3, %v5798_v9  ;;  %v2716_v49 = vld [vmem:[#allocation3 + $0x28] sm:$0x1]  ;;  %5370 = vmatprep.subr.bf16.mxu1 %v5798_v9  ;;  %v7061_v37 = vsel %vm3460_vm8, %v3479_v31, %v7047_v2  ;;  %v3012_v55 = vsel %vm3005_vm7, %v3009_v40, %v3011_v20  ;;  %v3806_v62 = vor.u32 %v3805_v29, %v3802_v56  ;;  %v3013_v31 = vrot.slane %v6970_v39, 1  ;;  %v3139_v6 = vld [vmem:[#allocation3] sm:$0xe0] }
 0x2aa   : > { %2702 = vst.msk [vmem:[#allocation3 + $0x30] sm:$0xff] %vm2695_vm6, %v2694_v21  ;;  %v2766_v23 = vshll.u32 %v2716_v49, 16  ;;  %5452 = vmatprep.subr.bf16.mxu0 %v5798_v9  ;;  %v7077_v22 = vor.u32 %v3814_v47, %v3811_v57  ;;  %v3015_v60 = vrot.slane %v2716_v49, 1  ;;  %v3318_v0 = vrot.slane %v6845_v30, 6  ;;  %v3140_v29 = vld [vmem:[#allocation3 + $0x28] sm:$0x3f] }
 0x2ab   : > { %5453 = vmatpush3.bf16.msra.mxu0 %v5758_v54  ;;  %v7085_v11 = vsel %vm3781_vm11, %v7038_v7, %v3806_v62  ;;  %v3014_v45 = vsel %vm3005_vm7, %v3011_v20, %v3013_v31  ;;  %v3317_v24 = vrot.slane %v7120_v18, 6  ;;  %v3320_v34 = vrot.slane %v6871_v27, 6  ;;  %v5767_v57 = vld [vmem:[%s7459_s5 + $0xa8] sm:$0xff]   ;;  %v5769_v47 = vld [vmem:[%s7459_s5 + $0xb0] sm:$0xff]  }
 0x2ac   : > { %v2768_v38 = vrot.slane %v2766_v23, 1  ;;  %5371 = vmatpush3.bf16.msra.mxu1 %v5754_v43  ;;  %5454 = vmatprep.subr.bf16.mxu0 %v5798_v9  ;;  %v7089_v40 = vsel %vm3781_vm11, %v3806_v62, %v7077_v22  ;;  %v3016_v33 = vsel %vm3005_vm7, %v3013_v31, %v3015_v60  ;;  %v3322_v35 = vrot.slane %v6907_v26, 6  ;;  %v5763_v23 = vld [vmem:[%s7459_s5 + $0xa0] sm:$0xff]   ;;  %v5773_v62 = vld [vmem:[%s7459_s5 + $0x108] sm:$0xff]   ;;  %vm7402_vm7 = vmor %vm2479_vm4, %vm4155_vm1 }
 0x2ad   : > { %5420 = vmatprep.subr.bf16.mxu1 %v5798_v9  ;;  %v3319_v5 = vsel %vm2479_vm4, %v3317_v24, %v3318_v0  ;;  %v3321_v10 = vsel %vm2479_vm4, %v3318_v0, %v3320_v34  ;;  %v3151_v13 = vshrl.u32 %v3139_v6, 16  ;;  %v3154_v54 = vshll.u32 %v3139_v6, 16 }
 0x2ae   : > { %v2769_v16 = vsel %vm431_vm0, %v2764_v59, %v2768_v38  ;;  %v3323_v1 = vsel %vm2479_vm4, %v3320_v34, %v3322_v35  ;;  %v3324_v43 = vrot.slane %v6970_v39, 6  ;;  %v7200_v38 = vld [vmem:[#allocation3 + $0x8] sm:$0xf8]  ;;  %v3175_v31 = vshrl.u32 %v3140_v29, 16 }
 0x2af   : > { %5361 = vmatmul.mubr.msk.bf16.gmra.mrb[128].mxu1 %vm2695_vm6, %v2769_v16  ;;  %5409 = vmatmul.mubr.msk.bf16.gmra.mrb[136].mxu0 %vm2695_vm6, %v3012_v55  ;;  %v3156_v21 = vrot.slane %v3154_v54, 6  ;;  %v3638_v16 = vrot.slane %v7200_v38, 3  ;;  %vm4164_vm0 = vsmask.f32 7950  ;;  %vm4256_vm1 = vsmask.f32 7938 }
 0x2b0   : > { %5372 = vmatprep.mubr.msk.bf16.mxu1 %vm5799_vm3, %v5798_v9  ;;  %5412 = vmatprep.mubr.msk.bf16.mxu0 %vm5799_vm3, %v5798_v9  ;;  %v3325_v56 = vsel %vm2479_vm4, %v3322_v35, %v3324_v43 }
 0x2b1   : > { %5455 = vmatpush3.bf16.msra.mxu0 %v5760_v25  ;;  %v5770_v25 = vld [vmem:[%s7459_s5 + $0xb8] sm:$0xff]   ;;  %v3640_v55 = vsel %vm3637_vm9, %v3638_v16, %v3639_v4  ;;  %v3178_v4 = vshll.u32 %v3140_v29, 16 }
 0x2b2   : > { %5504 = vmatprep.subr.bf16.mxu0 %v5798_v9 }
 0x2b7   : > { %5373 = vmatmul.mubr.msk.bf16.vlgmr.msra.gmra.mrb[132].mxu1 %vm2695_vm6, %v6833_v3  ;;  %5413 = vmatmul.mubr.msk.bf16.gmra.mrb[140].mxu0 %vm2695_vm6, %v3014_v45  ;;  %v5761_v3 = vld [vmem:[%s7459_s5 + $0x70] sm:$0xff]   ;;  %v3180_v45 = vrot.slane %v3178_v4, 6 }
 0x2b8   : > { %5421 = vmatpush3.bf16.msra.mxu1 %v5755_v52  ;;  %5376 = vmatprep.mubr.msk.bf16.mxu1 %vm5799_vm3, %v5798_v9  ;;  %v3177_v52 = vrot.slane %v3175_v31, 5 }
 0x2b9   : > { %5416 = vmatprep.mubr.msk.bf16.mxu0 %vm5799_vm3, %v5798_v9  ;;  %5422 = vmatprep.subr.bf16.mxu1 %v5798_v9 }
 0x2ba   : > { %v3181_v60 = vor.u32 %v3180_v45, %v3177_v52 }
 0x2bc   : > { %5423 = vmatpush3.bf16.msra.mxu1 %v5759_v61  ;;  %v5776_v61 = vld [vmem:[%s7459_s5 + $0x118] sm:$0xff]  }
 0x2bd   : > { %5424 = vmatprep.subr.bf16.mxu1 %v5798_v9 }
 0x2bf   : > { %5377 = vmatmul.mubr.msk.bf16.gmra.mrb[136].mxu1 %vm2695_vm6, %v6845_v30  ;;  %5417 = vmatmul.mubr.msk.bf16.gmra.mrb[144].mxu0 %vm2695_vm6, %v3016_v33  ;;  %v5765_v30 = vld [vmem:[%s7459_s5 + $0xc8] sm:$0xff]  }
 0x2c0   : > { %5380 = vmatprep.mubr.msk.bf16.mxu1 %vm5799_vm3, %v5798_v9  ;;  %5456 = vmatprep.mubr.msk.bf16.mxu0 %vm5799_vm3, %v5798_v9  ;;  %v7248_v33 = vld [vmem:[#allocation3 + $0x28] sm:$0xff] }
 0x2c1   : > { %5425 = vmatpush3.bf16.msra.mxu1 %v5761_v3  ;;  %v3462_v3 = vshrl.u32 %v7120_v18, 16 }
 0x2c2   : > { %5426 = vmatprep.subr.bf16.mxu1 %v5798_v9 }
 0x2c5   : > { %5427 = vmatpush3.bf16.msra.mxu1 %v5762_v41  ;;  %v3464_v41 = vrot.slane %v3462_v3, 6 }
 0x2c6   : > { %5476 = vmatprep.subr.bf16.mxu1 %v5798_v9 }
 0x2c7   : > { %5381 = vmatmul.mubr.msk.bf16.gmra.mrb[140].mxu1 %vm2695_vm6, %v6871_v27  ;;  %5457 = vmatmul.mubr.msk.bf16.vlgmr.msra.gmra.mrb[148].mxu0 %vm2695_vm6, %v3319_v5  ;;  %v3621_v5 = vld [vmem:[#allocation3 + $0x30] sm:$0x7] }
 0x2c8   : > { %5384 = vmatprep.mubr.msk.bf16.mxu1 %vm5799_vm3, %v5798_v9  ;;  %5460 = vmatprep.mubr.msk.bf16.mxu0 %vm5799_vm3, %v5798_v9 }
 0x2c9   : > { %5505 = vmatpush3.bf16.msra.mxu0 %v5764_v14 }
 0x2ca   : > { %5506 = vmatprep.subr.bf16.mxu0 %v5798_v9 }
 0x2cd   : > { %5507 = vmatpush3.bf16.msra.mxu0 %v5765_v30  ;;  %v5775_v30 = vld [vmem:[%s7459_s5 + $0xe8] sm:$0xff]  }
 0x2ce   : > { %5508 = vmatprep.subr.bf16.mxu0 %v5798_v9 }
 0x2cf   : > { %5385 = vmatmul.mubr.msk.bf16.gmra.mrb[144].mxu1 %vm2695_vm6, %v6907_v26  ;;  %5461 = vmatmul.mubr.msk.bf16.gmra.mrb[152].mxu0 %vm2695_vm6, %v3321_v10  ;;  %v3153_v26 = vrot.slane %v3151_v13, 5  ;;  %v5778_v10 = vld [vmem:[%s7459_s5 + $0xf8] sm:$0xff]  }
 0x2d0   : > { %5388 = vmatprep.mubr.msk.bf16.mxu1 %vm5799_vm3, %v5798_v9  ;;  %5464 = vmatprep.mubr.msk.bf16.mxu0 %vm5799_vm3, %v5798_v9 }
 0x2d1   : > { %5509 = vmatpush3.bf16.msra.mxu0 %v5766_v19  ;;  %v3157_v49 = vor.u32 %v3156_v21, %v3153_v26  ;;  %v3957_v19 = vld [vmem:[#allocation3 + $0x8] sm:$0xf0]  ;;  %v3977_v21 = vrot.slane %v7248_v33, 4 }
 0x2d2   : > { %5510 = vmatprep.subr.bf16.mxu0 %v5798_v9  ;;  %v3970_v6 = vrot.slane %v3957_v19, 4 }
 0x2d3   : > { %v3161_v20 = vsel %vm2253_vm5, %v3157_v49, %v6861_v51  ;;  %v3326_v51 = vrot.slane %v3140_v29, 6 }
 0x2d5   : > { %5511 = vmatpush3.bf16.msra.mxu0 %v5768_v8  ;;  %v3327_v59 = vsel %vm2479_vm4, %v3324_v43, %v3326_v51  ;;  %v3450_v8 = vld [vmem:[#allocation3 + $0x28] sm:$0x7f]  ;;  %vm4194_vm4 = vcmask 519170  }
 0x2d6   : > { %5560 = vmatprep.subr.bf16.mxu0 %v5798_v9  ;;  %v3486_v35 = vshrl.u32 %v3450_v8, 16  ;;  %v3489_v13 = vshll.u32 %v3450_v8, 16 }
 0x2d7   : > { %5389 = vmatmul.mubr.msk.bf16.gmra.mrb[148].mxu1 %vm2695_vm6, %v6970_v39  ;;  %5465 = vmatmul.mubr.msk.bf16.gmra.mrb[156].mxu0 %vm2695_vm6, %v3323_v1  ;;  %v3818_v39 = vshrl.u32 %v7248_v33, 16 }
 0x2d8   : > { %5428 = vmatprep.mubr.msk.bf16.mxu1 %vm5799_vm3, %v5798_v9  ;;  %5468 = vmatprep.mubr.msk.bf16.mxu0 %vm5799_vm3, %v5798_v9  ;;  %v3488_v54 = vrot.slane %v3486_v35, 6  ;;  %v3491_v1 = vrot.slane %v3489_v13, 7 }
 0x2da   : > { %v3492_v27 = vor.u32 %v3491_v1, %v3488_v54 }
 0x2dc   : > { %v3493_v26 = vsel %vm3460_vm8, %v7047_v2, %v3492_v27  ;;  %v3978_v2 = vsel %vm3969_vm10, %v3975_v32, %v3977_v21  ;;  %v3821_v32 = vshll.u32 %v7248_v33, 16 }
 0x2df   : > { %5429 = vmatmul.mubr.msk.bf16.vlgmr.msra.gmra.mrb[152].mxu1 %vm2695_vm6, %v3161_v20  ;;  %5469 = vmatmul.mubr.msk.bf16.gmra.mrb[160].mxu0 %vm2695_vm6, %v3325_v56  ;;  %v3823_v56 = vrot.slane %v3821_v32, 4 }
 0x2e0   : > { %5477 = vmatpush3.bf16.msra.mxu1 %v5763_v23  ;;  %5432 = vmatprep.mubr.msk.bf16.mxu1 %vm5799_vm3, %v5798_v9 }
 0x2e1   : > { %5472 = vmatprep.mubr.msk.bf16.mxu0 %vm5799_vm3, %v5798_v9  ;;  %5478 = vmatprep.subr.bf16.mxu1 %v5798_v9 }
 0x2e4   : > { %5479 = vmatpush3.bf16.msra.mxu1 %v5767_v57 }
 0x2e5   : > { %5480 = vmatprep.subr.bf16.mxu1 %v5798_v9 }
 0x2e7   : > { %5433 = vmatmul.mubr.msk.bf16.gmra.mrb[156].mxu1 %vm2695_vm6, %v6913_v58  ;;  %5473 = vmatmul.mubr.msk.bf16.gmra.mrb[164].mxu0 %vm2695_vm6, %v3327_v59  ;;  %v5772_v58 = vld [vmem:[%s7459_s5 + $0x100] sm:$0xff]  }
 0x2e8   : > { %5436 = vmatprep.mubr.msk.bf16.mxu1 %vm5799_vm3, %v5798_v9  ;;  %5512 = vmatprep.mubr.msk.bf16.mxu0 %vm5799_vm3, %v5798_v9 }
 0x2e9   : > { %5481 = vmatpush3.bf16.msra.mxu1 %v5769_v47 }
 0x2ea   : > { %5482 = vmatprep.subr.bf16.mxu1 %v5798_v9 }
 0x2ed   : > { %5483 = vmatpush3.bf16.msra.mxu1 %v5770_v25 }
 0x2ee   : > { %5532 = vmatprep.subr.bf16.mxu1 %v5798_v9 }
 0x2ef   : > { %5437 = vmatmul.mubr.msk.bf16.gmra.mrb[160].mxu1 %vm2695_vm6, %v6975_v46  ;;  %5513 = vmatmul.mubr.msk.bf16.vlgmr.msra.gmra.mrb[168].mxu0 %vm2695_vm6, %v3640_v55  ;;  %v5774_v46 = vld [vmem:[%s7459_s5 + $0x110] sm:$0xff]  }
 0x2f0   : > { %5440 = vmatprep.mubr.msk.bf16.mxu1 %vm5799_vm3, %v5798_v9  ;;  %5516 = vmatprep.mubr.msk.bf16.mxu0 %vm5799_vm3, %v5798_v9 }
 0x2f1   : > { %5561 = vmatpush3.bf16.msra.mxu0 %v5772_v58 }
 0x2f2   : > { %5562 = vmatprep.subr.bf16.mxu0 %v5798_v9 }
 0x2f5   : > { %5563 = vmatpush3.bf16.msra.mxu0 %v5773_v62 }
 0x2f6   : > { %5564 = vmatprep.subr.bf16.mxu0 %v5798_v9 }
 0x2f7   : > { %5441 = vmatmul.mubr.msk.bf16.gmra.mrb[164].mxu1 %vm2695_vm6, %v7045_v42  ;;  %5517 = vmatmul.mubr.msk.bf16.gmra.mrb[172].mxu0 %vm2695_vm6, %v6947_v12  ;;  %v3465_v42 = vshll.u32 %v7120_v18, 16  ;;  %v3182_v12 = vsel %vm2253_vm5, %v7029_v50, %v3181_v60  ;;  %v3645_v18 = vrot.slane %v7248_v33, 3  ;;  %v5771_v50 = vld [vmem:[%s7459_s5 + $0xe0] sm:$0xff]  }
 0x2f8   : > { %5444 = vmatprep.mubr.msk.bf16.mxu1 %vm5799_vm3, %v5798_v9  ;;  %5520 = vmatprep.mubr.msk.bf16.mxu0 %vm5799_vm3, %v5798_v9 }
 0x2f9   : > { %5565 = vmatpush3.bf16.msra.mxu0 %v5774_v46  ;;  %v3467_v0 = vrot.slane %v3465_v42, 7  ;;  %v3646_v14 = vsel %vm3637_vm9, %v3643_v15, %v3645_v18  ;;  %v5777_v15 = vld [vmem:[%s7459_s5 + $0xf0] sm:$0xff]  }
 0x2fa   : > { %5566 = vmatprep.subr.bf16.mxu0 %v5798_v9 }
 0x2fb   : > { %v3468_v24 = vor.u32 %v3467_v0, %v3464_v41 }
 0x2fd   : > { %5567 = vmatpush3.bf16.msra.mxu0 %v5776_v61 }
 0x2ff   : > { %5445 = vmatmul.mubr.msk.bf16.gmra.mrb[168].mxu1 %vm2695_vm6, %v3182_v12  ;;  %5521 = vmatmul.mubr.msk.bf16.gmra.mrb[176].mxu0 %vm2695_vm6, %v7020_v17  ;;  %v3472_v17 = vsel %vm3460_vm8, %v3468_v24, %v6873_v28  ;;  %v3647_v28 = vrot.slane %v3621_v5, 3 }
 0x300   : > { %5484 = vmatprep.mubr.msk.bf16.mxu1 %vm5799_vm3, %v5798_v9  ;;  %5524 = vmatprep.mubr.msk.bf16.mxu0 %vm5799_vm3, %v5798_v9 }
 0x301   : > { %v3648_v34 = vsel %vm3637_vm9, %v3645_v18, %v3647_v28  ;;  %vm4182_vm9 = vmand %vm4169_vm2, %vm2253_vm5  ;;  %vm4195_vm5 = vsmask.f32 7946 }
 0x307   : > { %5485 = vmatmul.mubr.msk.bf16.vlgmr.msra.gmra.mrb[172].mxu1 %vm2695_vm6, %v3472_v17  ;;  %5525 = vmatmul.mubr.msk.bf16.gmra.mrb[180].mxu0 %vm2695_vm6, %v3646_v14 }
 0x308   : > { %5533 = vmatpush3.bf16.msra.mxu1 %v5771_v50  ;;  %5488 = vmatprep.mubr.msk.bf16.mxu1 %vm5799_vm3, %v5798_v9 }
 0x309   : > { %5528 = vmatprep.mubr.msk.bf16.mxu0 %vm5799_vm3, %v5798_v9  ;;  %5534 = vmatprep.subr.bf16.mxu1 %v5798_v9 }
 0x30c   : > { %5535 = vmatpush3.bf16.msra.mxu1 %v5775_v30 }
 0x30d   : > { %5536 = vmatprep.subr.bf16.mxu1 %v5798_v9 }
 0x30f   : > { %5489 = vmatmul.mubr.msk.bf16.gmra.mrb[176].mxu1 %vm2695_vm6, %v6928_v44  ;;  %5529 = vmatmul.mubr.msk.bf16.gmra.mrb[184].mxu0 %vm2695_vm6, %v3648_v34  ;;  %v3972_v44 = vsel %vm3969_vm10, %v3970_v6, %v3971_v53  ;;  %v3783_v53 = vshrl.u32 %v7200_v38, 16 }
 0x310   : > { %5492 = vmatprep.mubr.msk.bf16.mxu1 %vm5799_vm3, %v5798_v9  ;;  %5568 = vmatprep.mubr.msk.bf16.mxu0 %vm5799_vm3, %v5798_v9 }
 0x311   : > { %5537 = vmatpush3.bf16.msra.mxu1 %v5777_v15 }
 0x312   : > { %5538 = vmatprep.subr.bf16.mxu1 %v5798_v9 }
 0x315   : > { %5539 = vmatpush3.bf16.msra.mxu1 %v5778_v10 }
 0x317   : > { %5493 = vmatmul.mubr.msk.bf16.gmra.mrb[180].mxu1 %vm2695_vm6, %v6998_v48  ;;  %5569 = vmatmul.mubr.msk.bf16.vlgmr.msra.gmra.mrb[188].mxu0 %vm2695_vm6, %v3972_v44  ;;  %v3786_v48 = vshll.u32 %v7200_v38, 16 }
 0x318   : > { %5496 = vmatprep.mubr.msk.bf16.mxu1 %vm5799_vm3, %v5798_v9  ;;  %5572 = vmatprep.mubr.msk.bf16.mxu0 %vm5799_vm3, %v5798_v9 }
 0x31f   : > { %5497 = vmatmul.mubr.msk.bf16.gmra.mrb[184].mxu1 %vm2695_vm6, %v7061_v37  ;;  %5573 = vmatmul.mubr.msk.bf16.gmra.mrb[192].mxu0 %vm2695_vm6, %v6980_v63  ;;  %v3785_v63 = vrot.slane %v3783_v53, 3  ;;  %v3788_v37 = vrot.slane %v3786_v48, 4 }
 0x320   : > { %5500 = vmatprep.mubr.msk.bf16.mxu1 %vm5799_vm3, %v5798_v9  ;;  %5576 = vmatprep.mubr.msk.bf16.mxu0 %vm5799_vm3, %v5798_v9 }
 0x321   : > { %v3789_v43 = vor.u32 %v3788_v37, %v3785_v63 }
 0x323   : > { %v3798_v49 = vsel %vm3781_vm11, %v3789_v43, %v7038_v7  ;;  %v3820_v7 = vrot.slane %v3818_v39, 3 }
 0x325   : > { %v3824_v29 = vor.u32 %v3823_v56, %v3820_v7 }
 0x327   : > { %5501 = vmatmul.mubr.msk.bf16.gmra.mrb[188].mxu1 %vm2695_vm6, %v3493_v26  ;;  %5577 = vmatmul.mubr.msk.bf16.gmra.mrb[196].mxu0 %vm2695_vm6, %v7052_v36  ;;  %v3771_v36 = vld [vmem:[#allocation3 + $0x30] sm:$0xf]  ;;  %v3825_v51 = vsel %vm3781_vm11, %v7077_v22, %v3824_v29 }
 0x328   : > { %5540 = vmatprep.mubr.msk.bf16.mxu1 %vm5799_vm3, %v5798_v9  ;;  %5580 = vmatprep.mubr.msk.bf16.mxu0 %vm5799_vm3, %v5798_v9  ;;  %v3979_v23 = vrot.slane %v3771_v36, 4  ;;  %v3827_v57 = vshrl.u32 %v3771_v36, 16 }
 0x32a   : > { %v3980_v20 = vsel %vm3969_vm10, %v3977_v21, %v3979_v23  ;;  %v3829_v47 = vrot.slane %v3827_v57, 3  ;;  %vm4196_vm10 = vmand %vm4194_vm4, %vm4195_vm5 }
 0x32f   : > { %5541 = vmatmul.mubr.msk.bf16.vlgmr.msra.gmra.mrb[192].mxu1 %vm2695_vm6, %v3798_v49  ;;  %5581 = vmatmul.mubr.msk.bf16.gmra.mrb[200].mxu0 %vm2695_vm6, %v3978_v2 }
 0x330   : > { %5544 = vmatprep.mubr.msk.bf16.mxu1 %vm5799_vm3, %v5798_v9  ;;  %5584 = vmatprep.mubr.msk.bf16.mxu0 %vm5799_vm3, %v5798_v9 }
 0x337   : > { %5545 = vmatmul.mubr.msk.bf16.gmra.mrb[196].mxu1 %vm2695_vm6, %v7085_v11  ;;  %5585 = vmatmul.mubr.msk.bf16.gmra.mrb[204].mxu0 %vm2695_vm6, %v3980_v20  ;;  %v3830_v11 = vshll.u32 %v3771_v36, 16 }
 0x338   : > { %5548 = vmatprep.mubr.msk.bf16.mxu1 %vm5799_vm3, %v5798_v9 }
 0x339   : > { %v3832_v59 = vrot.slane %v3830_v11, 4 }
 0x33b   : > { %v3833_v38 = vor.u32 %v3832_v59, %v3829_v47 }
 0x33d   : > { %v3834_v25 = vsel %vm3781_vm11, %v3824_v29, %v3833_v38  ;;  %vm4200_vm11 = vcmask 517120  }
 0x33e   : > { %vm4215_vm12 = vmand %vm4200_vm11, %vm3460_vm8  ;;  %vm4251_vm8 = vsmask.f32 256 }
 0x33f   : > { %5549 = vmatmul.mubr.msk.bf16.gmra.mrb[200].mxu1 %vm2695_vm6, %v7089_v40 }
 0x340   : > { %5552 = vmatprep.mubr.msk.bf16.mxu1 %vm5799_vm3, %v5798_v9 }
 0x347   : > { %5553 = vmatmul.mubr.msk.bf16.gmra.mrb[204].mxu1 %vm2695_vm6, %v3825_v51 }
 0x348   : > { %5556 = vmatprep.mubr.msk.bf16.mxu1 %vm5799_vm3, %v5798_v9  ;;  %vm4165_vm3 = vmand %vm4163_vm15, %vm4164_vm0 }
 0x34f   : > { %5557 = vmatmul.mubr.msk.bf16.gmra.mrb[208].mxu1 %vm2695_vm6, %v3834_v25 }
 0x362   : > { %v2843_v40 = vpop.f32.mrb[120].mxu0 }
 0x363   : > { %v5346_v16 = vpop.f32.mrb[121].mxu0 }
 0x364   : > { %v2846_v58 = vpop.f32.mrb[122].mxu0 }
 0x365   : > { %v5347_v55 = vpop.f32.mrb[123].mxu0 }
 0x36a   : > { %v2851_v62 = vpop.f32.mrb[124].mxu0 }
 0x36b   : > { %v5350_v31 = vpop.f32.mrb[125].mxu0 }
 0x36c   : > { %v2854_v4 = vpop.f32.mrb[126].mxu0 }
 0x36d   : > { %v5351_v22 = vpop.f32.mrb[127].mxu0 }
 0x372   : > { %v2859_v46 = vpop.f32.mrb[120].mxu1  ;;  %v3090_v52 = vpop.f32.mrb[128].mxu0 }
 0x373   : > { %v5354_v45 = vpop.f32.mrb[121].mxu1  ;;  %v5402_v61 = vpop.f32.mrb[129].mxu0 }
 0x374   : > { %v2862_v60 = vpop.f32.mrb[122].mxu1  ;;  %v3093_v3 = vpop.f32.mrb[130].mxu0 }
 0x375   : > { %v5355_v9 = vpop.f32.mrb[123].mxu1  ;;  %v5403_v42 = vpop.f32.mrb[131].mxu0 }
 0x37a   : > { %v2867_v12 = vpop.f32.mrb[124].mxu1  ;;  %v3098_v33 = vpop.f32.mrb[132].mxu0 }
 0x37b   : > { %v5358_v41 = vpop.f32.mrb[125].mxu1  ;;  %v5406_v0 = vpop.f32.mrb[133].mxu0 }
 0x37c   : > { %v2870_v18 = vpop.f32.mrb[126].mxu1  ;;  %v3101_v24 = vpop.f32.mrb[134].mxu0 }
 0x37d   : > { %v5359_v50 = vpop.f32.mrb[127].mxu1  ;;  %v5407_v17 = vpop.f32.mrb[135].mxu0 }
 0x382   : > { %v2875_v14 = vpop.f32.mrb[128].mxu1  ;;  %v3106_v5 = vpop.f32.mrb[136].mxu0 }
 0x383   : > { %v5362_v30 = vpop.f32.mrb[129].mxu1  ;;  %v5410_v28 = vpop.f32.mrb[137].mxu0 }
 0x384   : > { %v2878_v15 = vpop.f32.mrb[130].mxu1  ;;  %v3109_v34 = vpop.f32.mrb[138].mxu0 }
 0x385   : > { %v5363_v19 = vpop.f32.mrb[131].mxu1  ;;  %v5411_v10 = vpop.f32.mrb[139].mxu0 }
 0x38a   : > { %v2950_v6 = vpop.f32.mrb[132].mxu1  ;;  %v3114_v44 = vpop.f32.mrb[140].mxu0 }
 0x38b   : > { %v2951_v8 = vadd.f32 %v2950_v6, %v2843_v40  ;;  %v5374_v35 = vpop.f32.mrb[133].mxu1  ;;  %v5414_v13 = vpop.f32.mrb[141].mxu0 }
 0x38c   : > { %v2953_v54 = vpop.f32.mrb[134].mxu1  ;;  %v3117_v1 = vpop.f32.mrb[142].mxu0 }
 0x38d   : > { %v2954_v27 = vadd.f32 %v2953_v54, %v2846_v58  ;;  %v5375_v53 = vpop.f32.mrb[135].mxu1  ;;  %v5415_v48 = vpop.f32.mrb[143].mxu0  ;;  %v3129_v26 = vadd.f32 %v3090_v52, %v2951_v8 }
 0x38f   : > { %v3130_v63 = vadd.f32 %v3093_v3, %v2954_v27 }
 0x392   : > { %v2958_v37 = vpop.f32.mrb[136].mxu1  ;;  %v3122_v21 = vpop.f32.mrb[144].mxu0 }
 0x393   : > { %v2959_v43 = vadd.f32 %v2958_v37, %v2851_v62  ;;  %v5378_v49 = vpop.f32.mrb[137].mxu1  ;;  %v5418_v2 = vpop.f32.mrb[145].mxu0 }
 0x394   : > { %v2961_v36 = vpop.f32.mrb[138].mxu1  ;;  %v3125_v23 = vpop.f32.mrb[146].mxu0 }
 0x395   : > { %v2962_v20 = vadd.f32 %v2961_v36, %v2854_v4  ;;  %v5379_v39 = vpop.f32.mrb[139].mxu1  ;;  %v5419_v32 = vpop.f32.mrb[147].mxu0  ;;  %v3131_v7 = vadd.f32 %v3098_v33, %v2959_v43 }
 0x397   : > { %v3132_v56 = vadd.f32 %v3101_v24, %v2962_v20 }
 0x39a   : > { %v2966_v29 = vpop.f32.mrb[140].mxu1  ;;  %v3401_v57 = vpop.f32.mrb[148].mxu0 }
 0x39b   : > { %v2967_v11 = vadd.f32 %v2966_v29, %v2859_v46  ;;  %v5382_v51 = vpop.f32.mrb[141].mxu1  ;;  %v5458_v47 = vpop.f32.mrb[149].mxu0 }
 0x39c   : > { %v2969_v59 = vpop.f32.mrb[142].mxu1  ;;  %v3404_v38 = vpop.f32.mrb[150].mxu0 }
 0x39d   : > { %v2970_v25 = vadd.f32 %v2969_v59, %v2862_v60  ;;  %v5383_v40 = vpop.f32.mrb[143].mxu1  ;;  %v5459_v16 = vpop.f32.mrb[151].mxu0  ;;  %v3133_v58 = vadd.f32 %v3106_v5, %v2967_v11 }
 0x39f   : > { %v3134_v55 = vadd.f32 %v3109_v34, %v2970_v25 }
 0x3a2   : > { %v2974_v62 = vpop.f32.mrb[144].mxu1  ;;  %v3409_v31 = vpop.f32.mrb[152].mxu0 }
 0x3a3   : > { %v2975_v22 = vadd.f32 %v2974_v62, %v2867_v12  ;;  %v5386_v4 = vpop.f32.mrb[145].mxu1  ;;  %v5462_v52 = vpop.f32.mrb[153].mxu0 }
 0x3a4   : > { %v2977_v45 = vpop.f32.mrb[146].mxu1  ;;  %v3412_v61 = vpop.f32.mrb[154].mxu0 }
 0x3a5   : > { %v2978_v3 = vadd.f32 %v2977_v45, %v2870_v18  ;;  %v5387_v9 = vpop.f32.mrb[147].mxu1  ;;  %v5463_v42 = vpop.f32.mrb[155].mxu0  ;;  %v3135_v46 = vadd.f32 %v3114_v44, %v2975_v22 }
 0x3a7   : > { %v3136_v33 = vadd.f32 %v3117_v1, %v2978_v3 }
 0x3aa   : > { %v2982_v41 = vpop.f32.mrb[148].mxu1  ;;  %v3417_v0 = vpop.f32.mrb[156].mxu0 }
 0x3ab   : > { %v2983_v24 = vadd.f32 %v2982_v41, %v2875_v14  ;;  %v5390_v60 = vpop.f32.mrb[149].mxu1  ;;  %v5466_v50 = vpop.f32.mrb[157].mxu0 }
 0x3ac   : > { %v2985_v17 = vpop.f32.mrb[150].mxu1  ;;  %v3420_v5 = vpop.f32.mrb[158].mxu0 }
 0x3ad   : > { %v2986_v30 = vadd.f32 %v2985_v17, %v2878_v15  ;;  %v5391_v28 = vpop.f32.mrb[151].mxu1  ;;  %v5467_v34 = vpop.f32.mrb[159].mxu0  ;;  %v3137_v12 = vadd.f32 %v3122_v21, %v2983_v24 }
 0x3af   : > { %v3138_v19 = vadd.f32 %v3125_v23, %v2986_v30 }
 0x3b2   : > { %v3256_v10 = vpop.f32.mrb[152].mxu1  ;;  %v3425_v6 = vpop.f32.mrb[160].mxu0 }
 0x3b3   : > { %v3295_v8 = vadd.f32 %v3256_v10, %v3129_v26  ;;  %v5430_v18 = vpop.f32.mrb[153].mxu1  ;;  %v5470_v35 = vpop.f32.mrb[161].mxu0 }
 0x3b4   : > { %v3259_v13 = vpop.f32.mrb[154].mxu1  ;;  %v3428_v44 = vpop.f32.mrb[162].mxu0 }
 0x3b5   : > { %v3296_v54 = vadd.f32 %v3259_v13, %v3130_v63  ;;  %v5431_v1 = vpop.f32.mrb[155].mxu1  ;;  %v5471_v27 = vpop.f32.mrb[163].mxu0  ;;  %v3440_v14 = vadd.f32 %v3401_v57, %v3295_v8 }
 0x3b7   : > { %v3441_v53 = vadd.f32 %v3404_v38, %v3296_v54 }
 0x3ba   : > { %v3264_v48 = vpop.f32.mrb[156].mxu1  ;;  %v3433_v37 = vpop.f32.mrb[164].mxu0 }
 0x3bb   : > { %v3297_v43 = vadd.f32 %v3264_v48, %v3131_v7  ;;  %v5434_v15 = vpop.f32.mrb[157].mxu1  ;;  %v5474_v49 = vpop.f32.mrb[165].mxu0 }
 0x3bc   : > { %v3267_v2 = vpop.f32.mrb[158].mxu1  ;;  %v3436_v21 = vpop.f32.mrb[166].mxu0 }
 0x3bd   : > { %v3298_v36 = vadd.f32 %v3267_v2, %v3132_v56  ;;  %v5435_v23 = vpop.f32.mrb[159].mxu1  ;;  %v5475_v20 = vpop.f32.mrb[167].mxu0  ;;  %v3442_v26 = vadd.f32 %v3409_v31, %v3297_v43 }
 0x3bf   : > { %v3443_v39 = vadd.f32 %v3412_v61, %v3298_v36 }
 0x3c2   : > { %v3272_v32 = vpop.f32.mrb[160].mxu1  ;;  %v3722_v29 = vpop.f32.mrb[168].mxu0 }
 0x3c3   : > { %v3299_v11 = vadd.f32 %v3272_v32, %v3133_v58  ;;  %v5438_v63 = vpop.f32.mrb[161].mxu1  ;;  %v5514_v51 = vpop.f32.mrb[169].mxu0 }
 0x3c4   : > { %v3275_v47 = vpop.f32.mrb[162].mxu1  ;;  %v3725_v57 = vpop.f32.mrb[170].mxu0 }
 0x3c5   : > { %v3300_v59 = vadd.f32 %v3275_v47, %v3134_v55  ;;  %v5439_v38 = vpop.f32.mrb[163].mxu1  ;;  %v5515_v25 = vpop.f32.mrb[171].mxu0  ;;  %v3444_v7 = vadd.f32 %v3417_v0, %v3299_v11 }
 0x3c7   : > { %v3445_v40 = vadd.f32 %v3420_v5, %v3300_v59 }
 0x3ca   : > { %v3280_v16 = vpop.f32.mrb[164].mxu1  ;;  %v3730_v62 = vpop.f32.mrb[172].mxu0 }
 0x3cb   : > { %v3301_v22 = vadd.f32 %v3280_v16, %v3135_v46  ;;  %v5442_v56 = vpop.f32.mrb[165].mxu1  ;;  %v5518_v4 = vpop.f32.mrb[173].mxu0 }
 0x3cc   : > { %v3283_v52 = vpop.f32.mrb[166].mxu1  ;;  %v3733_v31 = vpop.f32.mrb[174].mxu0 }
 0x3cd   : > { %v3302_v45 = vadd.f32 %v3283_v52, %v3136_v33  ;;  %v5443_v61 = vpop.f32.mrb[167].mxu1  ;;  %v5519_v3 = vpop.f32.mrb[175].mxu0  ;;  %v3446_v58 = vadd.f32 %v3425_v6, %v3301_v22 }
 0x3cf   : > { %v3447_v9 = vadd.f32 %v3428_v44, %v3302_v45 }
 0x3d2   : > { %v3288_v42 = vpop.f32.mrb[168].mxu1  ;;  %v3738_v41 = vpop.f32.mrb[176].mxu0 }
 0x3d3   : > { %v3303_v24 = vadd.f32 %v3288_v42, %v3137_v12  ;;  %v5446_v55 = vpop.f32.mrb[169].mxu1  ;;  %v5522_v60 = vpop.f32.mrb[177].mxu0 }
 0x3d4   : > { %v3291_v50 = vpop.f32.mrb[170].mxu1  ;;  %v3741_v0 = vpop.f32.mrb[178].mxu0 }
 0x3d5   : > { %v3304_v17 = vadd.f32 %v3291_v50, %v3138_v19  ;;  %v5447_v5 = vpop.f32.mrb[171].mxu1  ;;  %v5523_v30 = vpop.f32.mrb[179].mxu0  ;;  %v3448_v46 = vadd.f32 %v3433_v37, %v3303_v24 }
 0x3d7   : > { %v3449_v28 = vadd.f32 %v3436_v21, %v3304_v17 }
 0x3da   : > { %v3567_v34 = vpop.f32.mrb[172].mxu1  ;;  %v3746_v10 = vpop.f32.mrb[180].mxu0 }
 0x3db   : > { %v3606_v8 = vadd.f32 %v3567_v34, %v3440_v14  ;;  %v5486_v33 = vpop.f32.mrb[173].mxu1  ;;  %v5526_v18 = vpop.f32.mrb[181].mxu0 }
 0x3dc   : > { %v3570_v35 = vpop.f32.mrb[174].mxu1  ;;  %v3749_v6 = vpop.f32.mrb[182].mxu0 }
 0x3dd   : > { %v3607_v13 = vadd.f32 %v3570_v35, %v3441_v53  ;;  %v5487_v44 = vpop.f32.mrb[175].mxu1  ;;  %v5527_v54 = vpop.f32.mrb[183].mxu0  ;;  %v3761_v12 = vadd.f32 %v3722_v29, %v3606_v8 }
 0x3df   : > { %v3762_v1 = vadd.f32 %v3725_v57, %v3607_v13 }
 0x3e2   : > { %v3575_v27 = vpop.f32.mrb[176].mxu1  ;;  %v3754_v48 = vpop.f32.mrb[184].mxu0 }
 0x3e3   : > { %v3608_v43 = vadd.f32 %v3575_v27, %v3442_v26  ;;  %v5490_v19 = vpop.f32.mrb[177].mxu1  ;;  %v5530_v15 = vpop.f32.mrb[185].mxu0 }
 0x3e4   : > { %v3578_v49 = vpop.f32.mrb[178].mxu1  ;;  %v3757_v37 = vpop.f32.mrb[186].mxu0 }
 0x3e5   : > { %v3609_v2 = vadd.f32 %v3578_v49, %v3443_v39  ;;  %v5491_v21 = vpop.f32.mrb[179].mxu1  ;;  %v5531_v36 = vpop.f32.mrb[187].mxu0  ;;  %v3763_v14 = vadd.f32 %v3730_v62, %v3608_v43 }
 0x3e7   : > { %v7349_v23 = vadd.f32 %v3733_v31, %v3609_v2 }
 0x3ea   : > { %v3583_v20 = vpop.f32.mrb[180].mxu1  ;;  %v4054_v32 = vpop.f32.mrb[188].mxu0 }
 0x3eb   : > { %v3610_v53 = vadd.f32 %v3583_v20, %v3444_v7  ;;  %v5494_v11 = vpop.f32.mrb[181].mxu1  ;;  %v5570_v63 = vpop.f32.mrb[189].mxu0 }
 0x3ec   : > { %v3586_v29 = vpop.f32.mrb[182].mxu1  ;;  %v4057_v51 = vpop.f32.mrb[190].mxu0 }
 0x3ed   : > { %v3611_v47 = vadd.f32 %v3586_v29, %v3445_v40  ;;  %v5495_v57 = vpop.f32.mrb[183].mxu1  ;;  %v5571_v26 = vpop.f32.mrb[191].mxu0  ;;  %v7351_v59 = vadd.f32 %v3738_v41, %v3610_v53 }
 0x3ee   : > { %v4144_v26 = vld [vmem:[%s7385_s10] sm:$0xf] }
 0x3ef   : > { %v7353_v38 = vadd.f32 %v3741_v0, %v3611_v47 }
 0x3f2   : > { %v3591_v39 = vpop.f32.mrb[184].mxu1  ;;  %v4062_v25 = vpop.f32.mrb[192].mxu0 }
 0x3f3   : > { %v3612_v16 = vadd.f32 %v3591_v39, %v3446_v58  ;;  %v5498_v62 = vpop.f32.mrb[185].mxu1  ;;  %v5574_v22 = vpop.f32.mrb[193].mxu0 }
 0x3f4   : > { %v3594_v56 = vpop.f32.mrb[186].mxu1  ;;  %v4065_v4 = vpop.f32.mrb[194].mxu0 }
 0x3f5   : > { %v3613_v52 = vadd.f32 %v3594_v56, %v3447_v9  ;;  %v5499_v7 = vpop.f32.mrb[187].mxu1  ;;  %v5575_v31 = vpop.f32.mrb[195].mxu0  ;;  %v7355_v45 = vadd.f32 %v3746_v10, %v3612_v16 }
 0x3f7   : > { %v7357_v61 = vadd.f32 %v3749_v6, %v3613_v52 }
 0x3fa   : > { %v3599_v40 = vpop.f32.mrb[188].mxu1  ;;  %v4070_v3 = vpop.f32.mrb[196].mxu0 }
 0x3fb   : > { %v3614_v42 = vadd.f32 %v3599_v40, %v3448_v46  ;;  %v5502_v41 = vpop.f32.mrb[189].mxu1  ;;  %v5578_v24 = vpop.f32.mrb[197].mxu0  ;;  %v7368_v46 = vld [vmem:[%s7460_s6] ss:$0 sm:$0xff] }
 0x3fc   : > { %v3602_v55 = vpop.f32.mrb[190].mxu1  ;;  %v4073_v60 = vpop.f32.mrb[198].mxu0 }
 0x3fd   : > { %v3615_v50 = vadd.f32 %v3602_v55, %v3449_v28  ;;  %v5503_v58 = vpop.f32.mrb[191].mxu1  ;;  %v5579_v0 = vpop.f32.mrb[199].mxu0  ;;  %v7359_v17 = vadd.f32 %v3754_v48, %v3614_v42 }
 0x3ff   : > { %v7361_v5 = vadd.f32 %v3757_v37, %v3615_v50  ;;  %v4183_v50 = vld [vmem:[%s7385_s10 + $0x8] sm:$0x7] }
 0x402   : > { %v3908_v9 = vpop.f32.mrb[192].mxu1  ;;  %v7363_v30 = vpop.f32.mrb[200].mxu0 }
 0x403   : > { %v3947_v34 = vadd.f32 %v3908_v9, %v3761_v12  ;;  %v5542_v10 = vpop.f32.mrb[193].mxu1  ;;  %v5582_v8 = vpop.f32.mrb[201].mxu0 }
 0x404   : > { %v3911_v33 = vpop.f32.mrb[194].mxu1  ;;  %v7370_v18 = vpop.f32.mrb[202].mxu0 }
 0x405   : > { %v4093_v28 = vadd.f32 %v4054_v32, %v3947_v34  ;;  %v3948_v35 = vadd.f32 %v3911_v33, %v3762_v1  ;;  %v5543_v6 = vpop.f32.mrb[195].mxu1  ;;  %v5583_v13 = vpop.f32.mrb[203].mxu0 }
 0x407   : > { %v4110_v44 = vadd.f32 %v7368_v46, %v4093_v28  ;;  %v4094_v54 = vadd.f32 %v4057_v51, %v3948_v35 }
 0x409   : > { %v4111_v12 = vadd.f32 %v7368_v46, %v4094_v54  ;;  %v4120_v43 = vmax.f32 %v4110_v44, 0.0 }
 0x40a   : > { %v3916_v27 = vpop.f32.mrb[196].mxu1  ;;  %v7374_v48 = vpop.f32.mrb[204].mxu0 }
 0x40b   : > { %v4121_v19 = vmax.f32 %v4111_v12, 0.0  ;;  %v3949_v15 = vadd.f32 %v3916_v27, %v3763_v14  ;;  %v5546_v49 = vpop.f32.mrb[197].mxu1  ;;  %v5586_v37 = vpop.f32.mrb[205].mxu0 }
 0x40c   : > { %v3919_v2 = vpop.f32.mrb[198].mxu1  ;;  %v7376_v21 = vpop.f32.mrb[206].mxu0 }
 0x40d   : > { %v4130_v1 = vpack.c.bf16 %v4121_v19, %v4120_v43  ;;  %v4095_v36 = vadd.f32 %v4062_v25, %v3949_v15  ;;  %v3950_v20 = vadd.f32 %v3919_v2, %v7349_v23  ;;  %v5547_v32 = vpop.f32.mrb[199].mxu1  ;;  %v5587_v53 = vpop.f32.mrb[207].mxu0 }
 0x40f   : > { %4135 = vst.msk [vmem:[#allocation4] sm:$0xff] %vm2695_vm6, %v4130_v1  ;;  %v4112_v11 = vadd.f32 %v7368_v46, %v4095_v36  ;;  %v4096_v63 = vadd.f32 %v4065_v4, %v3950_v20 }
 0x411   : > { %v4113_v14 = vadd.f32 %v7368_v46, %v4096_v63  ;;  %v4122_v51 = vmax.f32 %v4112_v11, 0.0 }
 0x412   : > { %v3924_v29 = vpop.f32.mrb[200].mxu1 }
 0x413   : > { %v4123_v23 = vmax.f32 %v4113_v14, 0.0  ;;  %v3951_v47 = vadd.f32 %v3924_v29, %v7351_v59  ;;  %v5550_v57 = vpop.f32.mrb[201].mxu1 }
 0x414   : > { %v3927_v39 = vpop.f32.mrb[202].mxu1 }
 0x415   : > { %v4131_v25 = vpack.c.bf16 %v4123_v23, %v4122_v51  ;;  %v4097_v16 = vadd.f32 %v4070_v3, %v3951_v47  ;;  %v3952_v62 = vadd.f32 %v3927_v39, %v7353_v38  ;;  %v5551_v22 = vpop.f32.mrb[203].mxu1  ;;  %v4216_v23 = vld [vmem:[%s7385_s10 + $0x10] sm:$0x3] }
 0x416   : > { %v4140_v56 = vld [vmem:[#allocation4] sm:$0xf]  ;;  %v5779_v52 = vld [vmem:[#allocation4 + $0x4] ss:$0 sps:$4 sm:$0xee]  }
 0x417   : > { %v4145_v4 = vsel %vm4143_vm14, %v4140_v56, %v4144_v26  ;;  %4136 = vst.msk [vmem:[#allocation4 + $0x8] sm:$0xff] %vm2695_vm6, %v4131_v25  ;;  %v4114_v7 = vadd.f32 %v7368_v46, %v4097_v16  ;;  %v4098_v31 = vadd.f32 %v4073_v60, %v3952_v62  ;;  %v4157_v3 = vrot.slane %v5779_v52, 6  ;;  %v4253_v56 = vld [vmem:[%s7385_s10 + $0x18] sm:$0x1] }
 0x418   : > { %4146 = vst [vmem:[%s7385_s10] sm:$0xf] %v4145_v4  ;;  %vm4233_vm14 = vsmask.f32 7942 }
 0x419   : > { %v4115_v59 = vadd.f32 %v7368_v46, %v4098_v31  ;;  %v4124_v38 = vmax.f32 %v4114_v7, 0.0  ;;  %vm4234_vm0 = vmand %vm4232_vm13, %vm4233_vm14 }
 0x41a   : > { %v3932_v40 = vpop.f32.mrb[204].mxu1 }
 0x41b   : > { %v4125_v42 = vmax.f32 %v4115_v59, 0.0  ;;  %v3953_v41 = vadd.f32 %v3932_v40, %v7355_v45  ;;  %v5554_v24 = vpop.f32.mrb[205].mxu1  ;;  %v4158_v45 = vrot.slane %v4157_v3, 4 }
 0x41c   : > { %v3935_v55 = vpop.f32.mrb[206].mxu1 }
 0x41d   : > { %v4132_v60 = vpack.c.bf16 %v4125_v42, %v4124_v38  ;;  %v4099_v58 = vadd.f32 %v7363_v30, %v3953_v41  ;;  %v3954_v0 = vadd.f32 %v3935_v55, %v7357_v61  ;;  %v5555_v9 = vpop.f32.mrb[207].mxu1 }
 0x41e   : > { %v5780_v34 = vld [vmem:[#allocation4 + $0x8] ss:$0 sps:$4 sm:$0x11]   ;;  %v4171_v33 = vld [vmem:[#allocation4 + $0x8] sm:$0x78] }
 0x41f   : > { %v4166_v8 = vld [vmem:[%s7385_s10] sm:$0x8]  ;;  %4137 = vst.msk [vmem:[#allocation4 + $0x10] sm:$0xff] %vm2695_vm6, %v4132_v60  ;;  %v4116_v61 = vadd.f32 %v7368_v46, %v4099_v58  ;;  %v4100_v30 = vadd.f32 %v7370_v18, %v3954_v0  ;;  %v4159_v35 = vrot.slane %v5780_v34, 6  ;;  %v4751_v6 = vcombine.low %v4171_v33, %v4171_v33 }
 0x420   : > { %v4167_v28 = vsel %vm4165_vm3, %v4157_v3, %v4166_v8  ;;  %v4752_v13 = vcombine.high %v4171_v33, %v4171_v33 }
 0x421   : > { %4168 = vst [vmem:[%s7385_s10] sm:$0x8] %v4167_v28  ;;  %v4117_v44 = vadd.f32 %v7368_v46, %v4100_v30  ;;  %v4160_v54 = vsel %vm7402_vm7, %v4158_v45, %v4159_v35  ;;  %4180 = vst.msk [vmem:[%s7385_s10 + $0x4] sm:$0x8] %vm4163_vm15, %v4751_v6  ;;  %v4126_v43 = vmax.f32 %v4116_v61, 0.0  ;;  %vm4238_vm15 = vcmask 516096  }
 0x422   : > { %v4184_v12 = vsel %vm4182_vm9, %v4752_v13, %v4183_v50  ;;  %v3940_v27 = vpop.f32.mrb[208].mxu1  ;;  %4170 = vst.msk [vmem:[%s7385_s10 + $0x4] sm:$0x7] %vm4169_vm2, %v4160_v54  ;;  %vm4257_vm2 = vmand %vm4238_vm15, %vm4256_vm1 }
 0x423   : > { %4185 = vst [vmem:[%s7385_s10 + $0x8] sm:$0x7] %v4184_v12  ;;  %v4127_v19 = vmax.f32 %v4117_v44, 0.0  ;;  %v3955_v18 = vadd.f32 %v3940_v27, %v7359_v17  ;;  %v5558_v15 = vpop.f32.mrb[209].mxu1 }
 0x424   : > { %v3943_v49 = vpop.f32.mrb[210].mxu1 }
 0x425   : > { %v4133_v37 = vpack.c.bf16 %v4127_v19, %v4126_v43  ;;  %v4101_v2 = vadd.f32 %v7374_v48, %v3955_v18  ;;  %v3956_v1 = vadd.f32 %v3943_v49, %v7361_v5  ;;  %v5559_v36 = vpop.f32.mrb[211].mxu1 }
 0x426   : > { %v5783_v20 = vld [vmem:[#allocation4 + $0x10] ss:$0 sps:$4 sm:$0xff]   ;;  %v5784_v32 = vld [vmem:[#allocation4 + $0x14] ss:$0 sps:$4 sm:$0xcc]  }
 0x427   : > { %4138 = vst.msk [vmem:[#allocation4 + $0x18] sm:$0xff] %vm2695_vm6, %v4133_v37  ;;  %v4118_v17 = vadd.f32 %v7368_v46, %v4101_v2  ;;  %v4102_v53 = vadd.f32 %v7376_v21, %v3956_v1  ;;  %v4190_v11 = vrot.slane %v5783_v20, 6 }
 0x428   : > { %4213 = vst.msk [vmem:[%s7385_s10 + $0xc] sm:$0xc] %vm4194_vm4, %v5784_v32 }
 0x429   : > { %v4119_v48 = vadd.f32 %v7368_v46, %v4102_v53  ;;  %v4191_v63 = vrot.slane %v4190_v11, 4  ;;  %v4128_v29 = vmax.f32 %v4118_v17, 0.0 }
 0x42a   : > { %v4197_v5 = vld [vmem:[%s7385_s10 + $0x8] sm:$0xc] }
 0x42b   : > { %v4198_v14 = vsel %vm4196_vm10, %v4190_v11, %v4197_v5  ;;  %v4129_v51 = vmax.f32 %v4119_v48, 0.0  ;;  %4201 = vst.msk [vmem:[%s7385_s10 + $0xc] sm:$0x3] %vm4200_vm11, %v4191_v63 }
 0x42c   : > { %4199 = vst [vmem:[%s7385_s10 + $0x8] sm:$0xc] %v4198_v14 }
 0x42d   : > { %v4134_v47 = vpack.c.bf16 %v4129_v51, %v4128_v29 }
 0x42e   : > { %v5785_v21 = vld [vmem:[#allocation4 + $0x18] ss:$0 sps:$4 sm:$0x33]   ;;  %v4219_v57 = vld [vmem:[#allocation4 + $0x18] sm:$0x78] }
 0x42f   : > { %4139 = vst.msk [vmem:[#allocation4 + $0x20] sm:$0xff] %vm2695_vm6, %v4134_v47  ;;  %v4217_v26 = vsel %vm4215_vm12, %v5785_v21, %v4216_v23  ;;  %v4756_v46 = vcombine.low %v4219_v57, %v4219_v57  ;;  %v4757_v39 = vcombine.high %v4219_v57, %v4219_v57  ;;  %vm4252_vm6 = vmand %vm4238_vm15, %vm4251_vm8 }
 0x430   : > { %4218 = vst [vmem:[%s7385_s10 + $0x10] sm:$0x3] %v4217_v26 }
 0x431   : > { %v4227_v25 = vrot.slane %v4757_v39, 6  ;;  %v4758_v16 = vrot.slane %v4756_v46, 10 }
 0x433   : > { %v4229_v62 = vrot.slane %v4227_v25, 4  ;;  %v4228_v7 = vsel %vm7402_vm7, %v4758_v16, %v4227_v25 }
 0x435   : > { %4239 = vst.msk [vmem:[%s7385_s10 + $0x14] sm:$0x1] %vm4238_vm15, %v4229_v62 }
 0x436   : > { %v4240_v22 = vld [vmem:[#allocation4 + $0x20] sm:$0x1e] }
 0x437   : > { %v4759_v4 = vcombine.low %v4240_v22, %v4240_v22  ;;  %v4760_v52 = vcombine.high %v4240_v22, %v4240_v22  ;;  %v4235_v31 = vld [vmem:[%s7385_s10 + $0x10] sm:$0xe] }
 0x438   : > { %v4236_v59 = vsel %vm4234_vm0, %v4228_v7, %v4235_v31 }
 0x439   : > { %4249 = vst.msk [vmem:[%s7385_s10 + $0x14] sm:$0xe] %vm4232_vm13, %v4759_v4  ;;  %v4254_v40 = vsel %vm4252_vm6, %v4760_v52, %v4253_v56  ;;  %4237 = vst [vmem:[%s7385_s10 + $0x10] sm:$0xe] %v4236_v59 }
 0x43a   : > { %4255 = vst [vmem:[%s7385_s10 + $0x18] sm:$0x1] %v4254_v40 }
 0x441   : > { %v4258_v3 = vld [vmem:[%s7385_s10 + $0x18] sm:$0x1] }
 0x442   : > { %v4259_v38 = vsel %vm4257_vm2, 0, %v4258_v3 }
 0x443   : > { %4260 = vst [vmem:[%s7385_s10 + $0x18] sm:$0x1] %v4259_v38 }
 0x444 PF: > { %s17_s24 = sadd.s32 1, %s5796_s24  }
 0x445   : > { %p14_p4 = scmp.ge.s32.totalorder %s17_s24, 4  }
 0x447   :  { %16 = sbr.rel (!%p14_p4) target bundleno = 1 (0x1), region = 92 }

// kernel: ddqn_forward.3
= control target key start
LH: loop header
LB: loop body
LE: loop exit
PB: predicated region body
PF: predicated region fallthrough
CT: control target
= control target key end

     0   :  { %s6463_s15 = smov 0   ;;  %s6465_s16 = smov 0   ;;  %s7871_s0 = inlined_call_operand.vmem [shape: bf16[2,3200], index: 0, kind: input, shape index: {}]   ;;  %s7872_s1 = inlined_call_operand.vmem [shape: bf16[3200,512], index: 1, kind: input, shape index: {}]   ;;  %s7873_s2 = inlined_call_operand.vmem [shape: f32[1,512], index: 2, kind: input, shape index: {}]   ;;  %s7874_s3 = inlined_call_operand.vmem [shape: bf16[512,128], index: 3, kind: input, shape index: {}]   ;;  %s7875_s4 = inlined_call_operand.vmem [shape: f32[2,2,128], index: 4, kind: output, shape index: {}]  }
   0x1   :  { %s6467_s17 = smov 0  }
   0x2 LB: > { %s6479_s18 = sadd.s32 4294967295, %s6434_s17   ;;  %s6482_s19 = sadd.s32 1, %s6434_s17   ;;  %s6434_s17 = sphi %s6467_s17, %s7878_s17   ;;  %s6430_s16 = sphi %s6465_s16, %s7877_s16   ;;  %s6426_s15 = sphi %s6463_s15, %s7876_s15  }
   0x3   : > { %s39_s20 = ssub.s32 %s6434_s17, %s6482_s19  ;;  %s42_s21 = sadd.s32 1, %s6430_s16 }
   0x4   : > { %p40_p0 = scmp.eq.s32.totalorder %s39_s20, 0  ;;  %p49_p1 = scmp.ne.s32.totalorder %s6430_s16, %s6426_s15 }
   0x5   : > { %p50_p2 = scmp.eq.s32.totalorder %s6434_s17, 0  ;;  %p5265_p4 = scmp.ge.s32.totalorder %s6434_s17, 2 }
   0x6   : > { %s6491_s22 = scalar_select %p40_p0, %s6430_s16, %s42_s21  }
   0x7   : > { %p51_p3 = por %p50_p2, %p49_p1  ;;  %156 = sbr.rel (%p5265_p4) target bundleno = 218 (0xda), region = 20 }
   0xe   : > { %159 = sbr.rel (!%p51_p3) target bundleno = 218 (0xda), region = 24  ;;  %s161_s23 = sand.u32 (%p51_p3), 1, %s6430_s16  }
   0xf   : > { %s5692_s24 = sshll.u32 (%p51_p3), %s6434_s17, 3  ;;  %s5763_s25 = smul.u32 (%p51_p3), 3200, %s161_s23 }
  0x10   : > { %s6499_s28 = scalar_lea.vmem (%p51_p3), %s7872_s1, %s5692_s24 }
  0x11   : > { %v992_v0 = vld [vmem:[%s6499_s28] sm:$0xff] (%p51_p3)  ;;  %v994_v1 = vld [vmem:[%s6499_s28 + $0x10] sm:$0xff] (%p51_p3)  ;;  %s6507_s29 = scalar_lea.vmem (%p51_p3), [#allocation2], %s5763_s25 }
  0x12   : > { %v996_v2 = vld [vmem:[%s6499_s28 + $0x20] sm:$0xff] (%p51_p3)  ;;  %v998_v3 = vld [vmem:[%s6499_s28 + $0x30] sm:$0xff] (%p51_p3)  ;;  %993 = vst [vmem:[%s6507_s29] sm:$0xff] (%p51_p3), %v992_v0  ;;  %995 = vst [vmem:[%s6507_s29 + $0x8] sm:$0xff] (%p51_p3), %v994_v1 }
  0x13   : > { %v1000_v4 = vld [vmem:[%s6499_s28 + $0x40] sm:$0xff] (%p51_p3)  ;;  %v1002_v5 = vld [vmem:[%s6499_s28 + $0x50] sm:$0xff] (%p51_p3)  ;;  %997 = vst [vmem:[%s6507_s29 + $0x10] sm:$0xff] (%p51_p3), %v996_v2  ;;  %999 = vst [vmem:[%s6507_s29 + $0x18] sm:$0xff] (%p51_p3), %v998_v3 }
  0x14   : > { %1001 = vst [vmem:[%s6507_s29 + $0x20] sm:$0xff] (%p51_p3), %v1000_v4  ;;  %1003 = vst [vmem:[%s6507_s29 + $0x28] sm:$0xff] (%p51_p3), %v1002_v5  ;;  %v1004_v6 = vld [vmem:[%s6499_s28 + $0x60] sm:$0xff] (%p51_p3)  ;;  %v1006_v7 = vld [vmem:[%s6499_s28 + $0x70] sm:$0xff] (%p51_p3) }
  0x15   : > { %v1008_v8 = vld [vmem:[%s6499_s28 + $0x80] sm:$0xff]  ;;  %1005 = vst [vmem:[%s6507_s29 + $0x30] sm:$0xff] %v1004_v6  ;;  %1007 = vst [vmem:[%s6507_s29 + $0x38] sm:$0xff] %v1006_v7  ;;  %v1010_v9 = vld [vmem:[%s6499_s28 + $0x90] sm:$0xff] }
  0x16   : > { %1009 = vst [vmem:[%s6507_s29 + $0x40] sm:$0xff] %v1008_v8  ;;  %v1012_v10 = vld [vmem:[%s6499_s28 + $0xa0] sm:$0xff]  ;;  %v1014_v11 = vld [vmem:[%s6499_s28 + $0xb0] sm:$0xff]  ;;  %1011 = vst [vmem:[%s6507_s29 + $0x48] sm:$0xff] %v1010_v9 }
  0x17   : > { %1013 = vst [vmem:[%s6507_s29 + $0x50] sm:$0xff] %v1012_v10  ;;  %1015 = vst [vmem:[%s6507_s29 + $0x58] sm:$0xff] %v1014_v11  ;;  %v1016_v12 = vld [vmem:[%s6499_s28 + $0xc0] sm:$0xff]  ;;  %v1018_v13 = vld [vmem:[%s6499_s28 + $0xd0] sm:$0xff] }
  0x18   : > { %v1020_v14 = vld [vmem:[%s6499_s28 + $0xe0] sm:$0xff]  ;;  %1017 = vst [vmem:[%s6507_s29 + $0x60] sm:$0xff] %v1016_v12  ;;  %1019 = vst [vmem:[%s6507_s29 + $0x68] sm:$0xff] %v1018_v13  ;;  %v1022_v15 = vld [vmem:[%s6499_s28 + $0xf0] sm:$0xff] }
  0x19   : > { %1021 = vst [vmem:[%s6507_s29 + $0x70] sm:$0xff] %v1020_v14  ;;  %v1024_v16 = vld [vmem:[%s6499_s28 + $0x100] sm:$0xff]  ;;  %v1026_v17 = vld [vmem:[%s6499_s28 + $0x110] sm:$0xff]  ;;  %1023 = vst [vmem:[%s6507_s29 + $0x78] sm:$0xff] %v1022_v15 }
  0x1a   : > { %1025 = vst [vmem:[%s6507_s29 + $0x80] sm:$0xff] %v1024_v16  ;;  %1027 = vst [vmem:[%s6507_s29 + $0x88] sm:$0xff] %v1026_v17  ;;  %v1028_v18 = vld [vmem:[%s6499_s28 + $0x120] sm:$0xff]  ;;  %v1030_v19 = vld [vmem:[%s6499_s28 + $0x130] sm:$0xff] }
  0x1b   : > { %v1032_v20 = vld [vmem:[%s6499_s28 + $0x140] sm:$0xff]  ;;  %1029 = vst [vmem:[%s6507_s29 + $0x90] sm:$0xff] %v1028_v18  ;;  %1031 = vst [vmem:[%s6507_s29 + $0x98] sm:$0xff] %v1030_v19  ;;  %v1034_v21 = vld [vmem:[%s6499_s28 + $0x150] sm:$0xff] }
  0x1c   : > { %1033 = vst [vmem:[%s6507_s29 + $0xa0] sm:$0xff] %v1032_v20  ;;  %v1036_v22 = vld [vmem:[%s6499_s28 + $0x160] sm:$0xff]  ;;  %v1038_v23 = vld [vmem:[%s6499_s28 + $0x170] sm:$0xff]  ;;  %1035 = vst [vmem:[%s6507_s29 + $0xa8] sm:$0xff] %v1034_v21 }
  0x1d   : > { %1037 = vst [vmem:[%s6507_s29 + $0xb0] sm:$0xff] %v1036_v22  ;;  %1039 = vst [vmem:[%s6507_s29 + $0xb8] sm:$0xff] %v1038_v23  ;;  %v1040_v24 = vld [vmem:[%s6499_s28 + $0x180] sm:$0xff]  ;;  %v1042_v25 = vld [vmem:[%s6499_s28 + $0x190] sm:$0xff] }
  0x1e   : > { %v1044_v26 = vld [vmem:[%s6499_s28 + $0x1a0] sm:$0xff]  ;;  %1041 = vst [vmem:[%s6507_s29 + $0xc0] sm:$0xff] %v1040_v24  ;;  %1043 = vst [vmem:[%s6507_s29 + $0xc8] sm:$0xff] %v1042_v25  ;;  %v1046_v27 = vld [vmem:[%s6499_s28 + $0x1b0] sm:$0xff] }
  0x1f   : > { %1045 = vst [vmem:[%s6507_s29 + $0xd0] sm:$0xff] %v1044_v26  ;;  %v1048_v28 = vld [vmem:[%s6499_s28 + $0x1c0] sm:$0xff]  ;;  %v1050_v29 = vld [vmem:[%s6499_s28 + $0x1d0] sm:$0xff]  ;;  %1047 = vst [vmem:[%s6507_s29 + $0xd8] sm:$0xff] %v1046_v27 }
  0x20   : > { %1049 = vst [vmem:[%s6507_s29 + $0xe0] sm:$0xff] %v1048_v28  ;;  %1051 = vst [vmem:[%s6507_s29 + $0xe8] sm:$0xff] %v1050_v29  ;;  %v1052_v30 = vld [vmem:[%s6499_s28 + $0x1e0] sm:$0xff]  ;;  %v1054_v31 = vld [vmem:[%s6499_s28 + $0x1f0] sm:$0xff] }
  0x21   : > { %v1056_v32 = vld [vmem:[%s6499_s28 + $0x200] sm:$0xff]  ;;  %1053 = vst [vmem:[%s6507_s29 + $0xf0] sm:$0xff] %v1052_v30  ;;  %1055 = vst [vmem:[%s6507_s29 + $0xf8] sm:$0xff] %v1054_v31  ;;  %v1058_v33 = vld [vmem:[%s6499_s28 + $0x210] sm:$0xff] }
  0x22   : > { %1057 = vst [vmem:[%s6507_s29 + $0x100] sm:$0xff] %v1056_v32  ;;  %v1060_v34 = vld [vmem:[%s6499_s28 + $0x220] sm:$0xff]  ;;  %v1062_v35 = vld [vmem:[%s6499_s28 + $0x230] sm:$0xff]  ;;  %1059 = vst [vmem:[%s6507_s29 + $0x108] sm:$0xff] %v1058_v33 }
  0x23   : > { %1061 = vst [vmem:[%s6507_s29 + $0x110] sm:$0xff] %v1060_v34  ;;  %1063 = vst [vmem:[%s6507_s29 + $0x118] sm:$0xff] %v1062_v35  ;;  %v1064_v36 = vld [vmem:[%s6499_s28 + $0x240] sm:$0xff]  ;;  %v1066_v37 = vld [vmem:[%s6499_s28 + $0x250] sm:$0xff] }
  0x24   : > { %v1068_v38 = vld [vmem:[%s6499_s28 + $0x260] sm:$0xff]  ;;  %1065 = vst [vmem:[%s6507_s29 + $0x120] sm:$0xff] %v1064_v36  ;;  %1067 = vst [vmem:[%s6507_s29 + $0x128] sm:$0xff] %v1066_v37  ;;  %v1070_v39 = vld [vmem:[%s6499_s28 + $0x270] sm:$0xff] }
  0x25   : > { %1069 = vst [vmem:[%s6507_s29 + $0x130] sm:$0xff] %v1068_v38  ;;  %v1072_v40 = vld [vmem:[%s6499_s28 + $0x280] sm:$0xff]  ;;  %v1074_v41 = vld [vmem:[%s6499_s28 + $0x290] sm:$0xff]  ;;  %1071 = vst [vmem:[%s6507_s29 + $0x138] sm:$0xff] %v1070_v39 }
  0x26   : > { %1073 = vst [vmem:[%s6507_s29 + $0x140] sm:$0xff] %v1072_v40  ;;  %1075 = vst [vmem:[%s6507_s29 + $0x148] sm:$0xff] %v1074_v41  ;;  %v1076_v42 = vld [vmem:[%s6499_s28 + $0x2a0] sm:$0xff]  ;;  %v1078_v43 = vld [vmem:[%s6499_s28 + $0x2b0] sm:$0xff] }
  0x27   : > { %v1080_v44 = vld [vmem:[%s6499_s28 + $0x2c0] sm:$0xff]  ;;  %1077 = vst [vmem:[%s6507_s29 + $0x150] sm:$0xff] %v1076_v42  ;;  %1079 = vst [vmem:[%s6507_s29 + $0x158] sm:$0xff] %v1078_v43  ;;  %v1082_v45 = vld [vmem:[%s6499_s28 + $0x2d0] sm:$0xff] }
  0x28   : > { %1081 = vst [vmem:[%s6507_s29 + $0x160] sm:$0xff] %v1080_v44  ;;  %v1084_v46 = vld [vmem:[%s6499_s28 + $0x2e0] sm:$0xff]  ;;  %v1086_v47 = vld [vmem:[%s6499_s28 + $0x2f0] sm:$0xff]  ;;  %1083 = vst [vmem:[%s6507_s29 + $0x168] sm:$0xff] %v1082_v45 }
  0x29   : > { %1085 = vst [vmem:[%s6507_s29 + $0x170] sm:$0xff] %v1084_v46  ;;  %1087 = vst [vmem:[%s6507_s29 + $0x178] sm:$0xff] %v1086_v47  ;;  %v1088_v48 = vld [vmem:[%s6499_s28 + $0x300] sm:$0xff]  ;;  %v1090_v49 = vld [vmem:[%s6499_s28 + $0x310] sm:$0xff] }
  0x2a   : > { %v1092_v50 = vld [vmem:[%s6499_s28 + $0x320] sm:$0xff]  ;;  %1089 = vst [vmem:[%s6507_s29 + $0x180] sm:$0xff] %v1088_v48  ;;  %1091 = vst [vmem:[%s6507_s29 + $0x188] sm:$0xff] %v1090_v49  ;;  %v1094_v51 = vld [vmem:[%s6499_s28 + $0x330] sm:$0xff] }
  0x2b   : > { %1093 = vst [vmem:[%s6507_s29 + $0x190] sm:$0xff] %v1092_v50  ;;  %v1096_v52 = vld [vmem:[%s6499_s28 + $0x340] sm:$0xff]  ;;  %v1098_v53 = vld [vmem:[%s6499_s28 + $0x350] sm:$0xff]  ;;  %1095 = vst [vmem:[%s6507_s29 + $0x198] sm:$0xff] %v1094_v51 }
  0x2c   : > { %1097 = vst [vmem:[%s6507_s29 + $0x1a0] sm:$0xff] %v1096_v52  ;;  %1099 = vst [vmem:[%s6507_s29 + $0x1a8] sm:$0xff] %v1098_v53  ;;  %v1100_v54 = vld [vmem:[%s6499_s28 + $0x360] sm:$0xff]  ;;  %v1102_v55 = vld [vmem:[%s6499_s28 + $0x370] sm:$0xff] }
  0x2d   : > { %v1104_v56 = vld [vmem:[%s6499_s28 + $0x380] sm:$0xff]  ;;  %1101 = vst [vmem:[%s6507_s29 + $0x1b0] sm:$0xff] %v1100_v54  ;;  %1103 = vst [vmem:[%s6507_s29 + $0x1b8] sm:$0xff] %v1102_v55  ;;  %v1106_v57 = vld [vmem:[%s6499_s28 + $0x390] sm:$0xff] }
  0x2e   : > { %1105 = vst [vmem:[%s6507_s29 + $0x1c0] sm:$0xff] %v1104_v56  ;;  %v1108_v58 = vld [vmem:[%s6499_s28 + $0x3a0] sm:$0xff]  ;;  %v1110_v59 = vld [vmem:[%s6499_s28 + $0x3b0] sm:$0xff]  ;;  %1107 = vst [vmem:[%s6507_s29 + $0x1c8] sm:$0xff] %v1106_v57 }
  0x2f   : > { %1109 = vst [vmem:[%s6507_s29 + $0x1d0] sm:$0xff] %v1108_v58  ;;  %1111 = vst [vmem:[%s6507_s29 + $0x1d8] sm:$0xff] %v1110_v59  ;;  %v1112_v60 = vld [vmem:[%s6499_s28 + $0x3c0] sm:$0xff]  ;;  %v1114_v61 = vld [vmem:[%s6499_s28 + $0x3d0] sm:$0xff] }
  0x30   : > { %v1116_v62 = vld [vmem:[%s6499_s28 + $0x3e0] sm:$0xff]  ;;  %1113 = vst [vmem:[%s6507_s29 + $0x1e0] sm:$0xff] %v1112_v60  ;;  %1115 = vst [vmem:[%s6507_s29 + $0x1e8] sm:$0xff] %v1114_v61  ;;  %v1118_v63 = vld [vmem:[%s6499_s28 + $0x3f0] sm:$0xff] }
  0x31   : > { %1117 = vst [vmem:[%s6507_s29 + $0x1f0] sm:$0xff] %v1116_v62  ;;  %v1120_v0 = vld [vmem:[%s6499_s28 + $0x400] sm:$0xff]  ;;  %v1122_v1 = vld [vmem:[%s6499_s28 + $0x410] sm:$0xff]  ;;  %1119 = vst [vmem:[%s6507_s29 + $0x1f8] sm:$0xff] %v1118_v63 }
  0x32   : > { %1121 = vst [vmem:[%s6507_s29 + $0x200] sm:$0xff] %v1120_v0  ;;  %1123 = vst [vmem:[%s6507_s29 + $0x208] sm:$0xff] %v1122_v1  ;;  %v1124_v2 = vld [vmem:[%s6499_s28 + $0x420] sm:$0xff]  ;;  %v1126_v3 = vld [vmem:[%s6499_s28 + $0x430] sm:$0xff] }
  0x33   : > { %v1128_v4 = vld [vmem:[%s6499_s28 + $0x440] sm:$0xff]  ;;  %1125 = vst [vmem:[%s6507_s29 + $0x210] sm:$0xff] %v1124_v2  ;;  %1127 = vst [vmem:[%s6507_s29 + $0x218] sm:$0xff] %v1126_v3  ;;  %v1130_v5 = vld [vmem:[%s6499_s28 + $0x450] sm:$0xff] }
  0x34   : > { %1129 = vst [vmem:[%s6507_s29 + $0x220] sm:$0xff] %v1128_v4  ;;  %v1132_v6 = vld [vmem:[%s6499_s28 + $0x460] sm:$0xff]  ;;  %v1134_v7 = vld [vmem:[%s6499_s28 + $0x470] sm:$0xff]  ;;  %1131 = vst [vmem:[%s6507_s29 + $0x228] sm:$0xff] %v1130_v5 }
  0x35   : > { %1133 = vst [vmem:[%s6507_s29 + $0x230] sm:$0xff] %v1132_v6  ;;  %1135 = vst [vmem:[%s6507_s29 + $0x238] sm:$0xff] %v1134_v7  ;;  %v1136_v8 = vld [vmem:[%s6499_s28 + $0x480] sm:$0xff]  ;;  %v1138_v9 = vld [vmem:[%s6499_s28 + $0x490] sm:$0xff] }
  0x36   : > { %v1140_v10 = vld [vmem:[%s6499_s28 + $0x4a0] sm:$0xff]  ;;  %1137 = vst [vmem:[%s6507_s29 + $0x240] sm:$0xff] %v1136_v8  ;;  %1139 = vst [vmem:[%s6507_s29 + $0x248] sm:$0xff] %v1138_v9  ;;  %v1142_v11 = vld [vmem:[%s6499_s28 + $0x4b0] sm:$0xff] }
  0x37   : > { %1141 = vst [vmem:[%s6507_s29 + $0x250] sm:$0xff] %v1140_v10  ;;  %v1144_v12 = vld [vmem:[%s6499_s28 + $0x4c0] sm:$0xff]  ;;  %v1146_v13 = vld [vmem:[%s6499_s28 + $0x4d0] sm:$0xff]  ;;  %1143 = vst [vmem:[%s6507_s29 + $0x258] sm:$0xff] %v1142_v11 }
  0x38   : > { %1145 = vst [vmem:[%s6507_s29 + $0x260] sm:$0xff] %v1144_v12  ;;  %1147 = vst [vmem:[%s6507_s29 + $0x268] sm:$0xff] %v1146_v13  ;;  %v1148_v14 = vld [vmem:[%s6499_s28 + $0x4e0] sm:$0xff]  ;;  %v1150_v15 = vld [vmem:[%s6499_s28 + $0x4f0] sm:$0xff] }
  0x39   : > { %v1152_v16 = vld [vmem:[%s6499_s28 + $0x500] sm:$0xff]  ;;  %1149 = vst [vmem:[%s6507_s29 + $0x270] sm:$0xff] %v1148_v14  ;;  %1151 = vst [vmem:[%s6507_s29 + $0x278] sm:$0xff] %v1150_v15  ;;  %v1154_v17 = vld [vmem:[%s6499_s28 + $0x510] sm:$0xff] }
  0x3a   : > { %1153 = vst [vmem:[%s6507_s29 + $0x280] sm:$0xff] %v1152_v16  ;;  %v1156_v18 = vld [vmem:[%s6499_s28 + $0x520] sm:$0xff]  ;;  %v1158_v19 = vld [vmem:[%s6499_s28 + $0x530] sm:$0xff]  ;;  %1155 = vst [vmem:[%s6507_s29 + $0x288] sm:$0xff] %v1154_v17 }
  0x3b   : > { %1157 = vst [vmem:[%s6507_s29 + $0x290] sm:$0xff] %v1156_v18  ;;  %1159 = vst [vmem:[%s6507_s29 + $0x298] sm:$0xff] %v1158_v19  ;;  %v1160_v20 = vld [vmem:[%s6499_s28 + $0x540] sm:$0xff]  ;;  %v1162_v21 = vld [vmem:[%s6499_s28 + $0x550] sm:$0xff] }
  0x3c   : > { %v1164_v22 = vld [vmem:[%s6499_s28 + $0x560] sm:$0xff]  ;;  %1161 = vst [vmem:[%s6507_s29 + $0x2a0] sm:$0xff] %v1160_v20  ;;  %1163 = vst [vmem:[%s6507_s29 + $0x2a8] sm:$0xff] %v1162_v21  ;;  %v1166_v23 = vld [vmem:[%s6499_s28 + $0x570] sm:$0xff] }
  0x3d   : > { %1165 = vst [vmem:[%s6507_s29 + $0x2b0] sm:$0xff] %v1164_v22  ;;  %v1168_v24 = vld [vmem:[%s6499_s28 + $0x580] sm:$0xff]  ;;  %v1170_v25 = vld [vmem:[%s6499_s28 + $0x590] sm:$0xff]  ;;  %1167 = vst [vmem:[%s6507_s29 + $0x2b8] sm:$0xff] %v1166_v23 }
  0x3e   : > { %1169 = vst [vmem:[%s6507_s29 + $0x2c0] sm:$0xff] %v1168_v24  ;;  %1171 = vst [vmem:[%s6507_s29 + $0x2c8] sm:$0xff] %v1170_v25  ;;  %v1172_v26 = vld [vmem:[%s6499_s28 + $0x5a0] sm:$0xff]  ;;  %v1174_v27 = vld [vmem:[%s6499_s28 + $0x5b0] sm:$0xff] }
  0x3f   : > { %v1176_v28 = vld [vmem:[%s6499_s28 + $0x5c0] sm:$0xff]  ;;  %1173 = vst [vmem:[%s6507_s29 + $0x2d0] sm:$0xff] %v1172_v26  ;;  %1175 = vst [vmem:[%s6507_s29 + $0x2d8] sm:$0xff] %v1174_v27  ;;  %v1178_v29 = vld [vmem:[%s6499_s28 + $0x5d0] sm:$0xff] }
  0x40   : > { %1177 = vst [vmem:[%s6507_s29 + $0x2e0] sm:$0xff] %v1176_v28  ;;  %v1180_v30 = vld [vmem:[%s6499_s28 + $0x5e0] sm:$0xff]  ;;  %v1182_v31 = vld [vmem:[%s6499_s28 + $0x5f0] sm:$0xff]  ;;  %1179 = vst [vmem:[%s6507_s29 + $0x2e8] sm:$0xff] %v1178_v29 }
  0x41   : > { %1181 = vst [vmem:[%s6507_s29 + $0x2f0] sm:$0xff] %v1180_v30  ;;  %1183 = vst [vmem:[%s6507_s29 + $0x2f8] sm:$0xff] %v1182_v31  ;;  %v1184_v32 = vld [vmem:[%s6499_s28 + $0x600] sm:$0xff]  ;;  %v1186_v33 = vld [vmem:[%s6499_s28 + $0x610] sm:$0xff] }
  0x42   : > { %v1188_v34 = vld [vmem:[%s6499_s28 + $0x620] sm:$0xff]  ;;  %1185 = vst [vmem:[%s6507_s29 + $0x300] sm:$0xff] %v1184_v32  ;;  %1187 = vst [vmem:[%s6507_s29 + $0x308] sm:$0xff] %v1186_v33  ;;  %v1190_v35 = vld [vmem:[%s6499_s28 + $0x630] sm:$0xff] }
  0x43   : > { %1189 = vst [vmem:[%s6507_s29 + $0x310] sm:$0xff] %v1188_v34  ;;  %v1192_v36 = vld [vmem:[%s6499_s28 + $0x640] sm:$0xff]  ;;  %v1194_v37 = vld [vmem:[%s6499_s28 + $0x650] sm:$0xff]  ;;  %1191 = vst [vmem:[%s6507_s29 + $0x318] sm:$0xff] %v1190_v35 }
  0x44   : > { %1193 = vst [vmem:[%s6507_s29 + $0x320] sm:$0xff] %v1192_v36  ;;  %1195 = vst [vmem:[%s6507_s29 + $0x328] sm:$0xff] %v1194_v37  ;;  %v1196_v38 = vld [vmem:[%s6499_s28 + $0x660] sm:$0xff]  ;;  %v1198_v39 = vld [vmem:[%s6499_s28 + $0x670] sm:$0xff] }
  0x45   : > { %v1200_v40 = vld [vmem:[%s6499_s28 + $0x680] sm:$0xff]  ;;  %1197 = vst [vmem:[%s6507_s29 + $0x330] sm:$0xff] %v1196_v38  ;;  %1199 = vst [vmem:[%s6507_s29 + $0x338] sm:$0xff] %v1198_v39  ;;  %v1202_v41 = vld [vmem:[%s6499_s28 + $0x690] sm:$0xff] }
  0x46   : > { %1201 = vst [vmem:[%s6507_s29 + $0x340] sm:$0xff] %v1200_v40  ;;  %v1204_v42 = vld [vmem:[%s6499_s28 + $0x6a0] sm:$0xff]  ;;  %v1206_v43 = vld [vmem:[%s6499_s28 + $0x6b0] sm:$0xff]  ;;  %1203 = vst [vmem:[%s6507_s29 + $0x348] sm:$0xff] %v1202_v41 }
  0x47   : > { %1205 = vst [vmem:[%s6507_s29 + $0x350] sm:$0xff] %v1204_v42  ;;  %1207 = vst [vmem:[%s6507_s29 + $0x358] sm:$0xff] %v1206_v43  ;;  %v1208_v44 = vld [vmem:[%s6499_s28 + $0x6c0] sm:$0xff]  ;;  %v1210_v45 = vld [vmem:[%s6499_s28 + $0x6d0] sm:$0xff] }
  0x48   : > { %v1212_v46 = vld [vmem:[%s6499_s28 + $0x6e0] sm:$0xff]  ;;  %1209 = vst [vmem:[%s6507_s29 + $0x360] sm:$0xff] %v1208_v44  ;;  %1211 = vst [vmem:[%s6507_s29 + $0x368] sm:$0xff] %v1210_v45  ;;  %v1214_v47 = vld [vmem:[%s6499_s28 + $0x6f0] sm:$0xff] }
  0x49   : > { %1213 = vst [vmem:[%s6507_s29 + $0x370] sm:$0xff] %v1212_v46  ;;  %v1216_v48 = vld [vmem:[%s6499_s28 + $0x700] sm:$0xff]  ;;  %v1218_v49 = vld [vmem:[%s6499_s28 + $0x710] sm:$0xff]  ;;  %1215 = vst [vmem:[%s6507_s29 + $0x378] sm:$0xff] %v1214_v47 }
  0x4a   : > { %1217 = vst [vmem:[%s6507_s29 + $0x380] sm:$0xff] %v1216_v48  ;;  %1219 = vst [vmem:[%s6507_s29 + $0x388] sm:$0xff] %v1218_v49  ;;  %v1220_v50 = vld [vmem:[%s6499_s28 + $0x720] sm:$0xff]  ;;  %v1222_v51 = vld [vmem:[%s6499_s28 + $0x730] sm:$0xff] }
  0x4b   : > { %v1224_v52 = vld [vmem:[%s6499_s28 + $0x740] sm:$0xff]  ;;  %1221 = vst [vmem:[%s6507_s29 + $0x390] sm:$0xff] %v1220_v50  ;;  %1223 = vst [vmem:[%s6507_s29 + $0x398] sm:$0xff] %v1222_v51  ;;  %v1226_v53 = vld [vmem:[%s6499_s28 + $0x750] sm:$0xff] }
  0x4c   : > { %1225 = vst [vmem:[%s6507_s29 + $0x3a0] sm:$0xff] %v1224_v52  ;;  %v1228_v54 = vld [vmem:[%s6499_s28 + $0x760] sm:$0xff]  ;;  %v1230_v55 = vld [vmem:[%s6499_s28 + $0x770] sm:$0xff]  ;;  %1227 = vst [vmem:[%s6507_s29 + $0x3a8] sm:$0xff] %v1226_v53 }
  0x4d   : > { %1229 = vst [vmem:[%s6507_s29 + $0x3b0] sm:$0xff] %v1228_v54  ;;  %1231 = vst [vmem:[%s6507_s29 + $0x3b8] sm:$0xff] %v1230_v55  ;;  %v1232_v56 = vld [vmem:[%s6499_s28 + $0x780] sm:$0xff]  ;;  %v1234_v57 = vld [vmem:[%s6499_s28 + $0x790] sm:$0xff] }
  0x4e   : > { %v1236_v58 = vld [vmem:[%s6499_s28 + $0x7a0] sm:$0xff]  ;;  %1233 = vst [vmem:[%s6507_s29 + $0x3c0] sm:$0xff] %v1232_v56  ;;  %1235 = vst [vmem:[%s6507_s29 + $0x3c8] sm:$0xff] %v1234_v57  ;;  %v1238_v59 = vld [vmem:[%s6499_s28 + $0x7b0] sm:$0xff] }
  0x4f   : > { %1237 = vst [vmem:[%s6507_s29 + $0x3d0] sm:$0xff] %v1236_v58  ;;  %v1240_v60 = vld [vmem:[%s6499_s28 + $0x7c0] sm:$0xff]  ;;  %v1242_v61 = vld [vmem:[%s6499_s28 + $0x7d0] sm:$0xff]  ;;  %1239 = vst [vmem:[%s6507_s29 + $0x3d8] sm:$0xff] %v1238_v59 }
  0x50   : > { %1241 = vst [vmem:[%s6507_s29 + $0x3e0] sm:$0xff] %v1240_v60  ;;  %1243 = vst [vmem:[%s6507_s29 + $0x3e8] sm:$0xff] %v1242_v61  ;;  %v1244_v62 = vld [vmem:[%s6499_s28 + $0x7e0] sm:$0xff]  ;;  %v1246_v63 = vld [vmem:[%s6499_s28 + $0x7f0] sm:$0xff] }
  0x51   : > { %v1248_v0 = vld [vmem:[%s6499_s28 + $0x800] sm:$0xff]  ;;  %1245 = vst [vmem:[%s6507_s29 + $0x3f0] sm:$0xff] %v1244_v62  ;;  %1247 = vst [vmem:[%s6507_s29 + $0x3f8] sm:$0xff] %v1246_v63  ;;  %v1250_v1 = vld [vmem:[%s6499_s28 + $0x810] sm:$0xff] }
  0x52   : > { %1249 = vst [vmem:[%s6507_s29 + $0x400] sm:$0xff] %v1248_v0  ;;  %v1252_v2 = vld [vmem:[%s6499_s28 + $0x820] sm:$0xff]  ;;  %v1254_v3 = vld [vmem:[%s6499_s28 + $0x830] sm:$0xff]  ;;  %1251 = vst [vmem:[%s6507_s29 + $0x408] sm:$0xff] %v1250_v1 }
  0x53   : > { %1253 = vst [vmem:[%s6507_s29 + $0x410] sm:$0xff] %v1252_v2  ;;  %1255 = vst [vmem:[%s6507_s29 + $0x418] sm:$0xff] %v1254_v3  ;;  %v1256_v4 = vld [vmem:[%s6499_s28 + $0x840] sm:$0xff]  ;;  %v1258_v5 = vld [vmem:[%s6499_s28 + $0x850] sm:$0xff] }
  0x54   : > { %v1260_v6 = vld [vmem:[%s6499_s28 + $0x860] sm:$0xff]  ;;  %1257 = vst [vmem:[%s6507_s29 + $0x420] sm:$0xff] %v1256_v4  ;;  %1259 = vst [vmem:[%s6507_s29 + $0x428] sm:$0xff] %v1258_v5  ;;  %v1262_v7 = vld [vmem:[%s6499_s28 + $0x870] sm:$0xff] }
  0x55   : > { %1261 = vst [vmem:[%s6507_s29 + $0x430] sm:$0xff] %v1260_v6  ;;  %v1264_v8 = vld [vmem:[%s6499_s28 + $0x880] sm:$0xff]  ;;  %v1266_v9 = vld [vmem:[%s6499_s28 + $0x890] sm:$0xff]  ;;  %1263 = vst [vmem:[%s6507_s29 + $0x438] sm:$0xff] %v1262_v7 }
  0x56   : > { %1265 = vst [vmem:[%s6507_s29 + $0x440] sm:$0xff] %v1264_v8  ;;  %1267 = vst [vmem:[%s6507_s29 + $0x448] sm:$0xff] %v1266_v9  ;;  %v1268_v10 = vld [vmem:[%s6499_s28 + $0x8a0] sm:$0xff]  ;;  %v1270_v11 = vld [vmem:[%s6499_s28 + $0x8b0] sm:$0xff] }
  0x57   : > { %v1272_v12 = vld [vmem:[%s6499_s28 + $0x8c0] sm:$0xff]  ;;  %1269 = vst [vmem:[%s6507_s29 + $0x450] sm:$0xff] %v1268_v10  ;;  %1271 = vst [vmem:[%s6507_s29 + $0x458] sm:$0xff] %v1270_v11  ;;  %v1274_v13 = vld [vmem:[%s6499_s28 + $0x8d0] sm:$0xff] }
  0x58   : > { %1273 = vst [vmem:[%s6507_s29 + $0x460] sm:$0xff] %v1272_v12  ;;  %v1276_v14 = vld [vmem:[%s6499_s28 + $0x8e0] sm:$0xff]  ;;  %v1278_v15 = vld [vmem:[%s6499_s28 + $0x8f0] sm:$0xff]  ;;  %1275 = vst [vmem:[%s6507_s29 + $0x468] sm:$0xff] %v1274_v13 }
  0x59   : > { %1277 = vst [vmem:[%s6507_s29 + $0x470] sm:$0xff] %v1276_v14  ;;  %1279 = vst [vmem:[%s6507_s29 + $0x478] sm:$0xff] %v1278_v15  ;;  %v1280_v16 = vld [vmem:[%s6499_s28 + $0x900] sm:$0xff]  ;;  %v1282_v17 = vld [vmem:[%s6499_s28 + $0x910] sm:$0xff] }
  0x5a   : > { %v1284_v18 = vld [vmem:[%s6499_s28 + $0x920] sm:$0xff]  ;;  %1281 = vst [vmem:[%s6507_s29 + $0x480] sm:$0xff] %v1280_v16  ;;  %1283 = vst [vmem:[%s6507_s29 + $0x488] sm:$0xff] %v1282_v17  ;;  %v1286_v19 = vld [vmem:[%s6499_s28 + $0x930] sm:$0xff] }
  0x5b   : > { %1285 = vst [vmem:[%s6507_s29 + $0x490] sm:$0xff] %v1284_v18  ;;  %v1288_v20 = vld [vmem:[%s6499_s28 + $0x940] sm:$0xff]  ;;  %v1290_v21 = vld [vmem:[%s6499_s28 + $0x950] sm:$0xff]  ;;  %1287 = vst [vmem:[%s6507_s29 + $0x498] sm:$0xff] %v1286_v19 }
  0x5c   : > { %1289 = vst [vmem:[%s6507_s29 + $0x4a0] sm:$0xff] %v1288_v20  ;;  %1291 = vst [vmem:[%s6507_s29 + $0x4a8] sm:$0xff] %v1290_v21  ;;  %v1292_v22 = vld [vmem:[%s6499_s28 + $0x960] sm:$0xff]  ;;  %v1294_v23 = vld [vmem:[%s6499_s28 + $0x970] sm:$0xff] }
  0x5d   : > { %v1296_v24 = vld [vmem:[%s6499_s28 + $0x980] sm:$0xff]  ;;  %1293 = vst [vmem:[%s6507_s29 + $0x4b0] sm:$0xff] %v1292_v22  ;;  %1295 = vst [vmem:[%s6507_s29 + $0x4b8] sm:$0xff] %v1294_v23  ;;  %v1298_v25 = vld [vmem:[%s6499_s28 + $0x990] sm:$0xff] }
  0x5e   : > { %1297 = vst [vmem:[%s6507_s29 + $0x4c0] sm:$0xff] %v1296_v24  ;;  %v1300_v26 = vld [vmem:[%s6499_s28 + $0x9a0] sm:$0xff]  ;;  %v1302_v27 = vld [vmem:[%s6499_s28 + $0x9b0] sm:$0xff]  ;;  %1299 = vst [vmem:[%s6507_s29 + $0x4c8] sm:$0xff] %v1298_v25 }
  0x5f   : > { %1301 = vst [vmem:[%s6507_s29 + $0x4d0] sm:$0xff] %v1300_v26  ;;  %1303 = vst [vmem:[%s6507_s29 + $0x4d8] sm:$0xff] %v1302_v27  ;;  %v1304_v28 = vld [vmem:[%s6499_s28 + $0x9c0] sm:$0xff]  ;;  %v1306_v29 = vld [vmem:[%s6499_s28 + $0x9d0] sm:$0xff] }
  0x60   : > { %v1308_v30 = vld [vmem:[%s6499_s28 + $0x9e0] sm:$0xff]  ;;  %1305 = vst [vmem:[%s6507_s29 + $0x4e0] sm:$0xff] %v1304_v28  ;;  %1307 = vst [vmem:[%s6507_s29 + $0x4e8] sm:$0xff] %v1306_v29  ;;  %v1310_v31 = vld [vmem:[%s6499_s28 + $0x9f0] sm:$0xff] }
  0x61   : > { %1309 = vst [vmem:[%s6507_s29 + $0x4f0] sm:$0xff] %v1308_v30  ;;  %v1312_v32 = vld [vmem:[%s6499_s28 + $0xa00] sm:$0xff]  ;;  %v1314_v33 = vld [vmem:[%s6499_s28 + $0xa10] sm:$0xff]  ;;  %1311 = vst [vmem:[%s6507_s29 + $0x4f8] sm:$0xff] %v1310_v31 }
  0x62   : > { %1313 = vst [vmem:[%s6507_s29 + $0x500] sm:$0xff] %v1312_v32  ;;  %1315 = vst [vmem:[%s6507_s29 + $0x508] sm:$0xff] %v1314_v33  ;;  %v1316_v34 = vld [vmem:[%s6499_s28 + $0xa20] sm:$0xff]  ;;  %v1318_v35 = vld [vmem:[%s6499_s28 + $0xa30] sm:$0xff] }
  0x63   : > { %v1320_v36 = vld [vmem:[%s6499_s28 + $0xa40] sm:$0xff]  ;;  %1317 = vst [vmem:[%s6507_s29 + $0x510] sm:$0xff] %v1316_v34  ;;  %1319 = vst [vmem:[%s6507_s29 + $0x518] sm:$0xff] %v1318_v35  ;;  %v1322_v37 = vld [vmem:[%s6499_s28 + $0xa50] sm:$0xff] }
  0x64   : > { %1321 = vst [vmem:[%s6507_s29 + $0x520] sm:$0xff] %v1320_v36  ;;  %v1324_v38 = vld [vmem:[%s6499_s28 + $0xa60] sm:$0xff]  ;;  %v1326_v39 = vld [vmem:[%s6499_s28 + $0xa70] sm:$0xff]  ;;  %1323 = vst [vmem:[%s6507_s29 + $0x528] sm:$0xff] %v1322_v37 }
  0x65   : > { %1325 = vst [vmem:[%s6507_s29 + $0x530] sm:$0xff] %v1324_v38  ;;  %1327 = vst [vmem:[%s6507_s29 + $0x538] sm:$0xff] %v1326_v39  ;;  %v1328_v40 = vld [vmem:[%s6499_s28 + $0xa80] sm:$0xff]  ;;  %v1330_v41 = vld [vmem:[%s6499_s28 + $0xa90] sm:$0xff] }
  0x66   : > { %v1332_v42 = vld [vmem:[%s6499_s28 + $0xaa0] sm:$0xff]  ;;  %1329 = vst [vmem:[%s6507_s29 + $0x540] sm:$0xff] %v1328_v40  ;;  %1331 = vst [vmem:[%s6507_s29 + $0x548] sm:$0xff] %v1330_v41  ;;  %v1334_v43 = vld [vmem:[%s6499_s28 + $0xab0] sm:$0xff] }
  0x67   : > { %1333 = vst [vmem:[%s6507_s29 + $0x550] sm:$0xff] %v1332_v42  ;;  %v1336_v44 = vld [vmem:[%s6499_s28 + $0xac0] sm:$0xff]  ;;  %v1338_v45 = vld [vmem:[%s6499_s28 + $0xad0] sm:$0xff]  ;;  %1335 = vst [vmem:[%s6507_s29 + $0x558] sm:$0xff] %v1334_v43 }
  0x68   : > { %1337 = vst [vmem:[%s6507_s29 + $0x560] sm:$0xff] %v1336_v44  ;;  %1339 = vst [vmem:[%s6507_s29 + $0x568] sm:$0xff] %v1338_v45  ;;  %v1340_v46 = vld [vmem:[%s6499_s28 + $0xae0] sm:$0xff]  ;;  %v1342_v47 = vld [vmem:[%s6499_s28 + $0xaf0] sm:$0xff] }
  0x69   : > { %v1344_v48 = vld [vmem:[%s6499_s28 + $0xb00] sm:$0xff]  ;;  %1341 = vst [vmem:[%s6507_s29 + $0x570] sm:$0xff] %v1340_v46  ;;  %1343 = vst [vmem:[%s6507_s29 + $0x578] sm:$0xff] %v1342_v47  ;;  %v1346_v49 = vld [vmem:[%s6499_s28 + $0xb10] sm:$0xff] }
  0x6a   : > { %1345 = vst [vmem:[%s6507_s29 + $0x580] sm:$0xff] %v1344_v48  ;;  %v1348_v50 = vld [vmem:[%s6499_s28 + $0xb20] sm:$0xff]  ;;  %v1350_v51 = vld [vmem:[%s6499_s28 + $0xb30] sm:$0xff]  ;;  %1347 = vst [vmem:[%s6507_s29 + $0x588] sm:$0xff] %v1346_v49 }
  0x6b   : > { %1349 = vst [vmem:[%s6507_s29 + $0x590] sm:$0xff] %v1348_v50  ;;  %1351 = vst [vmem:[%s6507_s29 + $0x598] sm:$0xff] %v1350_v51  ;;  %v1352_v52 = vld [vmem:[%s6499_s28 + $0xb40] sm:$0xff]  ;;  %v1354_v53 = vld [vmem:[%s6499_s28 + $0xb50] sm:$0xff] }
  0x6c   : > { %v1356_v54 = vld [vmem:[%s6499_s28 + $0xb60] sm:$0xff]  ;;  %1353 = vst [vmem:[%s6507_s29 + $0x5a0] sm:$0xff] %v1352_v52  ;;  %1355 = vst [vmem:[%s6507_s29 + $0x5a8] sm:$0xff] %v1354_v53  ;;  %v1358_v55 = vld [vmem:[%s6499_s28 + $0xb70] sm:$0xff] }
  0x6d   : > { %1357 = vst [vmem:[%s6507_s29 + $0x5b0] sm:$0xff] %v1356_v54  ;;  %v1360_v56 = vld [vmem:[%s6499_s28 + $0xb80] sm:$0xff]  ;;  %v1362_v57 = vld [vmem:[%s6499_s28 + $0xb90] sm:$0xff]  ;;  %1359 = vst [vmem:[%s6507_s29 + $0x5b8] sm:$0xff] %v1358_v55 }
  0x6e   : > { %1361 = vst [vmem:[%s6507_s29 + $0x5c0] sm:$0xff] %v1360_v56  ;;  %1363 = vst [vmem:[%s6507_s29 + $0x5c8] sm:$0xff] %v1362_v57  ;;  %v1364_v58 = vld [vmem:[%s6499_s28 + $0xba0] sm:$0xff]  ;;  %v1366_v59 = vld [vmem:[%s6499_s28 + $0xbb0] sm:$0xff] }
  0x6f   : > { %v1368_v60 = vld [vmem:[%s6499_s28 + $0xbc0] sm:$0xff]  ;;  %1365 = vst [vmem:[%s6507_s29 + $0x5d0] sm:$0xff] %v1364_v58  ;;  %1367 = vst [vmem:[%s6507_s29 + $0x5d8] sm:$0xff] %v1366_v59  ;;  %v1370_v61 = vld [vmem:[%s6499_s28 + $0xbd0] sm:$0xff] }
  0x70   : > { %1369 = vst [vmem:[%s6507_s29 + $0x5e0] sm:$0xff] %v1368_v60  ;;  %v1372_v62 = vld [vmem:[%s6499_s28 + $0xbe0] sm:$0xff]  ;;  %v1374_v63 = vld [vmem:[%s6499_s28 + $0xbf0] sm:$0xff]  ;;  %1371 = vst [vmem:[%s6507_s29 + $0x5e8] sm:$0xff] %v1370_v61 }
  0x71   : > { %1373 = vst [vmem:[%s6507_s29 + $0x5f0] sm:$0xff] %v1372_v62  ;;  %1375 = vst [vmem:[%s6507_s29 + $0x5f8] sm:$0xff] %v1374_v63  ;;  %v1376_v0 = vld [vmem:[%s6499_s28 + $0xc00] sm:$0xff]  ;;  %v1378_v1 = vld [vmem:[%s6499_s28 + $0xc10] sm:$0xff] }
  0x72   : > { %v1380_v2 = vld [vmem:[%s6499_s28 + $0xc20] sm:$0xff]  ;;  %1377 = vst [vmem:[%s6507_s29 + $0x600] sm:$0xff] %v1376_v0  ;;  %1379 = vst [vmem:[%s6507_s29 + $0x608] sm:$0xff] %v1378_v1  ;;  %v1382_v3 = vld [vmem:[%s6499_s28 + $0xc30] sm:$0xff] }
  0x73   : > { %1381 = vst [vmem:[%s6507_s29 + $0x610] sm:$0xff] %v1380_v2  ;;  %v1384_v4 = vld [vmem:[%s6499_s28 + $0xc40] sm:$0xff]  ;;  %v1386_v5 = vld [vmem:[%s6499_s28 + $0xc50] sm:$0xff]  ;;  %1383 = vst [vmem:[%s6507_s29 + $0x618] sm:$0xff] %v1382_v3 }
  0x74   : > { %1385 = vst [vmem:[%s6507_s29 + $0x620] sm:$0xff] %v1384_v4  ;;  %1387 = vst [vmem:[%s6507_s29 + $0x628] sm:$0xff] %v1386_v5  ;;  %v1388_v6 = vld [vmem:[%s6499_s28 + $0xc60] sm:$0xff]  ;;  %v1390_v7 = vld [vmem:[%s6499_s28 + $0xc70] sm:$0xff] }
  0x75   : > { %v1392_v8 = vld [vmem:[%s6499_s28 + $0xc80] sm:$0xff]  ;;  %1389 = vst [vmem:[%s6507_s29 + $0x630] sm:$0xff] %v1388_v6  ;;  %1391 = vst [vmem:[%s6507_s29 + $0x638] sm:$0xff] %v1390_v7  ;;  %v1394_v9 = vld [vmem:[%s6499_s28 + $0xc90] sm:$0xff] }
  0x76   : > { %1393 = vst [vmem:[%s6507_s29 + $0x640] sm:$0xff] %v1392_v8  ;;  %v1396_v10 = vld [vmem:[%s6499_s28 + $0xca0] sm:$0xff]  ;;  %v1398_v11 = vld [vmem:[%s6499_s28 + $0xcb0] sm:$0xff]  ;;  %1395 = vst [vmem:[%s6507_s29 + $0x648] sm:$0xff] %v1394_v9 }
  0x77   : > { %1397 = vst [vmem:[%s6507_s29 + $0x650] sm:$0xff] %v1396_v10  ;;  %1399 = vst [vmem:[%s6507_s29 + $0x658] sm:$0xff] %v1398_v11  ;;  %v1400_v12 = vld [vmem:[%s6499_s28 + $0xcc0] sm:$0xff]  ;;  %v1402_v13 = vld [vmem:[%s6499_s28 + $0xcd0] sm:$0xff] }
  0x78   : > { %v1404_v14 = vld [vmem:[%s6499_s28 + $0xce0] sm:$0xff]  ;;  %1401 = vst [vmem:[%s6507_s29 + $0x660] sm:$0xff] %v1400_v12  ;;  %1403 = vst [vmem:[%s6507_s29 + $0x668] sm:$0xff] %v1402_v13  ;;  %v1406_v15 = vld [vmem:[%s6499_s28 + $0xcf0] sm:$0xff] }
  0x79   : > { %1405 = vst [vmem:[%s6507_s29 + $0x670] sm:$0xff] %v1404_v14  ;;  %v1408_v16 = vld [vmem:[%s6499_s28 + $0xd00] sm:$0xff]  ;;  %v1410_v17 = vld [vmem:[%s6499_s28 + $0xd10] sm:$0xff]  ;;  %1407 = vst [vmem:[%s6507_s29 + $0x678] sm:$0xff] %v1406_v15 }
  0x7a   : > { %1409 = vst [vmem:[%s6507_s29 + $0x680] sm:$0xff] %v1408_v16  ;;  %1411 = vst [vmem:[%s6507_s29 + $0x688] sm:$0xff] %v1410_v17  ;;  %v1412_v18 = vld [vmem:[%s6499_s28 + $0xd20] sm:$0xff]  ;;  %v1414_v19 = vld [vmem:[%s6499_s28 + $0xd30] sm:$0xff] }
  0x7b   : > { %v1416_v20 = vld [vmem:[%s6499_s28 + $0xd40] sm:$0xff]  ;;  %1413 = vst [vmem:[%s6507_s29 + $0x690] sm:$0xff] %v1412_v18  ;;  %1415 = vst [vmem:[%s6507_s29 + $0x698] sm:$0xff] %v1414_v19  ;;  %v1418_v21 = vld [vmem:[%s6499_s28 + $0xd50] sm:$0xff] }
  0x7c   : > { %1417 = vst [vmem:[%s6507_s29 + $0x6a0] sm:$0xff] %v1416_v20  ;;  %v1420_v22 = vld [vmem:[%s6499_s28 + $0xd60] sm:$0xff]  ;;  %v1422_v23 = vld [vmem:[%s6499_s28 + $0xd70] sm:$0xff]  ;;  %1419 = vst [vmem:[%s6507_s29 + $0x6a8] sm:$0xff] %v1418_v21 }
  0x7d   : > { %1421 = vst [vmem:[%s6507_s29 + $0x6b0] sm:$0xff] %v1420_v22  ;;  %1423 = vst [vmem:[%s6507_s29 + $0x6b8] sm:$0xff] %v1422_v23  ;;  %v1424_v24 = vld [vmem:[%s6499_s28 + $0xd80] sm:$0xff]  ;;  %v1426_v25 = vld [vmem:[%s6499_s28 + $0xd90] sm:$0xff] }
  0x7e   : > { %v1428_v26 = vld [vmem:[%s6499_s28 + $0xda0] sm:$0xff]  ;;  %1425 = vst [vmem:[%s6507_s29 + $0x6c0] sm:$0xff] %v1424_v24  ;;  %1427 = vst [vmem:[%s6507_s29 + $0x6c8] sm:$0xff] %v1426_v25  ;;  %v1430_v27 = vld [vmem:[%s6499_s28 + $0xdb0] sm:$0xff] }
  0x7f   : > { %1429 = vst [vmem:[%s6507_s29 + $0x6d0] sm:$0xff] %v1428_v26  ;;  %v1432_v28 = vld [vmem:[%s6499_s28 + $0xdc0] sm:$0xff]  ;;  %v1434_v29 = vld [vmem:[%s6499_s28 + $0xdd0] sm:$0xff]  ;;  %1431 = vst [vmem:[%s6507_s29 + $0x6d8] sm:$0xff] %v1430_v27 }
  0x80   : > { %1433 = vst [vmem:[%s6507_s29 + $0x6e0] sm:$0xff] %v1432_v28  ;;  %1435 = vst [vmem:[%s6507_s29 + $0x6e8] sm:$0xff] %v1434_v29  ;;  %v1436_v30 = vld [vmem:[%s6499_s28 + $0xde0] sm:$0xff]  ;;  %v1438_v31 = vld [vmem:[%s6499_s28 + $0xdf0] sm:$0xff] }
  0x81   : > { %v1440_v32 = vld [vmem:[%s6499_s28 + $0xe00] sm:$0xff]  ;;  %1437 = vst [vmem:[%s6507_s29 + $0x6f0] sm:$0xff] %v1436_v30  ;;  %1439 = vst [vmem:[%s6507_s29 + $0x6f8] sm:$0xff] %v1438_v31  ;;  %v1442_v33 = vld [vmem:[%s6499_s28 + $0xe10] sm:$0xff] }
  0x82   : > { %1441 = vst [vmem:[%s6507_s29 + $0x700] sm:$0xff] %v1440_v32  ;;  %v1444_v34 = vld [vmem:[%s6499_s28 + $0xe20] sm:$0xff]  ;;  %v1446_v35 = vld [vmem:[%s6499_s28 + $0xe30] sm:$0xff]  ;;  %1443 = vst [vmem:[%s6507_s29 + $0x708] sm:$0xff] %v1442_v33 }
  0x83   : > { %1445 = vst [vmem:[%s6507_s29 + $0x710] sm:$0xff] %v1444_v34  ;;  %1447 = vst [vmem:[%s6507_s29 + $0x718] sm:$0xff] %v1446_v35  ;;  %v1448_v36 = vld [vmem:[%s6499_s28 + $0xe40] sm:$0xff]  ;;  %v1450_v37 = vld [vmem:[%s6499_s28 + $0xe50] sm:$0xff] }
  0x84   : > { %v1452_v38 = vld [vmem:[%s6499_s28 + $0xe60] sm:$0xff]  ;;  %1449 = vst [vmem:[%s6507_s29 + $0x720] sm:$0xff] %v1448_v36  ;;  %1451 = vst [vmem:[%s6507_s29 + $0x728] sm:$0xff] %v1450_v37  ;;  %v1454_v39 = vld [vmem:[%s6499_s28 + $0xe70] sm:$0xff] }
  0x85   : > { %1453 = vst [vmem:[%s6507_s29 + $0x730] sm:$0xff] %v1452_v38  ;;  %v1456_v40 = vld [vmem:[%s6499_s28 + $0xe80] sm:$0xff]  ;;  %v1458_v41 = vld [vmem:[%s6499_s28 + $0xe90] sm:$0xff]  ;;  %1455 = vst [vmem:[%s6507_s29 + $0x738] sm:$0xff] %v1454_v39 }
  0x86   : > { %1457 = vst [vmem:[%s6507_s29 + $0x740] sm:$0xff] %v1456_v40  ;;  %1459 = vst [vmem:[%s6507_s29 + $0x748] sm:$0xff] %v1458_v41  ;;  %v1460_v42 = vld [vmem:[%s6499_s28 + $0xea0] sm:$0xff]  ;;  %v1462_v43 = vld [vmem:[%s6499_s28 + $0xeb0] sm:$0xff] }
  0x87   : > { %v1464_v44 = vld [vmem:[%s6499_s28 + $0xec0] sm:$0xff]  ;;  %1461 = vst [vmem:[%s6507_s29 + $0x750] sm:$0xff] %v1460_v42  ;;  %1463 = vst [vmem:[%s6507_s29 + $0x758] sm:$0xff] %v1462_v43  ;;  %v1466_v45 = vld [vmem:[%s6499_s28 + $0xed0] sm:$0xff] }
  0x88   : > { %1465 = vst [vmem:[%s6507_s29 + $0x760] sm:$0xff] %v1464_v44  ;;  %v1468_v46 = vld [vmem:[%s6499_s28 + $0xee0] sm:$0xff]  ;;  %v1470_v47 = vld [vmem:[%s6499_s28 + $0xef0] sm:$0xff]  ;;  %1467 = vst [vmem:[%s6507_s29 + $0x768] sm:$0xff] %v1466_v45 }
  0x89   : > { %1469 = vst [vmem:[%s6507_s29 + $0x770] sm:$0xff] %v1468_v46  ;;  %1471 = vst [vmem:[%s6507_s29 + $0x778] sm:$0xff] %v1470_v47  ;;  %v1472_v48 = vld [vmem:[%s6499_s28 + $0xf00] sm:$0xff]  ;;  %v1474_v49 = vld [vmem:[%s6499_s28 + $0xf10] sm:$0xff] }
  0x8a   : > { %v1476_v50 = vld [vmem:[%s6499_s28 + $0xf20] sm:$0xff]  ;;  %1473 = vst [vmem:[%s6507_s29 + $0x780] sm:$0xff] %v1472_v48  ;;  %1475 = vst [vmem:[%s6507_s29 + $0x788] sm:$0xff] %v1474_v49  ;;  %v1478_v51 = vld [vmem:[%s6499_s28 + $0xf30] sm:$0xff] }
  0x8b   : > { %1477 = vst [vmem:[%s6507_s29 + $0x790] sm:$0xff] %v1476_v50  ;;  %v1480_v52 = vld [vmem:[%s6499_s28 + $0xf40] sm:$0xff]  ;;  %v1482_v53 = vld [vmem:[%s6499_s28 + $0xf50] sm:$0xff]  ;;  %1479 = vst [vmem:[%s6507_s29 + $0x798] sm:$0xff] %v1478_v51 }
  0x8c   : > { %1481 = vst [vmem:[%s6507_s29 + $0x7a0] sm:$0xff] %v1480_v52  ;;  %1483 = vst [vmem:[%s6507_s29 + $0x7a8] sm:$0xff] %v1482_v53  ;;  %v1484_v54 = vld [vmem:[%s6499_s28 + $0xf60] sm:$0xff]  ;;  %v1486_v55 = vld [vmem:[%s6499_s28 + $0xf70] sm:$0xff] }
  0x8d   : > { %v1488_v56 = vld [vmem:[%s6499_s28 + $0xf80] sm:$0xff]  ;;  %1485 = vst [vmem:[%s6507_s29 + $0x7b0] sm:$0xff] %v1484_v54  ;;  %1487 = vst [vmem:[%s6507_s29 + $0x7b8] sm:$0xff] %v1486_v55  ;;  %v1490_v57 = vld [vmem:[%s6499_s28 + $0xf90] sm:$0xff] }
  0x8e   : > { %1489 = vst [vmem:[%s6507_s29 + $0x7c0] sm:$0xff] %v1488_v56  ;;  %v1492_v58 = vld [vmem:[%s6499_s28 + $0xfa0] sm:$0xff]  ;;  %v1494_v59 = vld [vmem:[%s6499_s28 + $0xfb0] sm:$0xff]  ;;  %1491 = vst [vmem:[%s6507_s29 + $0x7c8] sm:$0xff] %v1490_v57 }
  0x8f   : > { %1493 = vst [vmem:[%s6507_s29 + $0x7d0] sm:$0xff] %v1492_v58  ;;  %1495 = vst [vmem:[%s6507_s29 + $0x7d8] sm:$0xff] %v1494_v59  ;;  %v1496_v60 = vld [vmem:[%s6499_s28 + $0xfc0] sm:$0xff]  ;;  %v1498_v61 = vld [vmem:[%s6499_s28 + $0xfd0] sm:$0xff] }
  0x90   : > { %v1500_v62 = vld [vmem:[%s6499_s28 + $0xfe0] sm:$0xff]  ;;  %1497 = vst [vmem:[%s6507_s29 + $0x7e0] sm:$0xff] %v1496_v60  ;;  %1499 = vst [vmem:[%s6507_s29 + $0x7e8] sm:$0xff] %v1498_v61  ;;  %v1502_v63 = vld [vmem:[%s6499_s28 + $0xff0] sm:$0xff] }
  0x91   : > { %1501 = vst [vmem:[%s6507_s29 + $0x7f0] sm:$0xff] %v1500_v62  ;;  %v1504_v0 = vld [vmem:[%s6499_s28 + $0x1000] sm:$0xff]  ;;  %v1506_v1 = vld [vmem:[%s6499_s28 + $0x1010] sm:$0xff]  ;;  %1503 = vst [vmem:[%s6507_s29 + $0x7f8] sm:$0xff] %v1502_v63 }
  0x92   : > { %1505 = vst [vmem:[%s6507_s29 + $0x800] sm:$0xff] %v1504_v0  ;;  %1507 = vst [vmem:[%s6507_s29 + $0x808] sm:$0xff] %v1506_v1  ;;  %v1508_v2 = vld [vmem:[%s6499_s28 + $0x1020] sm:$0xff]  ;;  %v1510_v3 = vld [vmem:[%s6499_s28 + $0x1030] sm:$0xff] }
  0x93   : > { %v1512_v4 = vld [vmem:[%s6499_s28 + $0x1040] sm:$0xff]  ;;  %1509 = vst [vmem:[%s6507_s29 + $0x810] sm:$0xff] %v1508_v2  ;;  %1511 = vst [vmem:[%s6507_s29 + $0x818] sm:$0xff] %v1510_v3  ;;  %v1514_v5 = vld [vmem:[%s6499_s28 + $0x1050] sm:$0xff] }
  0x94   : > { %1513 = vst [vmem:[%s6507_s29 + $0x820] sm:$0xff] %v1512_v4  ;;  %v1516_v6 = vld [vmem:[%s6499_s28 + $0x1060] sm:$0xff]  ;;  %v1518_v7 = vld [vmem:[%s6499_s28 + $0x1070] sm:$0xff]  ;;  %1515 = vst [vmem:[%s6507_s29 + $0x828] sm:$0xff] %v1514_v5 }
  0x95   : > { %1517 = vst [vmem:[%s6507_s29 + $0x830] sm:$0xff] %v1516_v6  ;;  %1519 = vst [vmem:[%s6507_s29 + $0x838] sm:$0xff] %v1518_v7  ;;  %v1520_v8 = vld [vmem:[%s6499_s28 + $0x1080] sm:$0xff]  ;;  %v1522_v9 = vld [vmem:[%s6499_s28 + $0x1090] sm:$0xff] }
  0x96   : > { %v1524_v10 = vld [vmem:[%s6499_s28 + $0x10a0] sm:$0xff]  ;;  %1521 = vst [vmem:[%s6507_s29 + $0x840] sm:$0xff] %v1520_v8  ;;  %1523 = vst [vmem:[%s6507_s29 + $0x848] sm:$0xff] %v1522_v9  ;;  %v1526_v11 = vld [vmem:[%s6499_s28 + $0x10b0] sm:$0xff] }
  0x97   : > { %1525 = vst [vmem:[%s6507_s29 + $0x850] sm:$0xff] %v1524_v10  ;;  %v1528_v12 = vld [vmem:[%s6499_s28 + $0x10c0] sm:$0xff]  ;;  %v1530_v13 = vld [vmem:[%s6499_s28 + $0x10d0] sm:$0xff]  ;;  %1527 = vst [vmem:[%s6507_s29 + $0x858] sm:$0xff] %v1526_v11 }
  0x98   : > { %1529 = vst [vmem:[%s6507_s29 + $0x860] sm:$0xff] %v1528_v12  ;;  %1531 = vst [vmem:[%s6507_s29 + $0x868] sm:$0xff] %v1530_v13  ;;  %v1532_v14 = vld [vmem:[%s6499_s28 + $0x10e0] sm:$0xff]  ;;  %v1534_v15 = vld [vmem:[%s6499_s28 + $0x10f0] sm:$0xff] }
  0x99   : > { %v1536_v16 = vld [vmem:[%s6499_s28 + $0x1100] sm:$0xff]  ;;  %1533 = vst [vmem:[%s6507_s29 + $0x870] sm:$0xff] %v1532_v14  ;;  %1535 = vst [vmem:[%s6507_s29 + $0x878] sm:$0xff] %v1534_v15  ;;  %v1538_v17 = vld [vmem:[%s6499_s28 + $0x1110] sm:$0xff] }
  0x9a   : > { %1537 = vst [vmem:[%s6507_s29 + $0x880] sm:$0xff] %v1536_v16  ;;  %v1540_v18 = vld [vmem:[%s6499_s28 + $0x1120] sm:$0xff]  ;;  %v1542_v19 = vld [vmem:[%s6499_s28 + $0x1130] sm:$0xff]  ;;  %1539 = vst [vmem:[%s6507_s29 + $0x888] sm:$0xff] %v1538_v17 }
  0x9b   : > { %1541 = vst [vmem:[%s6507_s29 + $0x890] sm:$0xff] %v1540_v18  ;;  %1543 = vst [vmem:[%s6507_s29 + $0x898] sm:$0xff] %v1542_v19  ;;  %v1544_v20 = vld [vmem:[%s6499_s28 + $0x1140] sm:$0xff]  ;;  %v1546_v21 = vld [vmem:[%s6499_s28 + $0x1150] sm:$0xff] }
  0x9c   : > { %v1548_v22 = vld [vmem:[%s6499_s28 + $0x1160] sm:$0xff]  ;;  %1545 = vst [vmem:[%s6507_s29 + $0x8a0] sm:$0xff] %v1544_v20  ;;  %1547 = vst [vmem:[%s6507_s29 + $0x8a8] sm:$0xff] %v1546_v21  ;;  %v1550_v23 = vld [vmem:[%s6499_s28 + $0x1170] sm:$0xff] }
  0x9d   : > { %1549 = vst [vmem:[%s6507_s29 + $0x8b0] sm:$0xff] %v1548_v22  ;;  %v1552_v24 = vld [vmem:[%s6499_s28 + $0x1180] sm:$0xff]  ;;  %v1554_v25 = vld [vmem:[%s6499_s28 + $0x1190] sm:$0xff]  ;;  %1551 = vst [vmem:[%s6507_s29 + $0x8b8] sm:$0xff] %v1550_v23 }
  0x9e   : > { %1553 = vst [vmem:[%s6507_s29 + $0x8c0] sm:$0xff] %v1552_v24  ;;  %1555 = vst [vmem:[%s6507_s29 + $0x8c8] sm:$0xff] %v1554_v25  ;;  %v1556_v26 = vld [vmem:[%s6499_s28 + $0x11a0] sm:$0xff]  ;;  %v1558_v27 = vld [vmem:[%s6499_s28 + $0x11b0] sm:$0xff] }
  0x9f   : > { %v1560_v28 = vld [vmem:[%s6499_s28 + $0x11c0] sm:$0xff]  ;;  %1557 = vst [vmem:[%s6507_s29 + $0x8d0] sm:$0xff] %v1556_v26  ;;  %1559 = vst [vmem:[%s6507_s29 + $0x8d8] sm:$0xff] %v1558_v27  ;;  %v1562_v29 = vld [vmem:[%s6499_s28 + $0x11d0] sm:$0xff] }
  0xa0   : > { %1561 = vst [vmem:[%s6507_s29 + $0x8e0] sm:$0xff] %v1560_v28  ;;  %v1564_v30 = vld [vmem:[%s6499_s28 + $0x11e0] sm:$0xff]  ;;  %v1566_v31 = vld [vmem:[%s6499_s28 + $0x11f0] sm:$0xff]  ;;  %1563 = vst [vmem:[%s6507_s29 + $0x8e8] sm:$0xff] %v1562_v29 }
  0xa1   : > { %1565 = vst [vmem:[%s6507_s29 + $0x8f0] sm:$0xff] %v1564_v30  ;;  %1567 = vst [vmem:[%s6507_s29 + $0x8f8] sm:$0xff] %v1566_v31  ;;  %v1568_v32 = vld [vmem:[%s6499_s28 + $0x1200] sm:$0xff]  ;;  %v1570_v33 = vld [vmem:[%s6499_s28 + $0x1210] sm:$0xff] }
  0xa2   : > { %v1572_v34 = vld [vmem:[%s6499_s28 + $0x1220] sm:$0xff]  ;;  %1569 = vst [vmem:[%s6507_s29 + $0x900] sm:$0xff] %v1568_v32  ;;  %1571 = vst [vmem:[%s6507_s29 + $0x908] sm:$0xff] %v1570_v33  ;;  %v1574_v35 = vld [vmem:[%s6499_s28 + $0x1230] sm:$0xff] }
  0xa3   : > { %1573 = vst [vmem:[%s6507_s29 + $0x910] sm:$0xff] %v1572_v34  ;;  %v1576_v36 = vld [vmem:[%s6499_s28 + $0x1240] sm:$0xff]  ;;  %v1578_v37 = vld [vmem:[%s6499_s28 + $0x1250] sm:$0xff]  ;;  %1575 = vst [vmem:[%s6507_s29 + $0x918] sm:$0xff] %v1574_v35 }
  0xa4   : > { %1577 = vst [vmem:[%s6507_s29 + $0x920] sm:$0xff] %v1576_v36  ;;  %1579 = vst [vmem:[%s6507_s29 + $0x928] sm:$0xff] %v1578_v37  ;;  %v1580_v38 = vld [vmem:[%s6499_s28 + $0x1260] sm:$0xff]  ;;  %v1582_v39 = vld [vmem:[%s6499_s28 + $0x1270] sm:$0xff] }
  0xa5   : > { %v1584_v40 = vld [vmem:[%s6499_s28 + $0x1280] sm:$0xff]  ;;  %1581 = vst [vmem:[%s6507_s29 + $0x930] sm:$0xff] %v1580_v38  ;;  %1583 = vst [vmem:[%s6507_s29 + $0x938] sm:$0xff] %v1582_v39  ;;  %v1586_v41 = vld [vmem:[%s6499_s28 + $0x1290] sm:$0xff] }
  0xa6   : > { %1585 = vst [vmem:[%s6507_s29 + $0x940] sm:$0xff] %v1584_v40  ;;  %v1588_v42 = vld [vmem:[%s6499_s28 + $0x12a0] sm:$0xff]  ;;  %v1590_v43 = vld [vmem:[%s6499_s28 + $0x12b0] sm:$0xff]  ;;  %1587 = vst [vmem:[%s6507_s29 + $0x948] sm:$0xff] %v1586_v41 }
  0xa7   : > { %1589 = vst [vmem:[%s6507_s29 + $0x950] sm:$0xff] %v1588_v42  ;;  %1591 = vst [vmem:[%s6507_s29 + $0x958] sm:$0xff] %v1590_v43  ;;  %v1592_v44 = vld [vmem:[%s6499_s28 + $0x12c0] sm:$0xff]  ;;  %v1594_v45 = vld [vmem:[%s6499_s28 + $0x12d0] sm:$0xff] }
  0xa8   : > { %v1596_v46 = vld [vmem:[%s6499_s28 + $0x12e0] sm:$0xff]  ;;  %1593 = vst [vmem:[%s6507_s29 + $0x960] sm:$0xff] %v1592_v44  ;;  %1595 = vst [vmem:[%s6507_s29 + $0x968] sm:$0xff] %v1594_v45  ;;  %v1598_v47 = vld [vmem:[%s6499_s28 + $0x12f0] sm:$0xff] }
  0xa9   : > { %1597 = vst [vmem:[%s6507_s29 + $0x970] sm:$0xff] %v1596_v46  ;;  %v1600_v48 = vld [vmem:[%s6499_s28 + $0x1300] sm:$0xff]  ;;  %v1602_v49 = vld [vmem:[%s6499_s28 + $0x1310] sm:$0xff]  ;;  %1599 = vst [vmem:[%s6507_s29 + $0x978] sm:$0xff] %v1598_v47 }
  0xaa   : > { %1601 = vst [vmem:[%s6507_s29 + $0x980] sm:$0xff] %v1600_v48  ;;  %1603 = vst [vmem:[%s6507_s29 + $0x988] sm:$0xff] %v1602_v49  ;;  %v1604_v50 = vld [vmem:[%s6499_s28 + $0x1320] sm:$0xff]  ;;  %v1606_v51 = vld [vmem:[%s6499_s28 + $0x1330] sm:$0xff] }
  0xab   : > { %v1608_v52 = vld [vmem:[%s6499_s28 + $0x1340] sm:$0xff]  ;;  %1605 = vst [vmem:[%s6507_s29 + $0x990] sm:$0xff] %v1604_v50  ;;  %1607 = vst [vmem:[%s6507_s29 + $0x998] sm:$0xff] %v1606_v51  ;;  %v1610_v53 = vld [vmem:[%s6499_s28 + $0x1350] sm:$0xff] }
  0xac   : > { %1609 = vst [vmem:[%s6507_s29 + $0x9a0] sm:$0xff] %v1608_v52  ;;  %v1612_v54 = vld [vmem:[%s6499_s28 + $0x1360] sm:$0xff]  ;;  %v1614_v55 = vld [vmem:[%s6499_s28 + $0x1370] sm:$0xff]  ;;  %1611 = vst [vmem:[%s6507_s29 + $0x9a8] sm:$0xff] %v1610_v53 }
  0xad   : > { %1613 = vst [vmem:[%s6507_s29 + $0x9b0] sm:$0xff] %v1612_v54  ;;  %1615 = vst [vmem:[%s6507_s29 + $0x9b8] sm:$0xff] %v1614_v55  ;;  %v1616_v56 = vld [vmem:[%s6499_s28 + $0x1380] sm:$0xff]  ;;  %v1618_v57 = vld [vmem:[%s6499_s28 + $0x1390] sm:$0xff] }
  0xae   : > { %v1620_v58 = vld [vmem:[%s6499_s28 + $0x13a0] sm:$0xff]  ;;  %1617 = vst [vmem:[%s6507_s29 + $0x9c0] sm:$0xff] %v1616_v56  ;;  %1619 = vst [vmem:[%s6507_s29 + $0x9c8] sm:$0xff] %v1618_v57  ;;  %v1622_v59 = vld [vmem:[%s6499_s28 + $0x13b0] sm:$0xff] }
  0xaf   : > { %1621 = vst [vmem:[%s6507_s29 + $0x9d0] sm:$0xff] %v1620_v58  ;;  %v1624_v60 = vld [vmem:[%s6499_s28 + $0x13c0] sm:$0xff]  ;;  %v1626_v61 = vld [vmem:[%s6499_s28 + $0x13d0] sm:$0xff]  ;;  %1623 = vst [vmem:[%s6507_s29 + $0x9d8] sm:$0xff] %v1622_v59 }
  0xb0   : > { %1625 = vst [vmem:[%s6507_s29 + $0x9e0] sm:$0xff] %v1624_v60  ;;  %1627 = vst [vmem:[%s6507_s29 + $0x9e8] sm:$0xff] %v1626_v61  ;;  %v1628_v62 = vld [vmem:[%s6499_s28 + $0x13e0] sm:$0xff]  ;;  %v1630_v63 = vld [vmem:[%s6499_s28 + $0x13f0] sm:$0xff] }
  0xb1   : > { %v1632_v0 = vld [vmem:[%s6499_s28 + $0x1400] sm:$0xff]  ;;  %1629 = vst [vmem:[%s6507_s29 + $0x9f0] sm:$0xff] %v1628_v62  ;;  %1631 = vst [vmem:[%s6507_s29 + $0x9f8] sm:$0xff] %v1630_v63  ;;  %v1634_v1 = vld [vmem:[%s6499_s28 + $0x1410] sm:$0xff] }
  0xb2   : > { %1633 = vst [vmem:[%s6507_s29 + $0xa00] sm:$0xff] %v1632_v0  ;;  %v1636_v2 = vld [vmem:[%s6499_s28 + $0x1420] sm:$0xff]  ;;  %v1638_v3 = vld [vmem:[%s6499_s28 + $0x1430] sm:$0xff]  ;;  %1635 = vst [vmem:[%s6507_s29 + $0xa08] sm:$0xff] %v1634_v1 }
  0xb3   : > { %1637 = vst [vmem:[%s6507_s29 + $0xa10] sm:$0xff] %v1636_v2  ;;  %1639 = vst [vmem:[%s6507_s29 + $0xa18] sm:$0xff] %v1638_v3  ;;  %v1640_v4 = vld [vmem:[%s6499_s28 + $0x1440] sm:$0xff]  ;;  %v1642_v5 = vld [vmem:[%s6499_s28 + $0x1450] sm:$0xff] }
  0xb4   : > { %v1644_v6 = vld [vmem:[%s6499_s28 + $0x1460] sm:$0xff]  ;;  %1641 = vst [vmem:[%s6507_s29 + $0xa20] sm:$0xff] %v1640_v4  ;;  %1643 = vst [vmem:[%s6507_s29 + $0xa28] sm:$0xff] %v1642_v5  ;;  %v1646_v7 = vld [vmem:[%s6499_s28 + $0x1470] sm:$0xff] }
  0xb5   : > { %1645 = vst [vmem:[%s6507_s29 + $0xa30] sm:$0xff] %v1644_v6  ;;  %v1648_v8 = vld [vmem:[%s6499_s28 + $0x1480] sm:$0xff]  ;;  %v1650_v9 = vld [vmem:[%s6499_s28 + $0x1490] sm:$0xff]  ;;  %1647 = vst [vmem:[%s6507_s29 + $0xa38] sm:$0xff] %v1646_v7 }
  0xb6   : > { %1649 = vst [vmem:[%s6507_s29 + $0xa40] sm:$0xff] %v1648_v8  ;;  %1651 = vst [vmem:[%s6507_s29 + $0xa48] sm:$0xff] %v1650_v9  ;;  %v1652_v10 = vld [vmem:[%s6499_s28 + $0x14a0] sm:$0xff]  ;;  %v1654_v11 = vld [vmem:[%s6499_s28 + $0x14b0] sm:$0xff] }
  0xb7   : > { %v1656_v12 = vld [vmem:[%s6499_s28 + $0x14c0] sm:$0xff]  ;;  %1653 = vst [vmem:[%s6507_s29 + $0xa50] sm:$0xff] %v1652_v10  ;;  %1655 = vst [vmem:[%s6507_s29 + $0xa58] sm:$0xff] %v1654_v11  ;;  %v1658_v13 = vld [vmem:[%s6499_s28 + $0x14d0] sm:$0xff] }
  0xb8   : > { %1657 = vst [vmem:[%s6507_s29 + $0xa60] sm:$0xff] %v1656_v12  ;;  %v1660_v14 = vld [vmem:[%s6499_s28 + $0x14e0] sm:$0xff]  ;;  %v1662_v15 = vld [vmem:[%s6499_s28 + $0x14f0] sm:$0xff]  ;;  %1659 = vst [vmem:[%s6507_s29 + $0xa68] sm:$0xff] %v1658_v13 }
  0xb9   : > { %1661 = vst [vmem:[%s6507_s29 + $0xa70] sm:$0xff] %v1660_v14  ;;  %1663 = vst [vmem:[%s6507_s29 + $0xa78] sm:$0xff] %v1662_v15  ;;  %v1664_v16 = vld [vmem:[%s6499_s28 + $0x1500] sm:$0xff]  ;;  %v1666_v17 = vld [vmem:[%s6499_s28 + $0x1510] sm:$0xff] }
  0xba   : > { %v1668_v18 = vld [vmem:[%s6499_s28 + $0x1520] sm:$0xff]  ;;  %1665 = vst [vmem:[%s6507_s29 + $0xa80] sm:$0xff] %v1664_v16  ;;  %1667 = vst [vmem:[%s6507_s29 + $0xa88] sm:$0xff] %v1666_v17  ;;  %v1670_v19 = vld [vmem:[%s6499_s28 + $0x1530] sm:$0xff] }
  0xbb   : > { %1669 = vst [vmem:[%s6507_s29 + $0xa90] sm:$0xff] %v1668_v18  ;;  %v1672_v20 = vld [vmem:[%s6499_s28 + $0x1540] sm:$0xff]  ;;  %v1674_v21 = vld [vmem:[%s6499_s28 + $0x1550] sm:$0xff]  ;;  %1671 = vst [vmem:[%s6507_s29 + $0xa98] sm:$0xff] %v1670_v19 }
  0xbc   : > { %1673 = vst [vmem:[%s6507_s29 + $0xaa0] sm:$0xff] %v1672_v20  ;;  %1675 = vst [vmem:[%s6507_s29 + $0xaa8] sm:$0xff] %v1674_v21  ;;  %v1676_v22 = vld [vmem:[%s6499_s28 + $0x1560] sm:$0xff]  ;;  %v1678_v23 = vld [vmem:[%s6499_s28 + $0x1570] sm:$0xff] }
  0xbd   : > { %v1680_v24 = vld [vmem:[%s6499_s28 + $0x1580] sm:$0xff]  ;;  %1677 = vst [vmem:[%s6507_s29 + $0xab0] sm:$0xff] %v1676_v22  ;;  %1679 = vst [vmem:[%s6507_s29 + $0xab8] sm:$0xff] %v1678_v23  ;;  %v1682_v25 = vld [vmem:[%s6499_s28 + $0x1590] sm:$0xff] }
  0xbe   : > { %1681 = vst [vmem:[%s6507_s29 + $0xac0] sm:$0xff] %v1680_v24  ;;  %v1684_v26 = vld [vmem:[%s6499_s28 + $0x15a0] sm:$0xff]  ;;  %v1686_v27 = vld [vmem:[%s6499_s28 + $0x15b0] sm:$0xff]  ;;  %1683 = vst [vmem:[%s6507_s29 + $0xac8] sm:$0xff] %v1682_v25 }
  0xbf   : > { %1685 = vst [vmem:[%s6507_s29 + $0xad0] sm:$0xff] %v1684_v26  ;;  %1687 = vst [vmem:[%s6507_s29 + $0xad8] sm:$0xff] %v1686_v27  ;;  %v1688_v28 = vld [vmem:[%s6499_s28 + $0x15c0] sm:$0xff]  ;;  %v1690_v29 = vld [vmem:[%s6499_s28 + $0x15d0] sm:$0xff] }
  0xc0   : > { %v1692_v30 = vld [vmem:[%s6499_s28 + $0x15e0] sm:$0xff]  ;;  %1689 = vst [vmem:[%s6507_s29 + $0xae0] sm:$0xff] %v1688_v28  ;;  %1691 = vst [vmem:[%s6507_s29 + $0xae8] sm:$0xff] %v1690_v29  ;;  %v1694_v31 = vld [vmem:[%s6499_s28 + $0x15f0] sm:$0xff] }
  0xc1   : > { %1693 = vst [vmem:[%s6507_s29 + $0xaf0] sm:$0xff] %v1692_v30  ;;  %v1696_v32 = vld [vmem:[%s6499_s28 + $0x1600] sm:$0xff]  ;;  %v1698_v33 = vld [vmem:[%s6499_s28 + $0x1610] sm:$0xff]  ;;  %1695 = vst [vmem:[%s6507_s29 + $0xaf8] sm:$0xff] %v1694_v31 }
  0xc2   : > { %1697 = vst [vmem:[%s6507_s29 + $0xb00] sm:$0xff] %v1696_v32  ;;  %1699 = vst [vmem:[%s6507_s29 + $0xb08] sm:$0xff] %v1698_v33  ;;  %v1700_v34 = vld [vmem:[%s6499_s28 + $0x1620] sm:$0xff]  ;;  %v1702_v35 = vld [vmem:[%s6499_s28 + $0x1630] sm:$0xff] }
  0xc3   : > { %v1704_v36 = vld [vmem:[%s6499_s28 + $0x1640] sm:$0xff]  ;;  %1701 = vst [vmem:[%s6507_s29 + $0xb10] sm:$0xff] %v1700_v34  ;;  %1703 = vst [vmem:[%s6507_s29 + $0xb18] sm:$0xff] %v1702_v35  ;;  %v1706_v37 = vld [vmem:[%s6499_s28 + $0x1650] sm:$0xff] }
  0xc4   : > { %1705 = vst [vmem:[%s6507_s29 + $0xb20] sm:$0xff] %v1704_v36  ;;  %v1708_v38 = vld [vmem:[%s6499_s28 + $0x1660] sm:$0xff]  ;;  %v1710_v39 = vld [vmem:[%s6499_s28 + $0x1670] sm:$0xff]  ;;  %1707 = vst [vmem:[%s6507_s29 + $0xb28] sm:$0xff] %v1706_v37 }
  0xc5   : > { %1709 = vst [vmem:[%s6507_s29 + $0xb30] sm:$0xff] %v1708_v38  ;;  %1711 = vst [vmem:[%s6507_s29 + $0xb38] sm:$0xff] %v1710_v39  ;;  %v1712_v40 = vld [vmem:[%s6499_s28 + $0x1680] sm:$0xff]  ;;  %v1714_v41 = vld [vmem:[%s6499_s28 + $0x1690] sm:$0xff] }
  0xc6   : > { %v1716_v42 = vld [vmem:[%s6499_s28 + $0x16a0] sm:$0xff]  ;;  %1713 = vst [vmem:[%s6507_s29 + $0xb40] sm:$0xff] %v1712_v40  ;;  %1715 = vst [vmem:[%s6507_s29 + $0xb48] sm:$0xff] %v1714_v41  ;;  %v1718_v43 = vld [vmem:[%s6499_s28 + $0x16b0] sm:$0xff] }
  0xc7   : > { %1717 = vst [vmem:[%s6507_s29 + $0xb50] sm:$0xff] %v1716_v42  ;;  %v1720_v44 = vld [vmem:[%s6499_s28 + $0x16c0] sm:$0xff]  ;;  %v1722_v45 = vld [vmem:[%s6499_s28 + $0x16d0] sm:$0xff]  ;;  %1719 = vst [vmem:[%s6507_s29 + $0xb58] sm:$0xff] %v1718_v43 }
  0xc8   : > { %1721 = vst [vmem:[%s6507_s29 + $0xb60] sm:$0xff] %v1720_v44  ;;  %1723 = vst [vmem:[%s6507_s29 + $0xb68] sm:$0xff] %v1722_v45  ;;  %v1724_v46 = vld [vmem:[%s6499_s28 + $0x16e0] sm:$0xff]  ;;  %v1726_v47 = vld [vmem:[%s6499_s28 + $0x16f0] sm:$0xff] }
  0xc9   : > { %v1728_v48 = vld [vmem:[%s6499_s28 + $0x1700] sm:$0xff]  ;;  %1725 = vst [vmem:[%s6507_s29 + $0xb70] sm:$0xff] %v1724_v46  ;;  %1727 = vst [vmem:[%s6507_s29 + $0xb78] sm:$0xff] %v1726_v47  ;;  %v1730_v49 = vld [vmem:[%s6499_s28 + $0x1710] sm:$0xff] }
  0xca   : > { %1729 = vst [vmem:[%s6507_s29 + $0xb80] sm:$0xff] %v1728_v48  ;;  %v1732_v50 = vld [vmem:[%s6499_s28 + $0x1720] sm:$0xff]  ;;  %v1734_v51 = vld [vmem:[%s6499_s28 + $0x1730] sm:$0xff]  ;;  %1731 = vst [vmem:[%s6507_s29 + $0xb88] sm:$0xff] %v1730_v49 }
  0xcb   : > { %1733 = vst [vmem:[%s6507_s29 + $0xb90] sm:$0xff] %v1732_v50  ;;  %1735 = vst [vmem:[%s6507_s29 + $0xb98] sm:$0xff] %v1734_v51  ;;  %v1736_v52 = vld [vmem:[%s6499_s28 + $0x1740] sm:$0xff]  ;;  %v1738_v53 = vld [vmem:[%s6499_s28 + $0x1750] sm:$0xff] }
  0xcc   : > { %v1740_v54 = vld [vmem:[%s6499_s28 + $0x1760] sm:$0xff]  ;;  %1737 = vst [vmem:[%s6507_s29 + $0xba0] sm:$0xff] %v1736_v52  ;;  %1739 = vst [vmem:[%s6507_s29 + $0xba8] sm:$0xff] %v1738_v53  ;;  %v1742_v55 = vld [vmem:[%s6499_s28 + $0x1770] sm:$0xff] }
  0xcd   : > { %1741 = vst [vmem:[%s6507_s29 + $0xbb0] sm:$0xff] %v1740_v54  ;;  %v1744_v56 = vld [vmem:[%s6499_s28 + $0x1780] sm:$0xff]  ;;  %v1746_v57 = vld [vmem:[%s6499_s28 + $0x1790] sm:$0xff]  ;;  %1743 = vst [vmem:[%s6507_s29 + $0xbb8] sm:$0xff] %v1742_v55 }
  0xce   : > { %1745 = vst [vmem:[%s6507_s29 + $0xbc0] sm:$0xff] %v1744_v56  ;;  %1747 = vst [vmem:[%s6507_s29 + $0xbc8] sm:$0xff] %v1746_v57  ;;  %v1748_v58 = vld [vmem:[%s6499_s28 + $0x17a0] sm:$0xff]  ;;  %v1750_v59 = vld [vmem:[%s6499_s28 + $0x17b0] sm:$0xff] }
  0xcf   : > { %v1752_v60 = vld [vmem:[%s6499_s28 + $0x17c0] sm:$0xff]  ;;  %1749 = vst [vmem:[%s6507_s29 + $0xbd0] sm:$0xff] %v1748_v58  ;;  %1751 = vst [vmem:[%s6507_s29 + $0xbd8] sm:$0xff] %v1750_v59  ;;  %v1754_v61 = vld [vmem:[%s6499_s28 + $0x17d0] sm:$0xff] }
  0xd0   : > { %1753 = vst [vmem:[%s6507_s29 + $0xbe0] sm:$0xff] %v1752_v60  ;;  %v1756_v62 = vld [vmem:[%s6499_s28 + $0x17e0] sm:$0xff]  ;;  %v1758_v63 = vld [vmem:[%s6499_s28 + $0x17f0] sm:$0xff]  ;;  %1755 = vst [vmem:[%s6507_s29 + $0xbe8] sm:$0xff] %v1754_v61 }
  0xd1   : > { %1757 = vst [vmem:[%s6507_s29 + $0xbf0] sm:$0xff] %v1756_v62  ;;  %1759 = vst [vmem:[%s6507_s29 + $0xbf8] sm:$0xff] %v1758_v63  ;;  %v1760_v0 = vld [vmem:[%s6499_s28 + $0x1800] sm:$0xff]  ;;  %v1762_v1 = vld [vmem:[%s6499_s28 + $0x1810] sm:$0xff] }
  0xd2   : > { %v1764_v2 = vld [vmem:[%s6499_s28 + $0x1820] sm:$0xff]  ;;  %1761 = vst [vmem:[%s6507_s29 + $0xc00] sm:$0xff] %v1760_v0  ;;  %1763 = vst [vmem:[%s6507_s29 + $0xc08] sm:$0xff] %v1762_v1  ;;  %v1766_v3 = vld [vmem:[%s6499_s28 + $0x1830] sm:$0xff] }
  0xd3   : > { %1765 = vst [vmem:[%s6507_s29 + $0xc10] sm:$0xff] %v1764_v2  ;;  %v1768_v4 = vld [vmem:[%s6499_s28 + $0x1840] sm:$0xff]  ;;  %v1770_v5 = vld [vmem:[%s6499_s28 + $0x1850] sm:$0xff]  ;;  %1767 = vst [vmem:[%s6507_s29 + $0xc18] sm:$0xff] %v1766_v3 }
  0xd4   : > { %1769 = vst [vmem:[%s6507_s29 + $0xc20] sm:$0xff] %v1768_v4  ;;  %1771 = vst [vmem:[%s6507_s29 + $0xc28] sm:$0xff] %v1770_v5  ;;  %v1772_v6 = vld [vmem:[%s6499_s28 + $0x1860] sm:$0xff]  ;;  %v1774_v7 = vld [vmem:[%s6499_s28 + $0x1870] sm:$0xff] }
  0xd5   : > { %v1776_v8 = vld [vmem:[%s6499_s28 + $0x1880] sm:$0xff]  ;;  %1773 = vst [vmem:[%s6507_s29 + $0xc30] sm:$0xff] %v1772_v6  ;;  %1775 = vst [vmem:[%s6507_s29 + $0xc38] sm:$0xff] %v1774_v7  ;;  %v1778_v9 = vld [vmem:[%s6499_s28 + $0x1890] sm:$0xff] }
  0xd6   : > { %1777 = vst [vmem:[%s6507_s29 + $0xc40] sm:$0xff] %v1776_v8  ;;  %v1780_v10 = vld [vmem:[%s6499_s28 + $0x18a0] sm:$0xff]  ;;  %v1782_v11 = vld [vmem:[%s6499_s28 + $0x18b0] sm:$0xff]  ;;  %1779 = vst [vmem:[%s6507_s29 + $0xc48] sm:$0xff] %v1778_v9 }
  0xd7   : > { %1781 = vst [vmem:[%s6507_s29 + $0xc50] sm:$0xff] %v1780_v10  ;;  %1783 = vst [vmem:[%s6507_s29 + $0xc58] sm:$0xff] %v1782_v11  ;;  %v1784_v12 = vld [vmem:[%s6499_s28 + $0x18c0] sm:$0xff]  ;;  %v1786_v13 = vld [vmem:[%s6499_s28 + $0x18d0] sm:$0xff] }
  0xd8   : > { %v1788_v14 = vld [vmem:[%s6499_s28 + $0x18e0] sm:$0xff]  ;;  %1785 = vst [vmem:[%s6507_s29 + $0xc60] sm:$0xff] %v1784_v12  ;;  %1787 = vst [vmem:[%s6507_s29 + $0xc68] sm:$0xff] %v1786_v13  ;;  %v1790_v15 = vld [vmem:[%s6499_s28 + $0x18f0] sm:$0xff] }
  0xd9   : > { %1789 = vst [vmem:[%s6507_s29 + $0xc70] sm:$0xff] %v1788_v14  ;;  %1791 = vst [vmem:[%s6507_s29 + $0xc78] sm:$0xff] %v1790_v15 }
  0xda PF: > { %p5268_p5 = scmp.ge.s32.totalorder %s6434_s17, 1  ;;  %p1813_p6 = scmp.lt.s32.totalorder %s6434_s17, 3 }
  0xdc   : > { %p1814_p7 = pnand %p5268_p5, %p1813_p6 }
  0xdd   : > { %s1820_s30 = sand.u32 (!%p1814_p7), 1, %s6426_s15   ;;  %v2276_v16 = vlaneseq (!%p1814_p7)  ;;  %v1871_v17 = vld [vmem:[%s7871_s0 + $0x8] sm:$0xff] (!%p1814_p7)  ;;  %v6436_v18 = vmov (!%p1814_p7), 1966171168   ;;  %v7314_v21 = vld [vmem:[%s7871_s0] sm:$0xff] (!%p1814_p7)  ;;  %s5270_s20 = sshll.u32 (!%p1814_p7), %s6479_s18, 5 }
  0xde   : > { %1817 = sbr.rel (%p1814_p7) target bundleno = 1080 (0x438), region = 70  ;;  %v2292_v19 = vunpack.c.l.s4 (!%p1814_p7), %v6436_v18  ;;  %v2339_v23 = vcombine.high (!%p1814_p7), %v1871_v17, %v1871_v17  ;;  %p1860_p8 = scmp.lt.s32.totalorder (!%p1814_p7), %s5270_s20, 63 }
  0xdf   : > { %s5764_s7 = smul.u32 (!%p1814_p7), 3200, %s1820_s30  ;;  %v7309_v20 = vshrl.u32 (!%p1814_p7), %v2276_v16, 7  ;;  %s5269_s26 = sshll.u32 (!%p1814_p7), %s6479_s18, 1 }
  0xe0   : > { %v2293_v22 = vunpack.c.0.s8 (!%p1814_p7), %v2292_v19  ;;  %p1855_p9 = scmp.lt.s32.totalorder (!%p1814_p7), %s5269_s26, 3  ;;  %p1865_p10 = scmp.lt.s32.totalorder (!%p1814_p7), %s6479_s18, 1 }
  0xe1   : > { %s7316_s10 = scalar_lea.vmem (!%p1814_p7), [#allocation2], %s5764_s7 }
  0xe2   : > { %v5791_v24 = vld [vmem:[%s7316_s10 + $0x4] ss:$8 sps:$4 sm:$0xff] (!%p1814_p7)   ;;  %v7321_v26 = vsub.s32 (!%p1814_p7), %v2293_v22, %v7309_v20  ;;  %v5795_v27 = vld [vmem:[%s7316_s10] ss:$8 sps:$4 sm:$0xff] (!%p1814_p7)   ;;  %v5797_v29 = vld [vmem:[%s7316_s10 + $0x14] ss:$8 sps:$4 sm:$0xff] (!%p1814_p7)  }
  0xe3   : > { %v5793_v25 = vld [vmem:[%s7316_s10 + $0x604] ss:$8 sps:$4 sm:$0xff] (!%p1814_p7)   ;;  %4476 = vmatprep.subr.bf16.mxu1 (!%p1814_p7), %v5791_v24  ;;  %v5796_v28 = vld [vmem:[%s7316_s10 + $0x600] ss:$8 sps:$4 sm:$0xff] (!%p1814_p7)   ;;  %v5799_v32 = vld [vmem:[%s7316_s10 + $0x614] ss:$8 sps:$4 sm:$0xff] (!%p1814_p7)  }
  0xe4   : > { %4722 = vmatprep.subr.bf16.mxu0 (!%p1814_p7), %v5793_v25  ;;  %v7328_v30 = vrot.slane (!%p1814_p7), %v7314_v21, %v7321_v26  ;;  %v7331_v31 = vrot.slane (!%p1814_p7), %v2339_v23, %v7321_v26  ;;  %4477 = vmatpush1.bf16.msra.mxu1 (!%p1814_p7), %v5795_v27  ;;  %v5801_v33 = vld [vmem:[%s7316_s10 + $0x10] ss:$8 sps:$4 sm:$0xff] (!%p1814_p7)   ;;  %v5803_v37 = vld [vmem:[%s7316_s10 + $0x24] ss:$8 sps:$4 sm:$0xff] (!%p1814_p7)   ;;  %v5807_v39 = vld [vmem:[%s7316_s10 + $0x20] ss:$8 sps:$4 sm:$0xff] (!%p1814_p7)  }
  0xe5   : > { %4723 = vmatpush1.bf16.msra.mxu0 %v5796_v28  ;;  %4478 = vmatprep.subr.bf16.mxu1 %v5797_v29  ;;  %v5802_v34 = vld [vmem:[%s7316_s10 + $0x610] ss:$8 sps:$4 sm:$0xff]   ;;  %v5805_v38 = vld [vmem:[%s7316_s10 + $0x624] ss:$8 sps:$4 sm:$0xff]   ;;  %v5808_v40 = vld [vmem:[%s7316_s10 + $0x620] ss:$8 sps:$4 sm:$0xff]  }
  0xe6   : > { %v2305_v35 = vcombine.high %v7328_v30, %v7328_v30  ;;  %v2355_v36 = vcombine.high %v7331_v31, %v7331_v31  ;;  %4724 = vmatprep.subr.bf16.mxu0 %v5799_v32  ;;  %v5809_v43 = vld [vmem:[%s7316_s10 + $0x34] ss:$8 sps:$4 sm:$0xff]   ;;  %v5813_v45 = vld [vmem:[%s7316_s10 + $0x30] ss:$8 sps:$4 sm:$0xff]   ;;  %v5815_v47 = vld [vmem:[%s7316_s10 + $0x44] ss:$8 sps:$4 sm:$0xff]  }
  0xe7   : > { %v5811_v44 = vld [vmem:[%s7316_s10 + $0x634] ss:$8 sps:$4 sm:$0xff]   ;;  %v5814_v46 = vld [vmem:[%s7316_s10 + $0x630] ss:$8 sps:$4 sm:$0xff]   ;;  %v5817_v48 = vld [vmem:[%s7316_s10 + $0x644] ss:$8 sps:$4 sm:$0xff]  }
  0xe8   : > { %v7345_v41 = vrot.slane %v2305_v35, %v7321_v26  ;;  %v7348_v42 = vrot.slane %v2355_v36, %v7321_v26  ;;  %4479 = vmatpush1.bf16.msra.mxu1 %v5801_v33  ;;  %v5819_v49 = vld [vmem:[%s7316_s10 + $0x40] ss:$8 sps:$4 sm:$0xff]   ;;  %v5821_v51 = vld [vmem:[%s7316_s10 + $0x54] ss:$8 sps:$4 sm:$0xff]   ;;  %v5825_v53 = vld [vmem:[%s7316_s10 + $0x50] ss:$8 sps:$4 sm:$0xff]  }
  0xe9   : > { %4725 = vmatpush1.bf16.msra.mxu0 %v5802_v34  ;;  %4480 = vmatprep.subr.bf16.mxu1 %v5803_v37  ;;  %v5820_v50 = vld [vmem:[%s7316_s10 + $0x640] ss:$8 sps:$4 sm:$0xff]   ;;  %v5823_v52 = vld [vmem:[%s7316_s10 + $0x654] ss:$8 sps:$4 sm:$0xff]   ;;  %v5826_v54 = vld [vmem:[%s7316_s10 + $0x650] ss:$8 sps:$4 sm:$0xff]  }
  0xea   : > { %4726 = vmatprep.subr.bf16.mxu0 %v5805_v38  ;;  %4508 = vmatprep.mubr.bf16.mxu1 %v7345_v41  ;;  %v5827_v55 = vld [vmem:[%s7316_s10 + $0x64] ss:$8 sps:$4 sm:$0xff]   ;;  %v5831_v57 = vld [vmem:[%s7316_s10 + $0x60] ss:$8 sps:$4 sm:$0xff]   ;;  %v5833_v59 = vld [vmem:[%s7316_s10 + $0x74] ss:$8 sps:$4 sm:$0xff]  }
  0xeb   : > { %4754 = vmatprep.mubr.bf16.mxu0 %v7348_v42  ;;  %v5829_v56 = vld [vmem:[%s7316_s10 + $0x664] ss:$8 sps:$4 sm:$0xff]   ;;  %v5832_v58 = vld [vmem:[%s7316_s10 + $0x660] ss:$8 sps:$4 sm:$0xff]   ;;  %v5835_v60 = vld [vmem:[%s7316_s10 + $0x674] ss:$8 sps:$4 sm:$0xff]  }
  0xec   : > { %4481 = vmatpush1.bf16.msra.mxu1 %v5807_v39  ;;  %v5837_v61 = vld [vmem:[%s7316_s10 + $0x70] ss:$8 sps:$4 sm:$0xff]   ;;  %v5839_v63 = vld [vmem:[%s7316_s10 + $0x84] ss:$8 sps:$4 sm:$0xff]   ;;  %v5843_v1 = vld [vmem:[%s7316_s10 + $0x80] ss:$8 sps:$4 sm:$0xff]  }
  0xed   : > { %4727 = vmatpush1.bf16.msra.mxu0 %v5808_v40  ;;  %4482 = vmatprep.subr.bf16.mxu1 %v5809_v43  ;;  %v5838_v62 = vld [vmem:[%s7316_s10 + $0x670] ss:$8 sps:$4 sm:$0xff]   ;;  %v5841_v0 = vld [vmem:[%s7316_s10 + $0x684] ss:$8 sps:$4 sm:$0xff]   ;;  %v5844_v2 = vld [vmem:[%s7316_s10 + $0x680] ss:$8 sps:$4 sm:$0xff]   ;;  %v7410_v40 = vrot.slane %v7328_v30, %v7321_v26  ;;  %v7414_v43 = vrot.slane %v7331_v31, %v7321_v26  ;;  %v2387_v30 = vcombine.high %v7348_v42, %v7348_v42 }
  0xee   : > { %4728 = vmatprep.subr.bf16.mxu0 %v5811_v44  ;;  %v5845_v3 = vld [vmem:[%s7316_s10 + $0x94] ss:$8 sps:$4 sm:$0xff]   ;;  %v5849_v5 = vld [vmem:[%s7316_s10 + $0x90] ss:$8 sps:$4 sm:$0xff]   ;;  %v5851_v7 = vld [vmem:[%s7316_s10 + $0xa4] ss:$8 sps:$4 sm:$0xff]  }
  0xef   : > { %v5847_v4 = vld [vmem:[%s7316_s10 + $0x694] ss:$8 sps:$4 sm:$0xff]   ;;  %v5850_v6 = vld [vmem:[%s7316_s10 + $0x690] ss:$8 sps:$4 sm:$0xff]   ;;  %v5853_v8 = vld [vmem:[%s7316_s10 + $0x6a4] ss:$8 sps:$4 sm:$0xff]  }
  0xf0   : > { %4483 = vmatpush1.bf16.msra.mxu1 %v5813_v45  ;;  %v5855_v9 = vld [vmem:[%s7316_s10 + $0xa0] ss:$8 sps:$4 sm:$0xff]   ;;  %v5857_v11 = vld [vmem:[%s7316_s10 + $0xb4] ss:$8 sps:$4 sm:$0xff]   ;;  %v5861_v13 = vld [vmem:[%s7316_s10 + $0xb0] ss:$8 sps:$4 sm:$0xff]  }
  0xf1   : > { %4729 = vmatpush1.bf16.msra.mxu0 %v5814_v46  ;;  %4484 = vmatprep.subr.bf16.mxu1 %v5815_v47  ;;  %v5856_v10 = vld [vmem:[%s7316_s10 + $0x6a0] ss:$8 sps:$4 sm:$0xff]   ;;  %v5859_v12 = vld [vmem:[%s7316_s10 + $0x6b4] ss:$8 sps:$4 sm:$0xff]   ;;  %v5862_v14 = vld [vmem:[%s7316_s10 + $0x6b0] ss:$8 sps:$4 sm:$0xff]   ;;  %v2337_v46 = vcombine.high %v7345_v41, %v7345_v41 }
  0xf2   : > { %4730 = vmatprep.subr.bf16.mxu0 %v5817_v48  ;;  %v5863_v15 = vld [vmem:[%s7316_s10 + $0xc4] ss:$8 sps:$4 sm:$0xff]   ;;  %v5867_v17 = vld [vmem:[%s7316_s10 + $0xc0] ss:$8 sps:$4 sm:$0xff]   ;;  %v5869_v19 = vld [vmem:[%s7316_s10 + $0xd4] ss:$8 sps:$4 sm:$0xff]  }
  0xf3   : > { %v5865_v16 = vld [vmem:[%s7316_s10 + $0x6c4] ss:$8 sps:$4 sm:$0xff]   ;;  %v5868_v18 = vld [vmem:[%s7316_s10 + $0x6c0] ss:$8 sps:$4 sm:$0xff]   ;;  %v5871_v22 = vld [vmem:[%s7316_s10 + $0x6d4] ss:$8 sps:$4 sm:$0xff]  }
  0xf4   : > { %4485 = vmatpush1.bf16.msra.mxu1 %v5819_v49  ;;  %v5873_v23 = vld [vmem:[%s7316_s10 + $0xd0] ss:$8 sps:$4 sm:$0xff]   ;;  %v5875_v25 = vld [vmem:[%s7316_s10 + $0xe4] ss:$8 sps:$4 sm:$0xff]   ;;  %v5879_v28 = vld [vmem:[%s7316_s10 + $0xe0] ss:$8 sps:$4 sm:$0xff]  }
  0xf5   : > { %4731 = vmatpush1.bf16.msra.mxu0 %v5820_v50  ;;  %4486 = vmatprep.subr.bf16.mxu1 %v5821_v51  ;;  %v5874_v24 = vld [vmem:[%s7316_s10 + $0x6d0] ss:$8 sps:$4 sm:$0xff]   ;;  %v5877_v27 = vld [vmem:[%s7316_s10 + $0x6e4] ss:$8 sps:$4 sm:$0xff]   ;;  %v5880_v29 = vld [vmem:[%s7316_s10 + $0x6e0] ss:$8 sps:$4 sm:$0xff]  }
  0xf6   : > { %4732 = vmatprep.subr.bf16.mxu0 %v5823_v52  ;;  %v5881_v32 = vld [vmem:[%s7316_s10 + $0xf4] ss:$8 sps:$4 sm:$0xff]   ;;  %v5885_v34 = vld [vmem:[%s7316_s10 + $0xf0] ss:$8 sps:$4 sm:$0xff]   ;;  %v5890_v36 = vld [vmem:[%s7316_s10 + $0x104] ss:$8 sps:$4 sm:$0xff]  }
  0xf7   : > { %v5883_v33 = vld [vmem:[%s7316_s10 + $0x6f4] ss:$8 sps:$4 sm:$0xff]   ;;  %v5886_v35 = vld [vmem:[%s7316_s10 + $0x6f0] ss:$8 sps:$4 sm:$0xff]   ;;  %v5894_v37 = vld [vmem:[%s7316_s10 + $0x704] ss:$8 sps:$4 sm:$0xff]  }
  0xf8   : > { %4487 = vmatpush1.bf16.msra.mxu1 %v5825_v53  ;;  %v5888_v38 = vld [vmem:[%s7316_s10 + $0x100] ss:$8 sps:$4 sm:$0xff]   ;;  %v5897_v44 = vld [vmem:[%s7316_s10 + $0x114] ss:$8 sps:$4 sm:$0xff]   ;;  %v5895_v31 = vld [vmem:[%s7316_s10 + $0x110] ss:$8 sps:$4 sm:$0xff]  }
  0xf9   : > { %4733 = vmatpush1.bf16.msra.mxu0 %v5826_v54  ;;  %4488 = vmatprep.subr.bf16.mxu1 %v5827_v55  ;;  %v5892_v39 = vld [vmem:[%s7316_s10 + $0x700] ss:$8 sps:$4 sm:$0xff]   ;;  %v5900_v45 = vld [vmem:[%s7316_s10 + $0x714] ss:$8 sps:$4 sm:$0xff]   ;;  %v5898_v47 = vld [vmem:[%s7316_s10 + $0x710] ss:$8 sps:$4 sm:$0xff]  }
  0xfa   : > { %4734 = vmatprep.subr.bf16.mxu0 %v5829_v56  ;;  %v5903_v48 = vld [vmem:[%s7316_s10 + $0x124] ss:$8 sps:$4 sm:$0xff]   ;;  %v5901_v42 = vld [vmem:[%s7316_s10 + $0x120] ss:$8 sps:$4 sm:$0xff]   ;;  %v5909_v50 = vld [vmem:[%s7316_s10 + $0x134] ss:$8 sps:$4 sm:$0xff]  }
  0xfb   : > { %v5906_v41 = vld [vmem:[%s7316_s10 + $0x724] ss:$8 sps:$4 sm:$0xff]   ;;  %v5904_v49 = vld [vmem:[%s7316_s10 + $0x720] ss:$8 sps:$4 sm:$0xff]   ;;  %v5912_v51 = vld [vmem:[%s7316_s10 + $0x734] ss:$8 sps:$4 sm:$0xff]  }
  0xfc   : > { %4489 = vmatpush1.bf16.msra.mxu1 %v5831_v57  ;;  %v5907_v52 = vld [vmem:[%s7316_s10 + $0x130] ss:$8 sps:$4 sm:$0xff]   ;;  %v5915_v54 = vld [vmem:[%s7316_s10 + $0x144] ss:$8 sps:$4 sm:$0xff]   ;;  %v5913_v56 = vld [vmem:[%s7316_s10 + $0x140] ss:$8 sps:$4 sm:$0xff]  }
  0xfd   : > { %4735 = vmatpush1.bf16.msra.mxu0 %v5832_v58  ;;  %4490 = vmatprep.subr.bf16.mxu1 %v5833_v59  ;;  %v5910_v53 = vld [vmem:[%s7316_s10 + $0x730] ss:$8 sps:$4 sm:$0xff]   ;;  %v5918_v55 = vld [vmem:[%s7316_s10 + $0x744] ss:$8 sps:$4 sm:$0xff]   ;;  %v5916_v57 = vld [vmem:[%s7316_s10 + $0x740] ss:$8 sps:$4 sm:$0xff]  }
  0xfe   : > { %4736 = vmatprep.subr.bf16.mxu0 %v5835_v60  ;;  %v5921_v58 = vld [vmem:[%s7316_s10 + $0x154] ss:$8 sps:$4 sm:$0xff]   ;;  %v5919_v60 = vld [vmem:[%s7316_s10 + $0x150] ss:$8 sps:$4 sm:$0xff]   ;;  %s7880_s20 = smov (!%p1860_p8, %s5270_s20), 63  ;;  %s7882_s26 = smov (!%p1855_p9, %s5269_s26), 3 }
  0xff   : > { %v5924_v59 = vld [vmem:[%s7316_s10 + $0x754] ss:$8 sps:$4 sm:$0xff]   ;;  %s5271_s21 = sshll.u32 %s7880_s20, 2  ;;  %s1857_s29 = scalar_lea.vmem %s7873_s2, %s7882_s26 }
 0x100   : > { %4491 = vmatpush1.bf16.msra.mxu1 %v5837_v61  ;;  %v5922_v61 = vld [vmem:[%s7316_s10 + $0x750] ss:$8 sps:$4 sm:$0xff]   ;;  %s1863_s25 = scalar_lea.vmem %s7874_s3, %s5271_s21  ;;  %s7884_s18 = smov (!%p1865_p10, %s6479_s18), 1 }
 0x101   : > { %4737 = vmatpush1.bf16.msra.mxu0 %v5838_v62  ;;  %4492 = vmatprep.subr.bf16.mxu1 %v5839_v63  ;;  %v5927_v62 = vld [vmem:[%s7316_s10 + $0x164] ss:$8 sps:$4 sm:$0xff]   ;;  %s5272_s30 = sshll.u32 %s7884_s18, 1 }
 0x102   : > { %4738 = vmatprep.subr.bf16.mxu0 %v5841_v0  ;;  %v5930_v63 = vld [vmem:[%s7316_s10 + $0x764] ss:$8 sps:$4 sm:$0xff]   ;;  %v5925_v0 = vld [vmem:[%s7316_s10 + $0x160] ss:$8 sps:$4 sm:$0xff]   ;;  %s1868_s7 = scalar_lea.vmem %s7875_s4, %s5272_s30 }
 0x104   : > { %4493 = vmatpush1.bf16.msra.mxu1 %v5843_v1  ;;  %v5928_v1 = vld [vmem:[%s7316_s10 + $0x760] ss:$8 sps:$4 sm:$0xff]  }
 0x105   : > { %4739 = vmatpush1.bf16.msra.mxu0 %v5844_v2  ;;  %4494 = vmatprep.subr.bf16.mxu1 %v5845_v3  ;;  %v5933_v2 = vld [vmem:[%s7316_s10 + $0x174] ss:$8 sps:$4 sm:$0xff]  }
 0x106   : > { %4740 = vmatprep.subr.bf16.mxu0 %v5847_v4  ;;  %v5936_v3 = vld [vmem:[%s7316_s10 + $0x774] ss:$8 sps:$4 sm:$0xff]   ;;  %v5931_v4 = vld [vmem:[%s7316_s10 + $0x170] ss:$8 sps:$4 sm:$0xff]  }
 0x108   : > { %4495 = vmatpush1.bf16.msra.mxu1 %v5849_v5  ;;  %v5934_v5 = vld [vmem:[%s7316_s10 + $0x770] ss:$8 sps:$4 sm:$0xff]  }
 0x109   : > { %4741 = vmatpush1.bf16.msra.mxu0 %v5850_v6  ;;  %4496 = vmatprep.subr.bf16.mxu1 %v5851_v7  ;;  %v5939_v6 = vld [vmem:[%s7316_s10 + $0x184] ss:$8 sps:$4 sm:$0xff]  }
 0x10a   : > { %4742 = vmatprep.subr.bf16.mxu0 %v5853_v8  ;;  %v5942_v7 = vld [vmem:[%s7316_s10 + $0x784] ss:$8 sps:$4 sm:$0xff]   ;;  %v5937_v8 = vld [vmem:[%s7316_s10 + $0x180] ss:$8 sps:$4 sm:$0xff]  }
 0x10c   : > { %4497 = vmatpush1.bf16.msra.mxu1 %v5855_v9  ;;  %v5940_v9 = vld [vmem:[%s7316_s10 + $0x780] ss:$8 sps:$4 sm:$0xff]  }
 0x10d   : > { %4743 = vmatpush1.bf16.msra.mxu0 %v5856_v10  ;;  %4498 = vmatprep.subr.bf16.mxu1 %v5857_v11  ;;  %v5945_v10 = vld [vmem:[%s7316_s10 + $0x194] ss:$8 sps:$4 sm:$0xff]  }
 0x10e   : > { %4744 = vmatprep.subr.bf16.mxu0 %v5859_v12  ;;  %v5948_v11 = vld [vmem:[%s7316_s10 + $0x794] ss:$8 sps:$4 sm:$0xff]   ;;  %v5943_v12 = vld [vmem:[%s7316_s10 + $0x190] ss:$8 sps:$4 sm:$0xff]  }
 0x110   : > { %4499 = vmatpush1.bf16.msra.mxu1 %v5861_v13  ;;  %v5946_v13 = vld [vmem:[%s7316_s10 + $0x790] ss:$8 sps:$4 sm:$0xff]  }
 0x111   : > { %4745 = vmatpush1.bf16.msra.mxu0 %v5862_v14  ;;  %4500 = vmatprep.subr.bf16.mxu1 %v5863_v15  ;;  %v5951_v14 = vld [vmem:[%s7316_s10 + $0x1a4] ss:$8 sps:$4 sm:$0xff]  }
 0x112   : > { %4746 = vmatprep.subr.bf16.mxu0 %v5865_v16  ;;  %v5954_v15 = vld [vmem:[%s7316_s10 + $0x7a4] ss:$8 sps:$4 sm:$0xff]   ;;  %v5949_v16 = vld [vmem:[%s7316_s10 + $0x1a0] ss:$8 sps:$4 sm:$0xff]  }
 0x114   : > { %4501 = vmatpush1.bf16.msra.mxu1 %v5867_v17  ;;  %v5952_v17 = vld [vmem:[%s7316_s10 + $0x7a0] ss:$8 sps:$4 sm:$0xff]  }
 0x115   : > { %4747 = vmatpush1.bf16.msra.mxu0 %v5868_v18  ;;  %4502 = vmatprep.subr.bf16.mxu1 %v5869_v19  ;;  %v5957_v18 = vld [vmem:[%s7316_s10 + $0x1b4] ss:$8 sps:$4 sm:$0xff]  }
 0x116   : > { %4748 = vmatprep.subr.bf16.mxu0 %v5871_v22  ;;  %v5960_v19 = vld [vmem:[%s7316_s10 + $0x7b4] ss:$8 sps:$4 sm:$0xff]   ;;  %v5955_v22 = vld [vmem:[%s7316_s10 + $0x1b0] ss:$8 sps:$4 sm:$0xff]  }
 0x118   : > { %4503 = vmatpush1.bf16.msra.mxu1 %v5873_v23  ;;  %v5958_v23 = vld [vmem:[%s7316_s10 + $0x7b0] ss:$8 sps:$4 sm:$0xff]  }
 0x119   : > { %4749 = vmatpush1.bf16.msra.mxu0 %v5874_v24  ;;  %4504 = vmatprep.subr.bf16.mxu1 %v5875_v25  ;;  %v5963_v24 = vld [vmem:[%s7316_s10 + $0x1c4] ss:$8 sps:$4 sm:$0xff]  }
 0x11a   : > { %4750 = vmatprep.subr.bf16.mxu0 %v5877_v27  ;;  %v5966_v25 = vld [vmem:[%s7316_s10 + $0x7c4] ss:$8 sps:$4 sm:$0xff]   ;;  %v5961_v27 = vld [vmem:[%s7316_s10 + $0x1c0] ss:$8 sps:$4 sm:$0xff]  }
 0x11c   : > { %4505 = vmatpush1.bf16.msra.mxu1 %v5879_v28  ;;  %v5964_v28 = vld [vmem:[%s7316_s10 + $0x7c0] ss:$8 sps:$4 sm:$0xff]  }
 0x11d   : > { %4751 = vmatpush1.bf16.msra.mxu0 %v5880_v29  ;;  %4506 = vmatprep.subr.bf16.mxu1 %v5881_v32  ;;  %v5969_v29 = vld [vmem:[%s7316_s10 + $0x1d4] ss:$8 sps:$4 sm:$0xff]  }
 0x11e   : > { %4752 = vmatprep.subr.bf16.mxu0 %v5883_v33  ;;  %v5972_v32 = vld [vmem:[%s7316_s10 + $0x7d4] ss:$8 sps:$4 sm:$0xff]   ;;  %v5967_v33 = vld [vmem:[%s7316_s10 + $0x1d0] ss:$8 sps:$4 sm:$0xff]  }
 0x120   : > { %4507 = vmatpush1.bf16.msra.mxu1 %v5885_v34  ;;  %v5970_v34 = vld [vmem:[%s7316_s10 + $0x7d0] ss:$8 sps:$4 sm:$0xff]  }
 0x121   : > { %4753 = vmatpush1.bf16.msra.mxu0 %v5886_v35  ;;  %4517 = vmatprep.subr.bf16.mxu1 %v5890_v36  ;;  %v5975_v35 = vld [vmem:[%s7316_s10 + $0x1e4] ss:$8 sps:$4 sm:$0xff]  }
 0x122   : > { %4763 = vmatprep.subr.bf16.mxu0 %v5894_v37  ;;  %v5978_v36 = vld [vmem:[%s7316_s10 + $0x7e4] ss:$8 sps:$4 sm:$0xff]   ;;  %v2290_v37 = vcombine.high %v7314_v21, %v7314_v21 }
 0x123   : > { %4509 = vmatmul.mubr.bf16.vlgmr.msra.gmra.mrb[0].mxu1 %v7410_v40  ;;  %v5987_v21 = vld [vmem:[%s7316_s10 + $0x204] ss:$8 sps:$4 sm:$0xff]  }
 0x124   : > { %4755 = vmatmul.mubr.bf16.vlgmr.msra.gmra.mrb[0].mxu0 %v7414_v43  ;;  %4518 = vmatpush1.bf16.msra.mxu1 %v5888_v38  ;;  %v5973_v38 = vld [vmem:[%s7316_s10 + $0x1e0] ss:$8 sps:$4 sm:$0xff]  }
 0x125   : > { %4764 = vmatpush1.bf16.msra.mxu0 %v5892_v39  ;;  %4519 = vmatprep.subr.bf16.mxu1 %v5897_v44  ;;  %v5976_v39 = vld [vmem:[%s7316_s10 + $0x7e0] ss:$8 sps:$4 sm:$0xff]   ;;  %v5981_v44 = vld [vmem:[%s7316_s10 + $0x1f4] ss:$8 sps:$4 sm:$0xff]  }
 0x126   : > { %4765 = vmatprep.subr.bf16.mxu0 %v5900_v45  ;;  %4549 = vmatprep.mubr.bf16.mxu1 %v2337_v46  ;;  %v5984_v45 = vld [vmem:[%s7316_s10 + $0x7f4] ss:$8 sps:$4 sm:$0xff]   ;;  %v7483_v46 = vrot.slane %v2290_v37, %v7321_v26  ;;  %v6051_v37 = vld [vmem:[%s7316_s10 + $0x2b0] ss:$8 sps:$4 sm:$0xff]  }
 0x127   : > { %4795 = vmatprep.mubr.bf16.mxu0 %v2387_v30  ;;  %v5979_v30 = vld [vmem:[%s7316_s10 + $0x1f0] ss:$8 sps:$4 sm:$0xff]  }
 0x128   : > { %4520 = vmatpush1.bf16.msra.mxu1 %v5895_v31  ;;  %v5982_v31 = vld [vmem:[%s7316_s10 + $0x7f0] ss:$8 sps:$4 sm:$0xff]  }
 0x129   : > { %4766 = vmatpush1.bf16.msra.mxu0 %v5898_v47  ;;  %4521 = vmatprep.subr.bf16.mxu1 %v5903_v48  ;;  %v5990_v47 = vld [vmem:[%s7316_s10 + $0x804] ss:$8 sps:$4 sm:$0xff]   ;;  %v2306_v48 = vcombine.high %v7483_v46, %v7483_v46 }
 0x12a   : > { %4767 = vmatprep.subr.bf16.mxu0 %v5906_v41  ;;  %v2335_v41 = vcombine.high %v7410_v40, %v7410_v40 }
 0x12b   : > { %v7505_v40 = vrot.slane %v2306_v48, %v7321_v26  ;;  %v6066_v48 = vld [vmem:[%s7316_s10 + $0x8d0] ss:$8 sps:$4 sm:$0xff]  }
 0x12c   : > { %4522 = vmatpush1.bf16.msra.mxu1 %v5901_v42  ;;  %v2385_v42 = vcombine.high %v7414_v43, %v7414_v43 }
 0x12d   : > { %4768 = vmatpush1.bf16.msra.mxu0 %v5904_v49  ;;  %4523 = vmatprep.subr.bf16.mxu1 %v5909_v50  ;;  %v5985_v49 = vld [vmem:[%s7316_s10 + $0x200] ss:$8 sps:$4 sm:$0xff]  }
 0x12e   : > { %4769 = vmatprep.subr.bf16.mxu0 %v5912_v51  ;;  %v5988_v50 = vld [vmem:[%s7316_s10 + $0x800] ss:$8 sps:$4 sm:$0xff]   ;;  %v5993_v51 = vld [vmem:[%s7316_s10 + $0x214] ss:$8 sps:$4 sm:$0xff]  }
 0x130   : > { %4524 = vmatpush1.bf16.msra.mxu1 %v5907_v52  ;;  %v5996_v52 = vld [vmem:[%s7316_s10 + $0x814] ss:$8 sps:$4 sm:$0xff]  }
 0x131   : > { %4770 = vmatpush1.bf16.msra.mxu0 %v5910_v53  ;;  %4525 = vmatprep.subr.bf16.mxu1 %v5915_v54  ;;  %v7502_v53 = vld [vmem:[%s7871_s0 + $0x10] sm:$0xff] }
 0x132   : > { %4771 = vmatprep.subr.bf16.mxu0 %v5918_v55  ;;  %v7509_v43 = vrot.slane %v7502_v53, %v7321_v26  ;;  %v5991_v54 = vld [vmem:[%s7316_s10 + $0x210] ss:$8 sps:$4 sm:$0xff]  }
 0x133   : > { %v5994_v55 = vld [vmem:[%s7316_s10 + $0x810] ss:$8 sps:$4 sm:$0xff]  }
 0x134   : > { %4526 = vmatpush1.bf16.msra.mxu1 %v5913_v56  ;;  %v2403_v56 = vcombine.high %v7509_v43, %v7509_v43 }
 0x135   : > { %4772 = vmatpush1.bf16.msra.mxu0 %v5916_v57  ;;  %4527 = vmatprep.subr.bf16.mxu1 %v5921_v58  ;;  %v5999_v57 = vld [vmem:[%s7316_s10 + $0x224] ss:$8 sps:$4 sm:$0xff]  }
 0x136   : > { %4773 = vmatprep.subr.bf16.mxu0 %v5924_v59  ;;  %v6002_v58 = vld [vmem:[%s7316_s10 + $0x824] ss:$8 sps:$4 sm:$0xff]   ;;  %v7519_v59 = vrot.slane %v2403_v56, %v7321_v26 }
 0x137   : > { %v6083_v56 = vld [vmem:[%s7316_s10 + $0x304] ss:$8 sps:$4 sm:$0xff]  }
 0x138   : > { %4528 = vmatpush1.bf16.msra.mxu1 %v5919_v60  ;;  %v5997_v60 = vld [vmem:[%s7316_s10 + $0x220] ss:$8 sps:$4 sm:$0xff]  }
 0x139   : > { %4774 = vmatpush1.bf16.msra.mxu0 %v5922_v61  ;;  %4529 = vmatprep.subr.bf16.mxu1 %v5927_v62  ;;  %v6000_v61 = vld [vmem:[%s7316_s10 + $0x820] ss:$8 sps:$4 sm:$0xff]   ;;  %v6005_v62 = vld [vmem:[%s7316_s10 + $0x234] ss:$8 sps:$4 sm:$0xff]  }
 0x13a   : > { %4775 = vmatprep.subr.bf16.mxu0 %v5930_v63  ;;  %v6008_v63 = vld [vmem:[%s7316_s10 + $0x834] ss:$8 sps:$4 sm:$0xff]  }
 0x13c   : > { %4530 = vmatpush1.bf16.msra.mxu1 %v5925_v0  ;;  %v6003_v0 = vld [vmem:[%s7316_s10 + $0x230] ss:$8 sps:$4 sm:$0xff]  }
 0x13d   : > { %4776 = vmatpush1.bf16.msra.mxu0 %v5928_v1  ;;  %4531 = vmatprep.subr.bf16.mxu1 %v5933_v2  ;;  %v6006_v1 = vld [vmem:[%s7316_s10 + $0x830] ss:$8 sps:$4 sm:$0xff]   ;;  %v6011_v2 = vld [vmem:[%s7316_s10 + $0x244] ss:$8 sps:$4 sm:$0xff]  }
 0x13e   : > { %4777 = vmatprep.subr.bf16.mxu0 %v5936_v3  ;;  %v6014_v3 = vld [vmem:[%s7316_s10 + $0x844] ss:$8 sps:$4 sm:$0xff]  }
 0x140   : > { %4532 = vmatpush1.bf16.msra.mxu1 %v5931_v4  ;;  %v6009_v4 = vld [vmem:[%s7316_s10 + $0x240] ss:$8 sps:$4 sm:$0xff]  }
 0x141   : > { %4778 = vmatpush1.bf16.msra.mxu0 %v5934_v5  ;;  %4533 = vmatprep.subr.bf16.mxu1 %v5939_v6  ;;  %v6012_v5 = vld [vmem:[%s7316_s10 + $0x840] ss:$8 sps:$4 sm:$0xff]   ;;  %v6017_v6 = vld [vmem:[%s7316_s10 + $0x254] ss:$8 sps:$4 sm:$0xff]  }
 0x142   : > { %4779 = vmatprep.subr.bf16.mxu0 %v5942_v7  ;;  %v6020_v7 = vld [vmem:[%s7316_s10 + $0x854] ss:$8 sps:$4 sm:$0xff]  }
 0x144   : > { %4534 = vmatpush1.bf16.msra.mxu1 %v5937_v8  ;;  %v6015_v8 = vld [vmem:[%s7316_s10 + $0x250] ss:$8 sps:$4 sm:$0xff]  }
 0x145   : > { %4780 = vmatpush1.bf16.msra.mxu0 %v5940_v9  ;;  %4535 = vmatprep.subr.bf16.mxu1 %v5945_v10  ;;  %v6018_v9 = vld [vmem:[%s7316_s10 + $0x850] ss:$8 sps:$4 sm:$0xff]   ;;  %v6023_v10 = vld [vmem:[%s7316_s10 + $0x264] ss:$8 sps:$4 sm:$0xff]  }
 0x146   : > { %4781 = vmatprep.subr.bf16.mxu0 %v5948_v11  ;;  %v6026_v11 = vld [vmem:[%s7316_s10 + $0x864] ss:$8 sps:$4 sm:$0xff]  }
 0x148   : > { %4536 = vmatpush1.bf16.msra.mxu1 %v5943_v12  ;;  %v6021_v12 = vld [vmem:[%s7316_s10 + $0x260] ss:$8 sps:$4 sm:$0xff]  }
 0x149   : > { %4782 = vmatpush1.bf16.msra.mxu0 %v5946_v13  ;;  %4537 = vmatprep.subr.bf16.mxu1 %v5951_v14  ;;  %v6024_v13 = vld [vmem:[%s7316_s10 + $0x860] ss:$8 sps:$4 sm:$0xff]   ;;  %v6029_v14 = vld [vmem:[%s7316_s10 + $0x274] ss:$8 sps:$4 sm:$0xff]  }
 0x14a   : > { %4783 = vmatprep.subr.bf16.mxu0 %v5954_v15  ;;  %v6032_v15 = vld [vmem:[%s7316_s10 + $0x874] ss:$8 sps:$4 sm:$0xff]  }
 0x14c   : > { %4538 = vmatpush1.bf16.msra.mxu1 %v5949_v16  ;;  %v6027_v16 = vld [vmem:[%s7316_s10 + $0x270] ss:$8 sps:$4 sm:$0xff]  }
 0x14d   : > { %4784 = vmatpush1.bf16.msra.mxu0 %v5952_v17  ;;  %4539 = vmatprep.subr.bf16.mxu1 %v5957_v18  ;;  %v6030_v17 = vld [vmem:[%s7316_s10 + $0x870] ss:$8 sps:$4 sm:$0xff]   ;;  %v6035_v18 = vld [vmem:[%s7316_s10 + $0x284] ss:$8 sps:$4 sm:$0xff]  }
 0x14e   : > { %4785 = vmatprep.subr.bf16.mxu0 %v5960_v19  ;;  %v6038_v19 = vld [vmem:[%s7316_s10 + $0x884] ss:$8 sps:$4 sm:$0xff]  }
 0x150   : > { %4540 = vmatpush1.bf16.msra.mxu1 %v5955_v22  ;;  %v6033_v22 = vld [vmem:[%s7316_s10 + $0x280] ss:$8 sps:$4 sm:$0xff]  }
 0x151   : > { %4786 = vmatpush1.bf16.msra.mxu0 %v5958_v23  ;;  %4541 = vmatprep.subr.bf16.mxu1 %v5963_v24  ;;  %v6036_v23 = vld [vmem:[%s7316_s10 + $0x880] ss:$8 sps:$4 sm:$0xff]   ;;  %v6041_v24 = vld [vmem:[%s7316_s10 + $0x294] ss:$8 sps:$4 sm:$0xff]  }
 0x152   : > { %4787 = vmatprep.subr.bf16.mxu0 %v5966_v25  ;;  %v6044_v25 = vld [vmem:[%s7316_s10 + $0x894] ss:$8 sps:$4 sm:$0xff]  }
 0x154   : > { %4542 = vmatpush1.bf16.msra.mxu1 %v5961_v27  ;;  %v6039_v27 = vld [vmem:[%s7316_s10 + $0x290] ss:$8 sps:$4 sm:$0xff]  }
 0x155   : > { %4788 = vmatpush1.bf16.msra.mxu0 %v5964_v28  ;;  %4543 = vmatprep.subr.bf16.mxu1 %v5969_v29  ;;  %v6042_v28 = vld [vmem:[%s7316_s10 + $0x890] ss:$8 sps:$4 sm:$0xff]   ;;  %v6047_v29 = vld [vmem:[%s7316_s10 + $0x2a4] ss:$8 sps:$4 sm:$0xff]  }
 0x156   : > { %4789 = vmatprep.subr.bf16.mxu0 %v5972_v32  ;;  %v6050_v32 = vld [vmem:[%s7316_s10 + $0x8a4] ss:$8 sps:$4 sm:$0xff]  }
 0x158   : > { %4544 = vmatpush1.bf16.msra.mxu1 %v5967_v33  ;;  %v6045_v33 = vld [vmem:[%s7316_s10 + $0x2a0] ss:$8 sps:$4 sm:$0xff]  }
 0x159   : > { %4790 = vmatpush1.bf16.msra.mxu0 %v5970_v34  ;;  %4545 = vmatprep.subr.bf16.mxu1 %v5975_v35  ;;  %v6048_v34 = vld [vmem:[%s7316_s10 + $0x8a0] ss:$8 sps:$4 sm:$0xff]   ;;  %v6053_v35 = vld [vmem:[%s7316_s10 + $0x2b4] ss:$8 sps:$4 sm:$0xff]  }
 0x15a   : > { %4791 = vmatprep.subr.bf16.mxu0 %v5978_v36  ;;  %v6056_v36 = vld [vmem:[%s7316_s10 + $0x8b4] ss:$8 sps:$4 sm:$0xff]  }
 0x15c   : > { %4546 = vmatpush1.bf16.msra.mxu1 %v5973_v38  ;;  %v6054_v38 = vld [vmem:[%s7316_s10 + $0x8b0] ss:$8 sps:$4 sm:$0xff]  }
 0x15d   : > { %4792 = vmatpush1.bf16.msra.mxu0 %v5976_v39  ;;  %4547 = vmatprep.subr.bf16.mxu1 %v5981_v44  ;;  %v6059_v39 = vld [vmem:[%s7316_s10 + $0x2c4] ss:$8 sps:$4 sm:$0xff]  }
 0x15e   : > { %4793 = vmatprep.subr.bf16.mxu0 %v5984_v45  ;;  %v6062_v44 = vld [vmem:[%s7316_s10 + $0x8c4] ss:$8 sps:$4 sm:$0xff]   ;;  %v6057_v45 = vld [vmem:[%s7316_s10 + $0x2c0] ss:$8 sps:$4 sm:$0xff]  }
 0x160   : > { %4548 = vmatpush1.bf16.msra.mxu1 %v5979_v30  ;;  %v6060_v30 = vld [vmem:[%s7316_s10 + $0x8c0] ss:$8 sps:$4 sm:$0xff]  }
 0x161   : > { %4794 = vmatpush1.bf16.msra.mxu0 %v5982_v31  ;;  %4558 = vmatprep.subr.bf16.mxu1 %v5987_v21  ;;  %v6065_v31 = vld [vmem:[%s7316_s10 + $0x2d4] ss:$8 sps:$4 sm:$0xff]  }
 0x162   : > { %4804 = vmatprep.subr.bf16.mxu0 %v5990_v47  ;;  %v6068_v21 = vld [vmem:[%s7316_s10 + $0x8d4] ss:$8 sps:$4 sm:$0xff]   ;;  %v6063_v47 = vld [vmem:[%s7316_s10 + $0x2d0] ss:$8 sps:$4 sm:$0xff]  }
 0x163   : > { %4550 = vmatmul.mubr.bf16.vlgmr.msra.gmra.mrb[0].mxu1 %v2335_v41  ;;  %v6071_v41 = vld [vmem:[%s7316_s10 + $0x2e4] ss:$8 sps:$4 sm:$0xff]  }
 0x164   : > { %4796 = vmatmul.mubr.bf16.vlgmr.msra.gmra.mrb[0].mxu0 %v2385_v42  ;;  %4559 = vmatpush1.bf16.msra.mxu1 %v5985_v49  ;;  %v6074_v42 = vld [vmem:[%s7316_s10 + $0x8e4] ss:$8 sps:$4 sm:$0xff]   ;;  %v6069_v49 = vld [vmem:[%s7316_s10 + $0x2e0] ss:$8 sps:$4 sm:$0xff]  }
 0x165   : > { %4805 = vmatpush1.bf16.msra.mxu0 %v5988_v50  ;;  %4560 = vmatprep.subr.bf16.mxu1 %v5993_v51  ;;  %v6072_v50 = vld [vmem:[%s7316_s10 + $0x8e0] ss:$8 sps:$4 sm:$0xff]   ;;  %v6077_v51 = vld [vmem:[%s7316_s10 + $0x2f4] ss:$8 sps:$4 sm:$0xff]  }
 0x166   : > { %4806 = vmatprep.subr.bf16.mxu0 %v5996_v52  ;;  %4590 = vmatprep.mubr.bf16.mxu1 %v7505_v40  ;;  %v6080_v52 = vld [vmem:[%s7316_s10 + $0x8f4] ss:$8 sps:$4 sm:$0xff]  }
 0x167   : > { %4836 = vmatprep.mubr.bf16.mxu0 %v7519_v59 }
 0x168   : > { %4561 = vmatpush1.bf16.msra.mxu1 %v5991_v54  ;;  %v6075_v54 = vld [vmem:[%s7316_s10 + $0x2f0] ss:$8 sps:$4 sm:$0xff]  }
 0x169   : > { %4807 = vmatpush1.bf16.msra.mxu0 %v5994_v55  ;;  %4562 = vmatprep.subr.bf16.mxu1 %v5999_v57  ;;  %v6078_v55 = vld [vmem:[%s7316_s10 + $0x8f0] ss:$8 sps:$4 sm:$0xff]   ;;  %v6086_v57 = vld [vmem:[%s7316_s10 + $0x904] ss:$8 sps:$4 sm:$0xff]  }
 0x16a   : > { %4808 = vmatprep.subr.bf16.mxu0 %v6002_v58  ;;  %v6081_v58 = vld [vmem:[%s7316_s10 + $0x300] ss:$8 sps:$4 sm:$0xff]  }
 0x16c   : > { %4563 = vmatpush1.bf16.msra.mxu1 %v5997_v60  ;;  %v7581_v60 = vrot.slane %v7483_v46, %v7321_v26  ;;  %v2435_v46 = vcombine.high %v7519_v59, %v7519_v59  ;;  %v6093_v59 = vld [vmem:[%s7316_s10 + $0x320] ss:$8 sps:$4 sm:$0xff]  }
 0x16d   : > { %4809 = vmatpush1.bf16.msra.mxu0 %v6000_v61  ;;  %4564 = vmatprep.subr.bf16.mxu1 %v6005_v62  ;;  %v7585_v61 = vrot.slane %v7509_v43, %v7321_v26  ;;  %v6084_v62 = vld [vmem:[%s7316_s10 + $0x900] ss:$8 sps:$4 sm:$0xff]   ;;  %v6087_v43 = vld [vmem:[%s7316_s10 + $0x310] ss:$8 sps:$4 sm:$0xff]  }
 0x16e   : > { %4810 = vmatprep.subr.bf16.mxu0 %v6008_v63  ;;  %v6089_v63 = vld [vmem:[%s7316_s10 + $0x314] ss:$8 sps:$4 sm:$0xff]  }
 0x170   : > { %4565 = vmatpush1.bf16.msra.mxu1 %v6003_v0  ;;  %v6092_v0 = vld [vmem:[%s7316_s10 + $0x914] ss:$8 sps:$4 sm:$0xff]  }
 0x171   : > { %4811 = vmatpush1.bf16.msra.mxu0 %v6006_v1  ;;  %4566 = vmatprep.subr.bf16.mxu1 %v6011_v2  ;;  %v2338_v1 = vcombine.high %v7505_v40, %v7505_v40  ;;  %v6090_v2 = vld [vmem:[%s7316_s10 + $0x910] ss:$8 sps:$4 sm:$0xff]   ;;  %v6098_v40 = vld [vmem:[%s7316_s10 + $0x924] ss:$8 sps:$4 sm:$0xff]  }
 0x172   : > { %4812 = vmatprep.subr.bf16.mxu0 %v6014_v3  ;;  %v6095_v3 = vld [vmem:[%s7316_s10 + $0x324] ss:$8 sps:$4 sm:$0xff]  }
 0x174   : > { %4567 = vmatpush1.bf16.msra.mxu1 %v6009_v4  ;;  %v6096_v4 = vld [vmem:[%s7316_s10 + $0x920] ss:$8 sps:$4 sm:$0xff]  }
 0x175   : > { %4813 = vmatpush1.bf16.msra.mxu0 %v6012_v5  ;;  %4568 = vmatprep.subr.bf16.mxu1 %v6017_v6  ;;  %v6101_v5 = vld [vmem:[%s7316_s10 + $0x334] ss:$8 sps:$4 sm:$0xff]  }
 0x176   : > { %4814 = vmatprep.subr.bf16.mxu0 %v6020_v7  ;;  %v6104_v6 = vld [vmem:[%s7316_s10 + $0x934] ss:$8 sps:$4 sm:$0xff]   ;;  %v6099_v7 = vld [vmem:[%s7316_s10 + $0x330] ss:$8 sps:$4 sm:$0xff]  }
 0x178   : > { %4569 = vmatpush1.bf16.msra.mxu1 %v6015_v8  ;;  %v6102_v8 = vld [vmem:[%s7316_s10 + $0x930] ss:$8 sps:$4 sm:$0xff]  }
 0x179   : > { %4815 = vmatpush1.bf16.msra.mxu0 %v6018_v9  ;;  %4570 = vmatprep.subr.bf16.mxu1 %v6023_v10  ;;  %v6107_v9 = vld [vmem:[%s7316_s10 + $0x344] ss:$8 sps:$4 sm:$0xff]  }
 0x17a   : > { %4816 = vmatprep.subr.bf16.mxu0 %v6026_v11  ;;  %v6110_v10 = vld [vmem:[%s7316_s10 + $0x944] ss:$8 sps:$4 sm:$0xff]   ;;  %v6105_v11 = vld [vmem:[%s7316_s10 + $0x340] ss:$8 sps:$4 sm:$0xff]  }
 0x17c   : > { %4571 = vmatpush1.bf16.msra.mxu1 %v6021_v12  ;;  %v6108_v12 = vld [vmem:[%s7316_s10 + $0x940] ss:$8 sps:$4 sm:$0xff]  }
 0x17d   : > { %4817 = vmatpush1.bf16.msra.mxu0 %v6024_v13  ;;  %4572 = vmatprep.subr.bf16.mxu1 %v6029_v14  ;;  %v6113_v13 = vld [vmem:[%s7316_s10 + $0x354] ss:$8 sps:$4 sm:$0xff]  }
 0x17e   : > { %4818 = vmatprep.subr.bf16.mxu0 %v6032_v15  ;;  %v6116_v14 = vld [vmem:[%s7316_s10 + $0x954] ss:$8 sps:$4 sm:$0xff]   ;;  %v6111_v15 = vld [vmem:[%s7316_s10 + $0x350] ss:$8 sps:$4 sm:$0xff]  }
 0x180   : > { %4573 = vmatpush1.bf16.msra.mxu1 %v6027_v16  ;;  %v6114_v16 = vld [vmem:[%s7316_s10 + $0x950] ss:$8 sps:$4 sm:$0xff]  }
 0x181   : > { %4819 = vmatpush1.bf16.msra.mxu0 %v6030_v17  ;;  %4574 = vmatprep.subr.bf16.mxu1 %v6035_v18  ;;  %v6119_v17 = vld [vmem:[%s7316_s10 + $0x364] ss:$8 sps:$4 sm:$0xff]  }
 0x182   : > { %4820 = vmatprep.subr.bf16.mxu0 %v6038_v19  ;;  %v6122_v18 = vld [vmem:[%s7316_s10 + $0x964] ss:$8 sps:$4 sm:$0xff]   ;;  %v6117_v19 = vld [vmem:[%s7316_s10 + $0x360] ss:$8 sps:$4 sm:$0xff]  }
 0x184   : > { %4575 = vmatpush1.bf16.msra.mxu1 %v6033_v22  ;;  %v6120_v22 = vld [vmem:[%s7316_s10 + $0x960] ss:$8 sps:$4 sm:$0xff]  }
 0x185   : > { %4821 = vmatpush1.bf16.msra.mxu0 %v6036_v23  ;;  %4576 = vmatprep.subr.bf16.mxu1 %v6041_v24  ;;  %v6125_v23 = vld [vmem:[%s7316_s10 + $0x374] ss:$8 sps:$4 sm:$0xff]  }
 0x186   : > { %4822 = vmatprep.subr.bf16.mxu0 %v6044_v25  ;;  %v6128_v24 = vld [vmem:[%s7316_s10 + $0x974] ss:$8 sps:$4 sm:$0xff]   ;;  %v6123_v25 = vld [vmem:[%s7316_s10 + $0x370] ss:$8 sps:$4 sm:$0xff]  }
 0x188   : > { %4577 = vmatpush1.bf16.msra.mxu1 %v6039_v27  ;;  %v6126_v27 = vld [vmem:[%s7316_s10 + $0x970] ss:$8 sps:$4 sm:$0xff]  }
 0x189   : > { %4823 = vmatpush1.bf16.msra.mxu0 %v6042_v28  ;;  %4578 = vmatprep.subr.bf16.mxu1 %v6047_v29  ;;  %v6131_v28 = vld [vmem:[%s7316_s10 + $0x384] ss:$8 sps:$4 sm:$0xff]  }
 0x18a   : > { %4824 = vmatprep.subr.bf16.mxu0 %v6050_v32  ;;  %v6134_v29 = vld [vmem:[%s7316_s10 + $0x984] ss:$8 sps:$4 sm:$0xff]   ;;  %v6129_v32 = vld [vmem:[%s7316_s10 + $0x380] ss:$8 sps:$4 sm:$0xff]  }
 0x18c   : > { %4579 = vmatpush1.bf16.msra.mxu1 %v6045_v33  ;;  %v6132_v33 = vld [vmem:[%s7316_s10 + $0x980] ss:$8 sps:$4 sm:$0xff]  }
 0x18d   : > { %4825 = vmatpush1.bf16.msra.mxu0 %v6048_v34  ;;  %4580 = vmatprep.subr.bf16.mxu1 %v6053_v35  ;;  %v6137_v34 = vld [vmem:[%s7316_s10 + $0x394] ss:$8 sps:$4 sm:$0xff]  }
 0x18e   : > { %4826 = vmatprep.subr.bf16.mxu0 %v6056_v36  ;;  %v6140_v35 = vld [vmem:[%s7316_s10 + $0x994] ss:$8 sps:$4 sm:$0xff]   ;;  %v6135_v36 = vld [vmem:[%s7316_s10 + $0x390] ss:$8 sps:$4 sm:$0xff]  }
 0x190   : > { %4581 = vmatpush1.bf16.msra.mxu1 %v6051_v37  ;;  %v6138_v37 = vld [vmem:[%s7316_s10 + $0x990] ss:$8 sps:$4 sm:$0xff]  }
 0x191   : > { %4827 = vmatpush1.bf16.msra.mxu0 %v6054_v38  ;;  %4582 = vmatprep.subr.bf16.mxu1 %v6059_v39  ;;  %v6143_v38 = vld [vmem:[%s7316_s10 + $0x3a4] ss:$8 sps:$4 sm:$0xff]  }
 0x192   : > { %4828 = vmatprep.subr.bf16.mxu0 %v6062_v44  ;;  %v6146_v39 = vld [vmem:[%s7316_s10 + $0x9a4] ss:$8 sps:$4 sm:$0xff]   ;;  %v6141_v44 = vld [vmem:[%s7316_s10 + $0x3a0] ss:$8 sps:$4 sm:$0xff]  }
 0x194   : > { %4583 = vmatpush1.bf16.msra.mxu1 %v6057_v45  ;;  %v6144_v45 = vld [vmem:[%s7316_s10 + $0x9a0] ss:$8 sps:$4 sm:$0xff]  }
 0x195   : > { %4829 = vmatpush1.bf16.msra.mxu0 %v6060_v30  ;;  %4584 = vmatprep.subr.bf16.mxu1 %v6065_v31  ;;  %v6149_v30 = vld [vmem:[%s7316_s10 + $0x3b4] ss:$8 sps:$4 sm:$0xff]  }
 0x196   : > { %4830 = vmatprep.subr.bf16.mxu0 %v6068_v21  ;;  %v6152_v31 = vld [vmem:[%s7316_s10 + $0x9b4] ss:$8 sps:$4 sm:$0xff]   ;;  %v6147_v21 = vld [vmem:[%s7316_s10 + $0x3b0] ss:$8 sps:$4 sm:$0xff]  }
 0x198   : > { %4585 = vmatpush1.bf16.msra.mxu1 %v6063_v47  ;;  %v6150_v47 = vld [vmem:[%s7316_s10 + $0x9b0] ss:$8 sps:$4 sm:$0xff]  }
 0x199   : > { %4831 = vmatpush1.bf16.msra.mxu0 %v6066_v48  ;;  %4586 = vmatprep.subr.bf16.mxu1 %v6071_v41  ;;  %v6155_v48 = vld [vmem:[%s7316_s10 + $0x3c4] ss:$8 sps:$4 sm:$0xff]  }
 0x19a   : > { %4832 = vmatprep.subr.bf16.mxu0 %v6074_v42  ;;  %v6158_v41 = vld [vmem:[%s7316_s10 + $0x9c4] ss:$8 sps:$4 sm:$0xff]   ;;  %v6153_v42 = vld [vmem:[%s7316_s10 + $0x3c0] ss:$8 sps:$4 sm:$0xff]  }
 0x19c   : > { %4587 = vmatpush1.bf16.msra.mxu1 %v6069_v49  ;;  %v6156_v49 = vld [vmem:[%s7316_s10 + $0x9c0] ss:$8 sps:$4 sm:$0xff]  }
 0x19d   : > { %4833 = vmatpush1.bf16.msra.mxu0 %v6072_v50  ;;  %4588 = vmatprep.subr.bf16.mxu1 %v6077_v51  ;;  %v6161_v50 = vld [vmem:[%s7316_s10 + $0x3d4] ss:$8 sps:$4 sm:$0xff]  }
 0x19e   : > { %4834 = vmatprep.subr.bf16.mxu0 %v6080_v52  ;;  %v6164_v51 = vld [vmem:[%s7316_s10 + $0x9d4] ss:$8 sps:$4 sm:$0xff]   ;;  %v6159_v52 = vld [vmem:[%s7316_s10 + $0x3d0] ss:$8 sps:$4 sm:$0xff]  }
 0x1a0   : > { %4589 = vmatpush1.bf16.msra.mxu1 %v6075_v54  ;;  %v6162_v54 = vld [vmem:[%s7316_s10 + $0x9d0] ss:$8 sps:$4 sm:$0xff]  }
 0x1a1   : > { %4835 = vmatpush1.bf16.msra.mxu0 %v6078_v55  ;;  %4599 = vmatprep.subr.bf16.mxu1 %v6083_v56  ;;  %v6167_v55 = vld [vmem:[%s7316_s10 + $0x3e4] ss:$8 sps:$4 sm:$0xff]  }
 0x1a2   : > { %4845 = vmatprep.subr.bf16.mxu0 %v6086_v57  ;;  %v6170_v56 = vld [vmem:[%s7316_s10 + $0x9e4] ss:$8 sps:$4 sm:$0xff]   ;;  %v2388_v57 = vcombine.high %v7502_v53, %v7502_v53  ;;  %v6171_v53 = vld [vmem:[%s7316_s10 + $0x3f0] ss:$8 sps:$4 sm:$0xff]  }
 0x1a3   : > { %4591 = vmatmul.mubr.bf16.vlgmr.msra.gmra.mrb[0].mxu1 %v7581_v60 }
 0x1a4   : > { %4837 = vmatmul.mubr.bf16.vlgmr.msra.gmra.mrb[0].mxu0 %v7585_v61  ;;  %4600 = vmatpush1.bf16.msra.mxu1 %v6081_v58  ;;  %v6165_v58 = vld [vmem:[%s7316_s10 + $0x3e0] ss:$8 sps:$4 sm:$0xff]  }
 0x1a5   : > { %4846 = vmatpush1.bf16.msra.mxu0 %v6084_v62  ;;  %4601 = vmatprep.subr.bf16.mxu1 %v6089_v63  ;;  %v6168_v62 = vld [vmem:[%s7316_s10 + $0x9e0] ss:$8 sps:$4 sm:$0xff]   ;;  %v6173_v63 = vld [vmem:[%s7316_s10 + $0x3f4] ss:$8 sps:$4 sm:$0xff]  }
 0x1a6   : > { %4847 = vmatprep.subr.bf16.mxu0 %v6092_v0  ;;  %4631 = vmatprep.mubr.bf16.mxu1 %v2338_v1  ;;  %v6176_v0 = vld [vmem:[%s7316_s10 + $0x9f4] ss:$8 sps:$4 sm:$0xff]   ;;  %v7657_v1 = vld.sshfl [vmem:[%s7871_s0 + $0x8] sm:$0xff pattern:$0x75316420] }
 0x1a7   : > { %4877 = vmatprep.mubr.bf16.mxu0 %v2435_v46  ;;  %v7660_v46 = vrot.slane %v2388_v57, %v7321_v26  ;;  %v6246_v57 = vld [vmem:[%s7316_s10 + $0xab0] ss:$8 sps:$4 sm:$0xff]  }
 0x1a8   : > { %4602 = vmatpush1.bf16.msra.mxu1 %v6087_v43  ;;  %v6174_v43 = vld [vmem:[%s7316_s10 + $0x9f0] ss:$8 sps:$4 sm:$0xff]  }
 0x1a9   : > { %4848 = vmatpush1.bf16.msra.mxu0 %v6090_v2  ;;  %4603 = vmatprep.subr.bf16.mxu1 %v6095_v3  ;;  %v6179_v2 = vld [vmem:[%s7316_s10 + $0x404] ss:$8 sps:$4 sm:$0xff]  }
 0x1aa   : > { %4849 = vmatprep.subr.bf16.mxu0 %v6098_v40  ;;  %v6182_v3 = vld [vmem:[%s7316_s10 + $0xa04] ss:$8 sps:$4 sm:$0xff]   ;;  %v6177_v40 = vld [vmem:[%s7316_s10 + $0x400] ss:$8 sps:$4 sm:$0xff]  }
 0x1ac   : > { %4604 = vmatpush1.bf16.msra.mxu1 %v6093_v59  ;;  %v2354_v59 = vcombine.high %v7657_v1, %v7657_v1 }
 0x1ad   : > { %4850 = vmatpush1.bf16.msra.mxu0 %v6096_v4  ;;  %4605 = vmatprep.subr.bf16.mxu1 %v6101_v5  ;;  %v2404_v4 = vcombine.high %v7660_v46, %v7660_v46  ;;  %v6180_v5 = vld [vmem:[%s7316_s10 + $0xa00] ss:$8 sps:$4 sm:$0xff]  }
 0x1ae   : > { %4851 = vmatprep.subr.bf16.mxu0 %v6104_v6  ;;  %v2336_v6 = vcombine.high %v7581_v60, %v7581_v60 }
 0x1af   : > { %v7684_v60 = vrot.slane %v2404_v4, %v7321_v26  ;;  %v6261_v4 = vld [vmem:[%s7316_s10 + $0x4e0] ss:$8 sps:$4 sm:$0xff]  }
 0x1b0   : > { %4606 = vmatpush1.bf16.msra.mxu1 %v6099_v7  ;;  %v2433_v7 = vcombine.high %v7585_v61, %v7585_v61  ;;  %v6191_v61 = vld [vmem:[%s7316_s10 + $0x424] ss:$8 sps:$4 sm:$0xff]  }
 0x1b1   : > { %4852 = vmatpush1.bf16.msra.mxu0 %v6102_v8  ;;  %4607 = vmatprep.subr.bf16.mxu1 %v6107_v9  ;;  %v6185_v8 = vld [vmem:[%s7316_s10 + $0x414] ss:$8 sps:$4 sm:$0xff]  }
 0x1b2   : > { %4853 = vmatprep.subr.bf16.mxu0 %v6110_v10  ;;  %v6188_v9 = vld [vmem:[%s7316_s10 + $0xa14] ss:$8 sps:$4 sm:$0xff]   ;;  %v6183_v10 = vld [vmem:[%s7316_s10 + $0x410] ss:$8 sps:$4 sm:$0xff]  }
 0x1b4   : > { %4608 = vmatpush1.bf16.msra.mxu1 %v6105_v11  ;;  %v6186_v11 = vld [vmem:[%s7316_s10 + $0xa10] ss:$8 sps:$4 sm:$0xff]  }
 0x1b5   : > { %4854 = vmatpush1.bf16.msra.mxu0 %v6108_v12  ;;  %4609 = vmatprep.subr.bf16.mxu1 %v6113_v13  ;;  %v7681_v12 = vrot.slane %v2354_v59, %v7321_v26  ;;  %v6194_v13 = vld [vmem:[%s7316_s10 + $0xa24] ss:$8 sps:$4 sm:$0xff]  }
 0x1b6   : > { %4855 = vmatprep.subr.bf16.mxu0 %v6116_v14  ;;  %v6189_v14 = vld [vmem:[%s7316_s10 + $0x420] ss:$8 sps:$4 sm:$0xff]   ;;  %v6266_v59 = vld [vmem:[%s7316_s10 + $0xae4] ss:$8 sps:$4 sm:$0xff]  }
 0x1b8   : > { %4610 = vmatpush1.bf16.msra.mxu1 %v6111_v15  ;;  %v6192_v15 = vld [vmem:[%s7316_s10 + $0xa20] ss:$8 sps:$4 sm:$0xff]  }
 0x1b9   : > { %4856 = vmatpush1.bf16.msra.mxu0 %v6114_v16  ;;  %4611 = vmatprep.subr.bf16.mxu1 %v6119_v17  ;;  %v6197_v16 = vld [vmem:[%s7316_s10 + $0x434] ss:$8 sps:$4 sm:$0xff]  }
 0x1ba   : > { %4857 = vmatprep.subr.bf16.mxu0 %v6122_v18  ;;  %v6200_v17 = vld [vmem:[%s7316_s10 + $0xa34] ss:$8 sps:$4 sm:$0xff]   ;;  %v6195_v18 = vld [vmem:[%s7316_s10 + $0x430] ss:$8 sps:$4 sm:$0xff]  }
 0x1bc   : > { %4612 = vmatpush1.bf16.msra.mxu1 %v6117_v19  ;;  %v6198_v19 = vld [vmem:[%s7316_s10 + $0xa30] ss:$8 sps:$4 sm:$0xff]  }
 0x1bd   : > { %4858 = vmatpush1.bf16.msra.mxu0 %v6120_v22  ;;  %4613 = vmatprep.subr.bf16.mxu1 %v6125_v23  ;;  %v6203_v22 = vld [vmem:[%s7316_s10 + $0x444] ss:$8 sps:$4 sm:$0xff]  }
 0x1be   : > { %4859 = vmatprep.subr.bf16.mxu0 %v6128_v24  ;;  %v6206_v23 = vld [vmem:[%s7316_s10 + $0xa44] ss:$8 sps:$4 sm:$0xff]   ;;  %v6201_v24 = vld [vmem:[%s7316_s10 + $0x440] ss:$8 sps:$4 sm:$0xff]  }
 0x1c0   : > { %4614 = vmatpush1.bf16.msra.mxu1 %v6123_v25  ;;  %v6204_v25 = vld [vmem:[%s7316_s10 + $0xa40] ss:$8 sps:$4 sm:$0xff]  }
 0x1c1   : > { %4860 = vmatpush1.bf16.msra.mxu0 %v6126_v27  ;;  %4615 = vmatprep.subr.bf16.mxu1 %v6131_v28  ;;  %v6209_v27 = vld [vmem:[%s7316_s10 + $0x454] ss:$8 sps:$4 sm:$0xff]  }
 0x1c2   : > { %4861 = vmatprep.subr.bf16.mxu0 %v6134_v29  ;;  %v6212_v28 = vld [vmem:[%s7316_s10 + $0xa54] ss:$8 sps:$4 sm:$0xff]   ;;  %v6207_v29 = vld [vmem:[%s7316_s10 + $0x450] ss:$8 sps:$4 sm:$0xff]  }
 0x1c4   : > { %4616 = vmatpush1.bf16.msra.mxu1 %v6129_v32  ;;  %v6210_v32 = vld [vmem:[%s7316_s10 + $0xa50] ss:$8 sps:$4 sm:$0xff]  }
 0x1c5   : > { %4862 = vmatpush1.bf16.msra.mxu0 %v6132_v33  ;;  %4617 = vmatprep.subr.bf16.mxu1 %v6137_v34  ;;  %v6215_v33 = vld [vmem:[%s7316_s10 + $0x464] ss:$8 sps:$4 sm:$0xff]  }
 0x1c6   : > { %4863 = vmatprep.subr.bf16.mxu0 %v6140_v35  ;;  %v6218_v34 = vld [vmem:[%s7316_s10 + $0xa64] ss:$8 sps:$4 sm:$0xff]   ;;  %v6213_v35 = vld [vmem:[%s7316_s10 + $0x460] ss:$8 sps:$4 sm:$0xff]  }
 0x1c8   : > { %4618 = vmatpush1.bf16.msra.mxu1 %v6135_v36  ;;  %v6216_v36 = vld [vmem:[%s7316_s10 + $0xa60] ss:$8 sps:$4 sm:$0xff]  }
 0x1c9   : > { %4864 = vmatpush1.bf16.msra.mxu0 %v6138_v37  ;;  %4619 = vmatprep.subr.bf16.mxu1 %v6143_v38  ;;  %v6221_v37 = vld [vmem:[%s7316_s10 + $0x474] ss:$8 sps:$4 sm:$0xff]  }
 0x1ca   : > { %4865 = vmatprep.subr.bf16.mxu0 %v6146_v39  ;;  %v6224_v38 = vld [vmem:[%s7316_s10 + $0xa74] ss:$8 sps:$4 sm:$0xff]   ;;  %v6219_v39 = vld [vmem:[%s7316_s10 + $0x470] ss:$8 sps:$4 sm:$0xff]  }
 0x1cc   : > { %4620 = vmatpush1.bf16.msra.mxu1 %v6141_v44  ;;  %v6222_v44 = vld [vmem:[%s7316_s10 + $0xa70] ss:$8 sps:$4 sm:$0xff]  }
 0x1cd   : > { %4866 = vmatpush1.bf16.msra.mxu0 %v6144_v45  ;;  %4621 = vmatprep.subr.bf16.mxu1 %v6149_v30  ;;  %v6227_v45 = vld [vmem:[%s7316_s10 + $0x484] ss:$8 sps:$4 sm:$0xff]  }
 0x1ce   : > { %4867 = vmatprep.subr.bf16.mxu0 %v6152_v31  ;;  %v6230_v30 = vld [vmem:[%s7316_s10 + $0xa84] ss:$8 sps:$4 sm:$0xff]   ;;  %v6225_v31 = vld [vmem:[%s7316_s10 + $0x480] ss:$8 sps:$4 sm:$0xff]  }
 0x1d0   : > { %4622 = vmatpush1.bf16.msra.mxu1 %v6147_v21  ;;  %v6228_v21 = vld [vmem:[%s7316_s10 + $0xa80] ss:$8 sps:$4 sm:$0xff]  }
 0x1d1   : > { %4868 = vmatpush1.bf16.msra.mxu0 %v6150_v47  ;;  %4623 = vmatprep.subr.bf16.mxu1 %v6155_v48  ;;  %v6233_v47 = vld [vmem:[%s7316_s10 + $0x494] ss:$8 sps:$4 sm:$0xff]  }
 0x1d2   : > { %4869 = vmatprep.subr.bf16.mxu0 %v6158_v41  ;;  %v6236_v48 = vld [vmem:[%s7316_s10 + $0xa94] ss:$8 sps:$4 sm:$0xff]   ;;  %v6231_v41 = vld [vmem:[%s7316_s10 + $0x490] ss:$8 sps:$4 sm:$0xff]  }
 0x1d4   : > { %4624 = vmatpush1.bf16.msra.mxu1 %v6153_v42  ;;  %v6234_v42 = vld [vmem:[%s7316_s10 + $0xa90] ss:$8 sps:$4 sm:$0xff]  }
 0x1d5   : > { %4870 = vmatpush1.bf16.msra.mxu0 %v6156_v49  ;;  %4625 = vmatprep.subr.bf16.mxu1 %v6161_v50  ;;  %v6239_v49 = vld [vmem:[%s7316_s10 + $0x4a4] ss:$8 sps:$4 sm:$0xff]  }
 0x1d6   : > { %4871 = vmatprep.subr.bf16.mxu0 %v6164_v51  ;;  %v6242_v50 = vld [vmem:[%s7316_s10 + $0xaa4] ss:$8 sps:$4 sm:$0xff]   ;;  %v6237_v51 = vld [vmem:[%s7316_s10 + $0x4a0] ss:$8 sps:$4 sm:$0xff]  }
 0x1d8   : > { %4626 = vmatpush1.bf16.msra.mxu1 %v6159_v52  ;;  %v6240_v52 = vld [vmem:[%s7316_s10 + $0xaa0] ss:$8 sps:$4 sm:$0xff]  }
 0x1d9   : > { %4872 = vmatpush1.bf16.msra.mxu0 %v6162_v54  ;;  %4627 = vmatprep.subr.bf16.mxu1 %v6167_v55  ;;  %v6245_v54 = vld [vmem:[%s7316_s10 + $0x4b4] ss:$8 sps:$4 sm:$0xff]  }
 0x1da   : > { %4873 = vmatprep.subr.bf16.mxu0 %v6170_v56  ;;  %v6248_v55 = vld [vmem:[%s7316_s10 + $0xab4] ss:$8 sps:$4 sm:$0xff]   ;;  %v6243_v56 = vld [vmem:[%s7316_s10 + $0x4b0] ss:$8 sps:$4 sm:$0xff]  }
 0x1dc   : > { %4628 = vmatpush1.bf16.msra.mxu1 %v6165_v58  ;;  %v6251_v58 = vld [vmem:[%s7316_s10 + $0x4c4] ss:$8 sps:$4 sm:$0xff]  }
 0x1dd   : > { %4874 = vmatpush1.bf16.msra.mxu0 %v6168_v62  ;;  %4629 = vmatprep.subr.bf16.mxu1 %v6173_v63  ;;  %v6254_v62 = vld [vmem:[%s7316_s10 + $0xac4] ss:$8 sps:$4 sm:$0xff]   ;;  %v6249_v63 = vld [vmem:[%s7316_s10 + $0x4c0] ss:$8 sps:$4 sm:$0xff]  }
 0x1de   : > { %4875 = vmatprep.subr.bf16.mxu0 %v6176_v0  ;;  %v6252_v0 = vld [vmem:[%s7316_s10 + $0xac0] ss:$8 sps:$4 sm:$0xff]  }
 0x1e0   : > { %4630 = vmatpush1.bf16.msra.mxu1 %v6171_v53  ;;  %v6257_v53 = vld [vmem:[%s7316_s10 + $0x4d4] ss:$8 sps:$4 sm:$0xff]  }
 0x1e1   : > { %4876 = vmatpush1.bf16.msra.mxu0 %v6174_v43  ;;  %4640 = vmatprep.subr.bf16.mxu1 %v6179_v2  ;;  %v6260_v43 = vld [vmem:[%s7316_s10 + $0xad4] ss:$8 sps:$4 sm:$0xff]   ;;  %v6255_v2 = vld [vmem:[%s7316_s10 + $0x4d0] ss:$8 sps:$4 sm:$0xff]  }
 0x1e2   : > { %4886 = vmatprep.subr.bf16.mxu0 %v6182_v3  ;;  %v6258_v3 = vld [vmem:[%s7316_s10 + $0xad0] ss:$8 sps:$4 sm:$0xff]  }
 0x1e3   : > { %4632 = vmatmul.mubr.bf16.vlgmr.msra.gmra.mrb[0].mxu1 %v2336_v6  ;;  %v6269_v6 = vld [vmem:[%s7316_s10 + $0x4f4] ss:$8 sps:$4 sm:$0xff]  }
 0x1e4   : > { %4878 = vmatmul.mubr.bf16.vlgmr.msra.gmra.mrb[0].mxu0 %v2433_v7  ;;  %4641 = vmatpush1.bf16.msra.mxu1 %v6177_v40  ;;  %v6263_v40 = vld [vmem:[%s7316_s10 + $0x4e4] ss:$8 sps:$4 sm:$0xff]   ;;  %v6272_v7 = vld [vmem:[%s7316_s10 + $0xaf4] ss:$8 sps:$4 sm:$0xff]  }
 0x1e5   : > { %4887 = vmatpush1.bf16.msra.mxu0 %v6180_v5  ;;  %4642 = vmatprep.subr.bf16.mxu1 %v6185_v8  ;;  %v6264_v5 = vld [vmem:[%s7316_s10 + $0xae0] ss:$8 sps:$4 sm:$0xff]   ;;  %v6267_v8 = vld [vmem:[%s7316_s10 + $0x4f0] ss:$8 sps:$4 sm:$0xff]  }
 0x1e6   : > { %4888 = vmatprep.subr.bf16.mxu0 %v6188_v9  ;;  %4672 = vmatprep.mubr.bf16.mxu1 %v7681_v12  ;;  %v6270_v9 = vld [vmem:[%s7316_s10 + $0xaf0] ss:$8 sps:$4 sm:$0xff]  }
 0x1e7   : > { %4918 = vmatprep.mubr.bf16.mxu0 %v7684_v60 }
 0x1e8   : > { %4643 = vmatpush1.bf16.msra.mxu1 %v6183_v10  ;;  %v6275_v10 = vld [vmem:[%s7316_s10 + $0x504] ss:$8 sps:$4 sm:$0xff]  }
 0x1e9   : > { %4889 = vmatpush1.bf16.msra.mxu0 %v6186_v11  ;;  %4644 = vmatprep.subr.bf16.mxu1 %v6191_v61  ;;  %v6279_v11 = vld [vmem:[%s7316_s10 + $0xb04] ss:$8 sps:$4 sm:$0xff]   ;;  %v7748_v61 = vrot.slane %v7657_v1, %v7321_v26  ;;  %v2386_v1 = vcombine.high %v7681_v12, %v7681_v12 }
 0x1ea   : > { %4890 = vmatprep.subr.bf16.mxu0 %v6194_v13  ;;  %v7752_v13 = vrot.slane %v7660_v46, %v7321_v26  ;;  %v6280_v46 = vld [vmem:[%s7316_s10 + $0x510] ss:$8 sps:$4 sm:$0xff]   ;;  %v6288_v12 = vld [vmem:[%s7316_s10 + $0x524] ss:$8 sps:$4 sm:$0xff]  }
 0x1ec   : > { %4645 = vmatpush1.bf16.msra.mxu1 %v6189_v14  ;;  %v6273_v14 = vld [vmem:[%s7316_s10 + $0x500] ss:$8 sps:$4 sm:$0xff]  }
 0x1ed   : > { %4891 = vmatpush1.bf16.msra.mxu0 %v6192_v15  ;;  %4646 = vmatprep.subr.bf16.mxu1 %v6197_v16  ;;  %v6277_v15 = vld [vmem:[%s7316_s10 + $0xb00] ss:$8 sps:$4 sm:$0xff]   ;;  %v6282_v16 = vld [vmem:[%s7316_s10 + $0x514] ss:$8 sps:$4 sm:$0xff]  }
 0x1ee   : > { %4892 = vmatprep.subr.bf16.mxu0 %v6200_v17  ;;  %v6285_v17 = vld [vmem:[%s7316_s10 + $0xb14] ss:$8 sps:$4 sm:$0xff]  }
 0x1f0   : > { %4647 = vmatpush1.bf16.msra.mxu1 %v6195_v18  ;;  %v2436_v18 = vcombine.high %v7684_v60, %v7684_v60  ;;  %v6286_v60 = vld [vmem:[%s7316_s10 + $0x520] ss:$8 sps:$4 sm:$0xff]  }
 0x1f1   : > { %4893 = vmatpush1.bf16.msra.mxu0 %v6198_v19  ;;  %4648 = vmatprep.subr.bf16.mxu1 %v6203_v22  ;;  %v6283_v19 = vld [vmem:[%s7316_s10 + $0xb10] ss:$8 sps:$4 sm:$0xff]   ;;  %v6291_v22 = vld [vmem:[%s7316_s10 + $0xb24] ss:$8 sps:$4 sm:$0xff]  }
 0x1f2   : > { %4894 = vmatprep.subr.bf16.mxu0 %v6206_v23  ;;  %v6289_v23 = vld [vmem:[%s7316_s10 + $0xb20] ss:$8 sps:$4 sm:$0xff]  }
 0x1f4   : > { %4649 = vmatpush1.bf16.msra.mxu1 %v6201_v24  ;;  %v6294_v24 = vld [vmem:[%s7316_s10 + $0x534] ss:$8 sps:$4 sm:$0xff]  }
 0x1f5   : > { %4895 = vmatpush1.bf16.msra.mxu0 %v6204_v25  ;;  %4650 = vmatprep.subr.bf16.mxu1 %v6209_v27  ;;  %v6297_v25 = vld [vmem:[%s7316_s10 + $0xb34] ss:$8 sps:$4 sm:$0xff]   ;;  %v6292_v27 = vld [vmem:[%s7316_s10 + $0x530] ss:$8 sps:$4 sm:$0xff]  }
 0x1f6   : > { %4896 = vmatprep.subr.bf16.mxu0 %v6212_v28  ;;  %v6295_v28 = vld [vmem:[%s7316_s10 + $0xb30] ss:$8 sps:$4 sm:$0xff]  }
 0x1f8   : > { %4651 = vmatpush1.bf16.msra.mxu1 %v6207_v29  ;;  %v6300_v29 = vld [vmem:[%s7316_s10 + $0x544] ss:$8 sps:$4 sm:$0xff]  }
 0x1f9   : > { %4897 = vmatpush1.bf16.msra.mxu0 %v6210_v32  ;;  %4652 = vmatprep.subr.bf16.mxu1 %v6215_v33  ;;  %v6303_v32 = vld [vmem:[%s7316_s10 + $0xb44] ss:$8 sps:$4 sm:$0xff]   ;;  %v6298_v33 = vld [vmem:[%s7316_s10 + $0x540] ss:$8 sps:$4 sm:$0xff]  }
 0x1fa   : > { %4898 = vmatprep.subr.bf16.mxu0 %v6218_v34  ;;  %v6301_v34 = vld [vmem:[%s7316_s10 + $0xb40] ss:$8 sps:$4 sm:$0xff]  }
 0x1fc   : > { %4653 = vmatpush1.bf16.msra.mxu1 %v6213_v35  ;;  %v6306_v35 = vld [vmem:[%s7316_s10 + $0x554] ss:$8 sps:$4 sm:$0xff]  }
 0x1fd   : > { %4899 = vmatpush1.bf16.msra.mxu0 %v6216_v36  ;;  %4654 = vmatprep.subr.bf16.mxu1 %v6221_v37  ;;  %v6309_v36 = vld [vmem:[%s7316_s10 + $0xb54] ss:$8 sps:$4 sm:$0xff]   ;;  %v6304_v37 = vld [vmem:[%s7316_s10 + $0x550] ss:$8 sps:$4 sm:$0xff]  }
 0x1fe   : > { %4900 = vmatprep.subr.bf16.mxu0 %v6224_v38  ;;  %v6307_v38 = vld [vmem:[%s7316_s10 + $0xb50] ss:$8 sps:$4 sm:$0xff]  }
 0x200   : > { %4655 = vmatpush1.bf16.msra.mxu1 %v6219_v39  ;;  %v6312_v39 = vld [vmem:[%s7316_s10 + $0x564] ss:$8 sps:$4 sm:$0xff]  }
 0x201   : > { %4901 = vmatpush1.bf16.msra.mxu0 %v6222_v44  ;;  %4656 = vmatprep.subr.bf16.mxu1 %v6227_v45  ;;  %v6315_v44 = vld [vmem:[%s7316_s10 + $0xb64] ss:$8 sps:$4 sm:$0xff]   ;;  %v6310_v45 = vld [vmem:[%s7316_s10 + $0x560] ss:$8 sps:$4 sm:$0xff]  }
 0x202   : > { %4902 = vmatprep.subr.bf16.mxu0 %v6230_v30  ;;  %v6313_v30 = vld [vmem:[%s7316_s10 + $0xb60] ss:$8 sps:$4 sm:$0xff]  }
 0x204   : > { %4657 = vmatpush1.bf16.msra.mxu1 %v6225_v31  ;;  %v6318_v31 = vld [vmem:[%s7316_s10 + $0x574] ss:$8 sps:$4 sm:$0xff]  }
 0x205   : > { %4903 = vmatpush1.bf16.msra.mxu0 %v6228_v21  ;;  %4658 = vmatprep.subr.bf16.mxu1 %v6233_v47  ;;  %v6321_v21 = vld [vmem:[%s7316_s10 + $0xb74] ss:$8 sps:$4 sm:$0xff]   ;;  %v6316_v47 = vld [vmem:[%s7316_s10 + $0x570] ss:$8 sps:$4 sm:$0xff]  }
 0x206   : > { %4904 = vmatprep.subr.bf16.mxu0 %v6236_v48  ;;  %v6319_v48 = vld [vmem:[%s7316_s10 + $0xb70] ss:$8 sps:$4 sm:$0xff]  }
 0x208   : > { %4659 = vmatpush1.bf16.msra.mxu1 %v6231_v41  ;;  %v6324_v41 = vld [vmem:[%s7316_s10 + $0x584] ss:$8 sps:$4 sm:$0xff]  }
 0x209   : > { %4905 = vmatpush1.bf16.msra.mxu0 %v6234_v42  ;;  %4660 = vmatprep.subr.bf16.mxu1 %v6239_v49  ;;  %v6327_v42 = vld [vmem:[%s7316_s10 + $0xb84] ss:$8 sps:$4 sm:$0xff]   ;;  %v6322_v49 = vld [vmem:[%s7316_s10 + $0x580] ss:$8 sps:$4 sm:$0xff]  }
 0x20a   : > { %4906 = vmatprep.subr.bf16.mxu0 %v6242_v50  ;;  %v6325_v50 = vld [vmem:[%s7316_s10 + $0xb80] ss:$8 sps:$4 sm:$0xff]  }
 0x20c   : > { %4661 = vmatpush1.bf16.msra.mxu1 %v6237_v51  ;;  %v6330_v51 = vld [vmem:[%s7316_s10 + $0x594] ss:$8 sps:$4 sm:$0xff]  }
 0x20d   : > { %4907 = vmatpush1.bf16.msra.mxu0 %v6240_v52  ;;  %4662 = vmatprep.subr.bf16.mxu1 %v6245_v54  ;;  %v6333_v52 = vld [vmem:[%s7316_s10 + $0xb94] ss:$8 sps:$4 sm:$0xff]   ;;  %v6328_v54 = vld [vmem:[%s7316_s10 + $0x590] ss:$8 sps:$4 sm:$0xff]  }
 0x20e   : > { %4908 = vmatprep.subr.bf16.mxu0 %v6248_v55  ;;  %v6331_v55 = vld [vmem:[%s7316_s10 + $0xb90] ss:$8 sps:$4 sm:$0xff]  }
 0x210   : > { %4663 = vmatpush1.bf16.msra.mxu1 %v6243_v56  ;;  %v6336_v56 = vld [vmem:[%s7316_s10 + $0x5a4] ss:$8 sps:$4 sm:$0xff]  }
 0x211   : > { %4909 = vmatpush1.bf16.msra.mxu0 %v6246_v57  ;;  %4664 = vmatprep.subr.bf16.mxu1 %v6251_v58  ;;  %v6339_v57 = vld [vmem:[%s7316_s10 + $0xba4] ss:$8 sps:$4 sm:$0xff]   ;;  %v6334_v58 = vld [vmem:[%s7316_s10 + $0x5a0] ss:$8 sps:$4 sm:$0xff]  }
 0x212   : > { %4910 = vmatprep.subr.bf16.mxu0 %v6254_v62  ;;  %v6337_v62 = vld [vmem:[%s7316_s10 + $0xba0] ss:$8 sps:$4 sm:$0xff]  }
 0x214   : > { %4665 = vmatpush1.bf16.msra.mxu1 %v6249_v63  ;;  %v6342_v63 = vld [vmem:[%s7316_s10 + $0x5b4] ss:$8 sps:$4 sm:$0xff]  }
 0x215   : > { %4911 = vmatpush1.bf16.msra.mxu0 %v6252_v0  ;;  %4666 = vmatprep.subr.bf16.mxu1 %v6257_v53  ;;  %v6345_v0 = vld [vmem:[%s7316_s10 + $0xbb4] ss:$8 sps:$4 sm:$0xff]   ;;  %v6340_v53 = vld [vmem:[%s7316_s10 + $0x5b0] ss:$8 sps:$4 sm:$0xff]  }
 0x216   : > { %4912 = vmatprep.subr.bf16.mxu0 %v6260_v43  ;;  %v6343_v43 = vld [vmem:[%s7316_s10 + $0xbb0] ss:$8 sps:$4 sm:$0xff]  }
 0x218   : > { %4667 = vmatpush1.bf16.msra.mxu1 %v6255_v2  ;;  %v6348_v2 = vld [vmem:[%s7316_s10 + $0x5c4] ss:$8 sps:$4 sm:$0xff]  }
 0x219   : > { %4913 = vmatpush1.bf16.msra.mxu0 %v6258_v3  ;;  %4668 = vmatprep.subr.bf16.mxu1 %v6263_v40  ;;  %v6351_v3 = vld [vmem:[%s7316_s10 + $0xbc4] ss:$8 sps:$4 sm:$0xff]   ;;  %v6346_v40 = vld [vmem:[%s7316_s10 + $0x5c0] ss:$8 sps:$4 sm:$0xff]  }
 0x21a   : > { %4914 = vmatprep.subr.bf16.mxu0 %v6266_v59  ;;  %v6349_v59 = vld [vmem:[%s7316_s10 + $0xbc0] ss:$8 sps:$4 sm:$0xff]  }
 0x21c   : > { %4669 = vmatpush1.bf16.msra.mxu1 %v6261_v4  ;;  %v6354_v4 = vld [vmem:[%s7316_s10 + $0x5d4] ss:$8 sps:$4 sm:$0xff]  }
 0x21d   : > { %4915 = vmatpush1.bf16.msra.mxu0 %v6264_v5  ;;  %4670 = vmatprep.subr.bf16.mxu1 %v6269_v6  ;;  %v6357_v5 = vld [vmem:[%s7316_s10 + $0xbd4] ss:$8 sps:$4 sm:$0xff]   ;;  %v6352_v6 = vld [vmem:[%s7316_s10 + $0x5d0] ss:$8 sps:$4 sm:$0xff]  }
 0x21e   : > { %4916 = vmatprep.subr.bf16.mxu0 %v6272_v7  ;;  %v6355_v7 = vld [vmem:[%s7316_s10 + $0xbd0] ss:$8 sps:$4 sm:$0xff]  }
 0x220   : > { %4671 = vmatpush1.bf16.msra.mxu1 %v6267_v8  ;;  %v6360_v8 = vld [vmem:[%s7316_s10 + $0x5e4] ss:$8 sps:$4 sm:$0xff]  }
 0x221   : > { %4917 = vmatpush1.bf16.msra.mxu0 %v6270_v9  ;;  %4681 = vmatprep.subr.bf16.mxu1 %v6275_v10  ;;  %v6363_v9 = vld [vmem:[%s7316_s10 + $0xbe4] ss:$8 sps:$4 sm:$0xff]   ;;  %v6358_v10 = vld [vmem:[%s7316_s10 + $0x5e0] ss:$8 sps:$4 sm:$0xff]  }
 0x222   : > { %4927 = vmatprep.subr.bf16.mxu0 %v6279_v11  ;;  %v6361_v11 = vld [vmem:[%s7316_s10 + $0xbe0] ss:$8 sps:$4 sm:$0xff]  }
 0x223   : > { %4673 = vmatmul.mubr.bf16.vlgmr.msra.gmra.mrb[0].mxu1 %v7748_v61 }
 0x224   : > { %4919 = vmatmul.mubr.bf16.vlgmr.msra.gmra.mrb[0].mxu0 %v7752_v13  ;;  %4682 = vmatpush1.bf16.msra.mxu1 %v6273_v14  ;;  %v6366_v14 = vld [vmem:[%s7316_s10 + $0x5f4] ss:$8 sps:$4 sm:$0xff]  }
 0x225   : > { %4928 = vmatpush1.bf16.msra.mxu0 %v6277_v15  ;;  %4683 = vmatprep.subr.bf16.mxu1 %v6282_v16  ;;  %v6369_v15 = vld [vmem:[%s7316_s10 + $0xbf4] ss:$8 sps:$4 sm:$0xff]   ;;  %v6364_v16 = vld [vmem:[%s7316_s10 + $0x5f0] ss:$8 sps:$4 sm:$0xff]  }
 0x226   : > { %4929 = vmatprep.subr.bf16.mxu0 %v6285_v17  ;;  %4713 = vmatprep.mubr.bf16.mxu1 %v2386_v1  ;;  %v6367_v17 = vld [vmem:[%s7316_s10 + $0xbf0] ss:$8 sps:$4 sm:$0xff]   ;;  %v6372_v1 = vld [vmem:[%s7316_s10 + $0xc04] ss:$8 sps:$4 sm:$0xff]  }
 0x227   : > { %4959 = vmatprep.mubr.bf16.mxu0 %v2436_v18  ;;  %v2384_v18 = vcombine.high %v7748_v61, %v7748_v61  ;;  %v6378_v61 = vld [vmem:[%s7316_s10 + $0xc24] ss:$8 sps:$4 sm:$0xff]  }
 0x228   : > { %4684 = vmatpush1.bf16.msra.mxu1 %v6280_v46  ;;  %v2434_v46 = vcombine.high %v7752_v13, %v7752_v13  ;;  %v6376_v13 = vld [vmem:[%s7316_s10 + $0xc20] ss:$8 sps:$4 sm:$0xff]  }
 0x229   : > { %4930 = vmatpush1.bf16.msra.mxu0 %v6283_v19  ;;  %4685 = vmatprep.subr.bf16.mxu1 %v6288_v12  ;;  %v6370_v19 = vld [vmem:[%s7316_s10 + $0xc00] ss:$8 sps:$4 sm:$0xff]   ;;  %v6375_v12 = vld [vmem:[%s7316_s10 + $0xc14] ss:$8 sps:$4 sm:$0xff]  }
 0x22a   : > { %4931 = vmatprep.subr.bf16.mxu0 %v6291_v22  ;;  %v6373_v22 = vld [vmem:[%s7316_s10 + $0xc10] ss:$8 sps:$4 sm:$0xff]  }
 0x22c   : > { %4686 = vmatpush1.bf16.msra.mxu1 %v6286_v60  ;;  %v6437_v60 = vmov 0  }
 0x22d   : > { %4932 = vmatpush1.bf16.msra.mxu0 %v6289_v23  ;;  %4687 = vmatprep.subr.bf16.mxu1 %v6294_v24  ;;  %v6381_v23 = vld [vmem:[%s7316_s10 + $0xc34] ss:$8 sps:$4 sm:$0xff]   ;;  %v6379_v24 = vld [vmem:[%s7316_s10 + $0xc30] ss:$8 sps:$4 sm:$0xff]  }
 0x22e   : > { %4933 = vmatprep.subr.bf16.mxu0 %v6297_v25  ;;  %v6384_v25 = vld [vmem:[%s7316_s10 + $0xc44] ss:$8 sps:$4 sm:$0xff]  }
 0x230   : > { %4688 = vmatpush1.bf16.msra.mxu1 %v6292_v27  ;;  %v6382_v27 = vld [vmem:[%s7316_s10 + $0xc40] ss:$8 sps:$4 sm:$0xff]  }
 0x231   : > { %4934 = vmatpush1.bf16.msra.mxu0 %v6295_v28  ;;  %4689 = vmatprep.subr.bf16.mxu1 %v6300_v29  ;;  %v6387_v28 = vld [vmem:[%s7316_s10 + $0xc54] ss:$8 sps:$4 sm:$0xff]   ;;  %v6385_v29 = vld [vmem:[%s7316_s10 + $0xc50] ss:$8 sps:$4 sm:$0xff]  }
 0x232   : > { %4935 = vmatprep.subr.bf16.mxu0 %v6303_v32  ;;  %v6390_v32 = vld [vmem:[%s7316_s10 + $0xc64] ss:$8 sps:$4 sm:$0xff]  }
 0x234   : > { %4690 = vmatpush1.bf16.msra.mxu1 %v6298_v33  ;;  %v6388_v33 = vld [vmem:[%s7316_s10 + $0xc60] ss:$8 sps:$4 sm:$0xff]  }
 0x235   : > { %4936 = vmatpush1.bf16.msra.mxu0 %v6301_v34  ;;  %4691 = vmatprep.subr.bf16.mxu1 %v6306_v35  ;;  %v6393_v34 = vld [vmem:[%s7316_s10 + $0xc74] ss:$8 sps:$4 sm:$0xff]   ;;  %v6391_v35 = vld [vmem:[%s7316_s10 + $0xc70] ss:$8 sps:$4 sm:$0xff]  }
 0x236   : > { %4937 = vmatprep.subr.bf16.mxu0 %v6309_v36  ;;  %v5273_v36 = vld.sshfl [vmem:[%s7871_s0 + $0x18] sm:$0x1 pattern:$0x75316420] }
 0x238   : > { %4692 = vmatpush1.bf16.msra.mxu1 %v6304_v37  ;;  %v2450_v37 = vrot.slane %v5273_v36, %v7321_v26  ;;  %v6399_v26 = vld [vmem:[%s1863_s25 + $0x10] sm:$0xff]  }
 0x239   : > { %4938 = vmatpush1.bf16.msra.mxu0 %v6307_v38  ;;  %4693 = vmatprep.subr.bf16.mxu1 %v6312_v39  ;;  %v6394_v38 = vld [vmem:[%s1863_s25 + $0x40] sm:$0xff]  }
 0x23a   : > { %4939 = vmatprep.subr.bf16.mxu0 %v6315_v44  ;;  %v6395_v39 = vld [vmem:[%s1863_s25] sm:$0xff]   ;;  %v6396_v44 = vld [vmem:[%s1863_s25 + $0x48] sm:$0xff]  }
 0x23c   : > { %4694 = vmatpush1.bf16.msra.mxu1 %v6310_v45  ;;  %v6397_v45 = vld [vmem:[%s1863_s25 + $0x8] sm:$0xff]  }
 0x23d   : > { %4940 = vmatpush1.bf16.msra.mxu0 %v6313_v30  ;;  %4695 = vmatprep.subr.bf16.mxu1 %v6318_v31  ;;  %v6398_v30 = vld [vmem:[%s1863_s25 + $0x50] sm:$0xff]   ;;  %v6400_v31 = vld [vmem:[%s1863_s25 + $0x58] sm:$0xff]  }
 0x23e   : > { %4941 = vmatprep.subr.bf16.mxu0 %v6321_v21  ;;  %v6401_v21 = vld [vmem:[%s1863_s25 + $0x18] sm:$0xff]  }
 0x240   : > { %4696 = vmatpush1.bf16.msra.mxu1 %v6316_v47  ;;  %v6402_v47 = vld [vmem:[%s1863_s25 + $0x60] sm:$0xff]  }
 0x241   : > { %4942 = vmatpush1.bf16.msra.mxu0 %v6319_v48  ;;  %4697 = vmatprep.subr.bf16.mxu1 %v6324_v41  ;;  %v6403_v48 = vld [vmem:[%s1863_s25 + $0x20] sm:$0xff]   ;;  %v6404_v41 = vld [vmem:[%s1863_s25 + $0x68] sm:$0xff]  }
 0x242   : > { %4943 = vmatprep.subr.bf16.mxu0 %v6327_v42  ;;  %v6405_v42 = vld [vmem:[%s1863_s25 + $0x28] sm:$0xff]  }
 0x244   : > { %4698 = vmatpush1.bf16.msra.mxu1 %v6322_v49  ;;  %v6406_v49 = vld [vmem:[%s1863_s25 + $0x70] sm:$0xff]  }
 0x245   : > { %4944 = vmatpush1.bf16.msra.mxu0 %v6325_v50  ;;  %4699 = vmatprep.subr.bf16.mxu1 %v6330_v51  ;;  %v6407_v50 = vld [vmem:[%s1863_s25 + $0x30] sm:$0xff]   ;;  %v6408_v51 = vld [vmem:[%s1863_s25 + $0x78] sm:$0xff]  }
 0x246   : > { %4945 = vmatprep.subr.bf16.mxu0 %v6333_v52  ;;  %v6409_v52 = vld [vmem:[%s1863_s25 + $0x38] sm:$0xff]  }
 0x248   : > { %4700 = vmatpush1.bf16.msra.mxu1 %v6328_v54 }
 0x249   : > { %4946 = vmatpush1.bf16.msra.mxu0 %v6331_v55  ;;  %4701 = vmatprep.subr.bf16.mxu1 %v6336_v56 }
 0x24a   : > { %4947 = vmatprep.subr.bf16.mxu0 %v6339_v57 }
 0x24c   : > { %4702 = vmatpush1.bf16.msra.mxu1 %v6334_v58  ;;  %v2278_v58 = vsub.s32 0, %v7309_v20 }
 0x24d   : > { %4948 = vmatpush1.bf16.msra.mxu0 %v6337_v62  ;;  %4703 = vmatprep.subr.bf16.mxu1 %v6342_v63  ;;  %v2274_v62 = vld [vmem:[%s1857_s29] sm:$0x3]  ;;  %v2282_v63 = vsub.s32 1, %v7309_v20 }
 0x24e   : > { %4949 = vmatprep.subr.bf16.mxu0 %v6345_v0  ;;  %v2279_v0 = vrot.slane %v2274_v62, %v2278_v58 }
 0x250   : > { %4704 = vmatpush1.bf16.msra.mxu1 %v6340_v53  ;;  %v2283_v53 = vrot.slane %v2274_v62, %v2282_v63 }
 0x251   : > { %4950 = vmatpush1.bf16.msra.mxu0 %v6343_v43  ;;  %4705 = vmatprep.subr.bf16.mxu1 %v6348_v2 }
 0x252   : > { %4951 = vmatprep.subr.bf16.mxu0 %v6351_v3 }
 0x254   : > { %4706 = vmatpush1.bf16.msra.mxu1 %v6346_v40 }
 0x255   : > { %4952 = vmatpush1.bf16.msra.mxu0 %v6349_v59  ;;  %4707 = vmatprep.subr.bf16.mxu1 %v6354_v4 }
 0x256   : > { %4953 = vmatprep.subr.bf16.mxu0 %v6357_v5 }
 0x258   : > { %4708 = vmatpush1.bf16.msra.mxu1 %v6352_v6 }
 0x259   : > { %4954 = vmatpush1.bf16.msra.mxu0 %v6355_v7  ;;  %4709 = vmatprep.subr.bf16.mxu1 %v6360_v8 }
 0x25a   : > { %4955 = vmatprep.subr.bf16.mxu0 %v6363_v9 }
 0x25c   : > { %4710 = vmatpush1.bf16.msra.mxu1 %v6358_v10 }
 0x25d   : > { %4956 = vmatpush1.bf16.msra.mxu0 %v6361_v11  ;;  %4711 = vmatprep.subr.bf16.mxu1 %v6366_v14 }
 0x25e   : > { %4957 = vmatprep.subr.bf16.mxu0 %v6369_v15 }
 0x260   : > { %4712 = vmatpush1.bf16.msra.mxu1 %v6364_v16 }
 0x261   : > { %4958 = vmatpush1.bf16.msra.mxu0 %v6367_v17  ;;  %5693 = vmatprep.subr.bf16.mxu1 %v6394_v38 }
 0x262   : > { %4968 = vmatprep.subr.bf16.mxu0 %v6372_v1 }
 0x263   : > { %4714 = vmatmul.mubr.bf16.vlgmr.msra.gmra.mrb[0].mxu1 %v2384_v18 }
 0x264   : > { %4960 = vmatmul.mubr.bf16.vlgmr.msra.gmra.mrb[0].mxu0 %v2434_v46  ;;  %5694 = vmatpush3.bf16.msra.mxu1 %v6395_v39 }
 0x265   : > { %4969 = vmatpush1.bf16.msra.mxu0 %v6370_v19  ;;  %5000 = vmatprep.mubr.bf16.mxu0 %v6437_v60 }
 0x266   : > { %4970 = vmatprep.subr.bf16.mxu0 %v6375_v12  ;;  %5695 = vmatprep.subr.bf16.mxu1 %v6396_v44 }
 0x268   : > { %5696 = vmatpush3.bf16.msra.mxu1 %v6397_v45 }
 0x269   : > { %4971 = vmatpush1.bf16.msra.mxu0 %v6373_v22  ;;  %5697 = vmatprep.subr.bf16.mxu1 %v6398_v30 }
 0x26a   : > { %4972 = vmatprep.subr.bf16.mxu0 %v6378_v61 }
 0x26c   : > { %5698 = vmatpush3.bf16.msra.mxu1 %v6399_v26 }
 0x26d   : > { %4973 = vmatpush1.bf16.msra.mxu0 %v6376_v13  ;;  %5699 = vmatprep.subr.bf16.mxu1 %v6400_v31 }
 0x26e   : > { %4974 = vmatprep.subr.bf16.mxu0 %v6381_v23 }
 0x270   : > { %5700 = vmatpush3.bf16.msra.mxu1 %v6401_v21 }
 0x271   : > { %4975 = vmatpush1.bf16.msra.mxu0 %v6379_v24  ;;  %5701 = vmatprep.subr.bf16.mxu1 %v6402_v47 }
 0x272   : > { %4976 = vmatprep.subr.bf16.mxu0 %v6384_v25 }
 0x274   : > { %5702 = vmatpush3.bf16.msra.mxu1 %v6403_v48 }
 0x275   : > { %4977 = vmatpush1.bf16.msra.mxu0 %v6382_v27  ;;  %5703 = vmatprep.subr.bf16.mxu1 %v6404_v41 }
 0x276   : > { %4978 = vmatprep.subr.bf16.mxu0 %v6387_v28 }
 0x278   : > { %5704 = vmatpush3.bf16.msra.mxu1 %v6405_v42 }
 0x279   : > { %4979 = vmatpush1.bf16.msra.mxu0 %v6385_v29  ;;  %5705 = vmatprep.subr.bf16.mxu1 %v6406_v49 }
 0x27a   : > { %4980 = vmatprep.subr.bf16.mxu0 %v6390_v32 }
 0x27c   : > { %5706 = vmatpush3.bf16.msra.mxu1 %v6407_v50 }
 0x27d   : > { %4981 = vmatpush1.bf16.msra.mxu0 %v6388_v33  ;;  %5707 = vmatprep.subr.bf16.mxu1 %v6408_v51 }
 0x27e   : > { %4982 = vmatprep.subr.bf16.mxu0 %v6393_v34 }
 0x280   : > { %5708 = vmatpush3.bf16.msra.mxu1 %v6409_v52 }
 0x281   : > { %4983 = vmatpush1.bf16.msra.mxu0 %v6391_v35 }
 0x284   : > { %5001 = vmatmul.mubr.bf16.vlgmr.msra.gmra.mrb[0].mxu0 %v2450_v37 }
 0x336   : > { %v4715_v54 = vpop.f32.mrb[0].mxu1 }
 0x337   : > { %v4717_v55 = vpop.f32.mrb[1].mxu1  ;;  %v5715_v43 = vadd.f32 %v4715_v54, %v2279_v0 }
 0x338   : > { %v4719_v56 = vpop.f32.mrb[2].mxu1  ;;  %v5717_v2 = vadd.f32 %v4717_v55, %v2283_v53 }
 0x339   : > { %v4720_v57 = vpop.f32.mrb[3].mxu1 }
 0x357   : > { %v5002_v3 = vpop.f32.mrb[0].mxu0 }
 0x358   : > { %v5716_v40 = vadd.f32 %v5715_v43, %v5002_v3  ;;  %v5004_v59 = vpop.f32.mrb[1].mxu0 }
 0x359   : > { %v5718_v4 = vadd.f32 %v5717_v2, %v5004_v59  ;;  %v5006_v5 = vpop.f32.mrb[2].mxu0 }
 0x35a   : > { %v5009_v6 = vmax.f32 %v5716_v40, 0.0  ;;  %v5007_v7 = vpop.f32.mrb[3].mxu0 }
 0x35b   : > { %v5010_v8 = vmax.f32 %v5718_v4, 0.0 }
 0x35c   : > { %v5011_v10 = vpack.c.bf16 %v5009_v6, %v5009_v6 }
 0x35d   : > { %v5012_v9 = vpack.c.bf16 %v5010_v8, %v5010_v8 }
 0x35f   : > { %5173 = vmatprep.mubr.bf16.mxu1 %v5012_v9 }
 0x360   : > { %5174 = vmatmul.mubr.bf16.vlgmr.msra.gmra.mrb[4].mxu1 %v5011_v10 }
 0x433   : > { %v5709_v20 = vpop.f32.mrb[4].mxu1 }
 0x434   : > { %v5710_v11 = vpop.f32.mrb[5].mxu1 }
 0x435   : > { %v5711_v14 = vadd.f32 %v5710_v11, %v5709_v20  ;;  %v5712_v15 = vpop.f32.mrb[6].mxu1 }
 0x436   : > { %v5713_v16 = vpop.f32.mrb[7].mxu1 }
 0x437   : > { %5181 = vst [vmem:[%s1868_s7] sm:$0x3] %v5711_v14 }
 0x438 PF: > { %p11_p11 = scmp.ge.s32.totalorder %s6482_s19, 4   ;;  %s7876_s15 = smov %s6430_s16 }
 0x439   : > { %s7877_s16 = smov %s6491_s22  ;;  %s7878_s17 = smov %s6482_s19 }
 0x43a   :  { %13 = sbr.rel (!%p11_p11) target bundleno = 2 (0x2), region = 115 }

</bundles_post_ra>
